<compile_context>
chip_gen: v7x
topology: tpu7x:2x2x1
jax: 0.10.0
libtpu: 0.0.40
codegen_flags: <defaults>
</compile_context>

<pallas_src>
import jax
import jax.numpy as jnp
from jax import lax
from jax.experimental import pallas as pl
from jax.experimental.pallas import tpu as pltpu


_COMPILER_PARAMS = pltpu.CompilerParams(
    dimension_semantics=("parallel",),
    # Raised above the v5e default (16 MiB) but bounded below v7x's 64 MiB.
    vmem_limit_bytes=48 * 1024 * 1024,
)


def _bcast_spec(shape):
    nd = len(shape)
    return pl.BlockSpec(shape, lambda i: (0,) * nd)


# ----------------------------------------------------------------------------
# In-kernel helpers
# ----------------------------------------------------------------------------
def _im2col_3x3(xpad, hout, wout):
    """xpad: (hout+2, wout+2, C) -> (hout*wout, 9*C); tap order (dy, dx, c)."""
    c = xpad.shape[-1]
    taps = [xpad[dy:dy + hout, dx:dx + wout, :]
            for dy in range(3) for dx in range(3)]
    return jnp.concatenate(taps, axis=-1).reshape(hout * wout, 9 * c)


# ----------------------------------------------------------------------------
# Pallas kernels
# ----------------------------------------------------------------------------
def _make_pointwise_kernel(H, W, Cin, Cout):
    """1x1 conv (the stem): a single per-pixel MXU matmul."""
    def kernel(x_ref, w_ref, b_ref, o_ref):
        x = x_ref[0].astype(jnp.float32).reshape(H * W, Cin)
        y = jnp.dot(x.astype(jnp.bfloat16), w_ref[...],
                    preferred_element_type=jnp.float32) + b_ref[...]
        o_ref[0] = y.reshape(H, W, Cout).astype(o_ref.dtype)
    return kernel


def _make_block_kernel(H, W, Cin, Cout, has_shortcut):
    """Fused VQGANLayer: shortcut + conv1(relu-in) + conv2(relu-in) + residual."""
    He, We = H + 2, W + 2  # conv1 evaluated on a 1-px-halo extended grid

    def kernel(*refs):
        if has_shortcut:
            x_ref, w1_ref, b1_ref, w2_ref, b2_ref, wsc_ref, bsc_ref, o_ref = refs
        else:
            x_ref, w1_ref, b1_ref, w2_ref, b2_ref, o_ref = refs

        xp = x_ref[0].astype(jnp.float32)               # (H+4, W+4, Cin)

        # Shortcut path uses the pre-relu hidden state (interior of the pad).
        x_in = xp[2:2 + H, 2:2 + W, :].reshape(H * W, Cin)
        if has_shortcut:
            sc = jnp.dot(x_in.astype(jnp.bfloat16), wsc_ref[...],
                         preferred_element_type=jnp.float32) + bsc_ref[...]
        else:
            sc = x_in                                    # identity (Cin == Cout)

        # conv1 on relu(hidden): one (He*We, 9*Cin) x (9*Cin, Cout) matmul.
        xr = jnp.maximum(xp, 0.0)
        p1 = _im2col_3x3(xr, He, We).astype(jnp.bfloat16)
        t = jnp.dot(p1, w1_ref[...], preferred_element_type=jnp.float32)
        t = jnp.maximum(t + b1_ref[...], 0.0).reshape(He, We, Cout)

        # PyTorch zero-pads relu(t) for conv2; the halo ring of the extended
        # grid lies outside the image, so force it to exactly zero in VMEM.
        row = lax.broadcasted_iota(jnp.int32, (He, We, 1), 0)
        col = lax.broadcasted_iota(jnp.int32, (He, We, 1), 1)
        inside = (row >= 1) & (row <= H) & (col >= 1) & (col <= W)
        t = jnp.where(inside, t, 0.0)

        # conv2: one (H*W, 9*Cout) x (9*Cout, Cout) matmul + bias + residual.
        p2 = _im2col_3x3(t, H, W).astype(jnp.bfloat16)
        out = jnp.dot(p2, w2_ref[...], preferred_element_type=jnp.float32)
        out = out + b2_ref[...] + sc
        o_ref[0] = out.reshape(H, W, Cout).astype(o_ref.dtype)

    return kernel


def _make_head_kernel(H, W, Cin, Cout):
    """Head: 3x3 conv (fat im2col matmul) + bias + tanh."""
    def kernel(x_ref, w_ref, b_ref, o_ref):
        xp = x_ref[0].astype(jnp.float32)               # (H+2, W+2, Cin)
        p = _im2col_3x3(xp, H, W).astype(jnp.bfloat16)
        y = jnp.dot(p, w_ref[...], preferred_element_type=jnp.float32)
        y = jnp.tanh(y + b_ref[...])
        o_ref[0] = y.reshape(H, W, Cout).astype(o_ref.dtype)
    return kernel


# ----------------------------------------------------------------------------
# pallas_call wrappers
# ----------------------------------------------------------------------------
def _pointwise_conv(x, w, b):
    B, H, W, Cin = x.shape
    Cout = w.shape[-1]
    return pl.pallas_call(
        _make_pointwise_kernel(H, W, Cin, Cout),
        out_shape=jax.ShapeDtypeStruct((B, H, W, Cout), jnp.bfloat16),
        grid_spec=pltpu.PrefetchScalarGridSpec(
            num_scalar_prefetch=0,
            grid=(B,),
            in_specs=[pl.BlockSpec((1, H, W, Cin), lambda i: (i, 0, 0, 0)),
                      _bcast_spec(w.shape),
                      _bcast_spec(b.shape)],
            out_specs=pl.BlockSpec((1, H, W, Cout), lambda i: (i, 0, 0, 0)),
        ),
        compiler_params=_COMPILER_PARAMS,
    )(x, w, b)


def _residual_block(x, layer):
    B, H, W, Cin = x.shape
    Cout = layer["b1"].shape[-1]
    has_shortcut = "wsc" in layer
    # 2-pixel halo: enough for conv1 on the extended grid feeding conv2.
    xp = jnp.pad(x, ((0, 0), (2, 2), (2, 2), (0, 0)))

    args = [xp, layer["w1"], layer["b1"], layer["w2"], layer["b2"]]
    if has_shortcut:
        args += [layer["wsc"], layer["bsc"]]
    in_specs = [pl.BlockSpec((1, H + 4, W + 4, Cin), lambda i: (i, 0, 0, 0))]
    in_specs += [_bcast_spec(a.shape) for a in args[1:]]

    return pl.pallas_call(
        _make_block_kernel(H, W, Cin, Cout, has_shortcut),
        out_shape=jax.ShapeDtypeStruct((B, H, W, Cout), jnp.bfloat16),
        grid_spec=pltpu.PrefetchScalarGridSpec(
            num_scalar_prefetch=0,
            grid=(B,),
            in_specs=in_specs,
            out_specs=pl.BlockSpec((1, H, W, Cout), lambda i: (i, 0, 0, 0)),
        ),
        compiler_params=_COMPILER_PARAMS,
    )(*args)


def _head_conv(x, w, b):
    B, H, W, Cin = x.shape
    Cout = w.shape[-1]
    xp = jnp.pad(x, ((0, 0), (1, 1), (1, 1), (0, 0)))
    return pl.pallas_call(
        _make_head_kernel(H, W, Cin, Cout),
        out_shape=jax.ShapeDtypeStruct((B, H, W, Cout), jnp.float32),
        grid_spec=pltpu.PrefetchScalarGridSpec(
            num_scalar_prefetch=0,
            grid=(B,),
            in_specs=[pl.BlockSpec((1, H + 2, W + 2, Cin), lambda i: (i, 0, 0, 0)),
                      _bcast_spec(w.shape),
                      _bcast_spec(b.shape)],
            out_specs=pl.BlockSpec((1, H, W, Cout), lambda i: (i, 0, 0, 0)),
        ),
        compiler_params=_COMPILER_PARAMS,
    )(xp, w, b)


# ----------------------------------------------------------------------------
# Parameter initialization (deterministic, synthetic) and packing
# ----------------------------------------------------------------------------
def _conv_params(key, k, cin, cout, scale=0.1):
    kw, kb = jax.random.split(key)
    w = scale * jax.random.normal(kw, (k, k, cin, cout), jnp.float32)
    b = scale * jax.random.normal(kb, (cout,), jnp.float32)
    return w, b


def init_decoder_params(key, num_channels, num_embeddings, num_layers, hidden_dims):
    keys = iter(jax.random.split(key, 256))
    params = {}
    params["embeddings"] = 0.1 * jax.random.normal(
        next(keys), (num_embeddings, hidden_dims[0]), jnp.float32)
    params["stem_w"], params["stem_b"] = _conv_params(
        next(keys), 1, hidden_dims[0], hidden_dims[0])

    blocks = []
    input_dims = [hidden_dims[0]] + list(hidden_dims[:-1])
    for in_dim, out_dim, n_rep in zip(input_dims, hidden_dims, num_layers):
        stage = []
        for r in range(n_rep):
            cin = in_dim if r == 0 else out_dim
            layer = {}
            layer["conv1_w"], layer["conv1_b"] = _conv_params(next(keys), 3, cin, out_dim)
            layer["conv2_w"], layer["conv2_b"] = _conv_params(next(keys), 3, out_dim, out_dim)
            if cin != out_dim:
                layer["shortcut_w"], layer["shortcut_b"] = _conv_params(next(keys), 1, cin, out_dim)
            stage.append(layer)
        blocks.append(stage)
    params["blocks"] = blocks

    params["head_w"], params["head_b"] = _conv_params(
        next(keys), 3, hidden_dims[-1], num_channels)
    return params


def pack_decoder_params(params):
    """Pre-reshape conv weights to im2col layout and pre-cast to bf16."""
    def conv3x3(w):   # (3, 3, Cin, Cout) -> (9*Cin, Cout), rows ordered (dy, dx, ci)
        return w.reshape(-1, w.shape[-1]).astype(jnp.bfloat16)

    def conv1x1(w):   # (1, 1, Cin, Cout) -> (Cin, Cout)
        return w.reshape(w.shape[2], w.shape[3]).astype(jnp.bfloat16)

    def bias(b):
        return b.reshape(1, -1).astype(jnp.float32)

    packed = {
        "embeddings": params["embeddings"].astype(jnp.bfloat16),
        "stem_w": conv1x1(params["stem_w"]),
        "stem_b": bias(params["stem_b"]),
        "head_w": conv3x3(params["head_w"]),
        "head_b": bias(params["head_b"]),
        "blocks": [],
    }
    for stage in params["blocks"]:
        ps = []
        for layer in stage:
            d = {"w1": conv3x3(layer["conv1_w"]), "b1": bias(layer["conv1_b"]),
                 "w2": conv3x3(layer["conv2_w"]), "b2": bias(layer["conv2_b"])}
            if "shortcut_w" in layer:
                d["wsc"] = conv1x1(layer["shortcut_w"])
                d["bsc"] = bias(layer["shortcut_b"])
            ps.append(d)
        packed["blocks"].append(ps)
    return packed


# ----------------------------------------------------------------------------
# Decoder forward (Pallas kernels on the hot path)
# ----------------------------------------------------------------------------
def vqgan_decoder_forward(packed, latent_ids):
    # embedding lookup (glue); we stay NHWC internally, bf16 activations.
    h = jnp.take(packed["embeddings"], latent_ids, axis=0)       # (B, H, W, C0)
    h = _pointwise_conv(h, packed["stem_w"], packed["stem_b"])   # stem 1x1 conv

    n_stages = len(packed["blocks"])
    for i, stage in enumerate(packed["blocks"]):
        for layer in stage:
            h = _residual_block(h, layer)   # one fused pallas_call per VQGANLayer
        if i < n_stages - 1:
            # F.interpolate(scale_factor=2, mode='nearest')  (plain-JAX glue)
            h = jnp.repeat(jnp.repeat(h, 2, axis=1), 2, axis=2)

    out = _head_conv(h, packed["head_w"], packed["head_b"])      # 3x3 conv + tanh
    return jnp.transpose(out, (0, 3, 1, 2))                      # back to NCHW


# ----------------------------------------------------------------------------
# Pure-JAX f32 reference (PyTorch semantics) for correctness check
# ----------------------------------------------------------------------------
def _ref_conv(x, w, b, relu_in=False):
    if relu_in:
        x = jnp.maximum(x, 0.0)
    y = lax.conv_general_dilated(
        x, w, window_strides=(1, 1), padding="SAME",
        dimension_numbers=("NHWC", "HWIO", "NHWC"))
    return y + b.reshape(1, 1, 1, -1)


def ref_forward(params, latent_ids):
    h = jnp.take(params["embeddings"], latent_ids, axis=0)
    h = _ref_conv(h, params["stem_w"], params["stem_b"])
    n_stages = len(params["blocks"])
    for i, stage in enumerate(params["blocks"]):
        for layer in stage:
            if "shortcut_w" in layer:
                sc = _ref_conv(h, layer["shortcut_w"], layer["shortcut_b"])
            else:
                sc = h
            t = _ref_conv(h, layer["conv1_w"], layer["conv1_b"], relu_in=True)
            h = _ref_conv(t, layer["conv2_w"], layer["conv2_b"], relu_in=True) + sc
        if i < n_stages - 1:
            h = jnp.repeat(jnp.repeat(h, 2, axis=1), 2, axis=2)
    h = jnp.tanh(_ref_conv(h, params["head_w"], params["head_b"]))
    return jnp.transpose(h, (0, 3, 1, 2))


# ----------------------------------------------------------------------------
if __name__ == "__main__":
    # Small config consistent with VQGANDecoder(__init__) structure.
    num_channels = 3
    num_embeddings = 64
    num_layers = (2, 2)
    hidden_dims = (32, 16)

    key = jax.random.PRNGKey(0)
    kp, ki = jax.random.split(key)
    params = init_decoder_params(kp, num_channels, num_embeddings,
                                 num_layers, hidden_dims)
    packed = pack_decoder_params(params)

    B, Hl, Wl = 2, 4, 4
    latent_ids = jax.random.randint(ki, (B, Hl, Wl), 0, num_embeddings)

    fwd = jax.jit(vqgan_decoder_forward)
    out = jax.block_until_ready(fwd(packed, latent_ids))
    ref = jax.block_until_ready(jax.jit(ref_forward)(params, latent_ids))

    expected_shape = (B, num_channels, Hl * 2 ** (len(num_layers) - 1),
                      Wl * 2 ** (len(num_layers) - 1))
    assert out.shape == expected_shape, (out.shape, expected_shape)
    assert bool(jnp.all(jnp.isfinite(out)))
    max_err = float(jnp.max(jnp.abs(out - ref)))
    # Kernel runs bf16 matmul inputs / bf16 inter-layer activations with f32
    # accumulation, so compare against the f32 reference with a bf16 tolerance.
    assert jnp.allclose(out, ref, rtol=5e-2, atol=3e-2), max_err

    print("KERNEL_OK")
</pallas_src>

<mosaic_0001>
module attributes {stable_mosaic.version = 11 : i64} {
  func.func @kernel(%arg0: i32, %arg1: memref<1x8x8x32xbf16, #tpu.memory_space<vmem>>, %arg2: memref<288x32xbf16, #tpu.memory_space<vmem>>, %arg3: memref<1x32xf32, #tpu.memory_space<vmem>>, %arg4: memref<288x32xbf16, #tpu.memory_space<vmem>>, %arg5: memref<1x32xf32, #tpu.memory_space<vmem>>, %arg6: memref<1x4x4x32xbf16, #tpu.memory_space<vmem>>) attributes {dimension_semantics = [#tpu.dimension_semantics<parallel>], iteration_bounds = array<i64: 2>, scalar_prefetch = 0 : i64, scratch_operands = 0 : i64, tpu.core_type = #tpu.core_type<tc>, window_params = [{transform_indices = @transform_0, window_bounds = array<i64: 1, 8, 8, 32>}, {pipeline_mode = #tpu.pipeline_mode<synchronous>, transform_indices = @transform_1, window_bounds = array<i64: 288, 32>}, {pipeline_mode = #tpu.pipeline_mode<synchronous>, transform_indices = @transform_2, window_bounds = array<i64: 1, 32>}, {pipeline_mode = #tpu.pipeline_mode<synchronous>, transform_indices = @transform_3, window_bounds = array<i64: 288, 32>}, {pipeline_mode = #tpu.pipeline_mode<synchronous>, transform_indices = @transform_4, window_bounds = array<i64: 1, 32>}, {transform_indices = @transform_5, window_bounds = array<i64: 1, 4, 4, 32>}]} {
    %c0 = arith.constant 0 : index
    %c0_0 = arith.constant 0 : index
    %c0_1 = arith.constant 0 : index
    %c0_2 = arith.constant 0 : index
    %0 = vector.load %arg1[%c0, %c0_0, %c0_1, %c0_2] : memref<1x8x8x32xbf16, #tpu.memory_space<vmem>>, vector<1x8x8x32xbf16>
    %1 = vector.shape_cast %0 : vector<1x8x8x32xbf16> to vector<8x8x32xbf16>
    %2 = arith.extf %1 : vector<8x8x32xbf16> to vector<8x8x32xf32>
    %3 = vector.extract_strided_slice %2 {offsets = [2, 2, 0], sizes = [4, 4, 32], strides = [1, 1, 1]} : vector<8x8x32xf32> to vector<4x4x32xf32>
    %4 = vector.shape_cast %3 : vector<4x4x32xf32> to vector<16x32xf32>
    %cst = arith.constant 0.000000e+00 : f32
    %5 = vector.broadcast %cst : f32 to vector<8x8x32xf32>
    %6 = arith.maximumf %2, %5 : vector<8x8x32xf32>
    %7 = vector.extract_strided_slice %6 {offsets = [0, 0, 0], sizes = [6, 6, 32], strides = [1, 1, 1]} : vector<8x8x32xf32> to vector<6x6x32xf32>
    %8 = vector.extract_strided_slice %6 {offsets = [0, 1, 0], sizes = [6, 6, 32], strides = [1, 1, 1]} : vector<8x8x32xf32> to vector<6x6x32xf32>
    %9 = vector.extract_strided_slice %6 {offsets = [0, 2, 0], sizes = [6, 6, 32], strides = [1, 1, 1]} : vector<8x8x32xf32> to vector<6x6x32xf32>
    %10 = vector.extract_strided_slice %6 {offsets = [1, 0, 0], sizes = [6, 6, 32], strides = [1, 1, 1]} : vector<8x8x32xf32> to vector<6x6x32xf32>
    %11 = vector.extract_strided_slice %6 {offsets = [1, 1, 0], sizes = [6, 6, 32], strides = [1, 1, 1]} : vector<8x8x32xf32> to vector<6x6x32xf32>
    %12 = vector.extract_strided_slice %6 {offsets = [1, 2, 0], sizes = [6, 6, 32], strides = [1, 1, 1]} : vector<8x8x32xf32> to vector<6x6x32xf32>
    %13 = vector.extract_strided_slice %6 {offsets = [2, 0, 0], sizes = [6, 6, 32], strides = [1, 1, 1]} : vector<8x8x32xf32> to vector<6x6x32xf32>
    %14 = vector.extract_strided_slice %6 {offsets = [2, 1, 0], sizes = [6, 6, 32], strides = [1, 1, 1]} : vector<8x8x32xf32> to vector<6x6x32xf32>
    %15 = vector.extract_strided_slice %6 {offsets = [2, 2, 0], sizes = [6, 6, 32], strides = [1, 1, 1]} : vector<8x8x32xf32> to vector<6x6x32xf32>
    %16 = tpu.concatenate %7, %8, %9, %10, %11, %12, %13, %14, %15 in 2 : vector<6x6x32xf32>, vector<6x6x32xf32>, vector<6x6x32xf32>, vector<6x6x32xf32>, vector<6x6x32xf32>, vector<6x6x32xf32>, vector<6x6x32xf32>, vector<6x6x32xf32>, vector<6x6x32xf32> -> vector<6x6x288xf32>
    %17 = vector.shape_cast %16 : vector<6x6x288xf32> to vector<36x288xf32>
    %18 = arith.truncf %17 : vector<36x288xf32> to vector<36x288xbf16>
    %c0_3 = arith.constant 0 : index
    %c0_4 = arith.constant 0 : index
    %19 = vector.load %arg2[%c0_3, %c0_4] : memref<288x32xbf16, #tpu.memory_space<vmem>>, vector<288x32xbf16>
    %cst_5 = arith.constant dense<0.000000e+00> : vector<36x32xf32>
    %20 = tpu.matmul %18, %19, %cst_5 {dimension_numbers = #tpu.dot_dimension_numbers<[1], [0], [0], [1], [0, 0, 1, 1], [], []>} : vector<36x288xbf16>, vector<288x32xbf16>, vector<36x32xf32> -> vector<36x32xf32>
    %c0_6 = arith.constant 0 : index
    %c0_7 = arith.constant 0 : index
    %21 = vector.load %arg3[%c0_6, %c0_7] : memref<1x32xf32, #tpu.memory_space<vmem>>, vector<1x32xf32>
    %22 = vector.broadcast %21 : vector<1x32xf32> to vector<36x32xf32>
    %23 = arith.addf %20, %22 : vector<36x32xf32>
    %cst_8 = arith.constant 0.000000e+00 : f32
    %24 = vector.broadcast %cst_8 : f32 to vector<36x32xf32>
    %25 = arith.maximumf %23, %24 : vector<36x32xf32>
    %26 = vector.shape_cast %25 : vector<36x32xf32> to vector<6x6x32xf32>
    %27 = tpu.iota {dimensions = array<i32: 0>} : vector<6x6x1xi32>
    %28 = tpu.iota {dimensions = array<i32: 1>} : vector<6x6x1xi32>
    %c1_i32 = arith.constant 1 : i32
    %29 = vector.broadcast %c1_i32 : i32 to vector<6x6x1xi32>
    %30 = arith.cmpi sge, %27, %29 : vector<6x6x1xi32>
    %c4_i32 = arith.constant 4 : i32
    %31 = vector.broadcast %c4_i32 : i32 to vector<6x6x1xi32>
    %32 = arith.cmpi sle, %27, %31 : vector<6x6x1xi32>
    %33 = arith.andi %30, %32 : vector<6x6x1xi1>
    %c1_i32_9 = arith.constant 1 : i32
    %34 = vector.broadcast %c1_i32_9 : i32 to vector<6x6x1xi32>
    %35 = arith.cmpi sge, %28, %34 : vector<6x6x1xi32>
    %36 = arith.andi %33, %35 : vector<6x6x1xi1>
    %c4_i32_10 = arith.constant 4 : i32
    %37 = vector.broadcast %c4_i32_10 : i32 to vector<6x6x1xi32>
    %38 = arith.cmpi sle, %28, %37 : vector<6x6x1xi32>
    %39 = arith.andi %36, %38 : vector<6x6x1xi1>
    %cst_11 = arith.constant 0.000000e+00 : f32
    %40 = vector.shape_cast %39 : vector<6x6x1xi1> to vector<6x6x1xi1>
    %41 = vector.broadcast %40 : vector<6x6x1xi1> to vector<6x6x32xi1>
    %42 = vector.broadcast %cst_11 : f32 to vector<6x6x32xf32>
    %43 = arith.select %41, %26, %42 : vector<6x6x32xi1>, vector<6x6x32xf32>
    %44 = vector.extract_strided_slice %43 {offsets = [0, 0, 0], sizes = [4, 4, 32], strides = [1, 1, 1]} : vector<6x6x32xf32> to vector<4x4x32xf32>
    %45 = vector.extract_strided_slice %43 {offsets = [0, 1, 0], sizes = [4, 4, 32], strides = [1, 1, 1]} : vector<6x6x32xf32> to vector<4x4x32xf32>
    %46 = vector.extract_strided_slice %43 {offsets = [0, 2, 0], sizes = [4, 4, 32], strides = [1, 1, 1]} : vector<6x6x32xf32> to vector<4x4x32xf32>
    %47 = vector.extract_strided_slice %43 {offsets = [1, 0, 0], sizes = [4, 4, 32], strides = [1, 1, 1]} : vector<6x6x32xf32> to vector<4x4x32xf32>
    %48 = vector.extract_strided_slice %43 {offsets = [1, 1, 0], sizes = [4, 4, 32], strides = [1, 1, 1]} : vector<6x6x32xf32> to vector<4x4x32xf32>
    %49 = vector.extract_strided_slice %43 {offsets = [1, 2, 0], sizes = [4, 4, 32], strides = [1, 1, 1]} : vector<6x6x32xf32> to vector<4x4x32xf32>
    %50 = vector.extract_strided_slice %43 {offsets = [2, 0, 0], sizes = [4, 4, 32], strides = [1, 1, 1]} : vector<6x6x32xf32> to vector<4x4x32xf32>
    %51 = vector.extract_strided_slice %43 {offsets = [2, 1, 0], sizes = [4, 4, 32], strides = [1, 1, 1]} : vector<6x6x32xf32> to vector<4x4x32xf32>
    %52 = vector.extract_strided_slice %43 {offsets = [2, 2, 0], sizes = [4, 4, 32], strides = [1, 1, 1]} : vector<6x6x32xf32> to vector<4x4x32xf32>
    %53 = tpu.concatenate %44, %45, %46, %47, %48, %49, %50, %51, %52 in 2 : vector<4x4x32xf32>, vector<4x4x32xf32>, vector<4x4x32xf32>, vector<4x4x32xf32>, vector<4x4x32xf32>, vector<4x4x32xf32>, vector<4x4x32xf32>, vector<4x4x32xf32>, vector<4x4x32xf32> -> vector<4x4x288xf32>
    %54 = vector.shape_cast %53 : vector<4x4x288xf32> to vector<16x288xf32>
    %55 = arith.truncf %54 : vector<16x288xf32> to vector<16x288xbf16>
    %c0_12 = arith.constant 0 : index
    %c0_13 = arith.constant 0 : index
    %56 = vector.load %arg4[%c0_12, %c0_13] : memref<288x32xbf16, #tpu.memory_space<vmem>>, vector<288x32xbf16>
    %cst_14 = arith.constant dense<0.000000e+00> : vector<16x32xf32>
    %57 = tpu.matmul %55, %56, %cst_14 {dimension_numbers = #tpu.dot_dimension_numbers<[1], [0], [0], [1], [0, 0, 1, 1], [], []>} : vector<16x288xbf16>, vector<288x32xbf16>, vector<16x32xf32> -> vector<16x32xf32>
    %c0_15 = arith.constant 0 : index
    %c0_16 = arith.constant 0 : index
    %58 = vector.load %arg5[%c0_15, %c0_16] : memref<1x32xf32, #tpu.memory_space<vmem>>, vector<1x32xf32>
    %59 = vector.broadcast %58 : vector<1x32xf32> to vector<16x32xf32>
    %60 = arith.addf %57, %59 : vector<16x32xf32>
    %61 = arith.addf %60, %4 : vector<16x32xf32>
    %62 = vector.shape_cast %61 : vector<16x32xf32> to vector<4x4x32xf32>
    %63 = arith.truncf %62 : vector<4x4x32xf32> to vector<4x4x32xbf16>
    %c0_17 = arith.constant 0 : index
    %c0_18 = arith.constant 0 : index
    %c0_19 = arith.constant 0 : index
    %c0_20 = arith.constant 0 : index
    %64 = vector.load %arg6[%c0_17, %c0_18, %c0_19, %c0_20] : memref<1x4x4x32xbf16, #tpu.memory_space<vmem>>, vector<1x4x4x32xbf16>
    %65 = vector.shape_cast %64 : vector<1x4x4x32xbf16> to vector<4x4x32xbf16>
    %66 = vector.shape_cast %63 : vector<4x4x32xbf16> to vector<1x4x4x32xbf16>
    tpu.vector_store %arg6[%c0_17, %c0_18, %c0_19, %c0_20], %66 {strides = array<i32>} : memref<1x4x4x32xbf16, #tpu.memory_space<vmem>>, vector<1x4x4x32xbf16>,
    return
  }
  func.func @transform_0(%arg0: i32) -> (i32, i32, i32, i32) {
    %c0_i32 = arith.constant 0 : i32
    %c0_i32_0 = arith.constant 0 : i32
    %c0_i32_1 = arith.constant 0 : i32
    %c0_i32_2 = arith.constant 0 : i32
    return %arg0, %c0_i32, %c0_i32_0, %c0_i32_1 : i32, i32, i32, i32
  }
  func.func @transform_1(%arg0: i32) -> (i32, i32) {
    %c0_i32 = arith.constant 0 : i32
    %c0_i32_0 = arith.constant 0 : i32
    %c0_i32_1 = arith.constant 0 : i32
    return %c0_i32, %c0_i32_0 : i32, i32
  }
  func.func @transform_2(%arg0: i32) -> (i32, i32) {
    %c0_i32 = arith.constant 0 : i32
    %c0_i32_0 = arith.constant 0 : i32
    %c0_i32_1 = arith.constant 0 : i32
    return %c0_i32, %c0_i32_0 : i32, i32
  }
  func.func @transform_3(%arg0: i32) -> (i32, i32) {
    %c0_i32 = arith.constant 0 : i32
    %c0_i32_0 = arith.constant 0 : i32
    %c0_i32_1 = arith.constant 0 : i32
    return %c0_i32, %c0_i32_0 : i32, i32
  }
  func.func @transform_4(%arg0: i32) -> (i32, i32) {
    %c0_i32 = arith.constant 0 : i32
    %c0_i32_0 = arith.constant 0 : i32
    %c0_i32_1 = arith.constant 0 : i32
    return %c0_i32, %c0_i32_0 : i32, i32
  }
  func.func @transform_5(%arg0: i32) -> (i32, i32, i32, i32) {
    %c0_i32 = arith.constant 0 : i32
    %c0_i32_0 = arith.constant 0 : i32
    %c0_i32_1 = arith.constant 0 : i32
    %c0_i32_2 = arith.constant 0 : i32
    return %arg0, %c0_i32, %c0_i32_0, %c0_i32_1 : i32, i32, i32, i32
  }
}

module attributes {stable_mosaic.version = 11 : i64} {
  func.func @kernel(%arg0: i32, %arg1: memref<1x4x4x32xbf16, #tpu.memory_space<vmem>>, %arg2: memref<32x32xbf16, #tpu.memory_space<vmem>>, %arg3: memref<1x32xf32, #tpu.memory_space<vmem>>, %arg4: memref<1x4x4x32xbf16, #tpu.memory_space<vmem>>) attributes {dimension_semantics = [#tpu.dimension_semantics<parallel>], iteration_bounds = array<i64: 2>, scalar_prefetch = 0 : i64, scratch_operands = 0 : i64, tpu.core_type = #tpu.core_type<tc>, window_params = [{transform_indices = @transform_0, window_bounds = array<i64: 1, 4, 4, 32>}, {pipeline_mode = #tpu.pipeline_mode<synchronous>, transform_indices = @transform_1, window_bounds = array<i64: 32, 32>}, {pipeline_mode = #tpu.pipeline_mode<synchronous>, transform_indices = @transform_2, window_bounds = array<i64: 1, 32>}, {transform_indices = @transform_3, window_bounds = array<i64: 1, 4, 4, 32>}]} {
    %c0 = arith.constant 0 : index
    %c0_0 = arith.constant 0 : index
    %c0_1 = arith.constant 0 : index
    %c0_2 = arith.constant 0 : index
    %0 = vector.load %arg1[%c0, %c0_0, %c0_1, %c0_2] : memref<1x4x4x32xbf16, #tpu.memory_space<vmem>>, vector<1x4x4x32xbf16>
    %1 = vector.shape_cast %0 : vector<1x4x4x32xbf16> to vector<4x4x32xbf16>
    %2 = arith.extf %1 : vector<4x4x32xbf16> to vector<4x4x32xf32>
    %3 = vector.shape_cast %2 : vector<4x4x32xf32> to vector<16x32xf32>
    %4 = arith.truncf %3 : vector<16x32xf32> to vector<16x32xbf16>
    %c0_3 = arith.constant 0 : index
    %c0_4 = arith.constant 0 : index
    %5 = vector.load %arg2[%c0_3, %c0_4] : memref<32x32xbf16, #tpu.memory_space<vmem>>, vector<32x32xbf16>
    %cst = arith.constant dense<0.000000e+00> : vector<16x32xf32>
    %6 = tpu.matmul %4, %5, %cst {dimension_numbers = #tpu.dot_dimension_numbers<[1], [0], [0], [1], [0, 0, 1, 1], [], []>} : vector<16x32xbf16>, vector<32x32xbf16>, vector<16x32xf32> -> vector<16x32xf32>
    %c0_5 = arith.constant 0 : index
    %c0_6 = arith.constant 0 : index
    %7 = vector.load %arg3[%c0_5, %c0_6] : memref<1x32xf32, #tpu.memory_space<vmem>>, vector<1x32xf32>
    %8 = vector.broadcast %7 : vector<1x32xf32> to vector<16x32xf32>
    %9 = arith.addf %6, %8 : vector<16x32xf32>
    %10 = vector.shape_cast %9 : vector<16x32xf32> to vector<4x4x32xf32>
    %11 = arith.truncf %10 : vector<4x4x32xf32> to vector<4x4x32xbf16>
    %c0_7 = arith.constant 0 : index
    %c0_8 = arith.constant 0 : index
    %c0_9 = arith.constant 0 : index
    %c0_10 = arith.constant 0 : index
    %12 = vector.load %arg4[%c0_7, %c0_8, %c0_9, %c0_10] : memref<1x4x4x32xbf16, #tpu.memory_space<vmem>>, vector<1x4x4x32xbf16>
    %13 = vector.shape_cast %12 : vector<1x4x4x32xbf16> to vector<4x4x32xbf16>
    %14 = vector.shape_cast %11 : vector<4x4x32xbf16> to vector<1x4x4x32xbf16>
    tpu.vector_store %arg4[%c0_7, %c0_8, %c0_9, %c0_10], %14 {strides = array<i32>} : memref<1x4x4x32xbf16, #tpu.memory_space<vmem>>, vector<1x4x4x32xbf16>,
    return
  }
  func.func @transform_0(%arg0: i32) -> (i32, i32, i32, i32) {
    %c0_i32 = arith.constant 0 : i32
    %c0_i32_0 = arith.constant 0 : i32
    %c0_i32_1 = arith.constant 0 : i32
    %c0_i32_2 = arith.constant 0 : i32
    return %arg0, %c0_i32, %c0_i32_0, %c0_i32_1 : i32, i32, i32, i32
  }
  func.func @transform_1(%arg0: i32) -> (i32, i32) {
    %c0_i32 = arith.constant 0 : i32
    %c0_i32_0 = arith.constant 0 : i32
    %c0_i32_1 = arith.constant 0 : i32
    return %c0_i32, %c0_i32_0 : i32, i32
  }
  func.func @transform_2(%arg0: i32) -> (i32, i32) {
    %c0_i32 = arith.constant 0 : i32
    %c0_i32_0 = arith.constant 0 : i32
    %c0_i32_1 = arith.constant 0 : i32
    return %c0_i32, %c0_i32_0 : i32, i32
  }
  func.func @transform_3(%arg0: i32) -> (i32, i32, i32, i32) {
    %c0_i32 = arith.constant 0 : i32
    %c0_i32_0 = arith.constant 0 : i32
    %c0_i32_1 = arith.constant 0 : i32
    %c0_i32_2 = arith.constant 0 : i32
    return %arg0, %c0_i32, %c0_i32_0, %c0_i32_1 : i32, i32, i32, i32
  }
}

module attributes {stable_mosaic.version = 11 : i64} {
  func.func @kernel(%arg0: i32, %arg1: memref<1x12x12x32xbf16, #tpu.memory_space<vmem>>, %arg2: memref<288x16xbf16, #tpu.memory_space<vmem>>, %arg3: memref<1x16xf32, #tpu.memory_space<vmem>>, %arg4: memref<144x16xbf16, #tpu.memory_space<vmem>>, %arg5: memref<1x16xf32, #tpu.memory_space<vmem>>, %arg6: memref<32x16xbf16, #tpu.memory_space<vmem>>, %arg7: memref<1x16xf32, #tpu.memory_space<vmem>>, %arg8: memref<1x8x8x16xbf16, #tpu.memory_space<vmem>>) attributes {dimension_semantics = [#tpu.dimension_semantics<parallel>], iteration_bounds = array<i64: 2>, scalar_prefetch = 0 : i64, scratch_operands = 0 : i64, tpu.core_type = #tpu.core_type<tc>, window_params = [{transform_indices = @transform_0, window_bounds = array<i64: 1, 12, 12, 32>}, {pipeline_mode = #tpu.pipeline_mode<synchronous>, transform_indices = @transform_1, window_bounds = array<i64: 288, 16>}, {pipeline_mode = #tpu.pipeline_mode<synchronous>, transform_indices = @transform_2, window_bounds = array<i64: 1, 16>}, {pipeline_mode = #tpu.pipeline_mode<synchronous>, transform_indices = @transform_3, window_bounds = array<i64: 144, 16>}, {pipeline_mode = #tpu.pipeline_mode<synchronous>, transform_indices = @transform_4, window_bounds = array<i64: 1, 16>}, {pipeline_mode = #tpu.pipeline_mode<synchronous>, transform_indices = @transform_5, window_bounds = array<i64: 32, 16>}, {pipeline_mode = #tpu.pipeline_mode<synchronous>, transform_indices = @transform_6, window_bounds = array<i64: 1, 16>}, {transform_indices = @transform_7, window_bounds = array<i64: 1, 8, 8, 16>}]} {
    %c0 = arith.constant 0 : index
    %c0_0 = arith.constant 0 : index
    %c0_1 = arith.constant 0 : index
    %c0_2 = arith.constant 0 : index
    %0 = vector.load %arg1[%c0, %c0_0, %c0_1, %c0_2] : memref<1x12x12x32xbf16, #tpu.memory_space<vmem>>, vector<1x12x12x32xbf16>
    %1 = vector.shape_cast %0 : vector<1x12x12x32xbf16> to vector<12x12x32xbf16>
    %2 = arith.extf %1 : vector<12x12x32xbf16> to vector<12x12x32xf32>
    %3 = vector.extract_strided_slice %2 {offsets = [2, 2, 0], sizes = [8, 8, 32], strides = [1, 1, 1]} : vector<12x12x32xf32> to vector<8x8x32xf32>
    %4 = vector.shape_cast %3 : vector<8x8x32xf32> to vector<64x32xf32>
    %5 = arith.truncf %4 : vector<64x32xf32> to vector<64x32xbf16>
    %c0_3 = arith.constant 0 : index
    %c0_4 = arith.constant 0 : index
    %6 = vector.load %arg6[%c0_3, %c0_4] : memref<32x16xbf16, #tpu.memory_space<vmem>>, vector<32x16xbf16>
    %cst = arith.constant dense<0.000000e+00> : vector<64x16xf32>
    %7 = tpu.matmul %5, %6, %cst {dimension_numbers = #tpu.dot_dimension_numbers<[1], [0], [0], [1], [0, 0, 1, 1], [], []>} : vector<64x32xbf16>, vector<32x16xbf16>, vector<64x16xf32> -> vector<64x16xf32>
    %c0_5 = arith.constant 0 : index
    %c0_6 = arith.constant 0 : index
    %8 = vector.load %arg7[%c0_5, %c0_6] : memref<1x16xf32, #tpu.memory_space<vmem>>, vector<1x16xf32>
    %9 = vector.broadcast %8 : vector<1x16xf32> to vector<64x16xf32>
    %10 = arith.addf %7, %9 : vector<64x16xf32>
    %cst_7 = arith.constant 0.000000e+00 : f32
    %11 = vector.broadcast %cst_7 : f32 to vector<12x12x32xf32>
    %12 = arith.maximumf %2, %11 : vector<12x12x32xf32>
    %13 = vector.extract_strided_slice %12 {offsets = [0, 0, 0], sizes = [10, 10, 32], strides = [1, 1, 1]} : vector<12x12x32xf32> to vector<10x10x32xf32>
    %14 = vector.extract_strided_slice %12 {offsets = [0, 1, 0], sizes = [10, 10, 32], strides = [1, 1, 1]} : vector<12x12x32xf32> to vector<10x10x32xf32>
    %15 = vector.extract_strided_slice %12 {offsets = [0, 2, 0], sizes = [10, 10, 32], strides = [1, 1, 1]} : vector<12x12x32xf32> to vector<10x10x32xf32>
    %16 = vector.extract_strided_slice %12 {offsets = [1, 0, 0], sizes = [10, 10, 32], strides = [1, 1, 1]} : vector<12x12x32xf32> to vector<10x10x32xf32>
    %17 = vector.extract_strided_slice %12 {offsets = [1, 1, 0], sizes = [10, 10, 32], strides = [1, 1, 1]} : vector<12x12x32xf32> to vector<10x10x32xf32>
    %18 = vector.extract_strided_slice %12 {offsets = [1, 2, 0], sizes = [10, 10, 32], strides = [1, 1, 1]} : vector<12x12x32xf32> to vector<10x10x32xf32>
    %19 = vector.extract_strided_slice %12 {offsets = [2, 0, 0], sizes = [10, 10, 32], strides = [1, 1, 1]} : vector<12x12x32xf32> to vector<10x10x32xf32>
    %20 = vector.extract_strided_slice %12 {offsets = [2, 1, 0], sizes = [10, 10, 32], strides = [1, 1, 1]} : vector<12x12x32xf32> to vector<10x10x32xf32>
    %21 = vector.extract_strided_slice %12 {offsets = [2, 2, 0], sizes = [10, 10, 32], strides = [1, 1, 1]} : vector<12x12x32xf32> to vector<10x10x32xf32>
    %22 = tpu.concatenate %13, %14, %15, %16, %17, %18, %19, %20, %21 in 2 : vector<10x10x32xf32>, vector<10x10x32xf32>, vector<10x10x32xf32>, vector<10x10x32xf32>, vector<10x10x32xf32>, vector<10x10x32xf32>, vector<10x10x32xf32>, vector<10x10x32xf32>, vector<10x10x32xf32> -> vector<10x10x288xf32>
    %23 = vector.shape_cast %22 : vector<10x10x288xf32> to vector<100x288xf32>
    %24 = arith.truncf %23 : vector<100x288xf32> to vector<100x288xbf16>
    %c0_8 = arith.constant 0 : index
    %c0_9 = arith.constant 0 : index
    %25 = vector.load %arg2[%c0_8, %c0_9] : memref<288x16xbf16, #tpu.memory_space<vmem>>, vector<288x16xbf16>
    %cst_10 = arith.constant dense<0.000000e+00> : vector<100x16xf32>
    %26 = tpu.matmul %24, %25, %cst_10 {dimension_numbers = #tpu.dot_dimension_numbers<[1], [0], [0], [1], [0, 0, 1, 1], [], []>} : vector<100x288xbf16>, vector<288x16xbf16>, vector<100x16xf32> -> vector<100x16xf32>
    %c0_11 = arith.constant 0 : index
    %c0_12 = arith.constant 0 : index
    %27 = vector.load %arg3[%c0_11, %c0_12] : memref<1x16xf32, #tpu.memory_space<vmem>>, vector<1x16xf32>
    %28 = vector.broadcast %27 : vector<1x16xf32> to vector<100x16xf32>
    %29 = arith.addf %26, %28 : vector<100x16xf32>
    %cst_13 = arith.constant 0.000000e+00 : f32
    %30 = vector.broadcast %cst_13 : f32 to vector<100x16xf32>
    %31 = arith.maximumf %29, %30 : vector<100x16xf32>
    %32 = vector.shape_cast %31 : vector<100x16xf32> to vector<10x10x16xf32>
    %33 = tpu.iota {dimensions = array<i32: 0>} : vector<10x10x1xi32>
    %34 = tpu.iota {dimensions = array<i32: 1>} : vector<10x10x1xi32>
    %c1_i32 = arith.constant 1 : i32
    %35 = vector.broadcast %c1_i32 : i32 to vector<10x10x1xi32>
    %36 = arith.cmpi sge, %33, %35 : vector<10x10x1xi32>
    %c8_i32 = arith.constant 8 : i32
    %37 = vector.broadcast %c8_i32 : i32 to vector<10x10x1xi32>
    %38 = arith.cmpi sle, %33, %37 : vector<10x10x1xi32>
    %39 = arith.andi %36, %38 : vector<10x10x1xi1>
    %c1_i32_14 = arith.constant 1 : i32
    %40 = vector.broadcast %c1_i32_14 : i32 to vector<10x10x1xi32>
    %41 = arith.cmpi sge, %34, %40 : vector<10x10x1xi32>
    %42 = arith.andi %39, %41 : vector<10x10x1xi1>
    %c8_i32_15 = arith.constant 8 : i32
    %43 = vector.broadcast %c8_i32_15 : i32 to vector<10x10x1xi32>
    %44 = arith.cmpi sle, %34, %43 : vector<10x10x1xi32>
    %45 = arith.andi %42, %44 : vector<10x10x1xi1>
    %cst_16 = arith.constant 0.000000e+00 : f32
    %46 = vector.shape_cast %45 : vector<10x10x1xi1> to vector<10x10x1xi1>
    %47 = vector.broadcast %46 : vector<10x10x1xi1> to vector<10x10x16xi1>
    %48 = vector.broadcast %cst_16 : f32 to vector<10x10x16xf32>
    %49 = arith.select %47, %32, %48 : vector<10x10x16xi1>, vector<10x10x16xf32>
    %50 = vector.extract_strided_slice %49 {offsets = [0, 0, 0], sizes = [8, 8, 16], strides = [1, 1, 1]} : vector<10x10x16xf32> to vector<8x8x16xf32>
    %51 = vector.extract_strided_slice %49 {offsets = [0, 1, 0], sizes = [8, 8, 16], strides = [1, 1, 1]} : vector<10x10x16xf32> to vector<8x8x16xf32>
    %52 = vector.extract_strided_slice %49 {offsets = [0, 2, 0], sizes = [8, 8, 16], strides = [1, 1, 1]} : vector<10x10x16xf32> to vector<8x8x16xf32>
    %53 = vector.extract_strided_slice %49 {offsets = [1, 0, 0], sizes = [8, 8, 16], strides = [1, 1, 1]} : vector<10x10x16xf32> to vector<8x8x16xf32>
    %54 = vector.extract_strided_slice %49 {offsets = [1, 1, 0], sizes = [8, 8, 16], strides = [1, 1, 1]} : vector<10x10x16xf32> to vector<8x8x16xf32>
    %55 = vector.extract_strided_slice %49 {offsets = [1, 2, 0], sizes = [8, 8, 16], strides = [1, 1, 1]} : vector<10x10x16xf32> to vector<8x8x16xf32>
    %56 = vector.extract_strided_slice %49 {offsets = [2, 0, 0], sizes = [8, 8, 16], strides = [1, 1, 1]} : vector<10x10x16xf32> to vector<8x8x16xf32>
    %57 = vector.extract_strided_slice %49 {offsets = [2, 1, 0], sizes = [8, 8, 16], strides = [1, 1, 1]} : vector<10x10x16xf32> to vector<8x8x16xf32>
    %58 = vector.extract_strided_slice %49 {offsets = [2, 2, 0], sizes = [8, 8, 16], strides = [1, 1, 1]} : vector<10x10x16xf32> to vector<8x8x16xf32>
    %59 = tpu.concatenate %50, %51, %52, %53, %54, %55, %56, %57, %58 in 2 : vector<8x8x16xf32>, vector<8x8x16xf32>, vector<8x8x16xf32>, vector<8x8x16xf32>, vector<8x8x16xf32>, vector<8x8x16xf32>, vector<8x8x16xf32>, vector<8x8x16xf32>, vector<8x8x16xf32> -> vector<8x8x144xf32>
    %60 = vector.shape_cast %59 : vector<8x8x144xf32> to vector<64x144xf32>
    %61 = arith.truncf %60 : vector<64x144xf32> to vector<64x144xbf16>
    %c0_17 = arith.constant 0 : index
    %c0_18 = arith.constant 0 : index
    %62 = vector.load %arg4[%c0_17, %c0_18] : memref<144x16xbf16, #tpu.memory_space<vmem>>, vector<144x16xbf16>
    %cst_19 = arith.constant dense<0.000000e+00> : vector<64x16xf32>
    %63 = tpu.matmul %61, %62, %cst_19 {dimension_numbers = #tpu.dot_dimension_numbers<[1], [0], [0], [1], [0, 0, 1, 1], [], []>} : vector<64x144xbf16>, vector<144x16xbf16>, vector<64x16xf32> -> vector<64x16xf32>
    %c0_20 = arith.constant 0 : index
    %c0_21 = arith.constant 0 : index
    %64 = vector.load %arg5[%c0_20, %c0_21] : memref<1x16xf32, #tpu.memory_space<vmem>>, vector<1x16xf32>
    %65 = vector.broadcast %64 : vector<1x16xf32> to vector<64x16xf32>
    %66 = arith.addf %63, %65 : vector<64x16xf32>
    %67 = arith.addf %66, %10 : vector<64x16xf32>
    %68 = vector.shape_cast %67 : vector<64x16xf32> to vector<8x8x16xf32>
    %69 = arith.truncf %68 : vector<8x8x16xf32> to vector<8x8x16xbf16>
    %c0_22 = arith.constant 0 : index
    %c0_23 = arith.constant 0 : index
    %c0_24 = arith.constant 0 : index
    %c0_25 = arith.constant 0 : index
    %70 = vector.load %arg8[%c0_22, %c0_23, %c0_24, %c0_25] : memref<1x8x8x16xbf16, #tpu.memory_space<vmem>>, vector<1x8x8x16xbf16>
    %71 = vector.shape_cast %70 : vector<1x8x8x16xbf16> to vector<8x8x16xbf16>
    %72 = vector.shape_cast %69 : vector<8x8x16xbf16> to vector<1x8x8x16xbf16>
    tpu.vector_store %arg8[%c0_22, %c0_23, %c0_24, %c0_25], %72 {strides = array<i32>} : memref<1x8x8x16xbf16, #tpu.memory_space<vmem>>, vector<1x8x8x16xbf16>,
    return
  }
  func.func @transform_0(%arg0: i32) -> (i32, i32, i32, i32) {
    %c0_i32 = arith.constant 0 : i32
    %c0_i32_0 = arith.constant 0 : i32
    %c0_i32_1 = arith.constant 0 : i32
    %c0_i32_2 = arith.constant 0 : i32
    return %arg0, %c0_i32, %c0_i32_0, %c0_i32_1 : i32, i32, i32, i32
  }
  func.func @transform_1(%arg0: i32) -> (i32, i32) {
    %c0_i32 = arith.constant 0 : i32
    %c0_i32_0 = arith.constant 0 : i32
    %c0_i32_1 = arith.constant 0 : i32
    return %c0_i32, %c0_i32_0 : i32, i32
  }
  func.func @transform_2(%arg0: i32) -> (i32, i32) {
    %c0_i32 = arith.constant 0 : i32
    %c0_i32_0 = arith.constant 0 : i32
    %c0_i32_1 = arith.constant 0 : i32
    return %c0_i32, %c0_i32_0 : i32, i32
  }
  func.func @transform_3(%arg0: i32) -> (i32, i32) {
    %c0_i32 = arith.constant 0 : i32
    %c0_i32_0 = arith.constant 0 : i32
    %c0_i32_1 = arith.constant 0 : i32
    return %c0_i32, %c0_i32_0 : i32, i32
  }
  func.func @transform_4(%arg0: i32) -> (i32, i32) {
    %c0_i32 = arith.constant 0 : i32
    %c0_i32_0 = arith.constant 0 : i32
    %c0_i32_1 = arith.constant 0 : i32
    return %c0_i32, %c0_i32_0 : i32, i32
  }
  func.func @transform_5(%arg0: i32) -> (i32, i32) {
    %c0_i32 = arith.constant 0 : i32
    %c0_i32_0 = arith.constant 0 : i32
    %c0_i32_1 = arith.constant 0 : i32
    return %c0_i32, %c0_i32_0 : i32, i32
  }
  func.func @transform_6(%arg0: i32) -> (i32, i32) {
    %c0_i32 = arith.constant 0 : i32
    %c0_i32_0 = arith.constant 0 : i32
    %c0_i32_1 = arith.constant 0 : i32
    return %c0_i32, %c0_i32_0 : i32, i32
  }
  func.func @transform_7(%arg0: i32) -> (i32, i32, i32, i32) {
    %c0_i32 = arith.constant 0 : i32
    %c0_i32_0 = arith.constant 0 : i32
    %c0_i32_1 = arith.constant 0 : i32
    %c0_i32_2 = arith.constant 0 : i32
    return %arg0, %c0_i32, %c0_i32_0, %c0_i32_1 : i32, i32, i32, i32
  }
}

module attributes {stable_mosaic.version = 11 : i64} {
  func.func @kernel(%arg0: i32, %arg1: memref<1x12x12x16xbf16, #tpu.memory_space<vmem>>, %arg2: memref<144x16xbf16, #tpu.memory_space<vmem>>, %arg3: memref<1x16xf32, #tpu.memory_space<vmem>>, %arg4: memref<144x16xbf16, #tpu.memory_space<vmem>>, %arg5: memref<1x16xf32, #tpu.memory_space<vmem>>, %arg6: memref<1x8x8x16xbf16, #tpu.memory_space<vmem>>) attributes {dimension_semantics = [#tpu.dimension_semantics<parallel>], iteration_bounds = array<i64: 2>, scalar_prefetch = 0 : i64, scratch_operands = 0 : i64, tpu.core_type = #tpu.core_type<tc>, window_params = [{transform_indices = @transform_0, window_bounds = array<i64: 1, 12, 12, 16>}, {pipeline_mode = #tpu.pipeline_mode<synchronous>, transform_indices = @transform_1, window_bounds = array<i64: 144, 16>}, {pipeline_mode = #tpu.pipeline_mode<synchronous>, transform_indices = @transform_2, window_bounds = array<i64: 1, 16>}, {pipeline_mode = #tpu.pipeline_mode<synchronous>, transform_indices = @transform_3, window_bounds = array<i64: 144, 16>}, {pipeline_mode = #tpu.pipeline_mode<synchronous>, transform_indices = @transform_4, window_bounds = array<i64: 1, 16>}, {transform_indices = @transform_5, window_bounds = array<i64: 1, 8, 8, 16>}]} {
    %c0 = arith.constant 0 : index
    %c0_0 = arith.constant 0 : index
    %c0_1 = arith.constant 0 : index
    %c0_2 = arith.constant 0 : index
    %0 = vector.load %arg1[%c0, %c0_0, %c0_1, %c0_2] : memref<1x12x12x16xbf16, #tpu.memory_space<vmem>>, vector<1x12x12x16xbf16>
    %1 = vector.shape_cast %0 : vector<1x12x12x16xbf16> to vector<12x12x16xbf16>
    %2 = arith.extf %1 : vector<12x12x16xbf16> to vector<12x12x16xf32>
    %3 = vector.extract_strided_slice %2 {offsets = [2, 2, 0], sizes = [8, 8, 16], strides = [1, 1, 1]} : vector<12x12x16xf32> to vector<8x8x16xf32>
    %4 = vector.shape_cast %3 : vector<8x8x16xf32> to vector<64x16xf32>
    %cst = arith.constant 0.000000e+00 : f32
    %5 = vector.broadcast %cst : f32 to vector<12x12x16xf32>
    %6 = arith.maximumf %2, %5 : vector<12x12x16xf32>
    %7 = vector.extract_strided_slice %6 {offsets = [0, 0, 0], sizes = [10, 10, 16], strides = [1, 1, 1]} : vector<12x12x16xf32> to vector<10x10x16xf32>
    %8 = vector.extract_strided_slice %6 {offsets = [0, 1, 0], sizes = [10, 10, 16], strides = [1, 1, 1]} : vector<12x12x16xf32> to vector<10x10x16xf32>
    %9 = vector.extract_strided_slice %6 {offsets = [0, 2, 0], sizes = [10, 10, 16], strides = [1, 1, 1]} : vector<12x12x16xf32> to vector<10x10x16xf32>
    %10 = vector.extract_strided_slice %6 {offsets = [1, 0, 0], sizes = [10, 10, 16], strides = [1, 1, 1]} : vector<12x12x16xf32> to vector<10x10x16xf32>
    %11 = vector.extract_strided_slice %6 {offsets = [1, 1, 0], sizes = [10, 10, 16], strides = [1, 1, 1]} : vector<12x12x16xf32> to vector<10x10x16xf32>
    %12 = vector.extract_strided_slice %6 {offsets = [1, 2, 0], sizes = [10, 10, 16], strides = [1, 1, 1]} : vector<12x12x16xf32> to vector<10x10x16xf32>
    %13 = vector.extract_strided_slice %6 {offsets = [2, 0, 0], sizes = [10, 10, 16], strides = [1, 1, 1]} : vector<12x12x16xf32> to vector<10x10x16xf32>
    %14 = vector.extract_strided_slice %6 {offsets = [2, 1, 0], sizes = [10, 10, 16], strides = [1, 1, 1]} : vector<12x12x16xf32> to vector<10x10x16xf32>
    %15 = vector.extract_strided_slice %6 {offsets = [2, 2, 0], sizes = [10, 10, 16], strides = [1, 1, 1]} : vector<12x12x16xf32> to vector<10x10x16xf32>
    %16 = tpu.concatenate %7, %8, %9, %10, %11, %12, %13, %14, %15 in 2 : vector<10x10x16xf32>, vector<10x10x16xf32>, vector<10x10x16xf32>, vector<10x10x16xf32>, vector<10x10x16xf32>, vector<10x10x16xf32>, vector<10x10x16xf32>, vector<10x10x16xf32>, vector<10x10x16xf32> -> vector<10x10x144xf32>
    %17 = vector.shape_cast %16 : vector<10x10x144xf32> to vector<100x144xf32>
    %18 = arith.truncf %17 : vector<100x144xf32> to vector<100x144xbf16>
    %c0_3 = arith.constant 0 : index
    %c0_4 = arith.constant 0 : index
    %19 = vector.load %arg2[%c0_3, %c0_4] : memref<144x16xbf16, #tpu.memory_space<vmem>>, vector<144x16xbf16>
    %cst_5 = arith.constant dense<0.000000e+00> : vector<100x16xf32>
    %20 = tpu.matmul %18, %19, %cst_5 {dimension_numbers = #tpu.dot_dimension_numbers<[1], [0], [0], [1], [0, 0, 1, 1], [], []>} : vector<100x144xbf16>, vector<144x16xbf16>, vector<100x16xf32> -> vector<100x16xf32>
    %c0_6 = arith.constant 0 : index
    %c0_7 = arith.constant 0 : index
    %21 = vector.load %arg3[%c0_6, %c0_7] : memref<1x16xf32, #tpu.memory_space<vmem>>, vector<1x16xf32>
    %22 = vector.broadcast %21 : vector<1x16xf32> to vector<100x16xf32>
    %23 = arith.addf %20, %22 : vector<100x16xf32>
    %cst_8 = arith.constant 0.000000e+00 : f32
    %24 = vector.broadcast %cst_8 : f32 to vector<100x16xf32>
    %25 = arith.maximumf %23, %24 : vector<100x16xf32>
    %26 = vector.shape_cast %25 : vector<100x16xf32> to vector<10x10x16xf32>
    %27 = tpu.iota {dimensions = array<i32: 0>} : vector<10x10x1xi32>
    %28 = tpu.iota {dimensions = array<i32: 1>} : vector<10x10x1xi32>
    %c1_i32 = arith.constant 1 : i32
    %29 = vector.broadcast %c1_i32 : i32 to vector<10x10x1xi32>
    %30 = arith.cmpi sge, %27, %29 : vector<10x10x1xi32>
    %c8_i32 = arith.constant 8 : i32
    %31 = vector.broadcast %c8_i32 : i32 to vector<10x10x1xi32>
    %32 = arith.cmpi sle, %27, %31 : vector<10x10x1xi32>
    %33 = arith.andi %30, %32 : vector<10x10x1xi1>
    %c1_i32_9 = arith.constant 1 : i32
    %34 = vector.broadcast %c1_i32_9 : i32 to vector<10x10x1xi32>
    %35 = arith.cmpi sge, %28, %34 : vector<10x10x1xi32>
    %36 = arith.andi %33, %35 : vector<10x10x1xi1>
    %c8_i32_10 = arith.constant 8 : i32
    %37 = vector.broadcast %c8_i32_10 : i32 to vector<10x10x1xi32>
    %38 = arith.cmpi sle, %28, %37 : vector<10x10x1xi32>
    %39 = arith.andi %36, %38 : vector<10x10x1xi1>
    %cst_11 = arith.constant 0.000000e+00 : f32
    %40 = vector.shape_cast %39 : vector<10x10x1xi1> to vector<10x10x1xi1>
    %41 = vector.broadcast %40 : vector<10x10x1xi1> to vector<10x10x16xi1>
    %42 = vector.broadcast %cst_11 : f32 to vector<10x10x16xf32>
    %43 = arith.select %41, %26, %42 : vector<10x10x16xi1>, vector<10x10x16xf32>
    %44 = vector.extract_strided_slice %43 {offsets = [0, 0, 0], sizes = [8, 8, 16], strides = [1, 1, 1]} : vector<10x10x16xf32> to vector<8x8x16xf32>
    %45 = vector.extract_strided_slice %43 {offsets = [0, 1, 0], sizes = [8, 8, 16], strides = [1, 1, 1]} : vector<10x10x16xf32> to vector<8x8x16xf32>
    %46 = vector.extract_strided_slice %43 {offsets = [0, 2, 0], sizes = [8, 8, 16], strides = [1, 1, 1]} : vector<10x10x16xf32> to vector<8x8x16xf32>
    %47 = vector.extract_strided_slice %43 {offsets = [1, 0, 0], sizes = [8, 8, 16], strides = [1, 1, 1]} : vector<10x10x16xf32> to vector<8x8x16xf32>
    %48 = vector.extract_strided_slice %43 {offsets = [1, 1, 0], sizes = [8, 8, 16], strides = [1, 1, 1]} : vector<10x10x16xf32> to vector<8x8x16xf32>
    %49 = vector.extract_strided_slice %43 {offsets = [1, 2, 0], sizes = [8, 8, 16], strides = [1, 1, 1]} : vector<10x10x16xf32> to vector<8x8x16xf32>
    %50 = vector.extract_strided_slice %43 {offsets = [2, 0, 0], sizes = [8, 8, 16], strides = [1, 1, 1]} : vector<10x10x16xf32> to vector<8x8x16xf32>
    %51 = vector.extract_strided_slice %43 {offsets = [2, 1, 0], sizes = [8, 8, 16], strides = [1, 1, 1]} : vector<10x10x16xf32> to vector<8x8x16xf32>
    %52 = vector.extract_strided_slice %43 {offsets = [2, 2, 0], sizes = [8, 8, 16], strides = [1, 1, 1]} : vector<10x10x16xf32> to vector<8x8x16xf32>
    %53 = tpu.concatenate %44, %45, %46, %47, %48, %49, %50, %51, %52 in 2 : vector<8x8x16xf32>, vector<8x8x16xf32>, vector<8x8x16xf32>, vector<8x8x16xf32>, vector<8x8x16xf32>, vector<8x8x16xf32>, vector<8x8x16xf32>, vector<8x8x16xf32>, vector<8x8x16xf32> -> vector<8x8x144xf32>
    %54 = vector.shape_cast %53 : vector<8x8x144xf32> to vector<64x144xf32>
    %55 = arith.truncf %54 : vector<64x144xf32> to vector<64x144xbf16>
    %c0_12 = arith.constant 0 : index
    %c0_13 = arith.constant 0 : index
    %56 = vector.load %arg4[%c0_12, %c0_13] : memref<144x16xbf16, #tpu.memory_space<vmem>>, vector<144x16xbf16>
    %cst_14 = arith.constant dense<0.000000e+00> : vector<64x16xf32>
    %57 = tpu.matmul %55, %56, %cst_14 {dimension_numbers = #tpu.dot_dimension_numbers<[1], [0], [0], [1], [0, 0, 1, 1], [], []>} : vector<64x144xbf16>, vector<144x16xbf16>, vector<64x16xf32> -> vector<64x16xf32>
    %c0_15 = arith.constant 0 : index
    %c0_16 = arith.constant 0 : index
    %58 = vector.load %arg5[%c0_15, %c0_16] : memref<1x16xf32, #tpu.memory_space<vmem>>, vector<1x16xf32>
    %59 = vector.broadcast %58 : vector<1x16xf32> to vector<64x16xf32>
    %60 = arith.addf %57, %59 : vector<64x16xf32>
    %61 = arith.addf %60, %4 : vector<64x16xf32>
    %62 = vector.shape_cast %61 : vector<64x16xf32> to vector<8x8x16xf32>
    %63 = arith.truncf %62 : vector<8x8x16xf32> to vector<8x8x16xbf16>
    %c0_17 = arith.constant 0 : index
    %c0_18 = arith.constant 0 : index
    %c0_19 = arith.constant 0 : index
    %c0_20 = arith.constant 0 : index
    %64 = vector.load %arg6[%c0_17, %c0_18, %c0_19, %c0_20] : memref<1x8x8x16xbf16, #tpu.memory_space<vmem>>, vector<1x8x8x16xbf16>
    %65 = vector.shape_cast %64 : vector<1x8x8x16xbf16> to vector<8x8x16xbf16>
    %66 = vector.shape_cast %63 : vector<8x8x16xbf16> to vector<1x8x8x16xbf16>
    tpu.vector_store %arg6[%c0_17, %c0_18, %c0_19, %c0_20], %66 {strides = array<i32>} : memref<1x8x8x16xbf16, #tpu.memory_space<vmem>>, vector<1x8x8x16xbf16>,
    return
  }
  func.func @transform_0(%arg0: i32) -> (i32, i32, i32, i32) {
    %c0_i32 = arith.constant 0 : i32
    %c0_i32_0 = arith.constant 0 : i32
    %c0_i32_1 = arith.constant 0 : i32
    %c0_i32_2 = arith.constant 0 : i32
    return %arg0, %c0_i32, %c0_i32_0, %c0_i32_1 : i32, i32, i32, i32
  }
  func.func @transform_1(%arg0: i32) -> (i32, i32) {
    %c0_i32 = arith.constant 0 : i32
    %c0_i32_0 = arith.constant 0 : i32
    %c0_i32_1 = arith.constant 0 : i32
    return %c0_i32, %c0_i32_0 : i32, i32
  }
  func.func @transform_2(%arg0: i32) -> (i32, i32) {
    %c0_i32 = arith.constant 0 : i32
    %c0_i32_0 = arith.constant 0 : i32
    %c0_i32_1 = arith.constant 0 : i32
    return %c0_i32, %c0_i32_0 : i32, i32
  }
  func.func @transform_3(%arg0: i32) -> (i32, i32) {
    %c0_i32 = arith.constant 0 : i32
    %c0_i32_0 = arith.constant 0 : i32
    %c0_i32_1 = arith.constant 0 : i32
    return %c0_i32, %c0_i32_0 : i32, i32
  }
  func.func @transform_4(%arg0: i32) -> (i32, i32) {
    %c0_i32 = arith.constant 0 : i32
    %c0_i32_0 = arith.constant 0 : i32
    %c0_i32_1 = arith.constant 0 : i32
    return %c0_i32, %c0_i32_0 : i32, i32
  }
  func.func @transform_5(%arg0: i32) -> (i32, i32, i32, i32) {
    %c0_i32 = arith.constant 0 : i32
    %c0_i32_0 = arith.constant 0 : i32
    %c0_i32_1 = arith.constant 0 : i32
    %c0_i32_2 = arith.constant 0 : i32
    return %arg0, %c0_i32, %c0_i32_0, %c0_i32_1 : i32, i32, i32, i32
  }
}

module attributes {stable_mosaic.version = 11 : i64} {
  func.func @kernel(%arg0: i32, %arg1: memref<1x10x10x16xbf16, #tpu.memory_space<vmem>>, %arg2: memref<144x3xbf16, #tpu.memory_space<vmem>>, %arg3: memref<1x3xf32, #tpu.memory_space<vmem>>, %arg4: memref<1x8x8x3xf32, #tpu.memory_space<vmem>>) attributes {dimension_semantics = [#tpu.dimension_semantics<parallel>], iteration_bounds = array<i64: 2>, scalar_prefetch = 0 : i64, scratch_operands = 0 : i64, tpu.core_type = #tpu.core_type<tc>, window_params = [{transform_indices = @transform_0, window_bounds = array<i64: 1, 10, 10, 16>}, {pipeline_mode = #tpu.pipeline_mode<synchronous>, transform_indices = @transform_1, window_bounds = array<i64: 144, 3>}, {pipeline_mode = #tpu.pipeline_mode<synchronous>, transform_indices = @transform_2, window_bounds = array<i64: 1, 3>}, {transform_indices = @transform_3, window_bounds = array<i64: 1, 8, 8, 3>}]} {
    %c0 = arith.constant 0 : index
    %c0_0 = arith.constant 0 : index
    %c0_1 = arith.constant 0 : index
    %c0_2 = arith.constant 0 : index
    %0 = vector.load %arg1[%c0, %c0_0, %c0_1, %c0_2] : memref<1x10x10x16xbf16, #tpu.memory_space<vmem>>, vector<1x10x10x16xbf16>
    %1 = vector.shape_cast %0 : vector<1x10x10x16xbf16> to vector<10x10x16xbf16>
    %2 = arith.extf %1 : vector<10x10x16xbf16> to vector<10x10x16xf32>
    %3 = vector.extract_strided_slice %2 {offsets = [0, 0, 0], sizes = [8, 8, 16], strides = [1, 1, 1]} : vector<10x10x16xf32> to vector<8x8x16xf32>
    %4 = vector.extract_strided_slice %2 {offsets = [0, 1, 0], sizes = [8, 8, 16], strides = [1, 1, 1]} : vector<10x10x16xf32> to vector<8x8x16xf32>
    %5 = vector.extract_strided_slice %2 {offsets = [0, 2, 0], sizes = [8, 8, 16], strides = [1, 1, 1]} : vector<10x10x16xf32> to vector<8x8x16xf32>
    %6 = vector.extract_strided_slice %2 {offsets = [1, 0, 0], sizes = [8, 8, 16], strides = [1, 1, 1]} : vector<10x10x16xf32> to vector<8x8x16xf32>
    %7 = vector.extract_strided_slice %2 {offsets = [1, 1, 0], sizes = [8, 8, 16], strides = [1, 1, 1]} : vector<10x10x16xf32> to vector<8x8x16xf32>
    %8 = vector.extract_strided_slice %2 {offsets = [1, 2, 0], sizes = [8, 8, 16], strides = [1, 1, 1]} : vector<10x10x16xf32> to vector<8x8x16xf32>
    %9 = vector.extract_strided_slice %2 {offsets = [2, 0, 0], sizes = [8, 8, 16], strides = [1, 1, 1]} : vector<10x10x16xf32> to vector<8x8x16xf32>
    %10 = vector.extract_strided_slice %2 {offsets = [2, 1, 0], sizes = [8, 8, 16], strides = [1, 1, 1]} : vector<10x10x16xf32> to vector<8x8x16xf32>
    %11 = vector.extract_strided_slice %2 {offsets = [2, 2, 0], sizes = [8, 8, 16], strides = [1, 1, 1]} : vector<10x10x16xf32> to vector<8x8x16xf32>
    %12 = tpu.concatenate %3, %4, %5, %6, %7, %8, %9, %10, %11 in 2 : vector<8x8x16xf32>, vector<8x8x16xf32>, vector<8x8x16xf32>, vector<8x8x16xf32>, vector<8x8x16xf32>, vector<8x8x16xf32>, vector<8x8x16xf32>, vector<8x8x16xf32>, vector<8x8x16xf32> -> vector<8x8x144xf32>
    %13 = vector.shape_cast %12 : vector<8x8x144xf32> to vector<64x144xf32>
    %14 = arith.truncf %13 : vector<64x144xf32> to vector<64x144xbf16>
    %c0_3 = arith.constant 0 : index
    %c0_4 = arith.constant 0 : index
    %15 = vector.load %arg2[%c0_3, %c0_4] : memref<144x3xbf16, #tpu.memory_space<vmem>>, vector<144x3xbf16>
    %cst = arith.constant dense<0.000000e+00> : vector<64x3xf32>
    %16 = tpu.matmul %14, %15, %cst {dimension_numbers = #tpu.dot_dimension_numbers<[1], [0], [0], [1], [0, 0, 1, 1], [], []>} : vector<64x144xbf16>, vector<144x3xbf16>, vector<64x3xf32> -> vector<64x3xf32>
    %c0_5 = arith.constant 0 : index
    %c0_6 = arith.constant 0 : index
    %17 = vector.load %arg3[%c0_5, %c0_6] : memref<1x3xf32, #tpu.memory_space<vmem>>, vector<1x3xf32>
    %18 = vector.broadcast %17 : vector<1x3xf32> to vector<64x3xf32>
    %19 = arith.addf %16, %18 : vector<64x3xf32>
    %20 = math.tanh %19 : vector<64x3xf32>
    %21 = vector.shape_cast %20 : vector<64x3xf32> to vector<8x8x3xf32>
    %c0_7 = arith.constant 0 : index
    %c0_8 = arith.constant 0 : index
    %c0_9 = arith.constant 0 : index
    %c0_10 = arith.constant 0 : index
    %22 = vector.load %arg4[%c0_7, %c0_8, %c0_9, %c0_10] : memref<1x8x8x3xf32, #tpu.memory_space<vmem>>, vector<1x8x8x3xf32>
    %23 = vector.shape_cast %22 : vector<1x8x8x3xf32> to vector<8x8x3xf32>
    %24 = vector.shape_cast %21 : vector<8x8x3xf32> to vector<1x8x8x3xf32>
    tpu.vector_store %arg4[%c0_7, %c0_8, %c0_9, %c0_10], %24 {strides = array<i32>} : memref<1x8x8x3xf32, #tpu.memory_space<vmem>>, vector<1x8x8x3xf32>,
    return
  }
  func.func @transform_0(%arg0: i32) -> (i32, i32, i32, i32) {
    %c0_i32 = arith.constant 0 : i32
    %c0_i32_0 = arith.constant 0 : i32
    %c0_i32_1 = arith.constant 0 : i32
    %c0_i32_2 = arith.constant 0 : i32
    return %arg0, %c0_i32, %c0_i32_0, %c0_i32_1 : i32, i32, i32, i32
  }
  func.func @transform_1(%arg0: i32) -> (i32, i32) {
    %c0_i32 = arith.constant 0 : i32
    %c0_i32_0 = arith.constant 0 : i32
    %c0_i32_1 = arith.constant 0 : i32
    return %c0_i32, %c0_i32_0 : i32, i32
  }
  func.func @transform_2(%arg0: i32) -> (i32, i32) {
    %c0_i32 = arith.constant 0 : i32
    %c0_i32_0 = arith.constant 0 : i32
    %c0_i32_1 = arith.constant 0 : i32
    return %c0_i32, %c0_i32_0 : i32, i32
  }
  func.func @transform_3(%arg0: i32) -> (i32, i32, i32, i32) {
    %c0_i32 = arith.constant 0 : i32
    %c0_i32_0 = arith.constant 0 : i32
    %c0_i32_1 = arith.constant 0 : i32
    %c0_i32_2 = arith.constant 0 : i32
    return %arg0, %c0_i32, %c0_i32_0, %c0_i32_1 : i32, i32, i32, i32
  }
}

</mosaic_0001>

<bundles_post_ra>
// kernel: vqgan_decoder_forward.6
= control target key start
LH: loop header
LB: loop body
LE: loop exit
PB: predicated region body
PF: predicated region fallthrough
CT: control target
= control target key end

     0   :  { %s397_s12 = smov 0   ;;  %s423_s0 = inlined_call_operand.vmem [shape: bf16[2,4,4,32], index: 0, kind: input, shape index: {}]   ;;  %s424_s1 = inlined_call_operand.vmem [shape: bf16[32,32], index: 1, kind: input, shape index: {}]   ;;  %s425_s2 = inlined_call_operand.vmem [shape: f32[1,32], index: 2, kind: input, shape index: {}]   ;;  %s426_s3 = inlined_call_operand.vmem [shape: bf16[2,4,4,32], index: 3, kind: output, shape index: {}]  }
   0x1 LB: > { %s327_s13 = sadd.s32 4294967295, %s373_s12   ;;  %p331_p0 = scmp.ge.s32.totalorder %s373_s12, 1  ;;  %s373_s12 = sphi %s397_s12, %s13_s12  }
   0x2   : > { %p137_p1 = scmp.lt.s32.totalorder %s373_s12, 3 }
   0x4   : > { %p138_p2 = pnand %p331_p0, %p137_p1 }
   0x5   : > { %v365_v0 = vld [vmem:[%s424_s1] sm:$0xff] (!%p138_p2)   ;;  %v375_v1 = vmov (!%p138_p2), 0.0   ;;  %v366_v2 = vld [vmem:[%s424_s1 + $0x8] sm:$0xff] (!%p138_p2)   ;;  %vm376_vm0 = vmmov (!%p138_p2), 0   ;;  %p161_p3 = scmp.lt.s32.totalorder (!%p138_p2), %s327_s13, 1  ;;  %vm212_vm1 = vcmask (!%p138_p2), 261120  }
   0x6   : > { %141 = sbr.rel (%p138_p2) target bundleno = 245 (0xf5), region = 32  ;;  %347 = vmatprep.subr.bf16.mxu0 (!%p138_p2), %v375_v1  ;;  %351 = vmatprep.mubr.msk.bf16.mxu0 (!%p138_p2), %vm376_vm0, %v375_v1  ;;  %v336_v14 = vld [vmem:[%s425_s2] ss:$0 sm:$0xff] (!%p138_p2)  ;;  %vm267_vm2 = vcmask (!%p138_p2), 254976  }
   0x7   : > { %348 = vmatpush3.bf16.msra.mxu0 (!%p138_p2), %v365_v0 }
   0x8   : > { %349 = vmatprep.subr.bf16.mxu0 (!%p138_p2), %v375_v1 }
   0xb   : > { %350 = vmatpush3.bf16.msra.mxu0 (!%p138_p2), %v366_v2 }
   0xd   : > { %s428_s13 = smov (!%p161_p3, %s327_s13), 1 }
   0xe   : > { %s342_s18 = sshll.u32 %s428_s13, 3 }
   0xf   : > { %s165_s21 = scalar_lea.vmem %s423_s0, %s342_s18  ;;  %s170_s26 = scalar_lea.vmem %s426_s3, %s342_s18 }
  0x10   : > { %v172_v3 = vld [vmem:[%s165_s21] sm:$0x3]  ;;  %v173_v4 = vld [vmem:[%s165_s21 + $0x2] sm:$0x3]  ;;  %v174_v5 = vld [vmem:[%s165_s21 + $0x4] sm:$0x3] }
  0x11   : > { %v175_v6 = vld [vmem:[%s165_s21 + $0x6] sm:$0x3]  ;;  %v176_v7 = vunpack.c.l.bf16 %v172_v3  ;;  %v177_v8 = vunpack.c.l.bf16 %v173_v4  ;;  %v178_v9 = vunpack.c.l.bf16 %v174_v5 }
  0x12   : > { %v179_v10 = vunpack.c.l.bf16 %v175_v6 }
  0x13   : > { %v184_v11 = vcombine.low %v176_v7, %v177_v8 }
  0x14   : > { %v185_v12 = vcombine.low %v178_v9, %v179_v10 }
  0x16   : > { %v188_v13 = vpack.c.bf16 %v185_v12, %v184_v11 }
  0x18   : > { %352 = vmatmul.mubr.msk.bf16.vlgmr.msra.gmra.mrb[0].mxu0 %vm212_vm1, %v188_v13 }
  0xeb   : > { %v250_v15 = vpop.f32.mrb[0].mxu0 }
  0xec   : > { %v251_v16 = vadd.f32 %v336_v14, %v250_v15  ;;  %v353_v17 = vpop.f32.mrb[1].mxu0 }
  0xed   : > { %v253_v18 = vpop.f32.mrb[2].mxu0 }
  0xee   : > { %v259_v19 = vcombine.high %v251_v16, %v251_v16  ;;  %v263_v20 = vpack.c.bf16 %v251_v16, %v251_v16  ;;  %v254_v21 = vadd.f32 %v336_v14, %v253_v18  ;;  %v354_v22 = vpop.f32.mrb[3].mxu0 }
  0xf0   : > { %v264_v23 = vpack.c.bf16 %v259_v19, %v259_v19  ;;  %268 = vst.msk [vmem:[%s170_s26] sm:$0x3] %vm267_vm2, %v263_v20  ;;  %v260_v24 = vcombine.high %v254_v21, %v254_v21  ;;  %v265_v25 = vpack.c.bf16 %v254_v21, %v254_v21 }
  0xf2   : > { %269 = vst.msk [vmem:[%s170_s26 + $0x2] sm:$0x3] %vm267_vm2, %v264_v23  ;;  %v266_v26 = vpack.c.bf16 %v260_v24, %v260_v24  ;;  %270 = vst.msk [vmem:[%s170_s26 + $0x4] sm:$0x3] %vm267_vm2, %v265_v25 }
  0xf4   : > { %271 = vst.msk [vmem:[%s170_s26 + $0x6] sm:$0x3] %vm267_vm2, %v266_v26 }
  0xf5 PF: > { %s13_s12 = sadd.s32 1, %s373_s12  }
  0xf6   : > { %p10_p4 = scmp.ge.s32.totalorder %s13_s12, 4  }
  0xf8   :  { %12 = sbr.rel (!%p10_p4) target bundleno = 1 (0x1), region = 62 }

// kernel: vqgan_decoder_forward.7
= control target key start
LH: loop header
LB: loop body
LE: loop exit
PB: predicated region body
PF: predicated region fallthrough
CT: control target
= control target key end

     0   :  { %s2157_s18 = smov 0   ;;  %s2696_s0 = inlined_call_operand.vmem [shape: bf16[2,8,8,32], index: 0, kind: input, shape index: {}]   ;;  %s2697_s1 = inlined_call_operand.vmem [shape: bf16[288,32], index: 1, kind: input, shape index: {}]   ;;  %s2698_s2 = inlined_call_operand.vmem [shape: f32[1,32], index: 2, kind: input, shape index: {}]   ;;  %s2699_s3 = inlined_call_operand.vmem [shape: bf16[288,32], index: 3, kind: input, shape index: {}]   ;;  %s2700_s4 = inlined_call_operand.vmem [shape: f32[1,32], index: 4, kind: input, shape index: {}]   ;;  %s2701_s5 = inlined_call_operand.vmem [shape: bf16[2,4,4,32], index: 5, kind: output, shape index: {}]  }
   0x1 LB: > { %s1786_s19 = sadd.s32 4294967295, %s2119_s18   ;;  %p1790_p0 = scmp.ge.s32.totalorder %s2119_s18, 1  ;;  %s2119_s18 = sphi %s2157_s18, %s15_s18  }
   0x2   : > { %p187_p1 = scmp.lt.s32.totalorder %s2119_s18, 3 }
   0x4   : > { %p188_p2 = pnand %p1790_p0, %p187_p1 }
   0x5   : > { %p215_p3 = scmp.lt.s32.totalorder (!%p188_p2), %s1786_s19, 1  ;;  %v2077_v0 = vld [vmem:[%s2697_s1 + $0x40] sm:$0xff] (!%p188_p2)   ;;  %v2079_v2 = vld [vmem:[%s2697_s1 + $0x48] sm:$0xff] (!%p188_p2)   ;;  %v2081_v11 = vld [vmem:[%s2697_s1 + $0x50] sm:$0xff] (!%p188_p2)   ;;  %v472_v12 = vlaneseq (!%p188_p2)  ;;  %v2121_v18 = vmov (!%p188_p2), 1983009808  }
   0x6   : > { %191 = sbr.rel (%p188_p2) target bundleno = 799 (0x31f), region = 40  ;;  %v2078_v1 = vld [vmem:[%s2697_s1] sm:$0xff] (!%p188_p2)   ;;  %1880 = vmatprep.subr.bf16.mxu0 (!%p188_p2), %v2077_v0  ;;  %v2080_v3 = vld [vmem:[%s2697_s1 + $0x8] sm:$0xff] (!%p188_p2)   ;;  %v2082_v13 = vld [vmem:[%s2697_s1 + $0x10] sm:$0xff] (!%p188_p2)   ;;  %v470_v19 = vunpack.c.l.s4 (!%p188_p2), %v2121_v18  ;;  %s2122_s15 = smov (!%p188_p2), 32   ;;  %v2125_v58 = vmov (!%p188_p2), 0.0  }
   0x7   : > { %1881 = vmatpush3.bf16.msra.mxu0 (!%p188_p2), %v2078_v1  ;;  %v2083_v24 = vld [vmem:[%s2697_s1 + $0x58] sm:$0xff] (!%p188_p2)   ;;  %v2217_v28 = vshrl.u32 (!%p188_p2), %v472_v12, 7  ;;  %v2085_v39 = vld [vmem:[%s2697_s1 + $0x60] sm:$0xff] (!%p188_p2)   ;;  %s2123_s22 = smov (!%p188_p2), 64   ;;  %s2124_s23 = smov (!%p188_p2), 96   ;;  %v2088_v48 = vld [vmem:[%s2697_s1 + $0x68] sm:$0xff] (!%p188_p2)   ;;  %1944 = vmatprep.subr.bf16.mxu1 (!%p188_p2), %v2125_v58 }
   0x8   : > { %1882 = vmatprep.subr.bf16.mxu0 (!%p188_p2), %v2079_v2  ;;  %v2084_v32 = vld [vmem:[%s2697_s1 + $0x18] sm:$0xff] (!%p188_p2)   ;;  %v471_v34 = vunpack.c.0.s8 (!%p188_p2), %v470_v19  ;;  %v2086_v43 = vld [vmem:[%s2697_s1 + $0x20] sm:$0xff] (!%p188_p2)   ;;  %v2089_v52 = vld [vmem:[%s2697_s1 + $0x28] sm:$0xff] (!%p188_p2)   ;;  %vm2126_vm0 = vmmov (!%p188_p2), 0   ;;  %vm415_vm1 = vcmask (!%p188_p2), 261120   ;;  %vm422_vm2 = vcmask (!%p188_p2), 523264  }
   0x9   : > { %v2087_v51 = vld [vmem:[%s2697_s1 + $0x80] sm:$0xff] (!%p188_p2)   ;;  %v2090_v59 = vld [vmem:[%s2697_s1 + $0x88] sm:$0xff] (!%p188_p2)   ;;  %v2091_v62 = vld [vmem:[%s2697_s1 + $0x70] sm:$0xff] (!%p188_p2)   ;;  %1948 = vmatprep.mubr.msk.bf16.mxu1 (!%p188_p2), %vm2126_vm0, %v2125_v58  ;;  %vm429_vm3 = vcmask (!%p188_p2), 785408   ;;  %vm1211_vm4 = vcmp.ge.s32.totalorder (!%p188_p2), %v2217_v28, 1  ;;  %vm1214_vm5 = vcmp.le.s32.totalorder (!%p188_p2), %v2217_v28, 4 }
   0xa   : > { %v2257_v47 = vsub.s32 (!%p188_p2), %v471_v34, %v2217_v28  ;;  %1945 = vmatpush3.bf16.msra.mxu1 (!%p188_p2), %v2087_v51  ;;  %v2092_v1 = vld [vmem:[%s2697_s1 + $0x30] sm:$0xff] (!%p188_p2)   ;;  %v2094_v12 = vld [vmem:[%s2697_s1 + $0x38] sm:$0xff] (!%p188_p2)   ;;  %vm2521_vm6 = vmand (!%p188_p2), %vm1211_vm4, %vm1214_vm5  ;;  %vm250_vm7 = vcmask (!%p188_p2), 1041408   ;;  %vm251_vm8 = vcmask (!%p188_p2), 1045508   ;;  %vm1726_vm10 = vcmask (!%p188_p2), 254976  }
   0xb   : > { %1883 = vmatpush3.bf16.msra.mxu0 (!%p188_p2), %v2080_v3  ;;  %1946 = vmatprep.subr.bf16.mxu1 (!%p188_p2), %v2125_v58  ;;  %vm252_vm9 = vmor (!%p188_p2), %vm250_vm7, %vm251_vm8 }
   0xc   : > { %1884 = vmatprep.subr.bf16.mxu0 (!%p188_p2), %v2081_v11 }
   0xd   : > { %s2705_s19 = smov (!%p215_p3, %s1786_s19), 1 }
   0xe   : > { %s1859_s26 = sshll.u32 %s2705_s19, 5  ;;  %1947 = vmatpush3.bf16.msra.mxu1 %v2090_v59  ;;  %s1860_s12 = sshll.u32 %s2705_s19, 3 }
   0xf   : > { %s219_s6 = scalar_lea.vmem %s2696_s0, %s1859_s26  ;;  %1885 = vmatpush3.bf16.msra.mxu0 %v2082_v13  ;;  %s224_s16 = scalar_lea.vmem %s2701_s5, %s1860_s12 }
  0x10   : > { %v1862_v4 = vld [vmem:[%s219_s6] sm:$0xff]   ;;  %v1877_v5 = vld [vmem:[%s219_s6 + $0x8] sm:$0xff]   ;;  %v1878_v8 = vld [vmem:[%s219_s6 + $0x10] sm:$0xff]   ;;  %1886 = vmatprep.subr.bf16.mxu0 %v2083_v24 }
  0x11   : > { %v1864_v6 = vunpack.c.h.bf16 %v1862_v4  ;;  %v2183_v7 = vunpack.c.l.bf16 %v1877_v5  ;;  %v1863_v9 = vunpack.c.l.bf16 %v1862_v4  ;;  %v2185_v10 = vunpack.c.h.bf16 %v1877_v5  ;;  %v1879_v27 = vld [vmem:[%s219_s6 + $0x18] sm:$0xff]  }
  0x12   : > { %v2215_v26 = vunpack.c.l.bf16 %v1878_v8  ;;  %v2226_v33 = vunpack.c.h.bf16 %v1878_v8  ;;  %v1875_v41 = vunpack.c.l.bf16 %v1879_v27  ;;  %v1876_v42 = vunpack.c.h.bf16 %v1879_v27 }
  0x13   : > { %v2193_v14 = vmax.f32 %v1864_v6, 0.0  ;;  %v2196_v15 = vmax.f32 %v2183_v7, 0.0  ;;  %v2198_v16 = vmax.f32 %v1863_v9, 0.0  ;;  %v2201_v17 = vmax.f32 %v2185_v10, 0.0  ;;  %1887 = vmatpush3.bf16.msra.mxu0 %v2084_v32  ;;  %v2093_v9 = vld [vmem:[%s2697_s1 + $0x78] sm:$0xff]  }
  0x14   : > { %v2243_v40 = vmax.f32 %v2215_v26, 0.0  ;;  %1888 = vmatprep.subr.bf16.mxu0 %v2085_v39  ;;  %v2254_v46 = vmax.f32 %v2226_v33, 0.0  ;;  %v2262_v49 = vmax.f32 %v1875_v41, 0.0  ;;  %v2264_v50 = vmax.f32 %v1876_v42, 0.0 }
  0x15   : > { %v284_v20 = vrot.slane %v2193_v14, 1  ;;  %v2205_v21 = vrot.slane %v2196_v15, 2  ;;  %v283_v22 = vrot.slane %v2198_v16, 1  ;;  %v308_v23 = vrot.slane %v2193_v14, 2 }
  0x16   : > { %v2213_v25 = vrot.slane %v2201_v17, 1  ;;  %v307_v31 = vrot.slane %v2198_v16, 2  ;;  %v2234_v37 = vrot.slane %v2196_v15, 1  ;;  %v2237_v38 = vrot.slane %v2201_v17, 2 }
  0x17   : > { %v1982_v29 = vpack.i.bf16 %v2205_v21, %v284_v20  ;;  %v1992_v30 = vpack.i.bf16 %v308_v23, %v283_v22  ;;  %v1987_v35 = vpack.i.bf16 %v2201_v17, %v308_v23  ;;  %1889 = vmatpush3.bf16.msra.mxu0 %v2086_v43  ;;  %v2273_v53 = vrot.slane %v2243_v40, 1 }
  0x18   : > { %v1997_v36 = vpack.i.bf16 %v2213_v25, %v2196_v15  ;;  %v2002_v44 = vpack.i.bf16 %v2196_v15, %v307_v31  ;;  %v2007_v45 = vpack.i.bf16 %v2237_v38, %v2234_v37  ;;  %1890 = vmatprep.subr.bf16.mxu0 %v2088_v48  ;;  %v468_v54 = vcombine.high %v2205_v21, %v2205_v21 }
  0x19   : > { %1983 = vrot.lane.b32.xlu0 %v1982_v29, %s2122_s15  ;;  %1993 = vrot.lane.b32.xlu1 %v1992_v30, %s2122_s15  ;;  %v489_v55 = vrot.slane %v2205_v21, %v2257_v47  ;;  %v2012_v56 = vpack.i.bf16 %v2234_v37, %v2193_v14  ;;  %v2017_v57 = vpack.i.bf16 %v2243_v40, %v2205_v21  ;;  %v2290_v60 = vrot.slane %v2243_v40, 2 }
  0x1a   : > { %v2294_v61 = vrot.slane %v2237_v38, %v2257_v47  ;;  %v496_v63 = vrot.slane %v468_v54, %v2257_v47  ;;  %v2301_v0 = vrot.slane %v2254_v46, 1  ;;  %v2022_v4 = vpack.i.bf16 %v2273_v53, %v2201_v17 }
  0x1b   : > { %1891 = vmatpush3.bf16.msra.mxu0 %v2089_v52  ;;  %v2311_v3 = vrot.slane %v489_v55, %v2257_v47  ;;  %v2027_v5 = vpack.i.bf16 %v2290_v60, %v2213_v25  ;;  %v357_v6 = vrot.slane %v2262_v49, 2  ;;  %v2327_v11 = vrot.slane %v2264_v50, 2 }
  0x1c   : > { %v1800_v2 = vcombine.low %v496_v63, %v2294_v61  ;;  %1892 = vmatprep.subr.bf16.mxu0 %v2091_v62  ;;  %v2032_v19 = vpack.i.bf16 %v2254_v46, %v2237_v38  ;;  %v2037_v21 = vpack.i.bf16 %v2301_v0, %v2273_v53  ;;  %v2341_v22 = vrot.slane %v2254_v46, 2 }
  0x1d   : > { %1988 = vrot.lane.b32.xlu0 %v1987_v35, %s2123_s22  ;;  %1998 = vrot.lane.b32.xlu1 %v1997_v36, %s2124_s23  ;;  %v604_v13 = vcombine.high %v357_v6, %v357_v6  ;;  %v2346_v24 = vrot.slane %v2327_v11, %v2257_v47  ;;  %v536_v27 = vcombine.high %v2290_v60, %v2290_v60  ;;  %v350_v42 = vrot.slane %v2262_v49, 1 }
  0x1e   : > { %v2321_v8 = vrot.slane %v1800_v2, %v2257_v47  ;;  %v2042_v29 = vpack.i.bf16 %v2301_v0, %v2243_v40  ;;  %v625_v30 = vrot.slane %v357_v6, %v2257_v47  ;;  %v2047_v31 = vpack.i.bf16 %v357_v6, %v2341_v22 }
  0x1f   : > { %1893 = vmatpush3.bf16.msra.mxu0 %v2092_v1  ;;  %v632_v23 = vrot.slane %v604_v13, %v2257_v47  ;;  %v2358_v32 = vrot.slane %v2341_v22, %v2257_v47  ;;  %v2361_v34 = vrot.slane %v536_v27, %v2257_v47  ;;  %v2052_v39 = vpack.i.bf16 %v2341_v22, %v2290_v60 }
  0x20   : > { %v704_v18 = vcombine.low %v2311_v3, %v2321_v8  ;;  %1894 = vmatprep.subr.bf16.mxu0 %v2093_v9  ;;  %v2057_v41 = vpack.i.bf16 %v2264_v50, %v2262_v49  ;;  %v395_v43 = vrot.slane %v2264_v50, 1  ;;  %v2062_v51 = vpack.i.bf16 %v2262_v49, %v2254_v46 }
  0x21   : > { %2003 = vrot.lane.b32.xlu0 %v2002_v44, %s2123_s22  ;;  %2008 = vrot.lane.b32.xlu1 %v2007_v45, %s2122_s15  ;;  %v1804_v35 = vcombine.low %v2361_v34, %v2358_v32  ;;  %v1808_v36 = vcombine.low %v632_v23, %v2346_v24  ;;  %v2375_v44 = vrot.slane %v625_v30, %v2257_v47 }
  0x22   : > { %v2067_v52 = vpack.i.bf16 %v395_v43, %v350_v42  ;;  %v502_v59 = vcombine.high %v2237_v38, %v2237_v38  ;;  %v557_v43 = vrot.slane %v2290_v60, %v2257_v47 }
  0x23   : > { %1895 = vmatpush3.bf16.msra.mxu0 %v2094_v12  ;;  %v2378_v45 = vrot.slane %v1808_v36, %v2257_v47 }
  0x25   : > { %2013 = vrot.lane.b32.xlu0 %v2012_v56, %s2124_s23  ;;  %2018 = vrot.lane.b32.xlu1 %v2017_v57, %s2123_s22  ;;  %v809_v48 = vcombine.low %v2375_v44, %v2378_v45 }
  0x29   : > { %2023 = vrot.lane.b32.xlu0 %v2022_v4, %s2124_s23  ;;  %2028 = vrot.lane.b32.xlu1 %v2027_v5, %s2122_s15 }
  0x2d   : > { %2033 = vrot.lane.b32.xlu0 %v2032_v19, %s2123_s22  ;;  %2038 = vrot.lane.b32.xlu1 %v2037_v21, %s2122_s15 }
  0x31   : > { %2043 = vrot.lane.b32.xlu0 %v2042_v29, %s2124_s23  ;;  %2048 = vrot.lane.b32.xlu1 %v2047_v31, %s2122_s15  ;;  %v530_v29 = vrot.slane %v502_v59, %v2257_v47 }
  0x35   : > { %2053 = vrot.lane.b32.xlu0 %v2052_v39, %s2123_s22  ;;  %2058 = vrot.lane.b32.xlu1 %v2057_v41, %s2123_s22  ;;  %v638_v39 = vcombine.high %v2327_v11, %v2327_v11 }
  0x39   : > { %2063 = vrot.lane.b32.xlu0 %v2062_v51, %s2124_s23  ;;  %2068 = vrot.lane.b32.xlu1 %v2067_v52, %s2124_s23 }
  0x8b   : > { %v1984_v50 = vpop.permute.xlu0 %1983  ;;  %v1994_v54 = vpop.permute.xlu1 %1993 }
  0x8c   : > { %v1986_v55 = vunpack.i.h.bf16 %v1984_v50  ;;  %v1985_v56 = vunpack.i.l.bf16 %v1984_v50  ;;  %v1996_v13 = vunpack.i.h.bf16 %v1994_v54  ;;  %v1995_v19 = vunpack.i.l.bf16 %v1994_v54 }
  0x8e   : > { %v437_v5 = vsel %vm415_vm1, %v2234_v37, %v1986_v55  ;;  %v417_v6 = vsel %vm415_vm1, %v2193_v14, %v1985_v56  ;;  %v436_v52 = vsel %vm415_vm1, %v284_v20, %v1996_v13  ;;  %v416_v50 = vsel %vm415_vm1, %v2198_v16, %v1995_v19 }
  0x8f   : > { %v1989_v57 = vpop.permute.xlu0 %1988  ;;  %v1999_v62 = vpop.permute.xlu1 %1998 }
  0x90   : > { %v1991_v63 = vunpack.i.h.bf16 %v1989_v57  ;;  %v1990_v1 = vunpack.i.l.bf16 %v1989_v57  ;;  %v2001_v2 = vunpack.i.h.bf16 %v1999_v62  ;;  %v2000_v4 = vunpack.i.l.bf16 %v1999_v62 }
  0x92   : > { %v424_v9 = vsel %vm422_vm2, %v417_v6, %v1990_v1  ;;  %v443_v12 = vsel %vm422_vm2, %v437_v5, %v1991_v63  ;;  %v736_v5 = vrot.slane %v557_v43, %v2257_v47 }
  0x93   : > { %v449_v21 = vsel %vm429_vm3, %v443_v12, %v2001_v2  ;;  %v431_v38 = vsel %vm429_vm3, %v424_v9, %v2000_v4  ;;  %v2004_v23 = vpop.permute.xlu0 %2003  ;;  %v2009_v27 = vpop.permute.xlu1 %2008 }
  0x94   : > { %v500_v30 = vcombine.low %v431_v38, %v449_v21  ;;  %v501_v31 = vcombine.high %v431_v38, %v449_v21  ;;  %v2006_v37 = vunpack.i.h.bf16 %v2004_v23  ;;  %v2005_v36 = vunpack.i.l.bf16 %v2004_v23 }
  0x95   : > { %v2011_v54 = vunpack.i.h.bf16 %v2009_v27  ;;  %v2010_v55 = vunpack.i.l.bf16 %v2009_v27  ;;  %v570_v21 = vcombine.high %v2341_v22, %v2341_v22 }
  0x96   : > { %v516_v41 = vrot.slane %v501_v31, %v2257_v47  ;;  %v509_v51 = vrot.slane %v500_v30, %v2257_v47  ;;  %v423_v1 = vsel %vm422_vm2, %v416_v50, %v2005_v36  ;;  %v442_v60 = vsel %vm422_vm2, %v436_v52, %v2006_v37 }
  0x97   : > { %v2014_v56 = vpop.permute.xlu0 %2013  ;;  %v2019_v57 = vpop.permute.xlu1 %2018  ;;  %v438_v6 = vsel %vm415_vm1, %v2213_v25, %v2011_v54  ;;  %v418_v38 = vsel %vm415_vm1, %v2196_v15, %v2010_v55 }
  0x98   : > { %v533_v59 = vcombine.low %v516_v41, %v530_v29  ;;  %v2016_v11 = vunpack.i.h.bf16 %v2014_v56  ;;  %v2015_v62 = vunpack.i.l.bf16 %v2014_v56  ;;  %v2021_v63 = vunpack.i.h.bf16 %v2019_v57 }
  0x99   : > { %v2020_v2 = vunpack.i.l.bf16 %v2019_v57  ;;  %v532_v14 = vcombine.high %v509_v51, %v2294_v61 }
  0x9a   : > { %v1802_v20 = vcombine.high %v2294_v61, %v533_v59  ;;  %v430_v4 = vsel %vm429_vm3, %v423_v1, %v2015_v62  ;;  %v448_v16 = vsel %vm429_vm3, %v442_v60, %v2016_v11  ;;  %v444_v61 = vsel %vm422_vm2, %v438_v6, %v2021_v63 }
  0x9b   : > { %v466_v9 = vcombine.low %v430_v4, %v448_v16  ;;  %v467_v12 = vcombine.high %v430_v4, %v448_v16  ;;  %v2024_v13 = vpop.permute.xlu0 %2023  ;;  %v2029_v19 = vpop.permute.xlu1 %2028  ;;  %v425_v29 = vsel %vm422_vm2, %v418_v38, %v2020_v2  ;;  %v1801_v31 = vcombine.low %v532_v14, %v516_v41 }
  0x9c   : > { %v2026_v23 = vunpack.i.h.bf16 %v2024_v13  ;;  %v2025_v27 = vunpack.i.l.bf16 %v2024_v13  ;;  %v722_v30 = vrot.slane %v1802_v20, %v2257_v47  ;;  %v2031_v43 = vunpack.i.h.bf16 %v2029_v19 }
  0x9d   : > { %v482_v25 = vrot.slane %v467_v12, %v2257_v47  ;;  %v2030_v22 = vunpack.i.l.bf16 %v2029_v19  ;;  %v475_v55 = vrot.slane %v466_v9, %v2257_v47  ;;  %v598_v11 = vrot.slane %v570_v21, %v2257_v47 }
  0x9e   : > { %v432_v37 = vsel %vm429_vm3, %v425_v29, %v2025_v27  ;;  %v450_v36 = vsel %vm429_vm3, %v444_v61, %v2026_v23  ;;  %v739_v54 = vcombine.low %v722_v30, %v736_v5  ;;  %v715_v63 = vrot.slane %v1801_v31, %v2257_v47 }
  0x9f   : > { %v534_v52 = vcombine.low %v432_v37, %v450_v36  ;;  %v2034_v50 = vpop.permute.xlu0 %2033  ;;  %v2039_v15 = vpop.permute.xlu1 %2038  ;;  %v1799_v56 = vcombine.low %v482_v25, %v509_v51  ;;  %v2439_v1 = vrot.slane %v638_v39, %v2257_v47  ;;  %v535_v60 = vcombine.high %v432_v37, %v450_v36 }
  0xa0   : > { %v2036_v57 = vunpack.i.h.bf16 %v2034_v50  ;;  %v2035_v59 = vunpack.i.l.bf16 %v2034_v50  ;;  %v844_v41 = vpack.c.bf16 %v739_v54, %v704_v18  ;;  %v439_v2 = vsel %vm415_vm1, %v2273_v53, %v2031_v43 }
  0xa1   : > { %v543_v62 = vrot.slane %v534_v52, %v2257_v47  ;;  %v419_v51 = vsel %vm415_vm1, %v2201_v17, %v2030_v22  ;;  %v2041_v14 = vunpack.i.h.bf16 %v2039_v15  ;;  %v2040_v20 = vunpack.i.l.bf16 %v2039_v15 }
  0xa2   : > { %1949 = vmatmul.mubr.msk.bf16.vlgmr.msra.gmra.mrb[0].mxu1 %vm415_vm1, %v844_v41  ;;  %v680_v18 = vrot.slane %v475_v55, %v2257_v47  ;;  %v694_v4 = vrot.slane %v1799_v56, %v2257_v47  ;;  %v426_v16 = vsel %vm422_vm2, %v419_v51, %v2035_v59  ;;  %v445_v5 = vsel %vm422_vm2, %v439_v2, %v2036_v57 }
  0xa3   : > { %v2044_v3 = vpop.permute.xlu0 %2043  ;;  %v2049_v8 = vpop.permute.xlu1 %2048  ;;  %v729_v39 = vrot.slane %v543_v62, %v2257_v47  ;;  %1952 = vmatprep.mubr.msk.bf16.mxu1 %vm2126_vm0, %v2125_v58  ;;  %v550_v37 = vrot.slane %v535_v60, %v2257_v47  ;;  %v757_v22 = vrot.slane %v1804_v35, %v2257_v47  ;;  %v421_v55 = vsel %vm415_vm1, %v2254_v46, %v2041_v14 }
  0xa4   : > { %v2046_v53 = vunpack.i.h.bf16 %v2044_v3  ;;  %v2045_v6 = vunpack.i.l.bf16 %v2044_v3  ;;  %v703_v17 = vcombine.high %v680_v18, %v694_v4  ;;  %v702_v12 = vcombine.low %v680_v18, %v694_v4 }
  0xa5   : > { %v738_v9 = vcombine.high %v715_v63, %v729_v39  ;;  %v737_v13 = vcombine.low %v715_v63, %v729_v39  ;;  %v2051_v38 = vunpack.i.h.bf16 %v2049_v8  ;;  %v2050_v61 = vunpack.i.l.bf16 %v2049_v8 }
  0xa6   : > { %v433_v19 = vsel %vm429_vm3, %v426_v16, %v2045_v6  ;;  %v451_v21 = vsel %vm429_vm3, %v445_v5, %v2046_v53  ;;  %v420_v56 = vsel %vm415_vm1, %v2243_v40, %v2040_v20 }
  0xa7   : > { %v568_v23 = vcombine.low %v433_v19, %v451_v21  ;;  %v569_v27 = vcombine.high %v433_v19, %v451_v21  ;;  %v2054_v29 = vpop.permute.xlu0 %2053  ;;  %v2059_v30 = vpop.permute.xlu1 %2058  ;;  %v843_v25 = vpack.c.bf16 %v738_v9, %v703_v17  ;;  %v842_v31 = vpack.c.bf16 %v737_v13, %v702_v12 }
  0xa8   : > { %v2056_v36 = vunpack.i.h.bf16 %v2054_v29  ;;  %v2055_v43 = vunpack.i.l.bf16 %v2054_v29  ;;  %v2061_v15 = vunpack.i.h.bf16 %v2059_v30  ;;  %v2060_v54 = vunpack.i.l.bf16 %v2059_v30 }
  0xa9   : > { %v577_v52 = vrot.slane %v568_v23, %v2257_v47  ;;  %v584_v50 = vrot.slane %v569_v27, %v2257_v47  ;;  %1043 = vmatprep.mubr.bf16.mxu0 %v843_v25  ;;  %v441_v57 = vsel %vm415_vm1, %v350_v42, %v2051_v38  ;;  %v440_v34 = vsel %vm415_vm1, %v2301_v0, %v2050_v61 }
  0xaa   : > { %1044 = vmatmul.mubr.bf16.vlgmr.msra.gmra.mrb[0].mxu0 %v842_v31  ;;  %v427_v41 = vsel %vm422_vm2, %v420_v56, %v2055_v43  ;;  %v428_v62 = vsel %vm422_vm2, %v421_v55, %v2056_v36  ;;  %v446_v42 = vsel %vm422_vm2, %v440_v34, %v2060_v54  ;;  %v447_v0 = vsel %vm422_vm2, %v441_v57, %v2061_v15 }
  0xab   : > { %v600_v35 = vcombine.high %v577_v52, %v2358_v32  ;;  %v601_v59 = vcombine.low %v584_v50, %v598_v11  ;;  %v2064_v63 = vpop.permute.xlu0 %2063  ;;  %v2069_v46 = vpop.permute.xlu1 %2068  ;;  %v1333_v15 = vrot.slane %v2125_v58, 1  ;;  %v2504_v54 = vrot.slane %v2125_v58, 2 }
  0xac   : > { %v2066_v60 = vunpack.i.h.bf16 %v2064_v63  ;;  %v2065_v2 = vunpack.i.l.bf16 %v2064_v63  ;;  %v2071_v40 = vunpack.i.h.bf16 %v2069_v46  ;;  %v2070_v51 = vunpack.i.l.bf16 %v2069_v46 }
  0xad   : > { %v1806_v49 = vcombine.high %v2358_v32, %v601_v59  ;;  %v1805_v14 = vcombine.low %v600_v35, %v584_v50  ;;  %v1803_v32 = vcombine.low %v550_v37, %v577_v52  ;;  %1337 = vrot.lane.b32.xlu0 %v1333_v15, %s2122_s15  ;;  %v2072_v55 = vpack.i.bf16 %v2504_v54, %v2125_v58 }
  0xae   : > { %v434_v20 = vsel %vm429_vm3, %v427_v41, %v2065_v2  ;;  %v435_v11 = vsel %vm429_vm3, %v428_v62, %v2066_v60  ;;  %v452_v3 = vsel %vm429_vm3, %v446_v42, %v2070_v51  ;;  %v453_v8 = vsel %vm429_vm3, %v447_v0, %v2071_v40  ;;  %v1811_v41 = vld [vmem:[%s2698_s2] ss:$0 sm:$0xff] }
  0xaf   : > { %v602_v18 = vcombine.low %v434_v20, %v452_v3  ;;  %v603_v4 = vcombine.high %v434_v20, %v452_v3  ;;  %v636_v39 = vcombine.low %v435_v11, %v453_v8  ;;  %v637_v16 = vcombine.high %v435_v11, %v453_v8  ;;  %2073 = vrot.lane.b32.xlu1 %v2072_v55, %s2123_s22 }
  0xb0   : > { %v771_v5 = vrot.slane %v1806_v49, %v2257_v47  ;;  %v764_v13 = vrot.slane %v1805_v14, %v2257_v47  ;;  %v750_v23 = vrot.slane %v1803_v32, %v2257_v47 }
  0xb1   : > { %v611_v53 = vrot.slane %v602_v18, %v2257_v47  ;;  %v618_v6 = vrot.slane %v603_v4, %v2257_v47  ;;  %v645_v17 = vrot.slane %v636_v39, %v2257_v47  ;;  %v652_v9 = vrot.slane %v637_v16, %v2257_v47  ;;  %1416 = vrot.lane.b32.xlu0 %v1333_v15, %s2124_s23  ;;  %v2096_v15 = vld [vmem:[%s2699_s3] sm:$0xff]  }
  0xb2   : > { %v774_v12 = vcombine.low %v757_v22, %v771_v5  ;;  %v773_v31 = vcombine.high %v750_v23, %v764_v13  ;;  %v772_v37 = vcombine.low %v750_v23, %v764_v13 }
  0xb3   : > { %v669_v19 = vcombine.low %v652_v9, %v2439_v1  ;;  %v1807_v21 = vcombine.low %v618_v6, %v645_v17  ;;  %v668_v38 = vcombine.high %v645_v17, %v2346_v24  ;;  %v785_v27 = vrot.slane %v611_v53, %v2257_v47 }
  0xb4   : > { %v847_v61 = vpack.c.bf16 %v809_v48, %v774_v12 }
  0xb5   : > { %v799_v29 = vrot.slane %v1807_v21, %v2257_v47  ;;  %v1809_v30 = vcombine.low %v668_v38, %v652_v9  ;;  %v1810_v25 = vcombine.high %v2346_v24, %v669_v19 }
  0xb6   : > { %1953 = vmatmul.mubr.msk.bf16.gmra.mrb[4].mxu1 %vm415_vm1, %v847_v61 }
  0xb7   : > { %v808_v1 = vcombine.high %v785_v27, %v799_v29  ;;  %v807_v36 = vcombine.low %v785_v27, %v799_v29  ;;  %1956 = vmatprep.mubr.msk.bf16.mxu1 %vm2126_vm0, %v2125_v58  ;;  %v818_v44 = vrot.slane %v1809_v30, %v2257_v47  ;;  %v825_v45 = vrot.slane %v1810_v25, %v2257_v47 }
  0xb9   : > { %v846_v48 = vpack.c.bf16 %v808_v1, %v773_v31  ;;  %v845_v43 = vpack.c.bf16 %v807_v36, %v772_v37  ;;  %v826_v22 = vcombine.high %v818_v44, %v818_v44  ;;  %v850_v24 = vpack.c.bf16 %v825_v45, %v825_v45 }
  0xba   : > { %v848_v50 = vpack.c.bf16 %v818_v44, %v818_v44 }
  0xbb   : > { %1051 = vmatprep.mubr.bf16.mxu0 %v846_v48  ;;  %v849_v52 = vpack.c.bf16 %v826_v22, %v826_v22 }
  0xbc   : > { %1052 = vmatmul.mubr.bf16.gmra.mrb[4].mxu0 %v845_v43 }
  0xbd   : > { %1059 = vmatprep.mubr.bf16.mxu0 %v849_v52 }
  0xbe   : > { %1957 = vmatmul.mubr.msk.bf16.gmra.mrb[8].mxu1 %vm415_vm1, %v850_v24 }
  0xc4   : > { %1060 = vmatmul.mubr.bf16.gmra.mrb[8].mxu0 %v848_v50  ;;  %v2095_v50 = vld [vmem:[%s2699_s3 + $0x40] sm:$0xff]  }
  0xc5   : > { %1919 = vmatprep.subr.bf16.mxu1 %v2095_v50 }
  0xc6   : > { %1920 = vmatpush3.bf16.msra.mxu1 %v2096_v15 }
 0x175   : > { %v1101_v56 = vpop.f32.mrb[0].mxu1 }
 0x176   : > { %v1950_v57 = vpop.f32.mrb[1].mxu1 }
 0x177   : > { %v1104_v34 = vpop.f32.mrb[2].mxu1 }
 0x178   : > { %v1951_v35 = vpop.f32.mrb[3].mxu1 }
 0x17d   : > { %v1896_v59 = vpop.f32.mrb[0].mxu0 }
 0x17e   : > { %v1897_v62 = vpop.f32.mrb[1].mxu0 }
 0x17f   : > { %v1898_v63 = vadd.f32 %v1897_v62, %v1896_v59  ;;  %v1899_v46 = vpop.f32.mrb[2].mxu0 }
 0x180   : > { %v1900_v60 = vpop.f32.mrb[3].mxu0 }
 0x181   : > { %v1046_v2 = vadd.f32 %v1898_v63, %v1811_v41  ;;  %v1901_v40 = vadd.f32 %v1900_v60, %v1899_v46 }
 0x183   : > { %v1102_v51 = vadd.f32 %v1101_v56, %v1046_v2  ;;  %v1049_v49 = vadd.f32 %v1901_v40, %v1811_v41  ;;  %v2097_v40 = vld [vmem:[%s2699_s3 + $0x48] sm:$0xff]  }
 0x184   : > { %1921 = vmatprep.subr.bf16.mxu1 %v2097_v40 }
 0x185   : > { %v1123_v42 = vmax.f32 %v1102_v51, 0.0  ;;  %v1105_v0 = vadd.f32 %v1104_v34, %v1049_v49  ;;  %v2098_v51 = vld [vmem:[%s2699_s3 + $0x8] sm:$0xff]  }
 0x186   : > { %1922 = vmatpush3.bf16.msra.mxu1 %v2098_v51 }
 0x187   : > { %v1133_v14 = vcombine.high %v1123_v42, %v1123_v42  ;;  %v1124_v20 = vmax.f32 %v1105_v0, 0.0 }
 0x189   : > { %v1147_v11 = vrot.slane %v1133_v14, %v2257_v47  ;;  %v1157_v3 = vrot.slane %v1124_v20, %v2257_v47  ;;  %v1109_v8 = vpop.f32.mrb[4].mxu1  ;;  %v1150_v18 = vcombine.high %v1124_v20, %v1124_v20 }
 0x18a   : > { %v1954_v4 = vpop.f32.mrb[5].mxu1 }
 0x18b   : > { %v1149_v39 = vcombine.high %v1147_v11, %v1147_v11  ;;  %v1165_v16 = vcombine.high %v1157_v3, %v1157_v3  ;;  %v1112_v5 = vpop.f32.mrb[6].mxu1  ;;  %v1164_v6 = vrot.slane %v1150_v18, %v2257_v47  ;;  %v2099_v18 = vld [vmem:[%s2699_s3 + $0x50] sm:$0xff]  }
 0x18c   : > { %v1955_v32 = vpop.f32.mrb[7].mxu1  ;;  %v2100_v4 = vld [vmem:[%s2699_s3 + $0x10] sm:$0xff]   ;;  %1923 = vmatprep.subr.bf16.mxu1 %v2099_v18 }
 0x18d   : > { %v1237_v53 = vcombine.low %v1149_v39, %v1157_v3  ;;  %v1251_v12 = vrot.slane %v1165_v16, %v2257_v47  ;;  %v1166_v27 = vcombine.high %v1164_v6, %v1164_v6  ;;  %1924 = vmatpush3.bf16.msra.mxu1 %v2100_v4 }
 0x18f   : > { %v1902_v17 = vpop.f32.mrb[4].mxu0  ;;  %v1244_v9 = vrot.slane %v1237_v53, %v2257_v47  ;;  %v1253_v48 = vcombine.low %v1164_v6, %v1166_v27 }
 0x190   : > { %v1903_v13 = vpop.f32.mrb[5].mxu0 }
 0x191   : > { %v1904_v21 = vadd.f32 %v1903_v13, %v1902_v17  ;;  %v1117_v38 = vpop.f32.mrb[8].mxu1  ;;  %v1905_v61 = vpop.f32.mrb[6].mxu0  ;;  %v1252_v23 = vcombine.low %v1244_v9, %v1251_v12  ;;  %v2101_v17 = vld [vmem:[%s2699_s3 + $0x58] sm:$0xff]  }
 0x192   : > { %v1958_v29 = vpop.f32.mrb[9].mxu1  ;;  %v1906_v30 = vpop.f32.mrb[7].mxu0  ;;  %v2102_v9 = vld [vmem:[%s2699_s3 + $0x18] sm:$0xff]   ;;  %1925 = vmatprep.subr.bf16.mxu1 %v2101_v17 }
 0x193   : > { %v1054_v28 = vadd.f32 %v1904_v21, %v1811_v41  ;;  %v1907_v25 = vadd.f32 %v1906_v30, %v1905_v61  ;;  %v1120_v31 = vpop.f32.mrb[10].mxu1  ;;  %v2527_v1 = vsel %vm2521_vm6, %v1252_v23, 0.0  ;;  %1926 = vmatpush3.bf16.msra.mxu1 %v2102_v9  ;;  %v2103_v61 = vld [vmem:[%s2699_s3 + $0x60] sm:$0xff]   ;;  %v2105_v30 = vld [vmem:[%s2699_s3 + $0x68] sm:$0xff]  }
 0x194   : > { %v1959_v37 = vpop.f32.mrb[11].mxu1  ;;  %1366 = vrot.lane.b32.xlu1 %v2527_v1, %s2124_s23  ;;  %v1350_v36 = vrot.slane %v2527_v1, 2  ;;  %v1334_v43 = vrot.slane %v2527_v1, 1  ;;  %v2104_v23 = vld [vmem:[%s2699_s3 + $0x20] sm:$0xff]   ;;  %1927 = vmatprep.subr.bf16.mxu1 %v2103_v61  ;;  %v2108_v31 = vld [vmem:[%s2699_s3 + $0x30] sm:$0xff]  }
 0x195   : > { %v1110_v44 = vadd.f32 %v1109_v8, %v1054_v28  ;;  %v1057_v45 = vadd.f32 %v1907_v25, %v1811_v41  ;;  %v1260_v41 = vrot.slane %v1253_v48, %v2257_v47  ;;  %v2106_v28 = vld [vmem:[%s2699_s3 + $0x28] sm:$0xff]   ;;  %v2107_v25 = vld [vmem:[%s2699_s3 + $0x70] sm:$0xff]   ;;  %v2109_v37 = vld [vmem:[%s2699_s3 + $0x78] sm:$0xff]   ;;  %v2074_v48 = vpop.permute.xlu1 %2073 }
 0x196   : > { %1384 = vrot.lane.b32.xlu0 %v1350_v36, %s2122_s15  ;;  %v2075_v40 = vunpack.i.l.bf16 %v2074_v48 }
 0x197   : > { %v1125_v22 = vmax.f32 %v1110_v44, 0.0  ;;  %v1113_v52 = vadd.f32 %v1112_v5, %v1057_v45  ;;  %v1908_v24 = vpop.f32.mrb[8].mxu0  ;;  %1928 = vmatpush3.bf16.msra.mxu1 %v2104_v23  ;;  %v1338_v45 = vpop.permute.xlu0 %1337 }
 0x198   : > { %v1909_v55 = vpop.f32.mrb[9].mxu0  ;;  %1339 = vrot.lane.b32.xlu1 %v1334_v43, %s2122_s15  ;;  %1929 = vmatprep.subr.bf16.mxu1 %v2105_v30 }
 0x199   : > { %v1167_v56 = vcombine.high %v1125_v22, %v1125_v22  ;;  %v1174_v57 = vrot.slane %v1125_v22, %v2257_v47  ;;  %v1126_v34 = vmax.f32 %v1113_v52, 0.0  ;;  %v1911_v35 = vpop.f32.mrb[10].mxu0 }
 0x19a   : > { %v1912_v59 = vpop.f32.mrb[11].mxu0 }
 0x19b   : > { %v1181_v62 = vrot.slane %v1167_v56, %v2257_v47  ;;  %v1182_v63 = vcombine.high %v1174_v57, %v1174_v57  ;;  %v1267_v46 = vrot.slane %v1174_v57, %v2257_v47  ;;  %v1184_v60 = vcombine.high %v1126_v34, %v1126_v34  ;;  %1930 = vmatpush3.bf16.msra.mxu1 %v2106_v28  ;;  %v1417_v22 = vpop.permute.xlu0 %1416 }
 0x19c   : > { %v1191_v2 = vrot.slane %v1126_v34, %v2257_v47  ;;  %1931 = vmatprep.subr.bf16.mxu1 %v2107_v25 }
 0x19d   : > { %v1183_v49 = vcombine.high %v1181_v62, %v1181_v62  ;;  %v1269_v42 = vcombine.low %v1182_v63, %v1181_v62  ;;  %v1268_v0 = vcombine.low %v1260_v41, %v1267_v46  ;;  %v1198_v14 = vrot.slane %v1184_v60, %v2257_v47 }
 0x19e   : > { %v1199_v20 = vcombine.high %v1191_v2, %v1191_v2 }
 0x19f   : > { %v2557_v11 = vsel %vm2521_vm6, %v1268_v0, 0.0  ;;  %v1276_v3 = vrot.slane %v1269_v42, %v2257_v47  ;;  %v1283_v8 = vrot.slane %v1183_v49, %v2257_v47  ;;  %v1299_v53 = vrot.slane %v1198_v14, %v2257_v47  ;;  %1932 = vmatpush3.bf16.msra.mxu1 %v2108_v31 }
 0x1a0   : > { %v1285_v39 = vcombine.low %v1191_v2, %v1199_v20  ;;  %1397 = vrot.lane.b32.xlu0 %v2557_v11, %s2123_s22  ;;  %v1351_v16 = vrot.slane %v2557_v11, 2  ;;  %v1335_v27 = vrot.slane %v2557_v11, 1  ;;  %1933 = vmatprep.subr.bf16.mxu1 %v2109_v37  ;;  %v2076_v42 = vunpack.i.h.bf16 %v2074_v48  ;;  %v2111_v37 = vld [vmem:[%s2699_s3 + $0x80] sm:$0xff]  }
 0x1a1   : > { %v1284_v5 = vcombine.low %v1276_v3, %v1283_v8  ;;  %v1423_v3 = vsel %vm415_vm1, 0.0, %v1338_v45  ;;  %v247_v45 = vcombine.high %v2185_v10, %v2185_v10  ;;  %v248_v48 = vcombine.high %v2215_v26, %v2215_v26 }
 0x1a2   : > { %1386 = vrot.lane.b32.xlu1 %v1351_v16, %s2122_s15  ;;  %v1292_v32 = vrot.slane %v1285_v39, %v2257_v47 }
 0x1a3   : > { %v2575_v6 = vsel %vm2521_vm6, %v1284_v5, 0.0 }
 0x1a4   : > { %1355 = vrot.lane.b32.xlu0 %v1350_v36, %s2123_s22  ;;  %v1352_v12 = vrot.slane %v2575_v6, 2  ;;  %v1300_v13 = vcombine.low %v1292_v32, %v1299_v53  ;;  %v2110_v36 = vld [vmem:[%s2699_s3 + $0x38] sm:$0xff]  }
 0x1a5   : > { %1934 = vmatpush3.bf16.msra.mxu1 %v2110_v36  ;;  %v2112_v36 = vld [vmem:[%s2699_s3 + $0x88] sm:$0xff]  }
 0x1a6   : > { %1357 = vrot.lane.b32.xlu1 %v1351_v16, %s2123_s22  ;;  %v1461_v47 = vcombine.low %v1351_v16, %v1352_v12  ;;  %v1327_v21 = vsel %vm2521_vm6, %v1300_v13, 0.0  ;;  %1960 = vmatprep.subr.bf16.mxu1 %v2125_v58 }
 0x1a7   : > { %v1383_v38 = vrot.slane %v1327_v21, 2  ;;  %v1378_v44 = vrot.slane %v1327_v21, 1 }
 0x1a8   : > { %1368 = vrot.lane.b32.xlu0 %v2557_v11, %s2124_s23 }
 0x1a9   : > { %v1464_v29 = vcombine.low %v1383_v38, %v2504_v54  ;;  %v1336_v54 = vrot.slane %v2575_v6, 1 }
 0x1aa   : > { %1410 = vrot.lane.b32.xlu1 %v1335_v27, %s2124_s23 }
 0x1ab   : > { %v2599_v19 = vpack.c.bf16 %v1464_v29, %v1461_v47 }
 0x1ac   : > { %1341 = vrot.lane.b32.xlu0 %v1335_v27, %s2122_s15 }
 0x1ae   : > { %1399 = vrot.lane.b32.xlu1 %v2575_v6, %s2123_s22 }
 0x1b0   : > { %1388 = vrot.lane.b32.xlu0 %v1352_v12, %s2122_s15 }
 0x1b2   : > { %1343 = vrot.lane.b32.xlu1 %v1336_v54, %s2122_s15 }
 0x1b4   : > { %1401 = vrot.lane.b32.xlu0 %v1327_v21, %s2123_s22 }
 0x1b6   : > { %1390 = vrot.lane.b32.xlu1 %v1383_v38, %s2122_s15 }
 0x1b8   : > { %1359 = vrot.lane.b32.xlu0 %v1352_v12, %s2123_s22  ;;  %v1427_v12 = vsel %vm422_vm2, %v1423_v3, %v2076_v42 }
 0x1ba   : > { %1414 = vrot.lane.b32.xlu1 %v1378_v44, %s2124_s23 }
 0x1bc   : > { %1412 = vrot.lane.b32.xlu0 %v1336_v54, %s2124_s23 }
 0x1be   : > { %1370 = vrot.lane.b32.xlu1 %v2575_v6, %s2124_s23 }
 0x1c0   : > { %1372 = vrot.lane.b32.xlu0 %v1327_v21, %s2124_s23 }
 0x206   : > { %v1367_v52 = vpop.permute.xlu1 %1366 }
 0x207   : > { %v1431_v30 = vsel %vm429_vm3, %v1427_v12, %v1367_v52 }
 0x208   : > { %v1385_v24 = vpop.permute.xlu0 %1384 }
 0x209   : > { %v1435_v8 = vsel %vm415_vm1, %v1334_v43, %v1385_v24 }
 0x20a   : > { %v1340_v50 = vpop.permute.xlu1 %1339 }
 0x20b   : > { %v1424_v39 = vsel %vm415_vm1, %v2527_v1, %v1340_v50  ;;  %v259_v50 = vrot.slane %v247_v45, 6 }
 0x212   : > { %v1398_v15 = vpop.permute.xlu0 %1397 }
 0x213   : > { %v1439_v16 = vsel %vm422_vm2, %v1435_v8, %v1398_v15 }
 0x214   : > { %v1387_v55 = vpop.permute.xlu1 %1386 }
 0x215   : > { %v1436_v18 = vsel %vm415_vm1, %v1335_v27, %v1387_v55  ;;  %v1797_v55 = vrot.slane %v2215_v26, 10 }
 0x216   : > { %v1356_v56 = vpop.permute.xlu0 %1355 }
 0x217   : > { %v1428_v13 = vsel %vm422_vm2, %v1424_v39, %v1356_v56 }
 0x218   : > { %v1358_v57 = vpop.permute.xlu1 %1357 }
 0x21a   : > { %v1369_v34 = vpop.permute.xlu0 %1368 }
 0x21b   : > { %v1432_v38 = vsel %vm429_vm3, %v1428_v13, %v1369_v34  ;;  %v263_v34 = vrot.slane %v248_v48, 6 }
 0x21c   : > { %v1411_v35 = vpop.permute.xlu1 %1410  ;;  %v1833_v25 = vcombine.low %v1431_v30, %v1432_v38 }
 0x21d   : > { %v1443_v53 = vsel %vm429_vm3, %v1439_v16, %v1411_v35  ;;  %v1798_v35 = vrot.slane %v2226_v33, 10 }
 0x21e   : > { %v1342_v59 = vpop.permute.xlu0 %1341 }
 0x21f   : > { %v1425_v17 = vsel %vm415_vm1, %v2557_v11, %v1342_v59 }
 0x220   : > { %v1400_v41 = vpop.permute.xlu1 %1399  ;;  %v1429_v11 = vsel %vm422_vm2, %v1425_v17, %v1358_v57 }
 0x221   : > { %v1440_v5 = vsel %vm422_vm2, %v1436_v18, %v1400_v41 }
 0x222   : > { %v1389_v62 = vpop.permute.xlu0 %1388 }
 0x223   : > { %v1437_v49 = vsel %vm415_vm1, %v1336_v54, %v1389_v62 }
 0x224   : > { %v1344_v63 = vpop.permute.xlu1 %1343 }
 0x225   : > { %v1426_v61 = vsel %vm415_vm1, %v2575_v6, %v1344_v63 }
 0x226   : > { %v1402_v46 = vpop.permute.xlu0 %1401 }
 0x227   : > { %v1441_v0 = vsel %vm422_vm2, %v1437_v49, %v1402_v46 }
 0x228   : > { %v1391_v60 = vpop.permute.xlu1 %1390 }
 0x229   : > { %v1438_v2 = vsel %vm415_vm1, %v1378_v44, %v1391_v60  ;;  %v246_v44 = vcombine.high %v2183_v7, %v2183_v7 }
 0x22a   : > { %v1360_v51 = vpop.permute.xlu0 %1359  ;;  %v1442_v14 = vsel %vm422_vm2, %v1438_v2, %v2075_v40 }
 0x22b   : > { %v1446_v9 = vsel %vm429_vm3, %v1442_v14, %v1417_v22  ;;  %v1430_v23 = vsel %vm422_vm2, %v1426_v61, %v1360_v51  ;;  %v249_v22 = vcombine.high %v2226_v33, %v2226_v33  ;;  %v255_v24 = vrot.slane %v246_v44, 6 }
 0x22c   : > { %v1415_v20 = vpop.permute.xlu1 %1414 }
 0x22d   : > { %v1445_v4 = vsel %vm429_vm3, %v1441_v0, %v1415_v20  ;;  %v267_v59 = vrot.slane %v249_v22, 6 }
 0x22e   : > { %v1413_v32 = vpop.permute.xlu0 %1412  ;;  %v1836_v47 = vcombine.low %v1445_v4, %v1446_v9 }
 0x22f   : > { %v1444_v43 = vsel %vm429_vm3, %v1440_v5, %v1413_v32  ;;  %v268_v60 = vsel %vm252_vm9, %v1798_v35, %v267_v59 }
 0x230   : > { %v1834_v1 = vcombine.low %v1443_v53, %v1444_v43  ;;  %v1371_v21 = vpop.permute.xlu1 %1370 }
 0x231   : > { %v1433_v28 = vsel %vm429_vm3, %v1429_v11, %v1371_v21 }
 0x232   : > { %v1373_v27 = vpop.permute.xlu0 %1372  ;;  %v1472_v29 = vpack.c.bf16 %v1836_v47, %v1834_v1 }
 0x233   : > { %v1434_v54 = vsel %vm429_vm3, %v1430_v23, %v1373_v27 }
 0x234   : > { %v1835_v31 = vcombine.low %v1433_v28, %v1434_v54  ;;  %1660 = vmatprep.mubr.bf16.mxu1 %v1472_v29 }
 0x236   : > { %v1471_v6 = vpack.c.bf16 %v1835_v31, %v1833_v25 }
 0x238   : > { %1661 = vmatmul.mubr.bf16.vlgmr.msra.gmra.mrb[12].mxu1 %v1471_v6 }
 0x239   : > { %1961 = vmatpush3.bf16.msra.mxu1 %v2111_v37  ;;  %1964 = vmatprep.mubr.msk.bf16.mxu1 %vm2126_vm0, %v2125_v58 }
 0x23a   : > { %1962 = vmatprep.subr.bf16.mxu1 %v2125_v58  ;;  %v1795_v58 = vrot.slane %v2183_v7, 10  ;;  %v1837_v7 = vld [vmem:[%s2700_s4] ss:$0 sm:$0xff] }
 0x23c   : > { %v256_v63 = vsel %vm252_vm9, %v1795_v58, %v255_v24 }
 0x23d   : > { %1963 = vmatpush3.bf16.msra.mxu1 %v2112_v36 }
 0x240   : > { %1965 = vmatmul.mubr.msk.bf16.vlgmr.msra.gmra.mrb[16].mxu1 %vm415_vm1, %v2599_v19  ;;  %v1796_v19 = vrot.slane %v2185_v10, 10  ;;  %v264_v10 = vsel %vm252_vm9, %v1797_v55, %v263_v34 }
 0x241   : > { %v1711_v0 = vcombine.low %v264_v10, %v268_v60 }
 0x242   : > { %v260_v46 = vsel %vm252_vm9, %v1796_v19, %v259_v50 }
 0x243   : > { %v1710_v40 = vcombine.low %v256_v63, %v260_v46 }
 0x30b   : > { %v1935_v52 = vpop.f32.mrb[12].mxu1 }
 0x30c   : > { %v1936_v15 = vpop.f32.mrb[13].mxu1 }
 0x30d   : > { %v1937_v56 = vadd.f32 %v1936_v15, %v1935_v52  ;;  %v1938_v57 = vpop.f32.mrb[14].mxu1 }
 0x30e   : > { %v1939_v41 = vpop.f32.mrb[15].mxu1 }
 0x30f   : > { %v1940_v62 = vadd.f32 %v1939_v41, %v1938_v57  ;;  %v1663_v2 = vadd.f32 %v1937_v56, %v1837_v7 }
 0x311   : > { %v1666_v42 = vadd.f32 %v1940_v62, %v1837_v7 }
 0x313   : > { %v1703_v26 = vpop.f32.mrb[16].mxu1 }
 0x314   : > { %v1704_v51 = vadd.f32 %v1703_v26, %v1663_v2  ;;  %v1966_v49 = vpop.f32.mrb[17].mxu1 }
 0x315   : > { %v1706_v33 = vpop.f32.mrb[18].mxu1 }
 0x316   : > { %v1714_v14 = vadd.f32 %v1710_v40, %v1704_v51  ;;  %v1707_v20 = vadd.f32 %v1706_v33, %v1666_v42  ;;  %v1967_v3 = vpop.f32.mrb[19].mxu1 }
 0x318   : > { %v1718_v8 = vcombine.high %v1714_v14, %v1714_v14  ;;  %v1722_v18 = vpack.c.bf16 %v1714_v14, %v1714_v14  ;;  %v1715_v4 = vadd.f32 %v1711_v0, %v1707_v20 }
 0x31a   : > { %v1723_v39 = vpack.c.bf16 %v1718_v8, %v1718_v8  ;;  %1727 = vst.msk [vmem:[%s224_s16] sm:$0x3] %vm1726_vm10, %v1722_v18  ;;  %v1719_v16 = vcombine.high %v1715_v4, %v1715_v4  ;;  %v1724_v5 = vpack.c.bf16 %v1715_v4, %v1715_v4 }
 0x31c   : > { %1728 = vst.msk [vmem:[%s224_s16 + $0x2] sm:$0x3] %vm1726_vm10, %v1723_v39  ;;  %v1725_v32 = vpack.c.bf16 %v1719_v16, %v1719_v16  ;;  %1729 = vst.msk [vmem:[%s224_s16 + $0x4] sm:$0x3] %vm1726_vm10, %v1724_v5 }
 0x31e   : > { %1730 = vst.msk [vmem:[%s224_s16 + $0x6] sm:$0x3] %vm1726_vm10, %v1725_v32 }
 0x31f PF: > { %s15_s18 = sadd.s32 1, %s2119_s18  }
 0x320   : > { %p12_p4 = scmp.ge.s32.totalorder %s15_s18, 4  }
 0x322   :  { %14 = sbr.rel (!%p12_p4) target bundleno = 1 (0x1), region = 70 }

// kernel: vqgan_decoder_forward.11
= control target key start
LH: loop header
LB: loop body
LE: loop exit
PB: predicated region body
PF: predicated region fallthrough
CT: control target
= control target key end

     0   :  { %s1030_s12 = smov 0   ;;  %s1362_s0 = inlined_call_operand.vmem [shape: bf16[2,10,10,16], index: 0, kind: input, shape index: {}]   ;;  %s1363_s1 = inlined_call_operand.vmem [shape: bf16[144,3], index: 1, kind: input, shape index: {}]   ;;  %s1364_s2 = inlined_call_operand.vmem [shape: f32[1,3], index: 2, kind: input, shape index: {}]   ;;  %s1365_s3 = inlined_call_operand.vmem [shape: f32[2,8,8,3], index: 3, kind: output, shape index: {}]  }
   0x1 LB: > { %s769_s13 = sadd.s32 4294967295, %s1000_s12   ;;  %p773_p0 = scmp.ge.s32.totalorder %s1000_s12, 1  ;;  %s1000_s12 = sphi %s1030_s12, %s13_s12  }
   0x2   : > { %p137_p1 = scmp.lt.s32.totalorder %s1000_s12, 3 }
   0x4   : > { %p138_p2 = pnand %p773_p0, %p137_p1 }
   0x5   : > { %p161_p3 = scmp.lt.s32.totalorder (!%p138_p2), %s769_s13, 1  ;;  %v969_v0 = vld [vmem:[%s1363_s1] sm:$0xff] (!%p138_p2)   ;;  %v1002_v1 = vmov (!%p138_p2), 0   ;;  %v970_v2 = vld [vmem:[%s1363_s1 + $0x8] sm:$0xff] (!%p138_p2)   ;;  %vm277_vm0 = vcmask (!%p138_p2), 1045504   ;;  %vm228_vm1 = vcmask (!%p138_p2), 1046528  }
   0x6   : > { %141 = sbr.rel (%p138_p2) target bundleno = 423 (0x1a7), region = 32  ;;  %632 = vmatprep.subr.bf16.mxu0 (!%p138_p2), %v1002_v1  ;;  %794 = vmatprep.subr.bf16.mxu1 (!%p138_p2), %v1002_v1  ;;  %v971_v3 = vld [vmem:[%s1363_s1 + $0x10] sm:$0xff] (!%p138_p2)   ;;  %v972_v24 = vld [vmem:[%s1363_s1 + $0x18] sm:$0xff] (!%p138_p2)   ;;  %s1003_s26 = smov (!%p138_p2), 48   ;;  %v973_v43 = vld [vmem:[%s1363_s1 + $0x20] sm:$0xff] (!%p138_p2)   ;;  %vm470_vm2 = vcmask (!%p138_p2), 130048  }
   0x7   : > { %633 = vmatpush1.bf16.msra.mxu0 (!%p138_p2), %v969_v0  ;;  %803 = vmatpush1.bf16.msra.mxu1 (!%p138_p2), %v969_v0  ;;  %s1004_s29 = smov (!%p138_p2), 32   ;;  %s1005_s30 = smov (!%p138_p2), 16   ;;  %v974_v60 = vld [vmem:[%s1363_s1 + $0x28] sm:$0xff] (!%p138_p2)   ;;  %vm479_vm3 = vcmask (!%p138_p2), 261120   ;;  %vm488_vm4 = vcmask (!%p138_p2), 392192   ;;  %vm497_vm5 = vcmask (!%p138_p2), 523264  }
   0x8   : > { %634 = vmatprep.subr.bf16.mxu0 (!%p138_p2), %v1002_v1  ;;  %795 = vmatprep.subr.bf16.mxu1 (!%p138_p2), %v1002_v1  ;;  %s1006_s8 = smov (!%p138_p2), 64   ;;  %s1007_s11 = smov (!%p138_p2), 80   ;;  %vm506_vm6 = vcmask (!%p138_p2), 654336   ;;  %vm515_vm7 = vcmask (!%p138_p2), 785408   ;;  %vm524_vm8 = vcmask (!%p138_p2), 916480   ;;  %vm705_vm9 = vcmask (!%p138_p2), 23552  }
   0x9   : > { %s1008_s16 = smov (!%p138_p2), 96   ;;  %s1009_s17 = smov (!%p138_p2), 112  }
   0xb   : > { %635 = vmatpush1.bf16.msra.mxu0 (!%p138_p2), %v970_v2  ;;  %804 = vmatpush1.bf16.msra.mxu1 (!%p138_p2), %v970_v2 }
   0xc   : > { %636 = vmatprep.subr.bf16.mxu0 (!%p138_p2), %v1002_v1  ;;  %796 = vmatprep.subr.bf16.mxu1 (!%p138_p2), %v1002_v1 }
   0xd   : > { %s1367_s13 = smov (!%p161_p3, %s769_s13), 1 }
   0xe   : > { %s812_s18 = smul.u32 80, %s1367_s13  ;;  %s793_s20 = sshll.u32 %s1367_s13, 6 }
   0xf   : > { %637 = vmatpush1.bf16.msra.mxu0 %v971_v3  ;;  %805 = vmatpush1.bf16.msra.mxu1 %v971_v3 }
  0x10   : > { %s1057_s23 = scalar_lea.vmem %s1362_s0, %s812_s18  ;;  %638 = vmatprep.subr.bf16.mxu0 %v1002_v1  ;;  %797 = vmatprep.subr.bf16.mxu1 %v1002_v1 }
  0x11   : > { %v182_v4 = vld [vmem:[%s1057_s23 + $0x28] ss:$8 sps:$4 sm:$0xff]   ;;  %v1062_v6 = vld [vmem:[%s1057_s23] ss:$56 sps:$4 sm:$0xff]   ;;  %v173_v11 = vld [vmem:[%s1057_s23 + $0x4] sm:$0x1] }
  0x12   : > { %v174_v5 = vld [vmem:[%s1057_s23 + $0x8] ss:$8 sps:$4 sm:$0xff]   ;;  %v1066_v7 = vunpack.c.l.bf16 %v182_v4  ;;  %v1068_v8 = vunpack.c.h.bf16 %v182_v4  ;;  %v175_v12 = vld [vmem:[%s1057_s23 + $0xc] sm:$0x1]  ;;  %v1077_v13 = vld [vmem:[%s1057_s23 + $0x18] ss:$8 sps:$4 sm:$0xff]   ;;  %v1080_v14 = vunpack.c.l.bf16 %v1062_v6  ;;  %v193_v15 = vunpack.c.l.bf16 %v173_v11 }
  0x13   : > { %v1070_v9 = vunpack.c.l.bf16 %v174_v5  ;;  %v1072_v10 = vunpack.c.h.bf16 %v174_v5  ;;  %v195_v16 = vunpack.c.l.bf16 %v175_v12  ;;  %v181_v17 = vld [vmem:[%s1057_s23 + $0x24] sm:$0x1]  ;;  %v183_v18 = vld [vmem:[%s1057_s23 + $0x2c] sm:$0x1]  ;;  %v1085_v19 = vunpack.c.h.bf16 %v1077_v13  ;;  %v185_v37 = vld [vmem:[%s1057_s23 + $0x34] sm:$0x1]  ;;  %639 = vmatpush1.bf16.msra.mxu0 %v972_v24  ;;  %806 = vmatpush1.bf16.msra.mxu1 %v972_v24 }
  0x14   : > { %v834_v20 = vpack.i.bf16 %v1068_v8, %v1066_v7  ;;  %v278_v25 = vrot.slane %v1080_v14, 2  ;;  %v279_v26 = vrot.slane %v193_v15, 2  ;;  %v229_v28 = vrot.slane %v1080_v14, 1  ;;  %v177_v38 = vld [vmem:[%s1057_s23 + $0x14] sm:$0x1]  ;;  %640 = vmatprep.subr.bf16.mxu0 %v1002_v1  ;;  %798 = vmatprep.subr.bf16.mxu1 %v1002_v1 }
  0x15   : > { %v829_v21 = vpack.i.bf16 %v1072_v10, %v1070_v9  ;;  %v281_v22 = vrot.slane %v1070_v9, 2  ;;  %v232_v23 = vrot.slane %v1070_v9, 1  ;;  %v282_v27 = vrot.slane %v195_v16, 2  ;;  %v187_v5 = vld [vmem:[%s1057_s23 + $0x3c] sm:$0x1] }
  0x16   : > { %835 = vrot.lane.b32.xlu1 %v834_v20, %s1003_s26  ;;  %v230_v29 = vrot.slane %v193_v15, 1  ;;  %v233_v30 = vrot.slane %v195_v16, 1  ;;  %v201_v31 = vunpack.c.l.bf16 %v181_v17  ;;  %v203_v32 = vunpack.c.l.bf16 %v183_v18  ;;  %v179_v17 = vld [vmem:[%s1057_s23 + $0x1c] sm:$0x1] }
  0x17   : > { %830 = vrot.lane.b32.xlu0 %v829_v21, %s1003_s26  ;;  %v280_v33 = vsel %vm277_vm0, %v278_v25, %v279_v26  ;;  %v1104_v34 = vsel %vm277_vm0, %v281_v22, %v282_v27  ;;  %v290_v35 = vrot.slane %v1085_v19, 2  ;;  %v293_v36 = vrot.slane %v1066_v7, 2  ;;  %641 = vmatpush1.bf16.msra.mxu0 %v973_v43  ;;  %v975_v22 = vld [vmem:[%s1363_s1 + $0x30] sm:$0xff]   ;;  %v188_v27 = vld [vmem:[%s1057_s23 + $0x40] ss:$8 sps:$4 sm:$0xff]  }
  0x18   : > { %v849_v39 = vpack.i.bf16 %v1104_v34, %v280_v33  ;;  %v231_v40 = vsel %vm228_vm1, %v229_v28, %v230_v29  ;;  %v234_v41 = vsel %vm228_vm1, %v232_v23, %v233_v30  ;;  %v291_v42 = vrot.slane %v201_v31, 2  ;;  %807 = vmatpush1.bf16.msra.mxu1 %v973_v43  ;;  %642 = vmatprep.subr.bf16.mxu0 %v1002_v1  ;;  %v189_v30 = vld [vmem:[%s1057_s23 + $0x44] sm:$0x1] }
  0x19   : > { %v839_v44 = vpack.i.bf16 %v234_v41, %v231_v40  ;;  %v294_v45 = vrot.slane %v203_v32, 2  ;;  %v241_v46 = vrot.slane %v1085_v19, 1  ;;  %v242_v47 = vrot.slane %v201_v31, 1  ;;  %799 = vmatprep.subr.bf16.mxu1 %v1002_v1  ;;  %v976_v31 = vld [vmem:[%s1363_s1 + $0x38] sm:$0xff]  }
  0x1a   : > { %850 = vrot.lane.b32.xlu1 %v849_v39, %s1004_s29  ;;  %v1121_v48 = vsel %vm277_vm0, %v290_v35, %v291_v42  ;;  %v244_v49 = vrot.slane %v1066_v7, 1  ;;  %v245_v50 = vrot.slane %v203_v32, 1  ;;  %v205_v51 = vunpack.c.l.bf16 %v185_v37  ;;  %v1184_v32 = vld [vmem:[%s1057_s23 + $0x4c] sm:$0x1]  ;;  %s1341_s23 = scalar_lea.vmem %s1365_s3, %s793_s20 }
  0x1b   : > { %840 = vrot.lane.b32.xlu0 %v839_v44, %s1005_s30  ;;  %v1126_v52 = vsel %vm277_vm0, %v293_v36, %v294_v45  ;;  %v1129_v53 = vsel %vm228_vm1, %v241_v46, %v242_v47  ;;  %v247_v54 = vrot.slane %v1068_v8, 1  ;;  %v197_v55 = vunpack.c.l.bf16 %v177_v38  ;;  %643 = vmatpush1.bf16.msra.mxu0 %v974_v60  ;;  %v977_v44 = vld [vmem:[%s1363_s1 + $0x40] sm:$0xff]  }
  0x1c   : > { %v854_v56 = vpack.i.bf16 %v1126_v52, %v1121_v48  ;;  %v246_v57 = vsel %vm228_vm1, %v244_v49, %v245_v50  ;;  %v248_v58 = vrot.slane %v205_v51, 1  ;;  %v235_v59 = vrot.slane %v1072_v10, 1  ;;  %808 = vmatpush1.bf16.msra.mxu1 %v974_v60  ;;  %644 = vmatprep.subr.bf16.mxu0 %v1002_v1 }
  0x1d   : > { %v1140_v61 = vpack.i.bf16 %v246_v57, %v1129_v53  ;;  %v236_v62 = vrot.slane %v197_v55, 1  ;;  %v296_v63 = vrot.slane %v1068_v8, 2  ;;  %v297_v0 = vrot.slane %v205_v51, 2  ;;  %800 = vmatprep.subr.bf16.mxu1 %v1002_v1 }
  0x1e   : > { %855 = vrot.lane.b32.xlu1 %v854_v56, %s1004_s29  ;;  %v249_v2 = vsel %vm228_vm1, %v247_v54, %v248_v58  ;;  %v284_v3 = vrot.slane %v1072_v10, 2  ;;  %v285_v4 = vrot.slane %v197_v55, 2  ;;  %v1156_v16 = vunpack.c.h.bf16 %v1062_v6 }
  0x1f   : > { %845 = vrot.lane.b32.xlu0 %v1140_v61, %s1005_s30  ;;  %v864_v11 = vpack.i.bf16 %v249_v2, %v246_v57  ;;  %v237_v12 = vsel %vm228_vm1, %v235_v59, %v236_v62  ;;  %v1153_v15 = vsel %vm277_vm0, %v296_v63, %v297_v0  ;;  %v1163_v21 = vunpack.c.l.bf16 %v1077_v13  ;;  %645 = vmatpush1.bf16.msra.mxu0 %v975_v22 }
  0x20   : > { %v859_v18 = vpack.i.bf16 %v237_v12, %v234_v41  ;;  %v1160_v20 = vsel %vm277_vm0, %v284_v3, %v285_v4  ;;  %v207_v23 = vunpack.c.l.bf16 %v187_v5  ;;  %v874_v6 = vpack.i.bf16 %v1153_v15, %v1126_v52  ;;  %809 = vmatpush1.bf16.msra.mxu1 %v975_v22  ;;  %646 = vmatprep.subr.bf16.mxu0 %v1002_v1 }
  0x21   : > { %v199_v24 = vunpack.c.l.bf16 %v179_v17  ;;  %v869_v13 = vpack.i.bf16 %v1160_v20, %v1104_v34  ;;  %v250_v25 = vrot.slane %v1156_v16, 1  ;;  %v238_v28 = vrot.slane %v1163_v21, 1  ;;  %801 = vmatprep.subr.bf16.mxu1 %v1002_v1 }
  0x22   : > { %865 = vrot.lane.b32.xlu1 %v864_v11, %s1006_s8  ;;  %v251_v26 = vrot.slane %v207_v23, 1  ;;  %v884_v33 = vpack.i.bf16 %v1156_v16, %v1068_v8  ;;  %v879_v34 = vpack.i.bf16 %v1163_v21, %v1072_v10  ;;  %v1192_v35 = vunpack.c.l.bf16 %v188_v27 }
  0x23   : > { %860 = vrot.lane.b32.xlu0 %v859_v18, %s1006_s8  ;;  %v239_v29 = vrot.slane %v199_v24, 1  ;;  %v299_v37 = vrot.slane %v1156_v16, 2  ;;  %v209_v38 = vunpack.c.l.bf16 %v189_v30  ;;  %v1197_v39 = vunpack.c.h.bf16 %v188_v27  ;;  %647 = vmatpush1.bf16.msra.mxu0 %v976_v31 }
  0x24   : > { %v252_v36 = vsel %vm228_vm1, %v250_v25, %v251_v26  ;;  %v287_v41 = vrot.slane %v1163_v21, 2  ;;  %v211_v42 = vunpack.c.l.bf16 %v1184_v32  ;;  %v379_v43 = vrot.slane %v1192_v35, 2  ;;  %810 = vmatpush1.bf16.msra.mxu1 %v976_v31  ;;  %648 = vmatprep.subr.bf16.mxu0 %v1002_v1 }
  0x25   : > { %v240_v40 = vsel %vm228_vm1, %v238_v28, %v239_v29  ;;  %v300_v45 = vrot.slane %v207_v23, 2  ;;  %v288_v46 = vrot.slane %v199_v24, 2  ;;  %v380_v47 = vrot.slane %v209_v38, 2  ;;  %802 = vmatprep.subr.bf16.mxu1 %v1002_v1 }
  0x26   : > { %875 = vrot.lane.b32.xlu1 %v874_v6, %s1007_s11  ;;  %v459_v49 = vrot.slane %v1197_v39, 2  ;;  %v894_v50 = vpack.i.bf16 %v252_v36, %v249_v2  ;;  %v460_v51 = vrot.slane %v211_v42, 2  ;;  %v889_v54 = vpack.i.bf16 %v240_v40, %v237_v12 }
  0x27   : > { %870 = vrot.lane.b32.xlu0 %v869_v13, %s1007_s11  ;;  %v1213_v55 = vsel %vm277_vm0, %v379_v43, %v380_v47  ;;  %649 = vmatpush1.bf16.msra.mxu0 %v977_v44  ;;  %v301_v57 = vsel %vm277_vm0, %v299_v37, %v300_v45  ;;  %v289_v58 = vsel %vm277_vm0, %v287_v41, %v288_v46  ;;  %v352_v0 = vrot.slane %v1192_v35, 1 }
  0x28   : > { %v1216_v56 = vsel %vm277_vm0, %v459_v49, %v460_v51  ;;  %811 = vmatpush1.bf16.msra.mxu1 %v977_v44  ;;  %v534_v1 = vpack.c.bf16 %v289_v58, %v1160_v20  ;;  %v538_v60 = vpack.c.bf16 %v301_v57, %v1153_v15  ;;  %v914_v62 = vpack.i.bf16 %v301_v57, %v1153_v15 }
  0x29   : > { %v540_v59 = vpack.c.bf16 %v1216_v56, %v1213_v55  ;;  %v909_v63 = vpack.i.bf16 %v289_v58, %v1160_v20  ;;  %v353_v2 = vrot.slane %v209_v38, 1  ;;  %v924_v3 = vpack.i.bf16 %v1192_v35, %v1156_v16 }
  0x2a   : > { %885 = vrot.lane.b32.xlu1 %v884_v33, %s1008_s16  ;;  %787 = vmatprep.mubr.msk.bf16.mxu0 %vm470_vm2, %v534_v1  ;;  %v919_v4 = vpack.i.bf16 %v1085_v19, %v1163_v21  ;;  %v929_v12 = vpack.i.bf16 %v1129_v53, %v240_v40  ;;  %v944_v15 = vpack.i.bf16 %v1213_v55, %v301_v57  ;;  %v432_v20 = vrot.slane %v1197_v39, 1 }
  0x2b   : > { %880 = vrot.lane.b32.xlu0 %v879_v34, %s1008_s16  ;;  %789 = vmatprep.mubr.msk.bf16.mxu1 %vm470_vm2, %v538_v60  ;;  %v354_v5 = vsel %vm228_vm1, %v352_v0, %v353_v2  ;;  %v536_v17 = vpack.c.bf16 %v1126_v52, %v1121_v48  ;;  %v939_v18 = vpack.i.bf16 %v1121_v48, %v289_v58  ;;  %v433_v22 = vrot.slane %v211_v42, 1 }
  0x2c   : > { %v934_v11 = vpack.i.bf16 %v354_v5, %v252_v36  ;;  %v954_v23 = vpack.i.bf16 %v1197_v39, %v1192_v35  ;;  %v949_v53 = vpack.i.bf16 %v1066_v7, %v1085_v19 }
  0x2d   : > { %v434_v6 = vsel %vm228_vm1, %v432_v20, %v433_v22 }
  0x2e   : > { %895 = vrot.lane.b32.xlu1 %v894_v50, %s1009_s17  ;;  %v964_v24 = vpack.i.bf16 %v434_v6, %v354_v5 }
  0x2f   : > { %890 = vrot.lane.b32.xlu0 %v889_v54, %s1009_s17 }
  0x32   : > { %905 = vrot.lane.b32.xlu1 %v894_v50, %s1005_s30 }
  0x33   : > { %900 = vrot.lane.b32.xlu0 %v889_v54, %s1005_s30 }
  0x36   : > { %915 = vrot.lane.b32.xlu1 %v914_v62, %s1004_s29 }
  0x37   : > { %910 = vrot.lane.b32.xlu0 %v909_v63, %s1004_s29 }
  0x3a   : > { %925 = vrot.lane.b32.xlu1 %v924_v3, %s1003_s26 }
  0x3b   : > { %920 = vrot.lane.b32.xlu0 %v919_v4, %s1003_s26 }
  0x3e   : > { %935 = vrot.lane.b32.xlu1 %v934_v11, %s1006_s8 }
  0x3f   : > { %930 = vrot.lane.b32.xlu0 %v929_v12, %s1006_s8 }
  0x42   : > { %945 = vrot.lane.b32.xlu1 %v944_v15, %s1007_s11 }
  0x43   : > { %940 = vrot.lane.b32.xlu0 %v939_v18, %s1007_s11 }
  0x46   : > { %955 = vrot.lane.b32.xlu1 %v954_v23, %s1008_s16 }
  0x47   : > { %950 = vrot.lane.b32.xlu0 %v949_v53, %s1008_s16 }
  0x4a   : > { %965 = vrot.lane.b32.xlu1 %v964_v24, %s1009_s17 }
  0x4b   : > { %960 = vrot.lane.b32.xlu0 %v1140_v61, %s1009_s17 }
  0x88   : > { %v836_v13 = vpop.permute.xlu1 %835 }
  0x89   : > { %v831_v25 = vpop.permute.xlu0 %830  ;;  %v837_v46 = vunpack.i.l.bf16 %v836_v13 }
  0x8a   : > { %v833_v47 = vunpack.i.h.bf16 %v831_v25  ;;  %v832_v49 = vunpack.i.l.bf16 %v831_v25 }
  0x8c   : > { %v851_v26 = vpop.permute.xlu1 %850 }
  0x8d   : > { %v841_v27 = vpop.permute.xlu0 %840  ;;  %v853_v39 = vunpack.i.h.bf16 %v851_v26  ;;  %v852_v40 = vunpack.i.l.bf16 %v851_v26 }
  0x8e   : > { %v843_v32 = vunpack.i.h.bf16 %v841_v27  ;;  %v842_v33 = vunpack.i.l.bf16 %v841_v27 }
  0x90   : > { %v856_v28 = vpop.permute.xlu1 %855  ;;  %v472_v41 = vsel %vm470_vm2, %v1070_v9, %v843_v32  ;;  %v471_v42 = vsel %vm470_vm2, %v1080_v14, %v842_v33 }
  0x91   : > { %v846_v29 = vpop.permute.xlu0 %845  ;;  %v858_v34 = vunpack.i.h.bf16 %v856_v28  ;;  %v857_v35 = vunpack.i.l.bf16 %v856_v28  ;;  %v481_v50 = vsel %vm479_vm3, %v472_v41, %v853_v39  ;;  %v480_v9 = vsel %vm479_vm3, %v471_v42, %v852_v40 }
  0x92   : > { %v848_v30 = vunpack.i.h.bf16 %v846_v29  ;;  %v847_v31 = vunpack.i.l.bf16 %v846_v29  ;;  %v489_v4 = vsel %vm488_vm4, %v480_v9, %v832_v49  ;;  %v490_v5 = vsel %vm488_vm4, %v481_v50, %v833_v47 }
  0x94   : > { %v866_v36 = vpop.permute.xlu1 %865  ;;  %v476_v37 = vsel %vm470_vm2, %v1066_v7, %v848_v30  ;;  %v475_v38 = vsel %vm470_vm2, %v1085_v19, %v847_v31  ;;  %v838_v7 = vunpack.i.h.bf16 %v836_v13 }
  0x95   : > { %v861_v61 = vpop.permute.xlu0 %860  ;;  %v485_v43 = vsel %vm479_vm3, %v476_v37, %v858_v34  ;;  %v484_v44 = vsel %vm479_vm3, %v475_v38, %v857_v35  ;;  %v868_v51 = vunpack.i.h.bf16 %v866_v36  ;;  %v867_v54 = vunpack.i.l.bf16 %v866_v36 }
  0x96   : > { %v493_v14 = vsel %vm488_vm4, %v484_v44, %v837_v46  ;;  %v494_v57 = vsel %vm488_vm4, %v485_v43, %v838_v7  ;;  %v863_v58 = vunpack.i.h.bf16 %v861_v61  ;;  %v862_v1 = vunpack.i.l.bf16 %v861_v61 }
  0x97   : > { %v502_v15 = vsel %vm497_vm5, %v493_v14, %v867_v54  ;;  %v503_v18 = vsel %vm497_vm5, %v494_v57, %v868_v51 }
  0x98   : > { %v876_v45 = vpop.permute.xlu1 %875  ;;  %v498_v23 = vsel %vm497_vm5, %v489_v4, %v862_v1  ;;  %v499_v53 = vsel %vm497_vm5, %v490_v5, %v863_v58 }
  0x99   : > { %v871_v19 = vpop.permute.xlu0 %870  ;;  %v878_v60 = vunpack.i.h.bf16 %v876_v45  ;;  %v877_v62 = vunpack.i.l.bf16 %v876_v45 }
  0x9a   : > { %v873_v0 = vunpack.i.h.bf16 %v871_v19  ;;  %v872_v2 = vunpack.i.l.bf16 %v871_v19 }
  0x9b   : > { %v511_v6 = vsel %vm506_vm6, %v502_v15, %v877_v62  ;;  %v512_v24 = vsel %vm506_vm6, %v503_v18, %v878_v60 }
  0x9c   : > { %v886_v63 = vpop.permute.xlu1 %885  ;;  %v507_v25 = vsel %vm506_vm6, %v498_v23, %v872_v2  ;;  %v508_v26 = vsel %vm506_vm6, %v499_v53, %v873_v0 }
  0x9d   : > { %v881_v3 = vpop.permute.xlu0 %880  ;;  %v888_v11 = vunpack.i.h.bf16 %v886_v63  ;;  %v887_v12 = vunpack.i.l.bf16 %v886_v63 }
  0x9e   : > { %v883_v20 = vunpack.i.h.bf16 %v881_v3  ;;  %v882_v22 = vunpack.i.l.bf16 %v881_v3 }
  0x9f   : > { %v520_v30 = vsel %vm515_vm7, %v511_v6, %v887_v12  ;;  %v521_v31 = vsel %vm515_vm7, %v512_v24, %v888_v11 }
  0xa0   : > { %v896_v13 = vpop.permute.xlu1 %895  ;;  %v516_v34 = vsel %vm515_vm7, %v507_v25, %v882_v22  ;;  %v517_v35 = vsel %vm515_vm7, %v508_v26, %v883_v20 }
  0xa1   : > { %v898_v27 = vunpack.i.h.bf16 %v896_v13  ;;  %v897_v28 = vunpack.i.l.bf16 %v896_v13  ;;  %v891_v29 = vpop.permute.xlu0 %890 }
  0xa2   : > { %v893_v32 = vunpack.i.h.bf16 %v891_v29  ;;  %v892_v33 = vunpack.i.l.bf16 %v891_v29 }
  0xa3   : > { %v529_v36 = vsel %vm524_vm8, %v520_v30, %v897_v28  ;;  %v530_v37 = vsel %vm524_vm8, %v521_v31, %v898_v27 }
  0xa4   : > { %v906_v38 = vpop.permute.xlu1 %905  ;;  %v525_v61 = vsel %vm524_vm8, %v516_v34, %v892_v33  ;;  %v526_v39 = vsel %vm524_vm8, %v517_v35, %v893_v32  ;;  %v537_v40 = vpack.c.bf16 %v530_v37, %v529_v36 }
  0xa5   : > { %v901_v41 = vpop.permute.xlu0 %900  ;;  %v533_v42 = vpack.c.bf16 %v526_v39, %v525_v61  ;;  %v908_v46 = vunpack.i.h.bf16 %v906_v38  ;;  %v907_v19 = vunpack.i.l.bf16 %v906_v38 }
  0xa6   : > { %681 = vmatmul.mubr.bf16.vlgmr.msra.gmra.mrb[0].mxu1 %v537_v40  ;;  %v903_v49 = vunpack.i.h.bf16 %v901_v41  ;;  %v902_v50 = vunpack.i.l.bf16 %v901_v41 }
  0xa7   : > { %665 = vmatmul.mubr.bf16.vlgmr.msra.gmra.mrb[0].mxu0 %v533_v42  ;;  %790 = vmatprep.mubr.msk.bf16.mxu1 %vm470_vm2, %v540_v59  ;;  %v478_v59 = vsel %vm470_vm2, %v1156_v16, %v908_v46  ;;  %v477_v48 = vsel %vm470_vm2, %v1068_v8, %v907_v19 }
  0xa8   : > { %v916_v43 = vpop.permute.xlu1 %915  ;;  %788 = vmatprep.mubr.msk.bf16.mxu0 %vm470_vm2, %v536_v17  ;;  %v474_v17 = vsel %vm470_vm2, %v1163_v21, %v903_v49  ;;  %v473_v14 = vsel %vm470_vm2, %v1072_v10, %v902_v50 }
  0xa9   : > { %v911_v44 = vpop.permute.xlu0 %910  ;;  %v918_v51 = vunpack.i.h.bf16 %v916_v43  ;;  %v917_v54 = vunpack.i.l.bf16 %v916_v43 }
  0xaa   : > { %v913_v55 = vunpack.i.h.bf16 %v911_v44  ;;  %v912_v56 = vunpack.i.l.bf16 %v911_v44 }
  0xab   : > { %v486_v60 = vsel %vm479_vm3, %v477_v48, %v917_v54  ;;  %v487_v62 = vsel %vm479_vm3, %v478_v59, %v918_v51 }
  0xac   : > { %v926_v45 = vpop.permute.xlu1 %925  ;;  %v482_v16 = vsel %vm479_vm3, %v473_v14, %v912_v56  ;;  %v483_v8 = vsel %vm479_vm3, %v474_v17, %v913_v55 }
  0xad   : > { %v921_v7 = vpop.permute.xlu0 %920  ;;  %v928_v57 = vunpack.i.h.bf16 %v926_v45  ;;  %v927_v58 = vunpack.i.l.bf16 %v926_v45 }
  0xae   : > { %v923_v63 = vunpack.i.h.bf16 %v921_v7  ;;  %v922_v0 = vunpack.i.l.bf16 %v921_v7 }
  0xaf   : > { %v495_v12 = vsel %vm488_vm4, %v486_v60, %v927_v58  ;;  %v496_v15 = vsel %vm488_vm4, %v487_v62, %v928_v57 }
  0xb0   : > { %v936_v47 = vpop.permute.xlu1 %935  ;;  %v491_v23 = vsel %vm488_vm4, %v482_v16, %v922_v0  ;;  %v492_v53 = vsel %vm488_vm4, %v483_v8, %v923_v63 }
  0xb1   : > { %v931_v9 = vpop.permute.xlu0 %930  ;;  %v938_v2 = vunpack.i.h.bf16 %v936_v47  ;;  %v937_v3 = vunpack.i.l.bf16 %v936_v47  ;;  %v777_v47 = vld [vmem:[%s1364_s2] ss:$0 sm:$0xff] }
  0xb2   : > { %v933_v4 = vunpack.i.h.bf16 %v931_v9  ;;  %v932_v21 = vunpack.i.l.bf16 %v931_v9 }
  0xb3   : > { %v504_v13 = vsel %vm497_vm5, %v495_v12, %v937_v3  ;;  %v505_v25 = vsel %vm497_vm5, %v496_v15, %v938_v2 }
  0xb4   : > { %v946_v52 = vpop.permute.xlu1 %945  ;;  %v500_v28 = vsel %vm497_vm5, %v491_v23, %v932_v21  ;;  %v501_v29 = vsel %vm497_vm5, %v492_v53, %v933_v4 }
  0xb5   : > { %v941_v1 = vpop.permute.xlu0 %940  ;;  %v948_v5 = vunpack.i.h.bf16 %v946_v52  ;;  %v947_v11 = vunpack.i.l.bf16 %v946_v52 }
  0xb6   : > { %v943_v18 = vunpack.i.h.bf16 %v941_v1  ;;  %v942_v20 = vunpack.i.l.bf16 %v941_v1 }
  0xb7   : > { %v513_v30 = vsel %vm506_vm6, %v504_v13, %v947_v11  ;;  %v514_v31 = vsel %vm506_vm6, %v505_v25, %v948_v5 }
  0xb8   : > { %v956_v10 = vpop.permute.xlu1 %955  ;;  %v509_v33 = vsel %vm506_vm6, %v500_v28, %v942_v20  ;;  %v510_v34 = vsel %vm506_vm6, %v501_v29, %v943_v18 }
  0xb9   : > { %v951_v22 = vpop.permute.xlu0 %950  ;;  %v958_v6 = vunpack.i.h.bf16 %v956_v10  ;;  %v957_v24 = vunpack.i.l.bf16 %v956_v10 }
  0xba   : > { %v953_v26 = vunpack.i.h.bf16 %v951_v22  ;;  %v952_v27 = vunpack.i.l.bf16 %v951_v22 }
  0xbb   : > { %v522_v38 = vsel %vm515_vm7, %v513_v30, %v957_v24  ;;  %v523_v61 = vsel %vm515_vm7, %v514_v31, %v958_v6 }
  0xbc   : > { %v966_v32 = vpop.permute.xlu1 %965  ;;  %v518_v41 = vsel %vm515_vm7, %v509_v33, %v952_v27  ;;  %v519_v42 = vsel %vm515_vm7, %v510_v34, %v953_v26 }
  0xbd   : > { %v968_v35 = vunpack.i.h.bf16 %v966_v32  ;;  %v967_v36 = vunpack.i.l.bf16 %v966_v32  ;;  %v961_v37 = vpop.permute.xlu0 %960 }
  0xbe   : > { %v963_v39 = vunpack.i.h.bf16 %v961_v37  ;;  %v962_v40 = vunpack.i.l.bf16 %v961_v37 }
  0xbf   : > { %v531_v43 = vsel %vm524_vm8, %v522_v38, %v967_v36  ;;  %v532_v44 = vsel %vm524_vm8, %v523_v61, %v968_v35 }
  0xc0   : > { %v527_v45 = vsel %vm524_vm8, %v518_v41, %v962_v40  ;;  %v528_v7 = vsel %vm524_vm8, %v519_v42, %v963_v39  ;;  %v539_v46 = vpack.c.bf16 %v532_v44, %v531_v43 }
  0xc1   : > { %v535_v19 = vpack.c.bf16 %v528_v7, %v527_v45 }
  0xc2   : > { %689 = vmatmul.mubr.bf16.gmra.mrb[4].mxu1 %v539_v46 }
  0xc3   : > { %673 = vmatmul.mubr.bf16.gmra.mrb[4].mxu0 %v535_v19 }
 0x179   : > { %v682_v49 = vpop.f32.mrb[0].mxu1 }
 0x17a   : > { %v666_v50 = vpop.f32.mrb[0].mxu0  ;;  %v683_v9 = vadd.f32 %v777_v47, %v682_v49  ;;  %v684_v51 = vpop.f32.mrb[1].mxu1 }
 0x17b   : > { %v667_v54 = vadd.f32 %v777_v47, %v666_v50  ;;  %v668_v55 = vpop.f32.mrb[1].mxu0  ;;  %v685_v56 = vpop.f32.mrb[2].mxu1 }
 0x17c   : > { %978 = vtanh.f32 %v683_v9  ;;  %v669_v59 = vpop.f32.mrb[2].mxu0  ;;  %v686_v48 = vadd.f32 %v777_v47, %v685_v56  ;;  %v687_v52 = vpop.f32.mrb[3].mxu1 }
 0x17d   : > { %980 = vtanh.f32 %v667_v54  ;;  %v670_v17 = vadd.f32 %v777_v47, %v669_v59  ;;  %v671_v14 = vpop.f32.mrb[3].mxu0 }
 0x17e   : > { %982 = vtanh.f32 %v686_v48 }
 0x17f   : > { %984 = vtanh.f32 %v670_v17 }
 0x186   : > { %v979_v57 = vpop.eup %978 }
 0x187   : > { %v981_v58 = vpop.eup %980  ;;  %710 = vst.msk [vmem:[%s1341_s23 + $0x20] sm:$0xff] %vm705_vm9, %v979_v57 }
 0x188   : > { %v983_v1 = vpop.eup %982  ;;  %706 = vst.msk [vmem:[%s1341_s23] sm:$0xff] %vm705_vm9, %v981_v58 }
 0x189   : > { %v985_v60 = vpop.eup %984  ;;  %711 = vst.msk [vmem:[%s1341_s23 + $0x28] sm:$0xff] %vm705_vm9, %v983_v1 }
 0x18a   : > { %707 = vst.msk [vmem:[%s1341_s23 + $0x8] sm:$0xff] %vm705_vm9, %v985_v60 }
 0x195   : > { %v690_v62 = vpop.f32.mrb[4].mxu1 }
 0x196   : > { %v674_v63 = vpop.f32.mrb[4].mxu0  ;;  %v691_v0 = vadd.f32 %v777_v47, %v690_v62  ;;  %v692_v16 = vpop.f32.mrb[5].mxu1 }
 0x197   : > { %v675_v8 = vadd.f32 %v777_v47, %v674_v63  ;;  %v676_v2 = vpop.f32.mrb[5].mxu0  ;;  %v693_v3 = vpop.f32.mrb[6].mxu1 }
 0x198   : > { %986 = vtanh.f32 %v691_v0  ;;  %v677_v4 = vpop.f32.mrb[6].mxu0  ;;  %v694_v21 = vadd.f32 %v777_v47, %v693_v3  ;;  %v695_v5 = vpop.f32.mrb[7].mxu1 }
 0x199   : > { %988 = vtanh.f32 %v675_v8  ;;  %v678_v11 = vadd.f32 %v777_v47, %v677_v4  ;;  %v679_v10 = vpop.f32.mrb[7].mxu0 }
 0x19a   : > { %990 = vtanh.f32 %v694_v21 }
 0x19b   : > { %992 = vtanh.f32 %v678_v11 }
 0x1a2   : > { %v987_v12 = vpop.eup %986 }
 0x1a3   : > { %v989_v15 = vpop.eup %988  ;;  %712 = vst.msk [vmem:[%s1341_s23 + $0x30] sm:$0xff] %vm705_vm9, %v987_v12 }
 0x1a4   : > { %v991_v18 = vpop.eup %990  ;;  %708 = vst.msk [vmem:[%s1341_s23 + $0x10] sm:$0xff] %vm705_vm9, %v989_v15 }
 0x1a5   : > { %v993_v20 = vpop.eup %992  ;;  %713 = vst.msk [vmem:[%s1341_s23 + $0x38] sm:$0xff] %vm705_vm9, %v991_v18 }
 0x1a6   : > { %709 = vst.msk [vmem:[%s1341_s23 + $0x18] sm:$0xff] %vm705_vm9, %v993_v20 }
 0x1a7 PF: > { %s13_s12 = sadd.s32 1, %s1000_s12  }
 0x1a8   : > { %p10_p4 = scmp.ge.s32.totalorder %s13_s12, 4  }
 0x1aa   :  { %12 = sbr.rel (!%p10_p4) target bundleno = 1 (0x1), region = 62 }

// kernel: vqgan_decoder_forward.9
= control target key start
LH: loop header
LB: loop body
LE: loop exit
PB: predicated region body
PF: predicated region fallthrough
CT: control target
= control target key end

     0   :  { %s4355_s24 = smov 0   ;;  %s5812_s0 = inlined_call_operand.vmem [shape: bf16[2,12,12,32], index: 0, kind: input, shape index: {}]   ;;  %s5813_s1 = inlined_call_operand.vmem [shape: bf16[288,16], index: 1, kind: input, shape index: {}]   ;;  %s5814_s2 = inlined_call_operand.vmem [shape: f32[1,16], index: 2, kind: input, shape index: {}]   ;;  %s5815_s3 = inlined_call_operand.vmem [shape: bf16[144,16], index: 3, kind: input, shape index: {}]   ;;  %s5816_s4 = inlined_call_operand.vmem [shape: f32[1,16], index: 4, kind: input, shape index: {}]   ;;  %s5817_s5 = inlined_call_operand.vmem [shape: bf16[32,16], index: 5, kind: input, shape index: {}]   ;;  %s5818_s6 = inlined_call_operand.vmem [shape: f32[1,16], index: 6, kind: input, shape index: {}]   ;;  %s5819_s7 = inlined_call_operand.vmem [shape: bf16[2,8,8,16], index: 7, kind: output, shape index: {}]  }
   0x1 LB: > { %s3601_s25 = sadd.s32 4294967295, %s4302_s24   ;;  %p3605_p0 = scmp.ge.s32.totalorder %s4302_s24, 1  ;;  %s4302_s24 = sphi %s4355_s24, %s17_s24  }
   0x2   : > { %p237_p1 = scmp.lt.s32.totalorder %s4302_s24, 3 }
   0x4   : > { %p238_p2 = pnand %p3605_p0, %p237_p1 }
   0x6   : > { %241 = sbr.rel (%p238_p2) target bundleno = 855 (0x357), region = 48 }
   0xd   : > { %p269_p3 = scmp.lt.s32.totalorder %s3601_s25, 1  ;;  %v4266_v0 = vld [vmem:[%s5817_s5] sm:$0xff]   ;;  %v4267_v1 = vld [vmem:[%s5817_s5 + $0x8] sm:$0xff]   ;;  %vm526_vm0 = vcmask 1046528   ;;  %vm344_vm1 = vcmask 1045504   ;;  %s4304_s13 = smov 64  }
   0xe   : > { %3762 = vmatprep.subr.bf16.mxu1 %v4266_v0  ;;  %v4268_v2 = vld [vmem:[%s5813_s1 + $0x40] sm:$0xff]   ;;  %s4305_s14 = smov 32   ;;  %s4306_s15 = smov 96   ;;  %vm404_vm2 = vcmask 261120   ;;  %vm4309_vm3 = vmmov 0   ;;  %vm1003_vm4 = vcmask 523264  }
   0xf   : > { %s5932_s25 = smov (!%p269_p3, %s3601_s25), 1  ;;  %3763 = vmatpush3.bf16.msra.mxu1 %v4266_v0  ;;  %vm1024_vm5 = vcmask 785408   ;;  %s4312_s18 = smov 48   ;;  %vm3297_vm8 = vcmask 130048   ;;  %vm3314_vm9 = vcmask 392192   ;;  %vm3331_vm10 = vcmask 654336  }
  0x10   : > { %s3806_s30 = smul.u32 96, %s5932_s25  ;;  %3764 = vmatprep.subr.bf16.mxu1 %v4267_v1  ;;  %s4313_s21 = smov 80   ;;  %vm3348_vm11 = vcmask 916480   ;;  %vm3537_vm12 = vcmask 125952  }
  0x11   : > { %s4314_s22 = smov 112   ;;  %s3688_s26 = sshll.u32 %s5932_s25, 5 }
  0x12   : > { %s4375_s10 = scalar_lea.vmem %s5812_s0, %s3806_s30  ;;  %s5785_s29 = scalar_lea.vmem %s5819_s7, %s3688_s26 }
  0x13   : > { %v281_v3 = vld [vmem:[%s4375_s10 + $0x4] sm:$0x3]  ;;  %v4382_v4 = vld [vmem:[%s4375_s10 + $0x14] sm:$0x3]  ;;  %v283_v5 = vld [vmem:[%s4375_s10 + $0xc] sm:$0x3]  ;;  %3765 = vmatpush3.bf16.msra.mxu1 %v4267_v1 }
  0x14   : > { %v305_v6 = vunpack.c.l.bf16 %v281_v3  ;;  %v309_v7 = vunpack.c.l.bf16 %v4382_v4  ;;  %v307_v8 = vunpack.c.l.bf16 %v283_v5  ;;  %v4387_v9 = vld [vmem:[%s4375_s10 + $0x10] ss:$8 sps:$4 sm:$0xff]   ;;  %v4390_v10 = vld [vmem:[%s4375_s10 + $0x1c] sm:$0x3]  ;;  %v282_v11 = vld [vmem:[%s4375_s10] ss:$8 sps:$4 sm:$0xff]   ;;  %3695 = vmatprep.subr.bf16.mxu1 %v4268_v2 }
  0x15   : > { %v308_v12 = vunpack.c.l.bf16 %v4387_v9  ;;  %v310_v13 = vunpack.c.h.bf16 %v4387_v9  ;;  %v5826_v14 = vunpack.c.l.bf16 %v4390_v10  ;;  %v306_v15 = vunpack.c.h.bf16 %v282_v11  ;;  %v4447_v38 = vld [vmem:[%s4375_s10 + $0x20] ss:$8 sps:$4 sm:$0xff]   ;;  %v4457_v42 = vld [vmem:[%s4375_s10 + $0x24] sm:$0x3]  ;;  %v4510_v1 = vld [vmem:[%s4375_s10 + $0x2c] sm:$0x3] }
  0x16   : > { %v4396_v16 = vmax.f32 %v305_v6, 0.0  ;;  %v4400_v17 = vmax.f32 %v309_v7, 0.0  ;;  %v4402_v18 = vmax.f32 %v307_v8, 0.0  ;;  %v304_v19 = vunpack.c.l.bf16 %v282_v11 }
  0x17   : > { %v4406_v20 = vmax.f32 %v308_v12, 0.0  ;;  %v4410_v21 = vmax.f32 %v310_v13, 0.0  ;;  %v4414_v22 = vmax.f32 %v5826_v14, 0.0  ;;  %v4416_v23 = vmax.f32 %v306_v15, 0.0 }
  0x18   : > { %v618_v24 = vrot.slane %v4396_v16, 2  ;;  %v528_v25 = vrot.slane %v4396_v16, 1  ;;  %v4421_v26 = vrot.slane %v4402_v18, 2  ;;  %v4424_v27 = vrot.slane %v4400_v17, 1 }
  0x19   : > { %5858 = vst [vmem:[#allocation2_spill] sm:$0xff] %v4406_v20  ;;  %5859 = vst [vmem:[#allocation3_spill] sm:$0xff] %v4414_v22  ;;  %v536_v28 = vrot.slane %v4410_v21, 1  ;;  %v4428_v29 = vrot.slane %v4414_v22, 1  ;;  %v530_v30 = vrot.slane %v4416_v23, 1  ;;  %v4432_v31 = vrot.slane %v4402_v18, 1 }
  0x1a   : > { %v3831_v32 = vpack.i.bf16 %v4400_v17, %v618_v24  ;;  %v3826_v33 = vpack.i.bf16 %v4421_v26, %v528_v25  ;;  %v623_v34 = vrot.slane %v4406_v20, 2  ;;  %v4442_v36 = vrot.slane %v4400_v17, 2 }
  0x1b   : > { %v4439_v35 = vsel %vm526_vm0, %v536_v28, %v4428_v29  ;;  %v4444_v37 = vmax.f32 %v304_v19, 0.0  ;;  %v3836_v39 = vpack.i.bf16 %v4424_v27, %v4402_v18  ;;  %v620_v41 = vrot.slane %v4416_v23, 2 }
  0x1c   : > { %3832 = vrot.lane.b32.xlu0 %v3831_v32, %s4304_s13  ;;  %3827 = vrot.lane.b32.xlu1 %v3826_v33, %s4305_s14  ;;  %v3851_v40 = vpack.i.bf16 %v4439_v35, %v4406_v20  ;;  %v4461_v43 = vsel %vm526_vm0, %v530_v30, %v4432_v31  ;;  %v4465_v44 = vsel %vm344_vm1, %v623_v34, %v4442_v36  ;;  %v5825_v51 = vunpack.c.l.bf16 %v4447_v38  ;;  %v4544_v30 = vld [vmem:[%s4375_s10 + $0x30] ss:$8 sps:$4 sm:$0xff]   ;;  %v4547_v32 = vld [vmem:[%s4375_s10 + $0x34] sm:$0x3] }
  0x1d   : > { %v527_v45 = vrot.slane %v4444_v37, 1  ;;  %v617_v46 = vrot.slane %v4444_v37, 2  ;;  %v622_v47 = vsel %vm344_vm1, %v620_v41, %v4421_v26  ;;  %v3841_v49 = vpack.i.bf16 %v4465_v44, %v4461_v43 }
  0x1e   : > { %v533_v53 = vrot.slane %v4406_v20, 1  ;;  %v5824_v54 = vunpack.c.l.bf16 %v4457_v42  ;;  %v4482_v55 = vmax.f32 %v5825_v51, 0.0  ;;  %v3846_v57 = vpack.i.bf16 %v4410_v21, %v622_v47 }
  0x1f   : > { %v529_v48 = vsel %vm526_vm0, %v527_v45, %v528_v25  ;;  %v619_v52 = vsel %vm344_vm1, %v617_v46, %v618_v24  ;;  %v3871_v63 = vpack.i.bf16 %v4424_v27, %v4432_v31  ;;  %v4507_v0 = vrot.slane %v4414_v22, 2 }
  0x20   : > { %3837 = vrot.lane.b32.xlu0 %v3836_v39, %s4306_s15  ;;  %3852 = vrot.lane.b32.xlu1 %v3851_v40, %s4306_s15  ;;  %v3856_v50 = vpack.i.bf16 %v622_v47, %v529_v48  ;;  %5860 = vst [vmem:[#allocation4_spill] sm:$0xff] %v4482_v55  ;;  %v4486_v56 = vmax.f32 %v5824_v54, 0.0  ;;  %v3861_v58 = vpack.i.bf16 %v4406_v20, %v619_v52  ;;  %v629_v60 = vrot.slane %v4482_v55, 2  ;;  %v4662_v54 = vld [vmem:[%s4375_s10 + $0x4c] sm:$0x3] }
  0x21   : > { %v4494_v59 = vsel %vm526_vm0, %v533_v53, %v4424_v27  ;;  %v626_v3 = vrot.slane %v4410_v21, 2  ;;  %v3876_v5 = vpack.i.bf16 %v4442_v36, %v4439_v35  ;;  %v5823_v8 = vunpack.c.h.bf16 %v4447_v38 }
  0x22   : > { %5861 = vst [vmem:[#allocation5_spill] sm:$0xff] %v4486_v56  ;;  %v4498_v61 = vrot.slane %v4486_v56, 2  ;;  %v3866_v62 = vpack.i.bf16 %v4494_v59, %v4416_v23  ;;  %v5822_v11 = vunpack.c.l.bf16 %v4510_v1  ;;  %v3886_v19 = vpack.i.bf16 %v4442_v36, %v4421_v26 }
  0x23   : > { %v4527_v15 = vsel %vm344_vm1, %v626_v3, %v4507_v0  ;;  %v4537_v25 = vmax.f32 %v5823_v8, 0.0  ;;  %v5821_v40 = vunpack.c.l.bf16 %v4544_v30  ;;  %v5820_v41 = vunpack.c.l.bf16 %v4547_v32 }
  0x24   : > { %3842 = vrot.lane.b32.xlu0 %v3841_v49, %s4305_s14  ;;  %3857 = vrot.lane.b32.xlu1 %v3856_v50, %s4305_s14  ;;  %v4514_v2 = vsel %vm344_vm1, %v629_v60, %v4498_v61  ;;  %v3891_v24 = vpack.i.bf16 %v4414_v22, %v4527_v15  ;;  %v4541_v28 = vmax.f32 %v5822_v11, 0.0  ;;  %v3901_v33 = vpack.i.bf16 %v4527_v15, %v4494_v59 }
  0x25   : > { %v3881_v6 = vpack.i.bf16 %v4514_v2, %v4507_v0  ;;  %5862 = vst [vmem:[#allocation6_spill] sm:$0xff] %v4537_v25  ;;  %v3896_v26 = vpack.i.bf16 %v4537_v25, %v4486_v56  ;;  %v542_v34 = vrot.slane %v4537_v25, 1  ;;  %v3906_v45 = vpack.i.bf16 %v4414_v22, %v4400_v17 }
  0x26   : > { %v4557_v39 = vrot.slane %v4541_v28, 1  ;;  %v3911_v46 = vpack.i.bf16 %v4428_v29, %v4482_v55  ;;  %v4568_v47 = vrot.slane %v4486_v56, 1  ;;  %v539_v49 = vrot.slane %v4482_v55, 1 }
  0x27   : > { %v4577_v50 = vmax.f32 %v5821_v40, 0.0  ;;  %v4581_v52 = vmax.f32 %v5820_v41, 0.0  ;;  %v4307_v53 = vmov 1983009808   ;;  %v632_v3 = vrot.slane %v4537_v25, 2 }
  0x28   : > { %3847 = vrot.lane.b32.xlu0 %v3846_v57, %s4304_s13  ;;  %3862 = vrot.lane.b32.xlu1 %v3861_v58, %s4304_s13  ;;  %v4572_v48 = vsel %vm526_vm0, %v542_v34, %v4557_v39  ;;  %v1149_v57 = vunpack.c.l.s4 %v4307_v53  ;;  %v1151_v58 = vlaneseq  ;;  %v318_v41 = vunpack.c.h.bf16 %v4544_v30 }
  0x29   : > { %5863 = vst [vmem:[#allocation7_spill] sm:$0xff] %v4572_v48  ;;  %5864 = vst [vmem:[#allocation8_spill] sm:$0xff] %v4577_v50  ;;  %v3916_v60 = vpack.i.bf16 %v4572_v48, %v4568_v47  ;;  %v3946_v4 = vpack.i.bf16 %v4557_v39, %v4486_v56  ;;  %v348_v14 = vrot.slane %v310_v13, 2  ;;  %v5873_v9 = vunpack.c.l.bf16 %v4510_v1  ;;  %v4281_v1 = vld [vmem:[%s5813_s1 + $0x80] sm:$0xff]  }
  0x2a   : > { %5865 = vst [vmem:[#allocation9_spill] sm:$0xff] %v4581_v52  ;;  %v1150_v34 = vunpack.c.0.s8 %v1149_v57 }
  0x2b   : > { %v355_v13 = vrot.slane %v5873_v9, 2 }
  0x2c   : > { %3867 = vrot.lane.b32.xlu0 %v3866_v62, %s4306_s15  ;;  %3872 = vrot.lane.b32.xlu1 %v3871_v63, %s4305_s14  ;;  %v3921_v62 = vpack.i.bf16 %v4482_v55, %v4465_v44  ;;  %v4591_v63 = vsel %vm526_vm0, %v539_v49, %v4568_v47  ;;  %v3931_v49 = vpack.i.bf16 %v4498_v61, %v4428_v29  ;;  %v5870_v55 = vunpack.c.l.bf16 %v4447_v38 }
  0x30   : > { %3877 = vrot.lane.b32.xlu0 %v3876_v5, %s4305_s14  ;;  %3882 = vrot.lane.b32.xlu1 %v3881_v6, %s4305_s14  ;;  %v4595_v5 = vrot.slane %v4541_v28, 2  ;;  %v545_v6 = vrot.slane %v4577_v50, 1 }
  0x32   : > { %v4616_v53 = vsel %vm344_vm1, %v632_v3, %v4595_v5  ;;  %v346_v3 = vrot.slane %v309_v7, 2  ;;  %v3951_v7 = vpack.i.bf16 %v4577_v50, %v4514_v2 }
  0x34   : > { %3887 = vrot.lane.b32.xlu0 %v3886_v19, %s4304_s13  ;;  %3892 = vrot.lane.b32.xlu1 %v3891_v24, %s4304_s13  ;;  %v4599_v19 = vrot.slane %v4581_v52, 1  ;;  %v635_v24 = vrot.slane %v4577_v50, 2 }
  0x36   : > { %v4621_v57 = vsel %vm526_vm0, %v545_v6, %v4599_v19  ;;  %v3936_v6 = vpack.i.bf16 %v4541_v28, %v4507_v0 }
  0x38   : > { %3897 = vrot.lane.b32.xlu0 %v3896_v26, %s4304_s13  ;;  %3902 = vrot.lane.b32.xlu1 %v3901_v33, %s4305_s14  ;;  %v4603_v26 = vrot.slane %v4581_v52, 2  ;;  %v295_v33 = vld [vmem:[%s4375_s10 + $0x3c] sm:$0x3] }
  0x39   : > { %v319_v40 = vunpack.c.l.bf16 %v295_v33 }
  0x3b   : > { %v4658_v8 = vmax.f32 %v319_v40, 0.0 }
  0x3c   : > { %3907 = vrot.lane.b32.xlu0 %v3906_v45, %s4306_s15  ;;  %3912 = vrot.lane.b32.xlu1 %v3911_v46, %s4306_s15  ;;  %v4606_v45 = vshrl.u32 %v1151_v58, 7  ;;  %v3926_v46 = vpack.i.bf16 %v4591_v63, %v4410_v21  ;;  %v4625_v58 = vsel %vm344_vm1, %v635_v24, %v4603_v26  ;;  %v3941_v24 = vpack.i.bf16 %v4616_v53, %v4591_v63 }
  0x3d   : > { %v3961_v11 = vpack.i.bf16 %v4625_v58, %v4572_v48  ;;  %5868 = vst [vmem:[#allocation12_spill] sm:$0xff] %v4658_v8 }
  0x3e   : > { %5866 = vst [vmem:[#allocation10_spill] sm:$0xff] %v4606_v45  ;;  %v4635_v33 = vsub.s32 %v1150_v34, %v4606_v45  ;;  %v4649_v34 = vmax.f32 %v318_v41, 0.0  ;;  %v5869_v45 = vunpack.c.l.bf16 %v4390_v10 }
  0x40   : > { %3917 = vrot.lane.b32.xlu0 %v3916_v60, %s4306_s15  ;;  %3922 = vrot.lane.b32.xlu1 %v3921_v62, %s4304_s13  ;;  %v4628_v60 = vld [vmem:[%s4375_s10 + $0x40] ss:$8 sps:$4 sm:$0xff]   ;;  %v345_v62 = vrot.slane %v308_v12, 2  ;;  %5867 = vst [vmem:[#allocation11_spill] sm:$0xff] %v4649_v34  ;;  %v349_v56 = vrot.slane %v5869_v45, 2  ;;  %v5871_v12 = vunpack.c.l.bf16 %v4457_v42  ;;  %v323_v45 = vunpack.c.l.bf16 %v4662_v54  ;;  %v4282_v54 = vld [vmem:[%s5813_s1 + $0x30] sm:$0xff]  }
  0x41   : > { %v322_v10 = vunpack.c.h.bf16 %v4628_v60  ;;  %v548_v9 = vrot.slane %v4649_v34, 1 }
  0x42   : > { %v347_v51 = vsel %vm344_vm1, %v345_v62, %v346_v3  ;;  %v352_v22 = vrot.slane %v5871_v12, 2  ;;  %v5872_v62 = vunpack.c.h.bf16 %v4447_v38  ;;  %v5875_v38 = vunpack.c.l.bf16 %v4547_v32 }
  0x44   : > { %3927 = vrot.lane.b32.xlu0 %v3926_v46, %s4306_s15  ;;  %3932 = vrot.lane.b32.xlu1 %v3931_v49, %s4305_s14  ;;  %v4652_v46 = vld [vmem:[%s4375_s10 + $0x44] sm:$0x3]  ;;  %v3956_v49 = vpack.i.bf16 %v4621_v57, %v4537_v25  ;;  %v351_v25 = vrot.slane %v5870_v55, 2  ;;  %v354_v3 = vrot.slane %v5872_v62, 2  ;;  %v350_v55 = vsel %vm344_vm1, %v348_v14, %v349_v56 }
  0x45   : > { %v377_v20 = vpack.c.bf16 %v350_v55, %v347_v51  ;;  %v358_v12 = vrot.slane %v5875_v38, 2  ;;  %v4269_v14 = vld [vmem:[%s5813_s1] sm:$0xff]   ;;  %v360_v56 = vrot.slane %v318_v41, 2  ;;  %v5876_v51 = vunpack.c.l.bf16 %v4628_v60  ;;  %v4271_v38 = vld [vmem:[%s5813_s1 + $0x8] sm:$0xff]  }
  0x46   : > { %v353_v48 = vsel %vm344_vm1, %v351_v25, %v352_v22  ;;  %v356_v42 = vsel %vm344_vm1, %v354_v3, %v355_v13  ;;  %v5877_v32 = vunpack.c.l.bf16 %v4652_v46  ;;  %v4706_v41 = vrot.slane %v4658_v8, 1 }
  0x47   : > { %v378_v62 = vpack.c.bf16 %v356_v42, %v353_v48  ;;  %v363_v25 = vrot.slane %v5876_v51, 2  ;;  %v366_v48 = vrot.slane %v322_v10, 2  ;;  %3766 = vmatprep.mubr.msk.bf16.mxu1 %vm404_vm2, %v377_v20  ;;  %v367_v13 = vrot.slane %v323_v45, 2  ;;  %v4284_v20 = vld [vmem:[%s5813_s1 + $0x88] sm:$0xff]  }
  0x48   : > { %3937 = vrot.lane.b32.xlu0 %v3936_v6, %s4304_s13  ;;  %3942 = vrot.lane.b32.xlu1 %v3941_v24, %s4305_s14  ;;  %v5874_v6 = vunpack.c.l.bf16 %v4544_v30  ;;  %v361_v30 = vrot.slane %v319_v40, 2  ;;  %v364_v3 = vrot.slane %v5877_v32, 2  ;;  %5878 = vst [vmem:[#allocation13_spill] sm:$0xff] %v4706_v41  ;;  %v4270_v40 = vld [vmem:[%s5813_s1 + $0x48] sm:$0xff]   ;;  %v4718_v55 = vrot.slane %v4527_v15, %v4635_v33  ;;  %v4273_v32 = vld [vmem:[%s5813_s1 + $0x10] sm:$0xff]  }
  0x49   : > { %3767 = vmatmul.mubr.msk.bf16.vlgmr.msra.gmra.mrb[0].mxu1 %vm404_vm2, %v378_v62  ;;  %v3971_v42 = vpack.i.bf16 %v4557_v39, %v4568_v47  ;;  %v368_v62 = vsel %vm344_vm1, %v366_v48, %v367_v13  ;;  %v1296_v51 = vrot.slane %v4498_v61, %v4635_v33  ;;  %v4274_v13 = vld [vmem:[%s5813_s1 + $0x58] sm:$0xff]  }
  0x4a   : > { %v357_v24 = vrot.slane %v5874_v6, 2  ;;  %3696 = vmatpush3.bf16.msra.mxu1 %v4269_v14 }
  0x4b   : > { %3697 = vmatprep.subr.bf16.mxu1 %v4270_v40  ;;  %v638_v40 = vrot.slane %v4649_v34, 2 }
  0x4c   : > { %3947 = vrot.lane.b32.xlu0 %v3946_v4, %s4306_s15  ;;  %3952 = vrot.lane.b32.xlu1 %v3951_v7, %s4304_s13  ;;  %v359_v22 = vsel %vm344_vm1, %v357_v24, %v358_v12  ;;  %v362_v4 = vsel %vm344_vm1, %v360_v56, %v361_v30  ;;  %v5835_v7 = vmov 0.0   ;;  %v1194_v24 = vrot.slane %v4442_v36, %v4635_v33  ;;  %v4272_v30 = vld [vmem:[%s5813_s1 + $0x50] sm:$0xff]  }
  0x4d   : > { %3774 = vmatprep.subr.bf16.mxu0 %v5835_v7  ;;  %v379_v6 = vpack.c.bf16 %v362_v4, %v359_v22  ;;  %v365_v12 = vsel %vm344_vm1, %v363_v25, %v364_v3  ;;  %v3966_v36 = vpack.i.bf16 %v4649_v34, %v4616_v53  ;;  %v4747_v56 = vsel %vm526_vm0, %v548_v9, %v4706_v41 }
  0x4e   : > { %3775 = vmatpush3.bf16.msra.mxu0 %v4281_v1  ;;  %v4736_v1 = vrot.slane %v4616_v53, %v4635_v33  ;;  %v4743_v14 = vcombine.low %v1194_v24, %v4718_v55  ;;  %v380_v22 = vpack.c.bf16 %v368_v62, %v365_v12  ;;  %3778 = vmatprep.mubr.msk.bf16.mxu0 %vm4309_vm3, %v5835_v7  ;;  %v4774_v4 = vrot.slane %v4658_v8, 2 }
  0x4f   : > { %3776 = vmatprep.subr.bf16.mxu0 %v5835_v7  ;;  %3770 = vmatprep.mubr.msk.bf16.mxu1 %vm404_vm2, %v379_v6  ;;  %v3981_v25 = vpack.i.bf16 %v4603_v26, %v4595_v5  ;;  %v3976_v3 = vpack.i.bf16 %v4747_v56, %v4577_v50  ;;  %v3986_v24 = vpack.i.bf16 %v4595_v5, %v4498_v61  ;;  %v5880_v62 = vunpack.c.l.bf16 %v4628_v60  ;;  %v4276_v61 = vld [vmem:[%s5813_s1 + $0x60] sm:$0xff]  }
  0x50   : > { %3957 = vrot.lane.b32.xlu0 %v3956_v49, %s4306_s15  ;;  %3962 = vrot.lane.b32.xlu1 %v3961_v11, %s4305_s14  ;;  %v5879_v11 = vcombine.high %v4514_v2, %v4514_v2  ;;  %v3623_v48 = vcombine.low %v1296_v51, %v4736_v1  ;;  %v4794_v12 = vsel %vm344_vm1, %v638_v40, %v4774_v4 }
  0x51   : > { %3698 = vmatpush3.bf16.msra.mxu1 %v4271_v38  ;;  %v4006_v40 = vpack.i.bf16 %v4706_v41, %v4599_v19  ;;  %v1398_v60 = vrot.slane %v4603_v26, %v4635_v33 }
  0x52   : > { %v1277_v49 = vrot.slane %v5879_v11, %v4635_v33  ;;  %3777 = vmatpush3.bf16.msra.mxu0 %v4284_v20  ;;  %3699 = vmatprep.subr.bf16.mxu1 %v4272_v30  ;;  %v1791_v6 = vrot.slane %v3623_v48, %v4635_v33  ;;  %v4275_v20 = vld [vmem:[%s5813_s1 + $0x18] sm:$0xff]   ;;  %v5882_v30 = vunpack.c.l.bf16 %v4652_v46  ;;  %v4001_v46 = vpack.i.bf16 %v4581_v52, %v4541_v28  ;;  %v4278_v48 = vld [vmem:[%s5813_s1 + $0x68] sm:$0xff]  }
  0x53   : > { %3771 = vmatmul.mubr.msk.bf16.gmra.mrb[4].mxu1 %vm404_vm2, %v380_v22  ;;  %v3996_v22 = vpack.i.bf16 %v4794_v12, %v4621_v57 }
  0x54   : > { %3967 = vrot.lane.b32.xlu0 %v3966_v36, %s4304_s13  ;;  %3972 = vrot.lane.b32.xlu1 %v3971_v42, %s4305_s14  ;;  %v1777_v9 = vrot.slane %v1277_v49, %v4635_v33  ;;  %v3991_v42 = vpack.i.bf16 %v4658_v8, %v4581_v52  ;;  %v4798_v36 = vmax.f32 %v5880_v62, 0.0  ;;  %v4802_v11 = vmax.f32 %v5882_v30, 0.0  ;;  %v4277_v49 = vld [vmem:[%s5813_s1 + $0x20] sm:$0xff]   ;;  %v4280_v62 = vld [vmem:[%s5813_s1 + $0x70] sm:$0xff]  }
  0x55   : > { %3700 = vmatpush3.bf16.msra.mxu1 %v4273_v32  ;;  %v4857_v30 = vrot.slane %v4794_v12, %v4635_v33 }
  0x56   : > { %v4790_v38 = vcombine.low %v1777_v9, %v1791_v6  ;;  %5881 = vst [vmem:[#allocation14_spill] sm:$0xff] %v4798_v36  ;;  %5883 = vst [vmem:[#allocation15_spill] sm:$0xff] %v4802_v11  ;;  %3701 = vmatprep.subr.bf16.mxu1 %v4274_v13  ;;  %v551_v51 = vrot.slane %v4798_v36, 1  ;;  %v641_v32 = vrot.slane %v4798_v36, 2  ;;  %v4279_v9 = vld [vmem:[%s5813_s1 + $0x28] sm:$0xff]   ;;  %v4011_v13 = vpack.i.bf16 %v4798_v36, %v4625_v58 }
  0x58   : > { %3977 = vrot.lane.b32.xlu0 %v3976_v3, %s4306_s15  ;;  %3982 = vrot.lane.b32.xlu1 %v3981_v25, %s4305_s14  ;;  %v4818_v25 = vrot.slane %v4802_v11, 1  ;;  %v4822_v3 = vrot.slane %v4802_v11, 2 }
  0x59   : > { %3702 = vmatpush3.bf16.msra.mxu1 %v4275_v20 }
  0x5a   : > { %5884 = vst [vmem:[#allocation16_spill] sm:$0xff] %v4818_v25  ;;  %3703 = vmatprep.subr.bf16.mxu1 %v4276_v61  ;;  %v4838_v6 = vsel %vm526_vm0, %v551_v51, %v4818_v25  ;;  %v4842_v20 = vsel %vm344_vm1, %v641_v32, %v4822_v3  ;;  %v4871_v61 = vcombine.low %v1398_v60, %v4857_v30  ;;  %v300_v51 = vld [vmem:[%s4375_s10 + $0x50] ss:$8 sps:$4 sm:$0xff]   ;;  %v301_v32 = vld [vmem:[%s4375_s10 + $0x54] sm:$0x3] }
  0x5b   : > { %v324_v60 = vunpack.c.l.bf16 %v300_v51  ;;  %v325_v7 = vunpack.c.l.bf16 %v301_v32 }
  0x5c   : > { %3987 = vrot.lane.b32.xlu0 %v3986_v24, %s4304_s13  ;;  %3992 = vrot.lane.b32.xlu1 %v3991_v42, %s4304_s13  ;;  %v4846_v24 = vmax.f32 %v322_v10, 0.0  ;;  %v4850_v42 = vmax.f32 %v323_v45, 0.0  ;;  %v4016_v10 = vpack.i.bf16 %v4838_v6, %v4649_v34  ;;  %v4021_v45 = vpack.i.bf16 %v4842_v20, %v4747_v56 }
  0x5d   : > { %3704 = vmatpush3.bf16.msra.mxu1 %v4277_v49  ;;  %v502_v52 = vmax.f32 %v324_v60, 0.0  ;;  %v503_v34 = vmax.f32 %v325_v7, 0.0 }
  0x5e   : > { %5885 = vst [vmem:[#allocation17_spill] sm:$0xff] %v4846_v24  ;;  %5886 = vst [vmem:[#allocation18_spill] sm:$0xff] %v4850_v42  ;;  %3705 = vmatprep.subr.bf16.mxu1 %v4278_v48  ;;  %v554_v49 = vrot.slane %v4846_v24, 1  ;;  %v4285_v48 = vld [vmem:[%s5813_s1 + $0x38] sm:$0xff]   ;;  %v4910_v32 = vrot.slane %v4850_v42, 2 }
  0x5f   : > { %v793_v7 = vrot.slane %v503_v34, 2 }
  0x60   : > { %3997 = vrot.lane.b32.xlu0 %v3996_v22, %s4305_s14  ;;  %4002 = vrot.lane.b32.xlu1 %v4001_v46, %s4306_s15  ;;  %v4875_v22 = vrot.slane %v4850_v42, 1  ;;  %v4283_v46 = vld [vmem:[%s5813_s1 + $0x78] sm:$0xff]  }
  0x61   : > { %3706 = vmatpush3.bf16.msra.mxu1 %v4279_v9  ;;  %v4026_v9 = vpack.i.bf16 %v4846_v24, %v4794_v12 }
  0x62   : > { %5887 = vst [vmem:[#allocation19_spill] sm:$0xff] %v4875_v22  ;;  %3707 = vmatprep.subr.bf16.mxu1 %v4280_v62  ;;  %v4892_v62 = vsel %vm526_vm0, %v554_v49, %v4875_v22 }
  0x63   : > { %5888 = vst [vmem:[#allocation20_spill] sm:$0xff] %v4892_v62 }
  0x64   : > { %4007 = vrot.lane.b32.xlu0 %v4006_v40, %s4306_s15  ;;  %4012 = vrot.lane.b32.xlu1 %v4011_v13, %s4304_s13  ;;  %v303_v13 = vld [vmem:[%s4375_s10 + $0x5c] sm:$0x3]  ;;  %s4311_s10 = smov 16  }
  0x65   : > { %3708 = vmatpush3.bf16.msra.mxu1 %v4282_v54  ;;  %v326_v54 = vunpack.c.h.bf16 %v300_v51  ;;  %v327_v41 = vunpack.c.l.bf16 %v303_v13  ;;  %v644_v51 = vrot.slane %v4846_v24, 2  ;;  %v4061_v13 = vpack.i.bf16 %v4875_v22, %v4818_v25 }
  0x66   : > { %3709 = vmatprep.subr.bf16.mxu1 %v4283_v46  ;;  %v4046_v46 = vpack.i.bf16 %v4774_v4, %v4603_v26  ;;  %v4056_v26 = vpack.i.bf16 %v4802_v11, %v4658_v8 }
  0x67   : > { %v504_v49 = vmax.f32 %v326_v54, 0.0  ;;  %v4900_v50 = vmax.f32 %v327_v41, 0.0  ;;  %v4921_v60 = vsel %vm344_vm1, %v644_v51, %v4910_v32 }
  0x68   : > { %4017 = vrot.lane.b32.xlu0 %v4016_v10, %s4306_s15  ;;  %4022 = vrot.lane.b32.xlu1 %v4021_v45, %s4305_s14  ;;  %v4036_v10 = vpack.i.bf16 %v4892_v62, %v4798_v36  ;;  %v4041_v45 = vpack.i.bf16 %v4822_v3, %v4774_v4  ;;  %v1453_v36 = vcombine.high %v4842_v20, %v4842_v20 }
  0x69   : > { %3710 = vmatpush3.bf16.msra.mxu1 %v4285_v48  ;;  %5889 = vst [vmem:[#allocation21_spill] sm:$0xff] %v4900_v50  ;;  %v792_v48 = vrot.slane %v502_v52, 2  ;;  %v5842_v41 = vrot.slane %v4900_v50, 2  ;;  %v4071_v51 = vpack.i.bf16 %v504_v49, %v4921_v60 }
  0x6b   : > { %v4924_v54 = vsel %vm344_vm1, %v792_v48, %v793_v7 }
  0x6c   : > { %4027 = vrot.lane.b32.xlu0 %v4026_v9, %s4304_s13  ;;  %4032 = vrot.lane.b32.xlu1 %v4006_v40, %s4305_s14  ;;  %v4051_v40 = vpack.i.bf16 %v4850_v42, %v4802_v11  ;;  %v980_v9 = vrot.slane %v504_v49, 2 }
  0x70   : > { %4037 = vrot.lane.b32.xlu0 %v4036_v10, %s4306_s15  ;;  %4042 = vrot.lane.b32.xlu1 %v4041_v45, %s4305_s14  ;;  %v917_v10 = vrot.slane %v504_v49, 1  ;;  %v918_v45 = vrot.slane %v4900_v50, 1  ;;  %v4091_v49 = vpack.i.bf16 %v4921_v60, %v4838_v6 }
  0x72   : > { %v919_v48 = vsel %vm526_vm0, %v917_v10, %v918_v45  ;;  %v4953_v10 = vrot.slane %v503_v34, 1 }
  0x74   : > { %4047 = vrot.lane.b32.xlu0 %v4046_v46, %s4304_s13  ;;  %4052 = vrot.lane.b32.xlu1 %v4051_v40, %s4304_s13  ;;  %v4930_v46 = vsel %vm344_vm1, %v980_v9, %v5842_v41  ;;  %v4066_v40 = vpack.i.bf16 %v4924_v54, %v4892_v62  ;;  %v4076_v9 = vpack.i.bf16 %v4910_v32, %v4818_v25 }
  0x75   : > { %v4086_v41 = vpack.i.bf16 %v503_v34, %v4822_v3  ;;  %5891 = vst [vmem:[#allocation23_spill] sm:$0xff] %v4953_v10 }
  0x78   : > { %4057 = vrot.lane.b32.xlu0 %v4056_v26, %s4306_s15  ;;  %4062 = vrot.lane.b32.xlu1 %v4061_v13, %s4306_s15  ;;  %v4081_v26 = vpack.i.bf16 %v919_v48, %v502_v52  ;;  %v4946_v13 = vrot.slane %v4921_v60, %v4635_v33  ;;  %v769_v48 = vrot.slane %v502_v52, 1 }
  0x7a   : > { %5890 = vst [vmem:[#allocation22_spill] sm:$0xff] %v4946_v13 }
  0x7c   : > { %4067 = vrot.lane.b32.xlu0 %v4066_v40, %s4305_s14  ;;  %4072 = vrot.lane.b32.xlu1 %v4071_v51, %s4304_s13  ;;  %v1481_v40 = vrot.slane %v1453_v36, %v4635_v33  ;;  %v1500_v51 = vrot.slane %v4822_v3, %v4635_v33  ;;  %v4968_v36 = vsel %vm526_vm0, %v769_v48, %v4953_v10 }
  0x7d   : > { %5892 = vst [vmem:[#allocation24_spill] sm:$0xff] %v4968_v36 }
  0x7e   : > { %v3635_v62 = vcombine.low %v1500_v51, %v4946_v13  ;;  %v1952_v11 = vrot.slane %v1481_v40, %v4635_v33  ;;  %v1602_v51 = vrot.slane %v793_v7, %v4635_v33 }
  0x80   : > { %4077 = vrot.lane.b32.xlu0 %v4076_v9, %s4305_s14  ;;  %4082 = vrot.lane.b32.xlu1 %v4081_v26, %s4306_s15  ;;  %v4096_v9 = vpack.i.bf16 %v4953_v10, %v4850_v42  ;;  %v4101_v26 = vpack.i.bf16 %v502_v52, %v4842_v20  ;;  %v1966_v8 = vrot.slane %v3635_v62, %v4635_v33 }
  0x81   : > { %v4980_v52 = vrot.slane %v4930_v46, %v4635_v33 }
  0x82   : > { %v4970_v3 = vcombine.low %v1952_v11, %v1966_v8  ;;  %v4116_v8 = vpack.i.bf16 %v4900_v50, %v4910_v32  ;;  %v4121_v11 = vpack.i.bf16 %v918_v45, %v503_v34  ;;  %v1168_v34 = vrot.slane %v4465_v44, %v4635_v33 }
  0x83   : > { %5894 = vst [vmem:[#allocation26_spill] sm:$0xff] %v4980_v52  ;;  %v4983_v62 = vcombine.low %v1602_v51, %v4980_v52  ;;  %v1198_v51 = vcombine.high %v4527_v15, %v4527_v15 }
  0x84   : > { %4087 = vrot.lane.b32.xlu0 %v4086_v41, %s4304_s13  ;;  %4092 = vrot.lane.b32.xlu1 %v4091_v49, %s4305_s14  ;;  %5893 = vst [vmem:[#allocation25_spill] sm:$0xff] %v4970_v3  ;;  %v4106_v41 = vpack.i.bf16 %v4968_v36, %v4846_v24  ;;  %v4111_v49 = vpack.i.bf16 %v793_v7, %v4875_v22 }
  0x85   : > { %5895 = vst [vmem:[#allocation27_spill] sm:$0xff] %v4983_v62  ;;  %v5006_v52 = vrot.slane %v1198_v51, %v4635_v33 }
  0x88   : > { %4097 = vrot.lane.b32.xlu0 %v4096_v9, %s4306_s15  ;;  %4102 = vrot.lane.b32.xlu1 %v4101_v26, %s4304_s13 }
  0x8c   : > { %4107 = vrot.lane.b32.xlu0 %v4106_v41, %s4306_s15  ;;  %4112 = vrot.lane.b32.xlu1 %v4111_v49, %s4305_s14  ;;  %v1147_v41 = vcombine.high %v4465_v44, %v4465_v44  ;;  %v1300_v49 = vcombine.high %v4616_v53, %v4616_v53 }
  0x8e   : > { %v3833_v40 = vpop.permute.xlu0 %3832  ;;  %v3828_v48 = vpop.permute.xlu1 %3827 }
  0x8f   : > { %v3830_v26 = vunpack.i.h.bf16 %v3828_v48  ;;  %v3829_v42 = vunpack.i.l.bf16 %v3828_v48  ;;  %v3835_v45 = vunpack.i.h.bf16 %v3833_v40 }
  0x90   : > { %4117 = vrot.lane.b32.xlu0 %v4116_v8, %s4304_s13  ;;  %4122 = vrot.lane.b32.xlu1 %v4121_v11, %s4306_s15  ;;  %v3834_v8 = vunpack.i.l.bf16 %v3833_v40  ;;  %v5009_v40 = vrot.slane %v1300_v49, %v4635_v33 }
  0x91   : > { %v1046_v48 = vsel %vm404_vm2, %v4432_v31, %v3830_v26  ;;  %v984_v15 = vsel %vm404_vm2, %v4396_v16, %v3829_v42  ;;  %v1175_v31 = vrot.slane %v1147_v41, %v4635_v33 }
  0x92   : > { %v3838_v7 = vpop.permute.xlu0 %3837  ;;  %v3853_v9 = vpop.permute.xlu1 %3852  ;;  %v1005_v26 = vsel %vm1003_vm4, %v984_v15, %v3834_v8  ;;  %v1066_v16 = vsel %vm1003_vm4, %v1046_v48, %v3835_v45 }
  0x93   : > { %v3840_v10 = vunpack.i.h.bf16 %v3838_v7  ;;  %v3839_v3 = vunpack.i.l.bf16 %v3838_v7  ;;  %v3855_v42 = vunpack.i.h.bf16 %v3853_v9  ;;  %v3854_v7 = vunpack.i.l.bf16 %v3853_v9 }
  0x95   : > { %v1026_v51 = vsel %vm1024_vm5, %v1005_v26, %v3839_v3  ;;  %v1086_v13 = vsel %vm1024_vm5, %v1066_v16, %v3840_v10 }
  0x96   : > { %v3843_v11 = vpop.permute.xlu0 %3842  ;;  %v3858_v50 = vpop.permute.xlu1 %3857  ;;  %v1180_v48 = vcombine.low %v1026_v51, %v1086_v13 }
  0x97   : > { %v3845_v44 = vunpack.i.h.bf16 %v3843_v11  ;;  %v3844_v22 = vunpack.i.l.bf16 %v3843_v11  ;;  %v3860_v24 = vunpack.i.h.bf16 %v3858_v50  ;;  %v3859_v36 = vunpack.i.l.bf16 %v3858_v50 }
  0x98   : > { %v1187_v51 = vrot.slane %v1180_v48, %v4635_v33 }
  0x99   : > { %v1047_v49 = vsel %vm404_vm2, %v4494_v59, %v3845_v44  ;;  %v985_v50 = vsel %vm404_vm2, %v4416_v23, %v3844_v22  ;;  %v1045_v45 = vsel %vm404_vm2, %v4461_v43, %v3860_v24  ;;  %v983_v9 = vsel %vm404_vm2, %v4444_v37, %v3859_v36 }
  0x9a   : > { %v3848_v62 = vpop.permute.xlu0 %3847  ;;  %v3863_v53 = vpop.permute.xlu1 %3862  ;;  %v1351_v37 = vcombine.high %v4625_v58, %v4625_v58 }
  0x9b   : > { %v3850_v11 = vunpack.i.h.bf16 %v3848_v62  ;;  %v3849_v25 = vunpack.i.l.bf16 %v3848_v62  ;;  %v3865_v41 = vunpack.i.h.bf16 %v3863_v53  ;;  %v3864_v8 = vunpack.i.l.bf16 %v3863_v53 }
  0x9c   : > { %v1402_v62 = vcombine.high %v4794_v12, %v4794_v12  ;;  %v1672_v12 = vrot.slane %v1168_v34, %v4635_v33 }
  0x9d   : > { %v1006_v3 = vsel %vm1003_vm4, %v985_v50, %v3849_v25  ;;  %v1067_v10 = vsel %vm1003_vm4, %v1047_v49, %v3850_v11  ;;  %v1004_v25 = vsel %vm1003_vm4, %v983_v9, %v3864_v8  ;;  %v1065_v36 = vsel %vm1003_vm4, %v1045_v45, %v3865_v41 }
  0x9e   : > { %v1027_v59 = vsel %vm1024_vm5, %v1006_v3, %v3854_v7  ;;  %v1087_v23 = vsel %vm1024_vm5, %v1067_v10, %v3855_v42  ;;  %v3868_v22 = vpop.permute.xlu0 %3867  ;;  %v3873_v15 = vpop.permute.xlu1 %3872  ;;  %v1686_v42 = vrot.slane %v1175_v31, %v4635_v33  ;;  %v5043_v41 = vrot.slane %v1402_v62, %v4635_v33 }
  0x9f   : > { %v1196_v53 = vcombine.low %v1027_v59, %v1087_v23  ;;  %v1197_v44 = vcombine.high %v1027_v59, %v1087_v23  ;;  %v3870_v43 = vunpack.i.h.bf16 %v3868_v22  ;;  %v3869_v24 = vunpack.i.l.bf16 %v3868_v22 }
  0xa0   : > { %v1689_v59 = vcombine.low %v1672_v12, %v1686_v42 }
  0xa1   : > { %v1205_v13 = vrot.slane %v1196_v53, %v4635_v33  ;;  %v1025_v26 = vsel %vm1024_vm5, %v1004_v25, %v3869_v24  ;;  %v1085_v16 = vsel %vm1024_vm5, %v1065_v36, %v3870_v43  ;;  %v5050_v31 = vrot.slane %v1197_v44, %v4635_v33 }
  0xa2   : > { %v1145_v11 = vcombine.low %v1025_v26, %v1085_v16  ;;  %v1146_v49 = vcombine.high %v1025_v26, %v1085_v16  ;;  %v3878_v50 = vpop.permute.xlu0 %3877  ;;  %v3883_v8 = vpop.permute.xlu1 %3882  ;;  %v1707_v36 = vrot.slane %v4743_v14, %v4635_v33  ;;  %v3874_v26 = vunpack.i.l.bf16 %v3873_v15 }
  0xa3   : > { %v1228_v10 = vcombine.high %v1205_v13, %v4718_v55  ;;  %v3616_v48 = vcombine.low %v1187_v51, %v1205_v13  ;;  %v3875_v13 = vunpack.i.h.bf16 %v3873_v15  ;;  %v5896_v16 = vrot.slane %v4514_v2, %v4635_v33 }
  0xa4   : > { %v1154_v9 = vrot.slane %v1145_v11, %v4635_v33  ;;  %v1161_v3 = vrot.slane %v1146_v49, %v4635_v33  ;;  %v3885_v14 = vunpack.i.h.bf16 %v3883_v8  ;;  %v3884_v34 = vunpack.i.l.bf16 %v3883_v8 }
  0xa5   : > { %v3618_v25 = vcombine.low %v1228_v10, %v5050_v31  ;;  %v1700_v12 = vrot.slane %v3616_v48, %v4635_v33  ;;  %v5071_v42 = vrot.slane %v5896_v16, %v4635_v33  ;;  %v3879_v10 = vunpack.i.l.bf16 %v3878_v50 }
  0xa6   : > { %v3888_v53 = vpop.permute.xlu0 %3887  ;;  %v3893_v44 = vpop.permute.xlu1 %3892  ;;  %v1665_v43 = vrot.slane %v1154_v9, %v4635_v33  ;;  %v1679_v24 = vrot.slane %v1161_v3, %v4635_v33  ;;  %v1229_v9 = vcombine.low %v5050_v31, %v5006_v52  ;;  %v3880_v3 = vunpack.i.h.bf16 %v3878_v50 }
  0xa7   : > { %v1714_v49 = vrot.slane %v3618_v25, %v4635_v33  ;;  %v3889_v15 = vunpack.i.l.bf16 %v3888_v53  ;;  %v988_v16 = vsel %vm404_vm2, %v4400_v17, %v3875_v13  ;;  %v5082_v25 = vrot.slane %v1351_v37, %v4635_v33 }
  0xa8   : > { %v1687_v51 = vcombine.low %v1665_v43, %v1679_v24  ;;  %v1688_v11 = vcombine.high %v1665_v43, %v1679_v24  ;;  %v3619_v2 = vcombine.high %v4718_v55, %v1229_v9  ;;  %v986_v43 = vsel %vm404_vm2, %v4402_v18, %v3874_v26 }
  0xa9   : > { %v1722_v7 = vcombine.low %v1700_v12, %v1714_v49  ;;  %v1723_v45 = vcombine.high %v1700_v12, %v1714_v49  ;;  %v3890_v24 = vunpack.i.h.bf16 %v3888_v53  ;;  %v3895_v50 = vunpack.i.h.bf16 %v3893_v44 }
  0xaa   : > { %v3898_v62 = vpop.permute.xlu0 %3897  ;;  %v3903_v48 = vpop.permute.xlu1 %3902  ;;  %v1721_v8 = vrot.slane %v3619_v2, %v4635_v33  ;;  %v1048_v12 = vsel %vm404_vm2, %v4424_v27, %v3880_v3  ;;  %v989_v55 = vsel %vm404_vm2, %v4410_v21, %v3879_v10  ;;  %v1051_v17 = vsel %vm404_vm2, %v4591_v63, %v3885_v14 }
  0xab   : > { %v2132_v22 = vpack.c.bf16 %v1723_v45, %v1688_v11  ;;  %v2131_v23 = vpack.c.bf16 %v1722_v7, %v1687_v51  ;;  %v1050_v18 = vsel %vm404_vm2, %v4428_v29, %v3884_v34  ;;  %v1007_v37 = vsel %vm1003_vm4, %v986_v43, %v3889_v15 }
  0xac   : > { %v3894_v53 = vunpack.i.l.bf16 %v3893_v44  ;;  %v3899_v13 = vunpack.i.l.bf16 %v3898_v62  ;;  %v1724_v45 = vcombine.low %v1707_v36, %v1721_v8  ;;  %v3900_v51 = vunpack.i.h.bf16 %v3898_v62 }
  0xad   : > { %2356 = vmatprep.mubr.bf16.mxu1 %v2132_v22  ;;  %v3905_v11 = vunpack.i.h.bf16 %v3903_v48  ;;  %v1009_v21 = vsel %vm1003_vm4, %v988_v16, %v3890_v24  ;;  %v1068_v63 = vsel %vm1003_vm4, %v1048_v12, %v3895_v50  ;;  %v3904_v9 = vunpack.i.l.bf16 %v3903_v48  ;;  %v5898_v24 = vld [vmem:[#allocation2_spill] sm:$0xff] }
  0xae   : > { %v3908_v26 = vpop.permute.xlu0 %3907  ;;  %v3913_v7 = vpop.permute.xlu1 %3912  ;;  %2357 = vmatmul.mubr.bf16.vlgmr.msra.gmra.mrb[8].mxu1 %v2131_v23  ;;  %v2133_v3 = vpack.c.bf16 %v1724_v45, %v1689_v59  ;;  %v1010_v36 = vsel %vm1003_vm4, %v989_v55, %v3894_v53  ;;  %v1070_v62 = vsel %vm1003_vm4, %v1050_v18, %v3899_v13  ;;  %v1230_v15 = vcombine.high %v5050_v31, %v5006_v52 }
  0xaf   : > { %v3909_v27 = vunpack.i.l.bf16 %v3908_v26  ;;  %v3915_v49 = vunpack.i.h.bf16 %v3913_v7  ;;  %v3910_v29 = vunpack.i.h.bf16 %v3908_v26  ;;  %v3914_v44 = vunpack.i.l.bf16 %v3913_v7 }
  0xb0   : > { %3779 = vmatmul.mubr.msk.bf16.vlgmr.msra.gmra.mrb[0].mxu0 %vm404_vm2, %v2133_v3  ;;  %v1071_v59 = vsel %vm1003_vm4, %v1051_v17, %v3900_v51  ;;  %v1049_v48 = vsel %vm404_vm2, %v4439_v35, %v3905_v11  ;;  %v5897_v43 = vmov 0.0   ;;  %v987_v50 = vsel %vm404_vm2, %v5898_v24, %v3904_v9 }
  0xb1   : > { %v1028_v34 = vsel %vm1024_vm5, %v1007_v37, %v3909_v27  ;;  %v1088_v22 = vsel %vm1024_vm5, %v1068_v63, %v3915_v49  ;;  %3782 = vmatprep.mubr.msk.bf16.mxu0 %vm4309_vm3, %v5897_v43  ;;  %v1030_v18 = vsel %vm1024_vm5, %v1009_v21, %v3910_v29  ;;  %v1031_v31 = vsel %vm1024_vm5, %v1010_v36, %v3914_v44 }
  0xb2   : > { %v1231_v10 = vcombine.low %v1028_v34, %v1088_v22  ;;  %v3918_v23 = vpop.permute.xlu0 %3917  ;;  %v3923_v14 = vpop.permute.xlu1 %3922  ;;  %v5899_v37 = vrot.slane %v4507_v0, %v4635_v33 }
  0xb3   : > { %v3920_v2 = vunpack.i.h.bf16 %v3918_v23  ;;  %v3919_v16 = vunpack.i.l.bf16 %v3918_v23  ;;  %v3925_v12 = vunpack.i.h.bf16 %v3923_v14  ;;  %v3924_v55 = vunpack.i.l.bf16 %v3923_v14 }
  0xb4   : > { %v1238_v8 = vrot.slane %v1231_v10, %v4635_v33  ;;  %v5900_v10 = vld [vmem:[#allocation3_spill] sm:$0xff] }
  0xb5   : > { %v1090_v17 = vsel %vm1024_vm5, %v1070_v62, %v3919_v16  ;;  %v1091_v35 = vsel %vm1024_vm5, %v1071_v59, %v3920_v2  ;;  %v1008_v3 = vsel %vm1003_vm4, %v987_v50, %v3924_v55  ;;  %v1069_v29 = vsel %vm1003_vm4, %v1049_v48, %v3925_v12 }
  0xb6   : > { %v1246_v53 = vcombine.low %v1238_v8, %v5899_v37  ;;  %v1282_v13 = vcombine.low %v1030_v18, %v1090_v17  ;;  %v1298_v45 = vcombine.low %v1031_v31, %v1091_v35  ;;  %v1299_v26 = vcombine.high %v1031_v31, %v1091_v35  ;;  %v3928_v7 = vpop.permute.xlu0 %3927  ;;  %v3933_v51 = vpop.permute.xlu1 %3932  ;;  %v5901_v35 = vld [vmem:[#allocation4_spill] sm:$0xff] }
  0xb7   : > { %v3930_v11 = vunpack.i.h.bf16 %v3928_v7  ;;  %v3929_v27 = vunpack.i.l.bf16 %v3928_v7  ;;  %v3935_v49 = vunpack.i.h.bf16 %v3933_v51  ;;  %v3934_v63 = vunpack.i.l.bf16 %v3933_v51 }
  0xb8   : > { %v3621_v21 = vcombine.high %v5006_v52, %v1246_v53  ;;  %v5120_v9 = vrot.slane %v1298_v45, %v4635_v33  ;;  %v1289_v0 = vrot.slane %v1282_v13, %v4635_v33  ;;  %v5126_v34 = vrot.slane %v1299_v26, %v4635_v33 }
  0xb9   : > { %v1029_v44 = vsel %vm1024_vm5, %v1008_v3, %v3929_v27  ;;  %v1089_v22 = vsel %vm1024_vm5, %v1069_v29, %v3930_v11  ;;  %v1052_v52 = vsel %vm404_vm2, %v4568_v47, %v3935_v49  ;;  %v990_v23 = vsel %vm404_vm2, %v5900_v10, %v3934_v63  ;;  %v5902_v29 = vld [vmem:[#allocation7_spill] sm:$0xff] }
  0xba   : > { %v1247_v36 = vcombine.low %v1029_v44, %v1089_v22  ;;  %v1248_v62 = vcombine.high %v1029_v44, %v1089_v22  ;;  %v3938_v14 = vpop.permute.xlu0 %3937  ;;  %v3943_v59 = vpop.permute.xlu1 %3942  ;;  %v1330_v48 = vcombine.high %v5120_v9, %v4736_v1  ;;  %v1742_v55 = vrot.slane %v3621_v21, %v4635_v33 }
  0xbb   : > { %v3940_v2 = vunpack.i.h.bf16 %v3938_v14  ;;  %v3939_v16 = vunpack.i.l.bf16 %v3938_v14  ;;  %v3944_v24 = vunpack.i.l.bf16 %v3943_v59  ;;  %v3620_v18 = vcombine.low %v1230_v15, %v1238_v8 }
  0xbc   : > { %v1256_v50 = vrot.slane %v1247_v36, %v4635_v33  ;;  %v1263_v12 = vrot.slane %v1248_v62, %v4635_v33  ;;  %v3945_v17 = vunpack.i.h.bf16 %v3943_v59  ;;  %v1759_v45 = vcombine.low %v1742_v55, %v5071_v42 }
  0xbd   : > { %v1011_v47 = vsel %vm1003_vm4, %v990_v23, %v3939_v16  ;;  %v1072_v31 = vsel %vm1003_vm4, %v1052_v52, %v3940_v2  ;;  %v991_v37 = vsel %vm404_vm2, %v5901_v35, %v3944_v24  ;;  %v1735_v26 = vrot.slane %v3620_v18, %v4635_v33 }
  0xbe   : > { %v3948_v53 = vpop.permute.xlu0 %3947  ;;  %v3953_v13 = vpop.permute.xlu1 %3952  ;;  %v1749_v7 = vrot.slane %v1256_v50, %v4635_v33  ;;  %v3622_v51 = vcombine.low %v1289_v0, %v5120_v9  ;;  %v2136_v49 = vpack.c.bf16 %v4790_v38, %v1759_v45  ;;  %v1770_v21 = vrot.slane %v1263_v12, %v4635_v33 }
  0xbf   : > { %v3950_v11 = vunpack.i.h.bf16 %v3948_v53  ;;  %v3949_v15 = vunpack.i.l.bf16 %v3948_v53  ;;  %v3955_v8 = vunpack.i.h.bf16 %v3953_v13  ;;  %v3954_v27 = vunpack.i.l.bf16 %v3953_v13 }
  0xc0   : > { %v1758_v63 = vcombine.high %v1735_v26, %v1749_v7  ;;  %v1784_v3 = vrot.slane %v3622_v51, %v4635_v33  ;;  %v1053_v42 = vsel %vm404_vm2, %v5902_v29, %v3945_v17  ;;  %3783 = vmatmul.mubr.msk.bf16.gmra.mrb[4].mxu0 %vm404_vm2, %v2136_v49  ;;  %v1757_v52 = vcombine.low %v1735_v26, %v1749_v7  ;;  %v5904_v51 = vld [vmem:[#allocation6_spill] sm:$0xff] }
  0xc1   : > { %v1032_v44 = vsel %vm1024_vm5, %v1011_v47, %v3949_v15  ;;  %v1092_v22 = vsel %vm1024_vm5, %v1072_v31, %v3950_v11  ;;  %v1012_v9 = vsel %vm1003_vm4, %v991_v37, %v3954_v27  ;;  %3786 = vmatprep.mubr.msk.bf16.mxu0 %vm4309_vm3, %v5897_v43  ;;  %v1073_v24 = vsel %vm1003_vm4, %v1053_v42, %v3955_v8 }
  0xc2   : > { %v1333_v0 = vcombine.low %v1032_v44, %v1092_v22  ;;  %v3958_v36 = vpop.permute.xlu0 %3957  ;;  %v3963_v62 = vpop.permute.xlu1 %3962  ;;  %v1793_v38 = vcombine.high %v1770_v21, %v1784_v3  ;;  %v1792_v10 = vcombine.low %v1770_v21, %v1784_v3  ;;  %v1331_v55 = vcombine.low %v5126_v34, %v5009_v40 }
  0xc3   : > { %v3960_v23 = vunpack.i.h.bf16 %v3958_v36  ;;  %v3959_v14 = vunpack.i.l.bf16 %v3958_v36  ;;  %v3965_v59 = vunpack.i.h.bf16 %v3963_v62  ;;  %v3964_v2 = vunpack.i.l.bf16 %v3963_v62 }
  0xc4   : > { %v1340_v16 = vrot.slane %v1333_v0, %v4635_v33  ;;  %v2135_v50 = vpack.c.bf16 %v1793_v38, %v1758_v63  ;;  %v2134_v12 = vpack.c.bf16 %v1792_v10, %v1757_v52  ;;  %v1332_v31 = vcombine.high %v5126_v34, %v5009_v40 }
  0xc5   : > { %v1033_v18 = vsel %vm1024_vm5, %v1012_v9, %v3959_v14  ;;  %v1093_v47 = vsel %vm1024_vm5, %v1073_v24, %v3960_v23  ;;  %v5903_v17 = vrot.slane %v4595_v5, %v4635_v33  ;;  %v3624_v26 = vcombine.low %v1330_v48, %v5126_v34 }
  0xc6   : > { %v1349_v37 = vcombine.low %v1033_v18, %v1093_v47  ;;  %v1350_v53 = vcombine.high %v1033_v18, %v1093_v47  ;;  %2364 = vmatprep.mubr.bf16.mxu1 %v2135_v50  ;;  %v3968_v13 = vpop.permute.xlu0 %3967  ;;  %v5169_v45 = vpop.permute.xlu1 %3972  ;;  %v1055_v7 = vsel %vm404_vm2, %v4621_v57, %v3965_v59  ;;  %v993_v11 = vsel %vm404_vm2, %v5904_v51, %v3964_v2 }
  0xc7   : > { %v1348_v35 = vcombine.low %v1340_v16, %v5903_v17  ;;  %2365 = vmatmul.mubr.bf16.gmra.mrb[12].mxu1 %v2134_v12  ;;  %v3970_v15 = vunpack.i.h.bf16 %v3968_v13  ;;  %v3969_v8 = vunpack.i.l.bf16 %v3968_v13  ;;  %v3626_v63 = vcombine.low %v1332_v31, %v1340_v16 }
  0xc8   : > { %v1358_v27 = vrot.slane %v1349_v37, %v4635_v33  ;;  %v1365_v49 = vrot.slane %v1350_v53, %v4635_v33  ;;  %v1576_v21 = vrot.slane %v4924_v54, %v4635_v33  ;;  %v5905_v57 = vcombine.high %v4921_v60, %v4921_v60 }
  0xc9   : > { %v3627_v5 = vcombine.high %v5009_v40, %v1348_v35  ;;  %v5906_v48 = vrot.slane %v4625_v58, %v4635_v33  ;;  %v1861_v40 = vrot.slane %v5082_v25, %v4635_v33  ;;  %v1805_v44 = vrot.slane %v3624_v26, %v4635_v33 }
  0xca   : > { %v5185_v34 = vrot.slane %v5905_v57, %v4635_v33  ;;  %v3978_v29 = vpop.permute.xlu0 %3977  ;;  %v3983_v42 = vpop.permute.xlu1 %3982  ;;  %v1819_v22 = vrot.slane %v3626_v63, %v4635_v33  ;;  %v1840_v9 = vrot.slane %v1358_v27, %v4635_v33  ;;  %v1854_v60 = vrot.slane %v1365_v49, %v4635_v33  ;;  %v5908_v63 = vld [vmem:[#allocation5_spill] sm:$0xff] }
  0xcb   : > { %v1847_v3 = vrot.slane %v5906_v48, %v4635_v33  ;;  %v1014_v0 = vsel %vm1003_vm4, %v993_v11, %v3969_v8  ;;  %v1075_v36 = vsel %vm1003_vm4, %v1055_v7, %v3970_v15  ;;  %v3980_v62 = vunpack.i.h.bf16 %v3978_v29 }
  0xcc   : > { %v3979_v58 = vunpack.i.l.bf16 %v3978_v29  ;;  %v1828_v38 = vcombine.high %v1805_v44, %v1819_v22  ;;  %v1863_v52 = vcombine.high %v1840_v9, %v1854_v60  ;;  %v3625_v25 = vcombine.high %v4736_v1, %v1331_v55 }
  0xcd   : > { %v1826_v10 = vrot.slane %v3627_v5, %v4635_v33  ;;  %v5907_v23 = vcombine.high %v4924_v54, %v4924_v54  ;;  %v5208_v59 = vrot.slane %v1576_v21, %v4635_v33  ;;  %v1095_v16 = vsel %vm1024_vm5, %v1075_v36, %v3980_v62 }
  0xce   : > { %v1035_v2 = vsel %vm1024_vm5, %v1014_v0, %v3979_v58  ;;  %v3988_v50 = vpop.permute.xlu0 %3987  ;;  %v3993_v12 = vpop.permute.xlu1 %3992  ;;  %v2138_v18 = vpack.c.bf16 %v1863_v52, %v1828_v38  ;;  %v1812_v1 = vrot.slane %v3625_v25, %v4635_v33  ;;  %v1864_v55 = vcombine.low %v1847_v3, %v1861_v40 }
  0xcf   : > { %v5205_v14 = vrot.slane %v5907_v23, %v4635_v33  ;;  %v1401_v24 = vcombine.high %v1035_v2, %v1095_v16  ;;  %v3974_v47 = vunpack.i.l.bf16 %v5169_v45  ;;  %v3984_v31 = vunpack.i.l.bf16 %v3983_v42 }
  0xd0   : > { %v1449_v54 = vrot.slane %v4774_v4, %v4635_v33  ;;  %v1882_v17 = vrot.slane %v4871_v61, %v4635_v33  ;;  %v1400_v35 = vcombine.low %v1035_v2, %v1095_v16  ;;  %v3985_v53 = vunpack.i.h.bf16 %v3983_v42  ;;  %2372 = vmatprep.mubr.bf16.mxu1 %v2138_v18 }
  0xd1   : > { %v5219_v37 = vrot.slane %v1401_v24, %v4635_v33  ;;  %v1829_v13 = vcombine.low %v1812_v1, %v1826_v10  ;;  %v3975_v26 = vunpack.i.h.bf16 %v5169_v45  ;;  %v3990_v7 = vunpack.i.h.bf16 %v3988_v50 }
  0xd2   : > { %v3989_v51 = vunpack.i.l.bf16 %v3988_v50  ;;  %v3994_v11 = vunpack.i.l.bf16 %v3993_v12  ;;  %v1827_v5 = vcombine.low %v1805_v44, %v1819_v22  ;;  %v1862_v27 = vcombine.low %v1840_v9, %v1854_v60  ;;  %v3998_v49 = vpop.permute.xlu0 %3997  ;;  %v4003_v61 = vpop.permute.xlu1 %4002 }
  0xd3   : > { %v1433_v15 = vcombine.low %v5219_v37, %v5043_v41  ;;  %v2139_v8 = vpack.c.bf16 %v1864_v55, %v1829_v13  ;;  %v992_v21 = vsel %vm404_vm2, %v5908_v63, %v3974_v47  ;;  %v1054_v57 = vsel %vm404_vm2, %v4557_v39, %v3984_v31 }
  0xd4   : > { %v3995_v48 = vunpack.i.h.bf16 %v3993_v12  ;;  %v5909_v45 = vrot.slane %v4842_v20, %v4635_v33  ;;  %v1409_v40 = vrot.slane %v1400_v35, %v4635_v33  ;;  %v1056_v29 = vsel %vm404_vm2, %v4599_v19, %v3985_v53 }
  0xd5   : > { %3787 = vmatmul.mubr.msk.bf16.gmra.mrb[8].mxu0 %vm404_vm2, %v2139_v8  ;;  %v2137_v42 = vpack.c.bf16 %v1862_v27, %v1827_v5  ;;  %v3631_v44 = vcombine.high %v4857_v30, %v1433_v15  ;;  %v994_v39 = vsel %vm404_vm2, %v4541_v28, %v3975_v26  ;;  %v1013_v22 = vsel %vm1003_vm4, %v992_v21, %v3989_v51 }
  0xd6   : > { %v5232_v3 = vrot.slane %v5909_v45, %v4635_v33  ;;  %v4005_v9 = vunpack.i.h.bf16 %v4003_v61  ;;  %v4004_v60 = vunpack.i.l.bf16 %v4003_v61  ;;  %3790 = vmatprep.mubr.msk.bf16.mxu0 %vm4309_vm3, %v5897_v43  ;;  %v1015_v20 = vsel %vm1003_vm4, %v994_v39, %v3990_v7  ;;  %v4008_v36 = vpop.permute.xlu0 %4007  ;;  %v4013_v62 = vpop.permute.xlu1 %4012  ;;  %v5911_v45 = vld [vmem:[#allocation11_spill] sm:$0xff] }
  0xd7   : > { %v1074_v0 = vsel %vm1003_vm4, %v1054_v57, %v3994_v11  ;;  %2373 = vmatmul.mubr.bf16.gmra.mrb[16].mxu1 %v2137_v42  ;;  %v4000_v19 = vunpack.i.h.bf16 %v3998_v49  ;;  %v1896_v58 = vrot.slane %v3631_v44, %v4635_v33  ;;  %v1076_v38 = vsel %vm1003_vm4, %v1056_v29, %v3995_v48 }
  0xd8   : > { %v3999_v28 = vunpack.i.l.bf16 %v3998_v49  ;;  %v4010_v52 = vunpack.i.h.bf16 %v4008_v36  ;;  %v4009_v25 = vunpack.i.l.bf16 %v4008_v36  ;;  %v1432_v10 = vcombine.high %v1409_v40, %v4857_v30 }
  0xd9   : > { %v4015_v23 = vunpack.i.h.bf16 %v4013_v62  ;;  %v4014_v2 = vunpack.i.l.bf16 %v4013_v62  ;;  %v5249_v16 = vcombine.low %v1882_v17, %v1896_v58  ;;  %v1034_v24 = vsel %vm1024_vm5, %v1013_v22, %v4004_v60  ;;  %v5910_v17 = vld [vmem:[#allocation8_spill] sm:$0xff] }
  0xda   : > { %v1036_v50 = vsel %vm1024_vm5, %v1015_v20, %v4005_v9  ;;  %v1094_v12 = vsel %vm1024_vm5, %v1074_v0, %v4009_v25  ;;  %v1096_v18 = vsel %vm1024_vm5, %v1076_v38, %v4010_v52  ;;  %v1057_v1 = vsel %vm404_vm2, %v4747_v56, %v4000_v19  ;;  %v4018_v31 = vpop.permute.xlu0 %4017  ;;  %v4023_v35 = vpop.permute.xlu1 %4022 }
  0xdb   : > { %v1384_v55 = vcombine.low %v1034_v24, %v1094_v12  ;;  %v1435_v47 = vcombine.low %v1036_v50, %v1096_v18  ;;  %v1606_v30 = vcombine.high %v4930_v46, %v4930_v46  ;;  %v995_v53 = vsel %vm404_vm2, %v5910_v17, %v3999_v28 }
  0xdc   : > { %v4020_v13 = vunpack.i.h.bf16 %v4018_v31  ;;  %v4019_v26 = vunpack.i.l.bf16 %v4018_v31  ;;  %v4024_v7 = vunpack.i.l.bf16 %v4023_v35  ;;  %v1077_v15 = vsel %vm1003_vm4, %v1057_v1, %v4015_v23 }
  0xdd   : > { %v1391_v51 = vrot.slane %v1384_v55, %v4635_v33  ;;  %v1442_v11 = vrot.slane %v1435_v47, %v4635_v33  ;;  %v1016_v56 = vsel %vm1003_vm4, %v995_v53, %v4014_v2  ;;  %v4025_v27 = vunpack.i.h.bf16 %v4023_v35 }
  0xde   : > { %v1037_v8 = vsel %vm1024_vm5, %v1016_v56, %v4019_v26  ;;  %v1097_v5 = vsel %vm1024_vm5, %v1077_v15, %v4020_v13  ;;  %v3630_v46 = vcombine.low %v1432_v10, %v5219_v37  ;;  %v4028_v63 = vpop.permute.xlu0 %4027  ;;  %v4033_v21 = vpop.permute.xlu1 %4032  ;;  %v1551_v48 = vrot.slane %v4910_v32, %v4635_v33  ;;  %v5912_v56 = vld [vmem:[#allocation9_spill] sm:$0xff]  ;;  %v5920_v32 = vld [vmem:[#allocation19_spill] sm:$0xff] }
  0xdf   : > { %v1450_v49 = vcombine.low %v1442_v11, %v1449_v54  ;;  %v1451_v61 = vcombine.low %v1037_v8, %v1097_v5  ;;  %v3628_v57 = vcombine.low %v1391_v51, %v1409_v40  ;;  %v997_v29 = vsel %vm404_vm2, %v5911_v45, %v4024_v7 }
  0xe0   : > { %v4029_v42 = vunpack.i.l.bf16 %v4028_v63  ;;  %v1434_v44 = vcombine.high %v5219_v37, %v5043_v41  ;;  %v5278_v39 = vrot.slane %v1606_v30, %v4635_v33  ;;  %v4030_v22 = vunpack.i.h.bf16 %v4028_v63 }
  0xe1   : > { %v3633_v4 = vcombine.high %v5043_v41, %v1450_v49  ;;  %v1460_v54 = vrot.slane %v1451_v61, %v4635_v33  ;;  %v1875_v40 = vrot.slane %v3628_v57, %v4635_v33  ;;  %v1452_v9 = vcombine.high %v1037_v8, %v1097_v5  ;;  %v5913_v5 = vld [vmem:[#allocation16_spill] sm:$0xff] }
  0xe2   : > { %v1059_v60 = vsel %vm404_vm2, %v4838_v6, %v4025_v27  ;;  %v1889_v20 = vrot.slane %v3630_v46, %v4635_v33  ;;  %v2036_v0 = vrot.slane %v5205_v14, %v4635_v33  ;;  %v4035_v37 = vunpack.i.h.bf16 %v4033_v21  ;;  %v4038_v19 = vpop.permute.xlu0 %4037  ;;  %v4043_v36 = vpop.permute.xlu1 %4042  ;;  %v5915_v49 = vld [vmem:[#allocation12_spill] sm:$0xff]  ;;  %v5919_v14 = vld [vmem:[#allocation17_spill] sm:$0xff] }
  0xe3   : > { %v3632_v62 = vcombine.low %v1434_v44, %v1442_v11  ;;  %v1924_v41 = vrot.slane %v1460_v54, %v4635_v33  ;;  %v1917_v58 = vrot.slane %v3633_v4, %v4635_v33  ;;  %v1018_v38 = vsel %vm1003_vm4, %v997_v29, %v4029_v42 }
  0xe4   : > { %v4034_v28 = vunpack.i.l.bf16 %v4033_v21  ;;  %v4040_v52 = vunpack.i.h.bf16 %v4038_v19  ;;  %v4039_v25 = vunpack.i.l.bf16 %v4038_v19  ;;  %v1079_v6 = vsel %vm1003_vm4, %v1059_v60, %v4030_v22  ;;  %v5916_v22 = vld [vmem:[#allocation22_spill] sm:$0xff] }
  0xe5   : > { %v1898_v10 = vcombine.high %v1875_v40, %v1889_v20  ;;  %v1910_v23 = vrot.slane %v3632_v62, %v4635_v33  ;;  %v1934_v2 = vcombine.low %v1917_v58, %v5232_v3  ;;  %v4045_v12 = vunpack.i.h.bf16 %v4043_v36 }
  0xe6   : > { %v1039_v24 = vsel %vm1024_vm5, %v1018_v38, %v4039_v25  ;;  %v1099_v50 = vsel %vm1024_vm5, %v1079_v6, %v4040_v52  ;;  %v4044_v18 = vunpack.i.l.bf16 %v4043_v36  ;;  %v4048_v47 = vpop.permute.xlu0 %4047  ;;  %v4053_v31 = vpop.permute.xlu1 %4052  ;;  %v1897_v26 = vcombine.low %v1875_v40, %v1889_v20 }
  0xe7   : > { %v1502_v1 = vcombine.low %v1039_v24, %v1099_v50  ;;  %v1503_v55 = vcombine.high %v1039_v24, %v1099_v50  ;;  %v1933_v35 = vcombine.high %v1910_v23, %v1924_v41  ;;  %v2142_v30 = vpack.c.bf16 %v1934_v2, %v5249_v16  ;;  %v5914_v16 = vld [vmem:[#allocation13_spill] sm:$0xff]  ;;  %v5917_v2 = vld [vmem:[#allocation27_spill] sm:$0xff] }
  0xe8   : > { %v4050_v17 = vunpack.i.h.bf16 %v4048_v47  ;;  %v4049_v53 = vunpack.i.l.bf16 %v4048_v47  ;;  %v4055_v13 = vunpack.i.h.bf16 %v4053_v31  ;;  %v4054_v3 = vunpack.i.l.bf16 %v4053_v31 }
  0xe9   : > { %v1511_v7 = vrot.slane %v1502_v1, %v4635_v33  ;;  %v2141_v51 = vpack.c.bf16 %v1933_v35, %v1898_v10  ;;  %3791 = vmatmul.mubr.msk.bf16.gmra.mrb[12].mxu0 %vm404_vm2, %v2142_v30  ;;  %v1932_v11 = vcombine.low %v1910_v23, %v1924_v41  ;;  %v1467_v15 = vrot.slane %v1452_v9, %v4635_v33 }
  0xea   : > { %v996_v8 = vsel %vm404_vm2, %v5912_v56, %v4034_v28  ;;  %v1060_v27 = vsel %vm404_vm2, %v5913_v5, %v4045_v12  ;;  %v1058_v46 = vsel %vm404_vm2, %v5914_v16, %v4044_v18  ;;  %3794 = vmatprep.mubr.msk.bf16.mxu0 %vm4309_vm3, %v5897_v43  ;;  %v998_v61 = vsel %vm404_vm2, %v5915_v49, %v4035_v37  ;;  %v4058_v45 = vpop.permute.xlu0 %4057  ;;  %v4063_v29 = vpop.permute.xlu1 %4062 }
  0xeb   : > { %v1518_v63 = vrot.slane %v1503_v55, %v4635_v33  ;;  %v1017_v21 = vsel %vm1003_vm4, %v996_v8, %v4049_v53  ;;  %2380 = vmatprep.mubr.bf16.mxu1 %v2141_v51  ;;  %v2140_v57 = vpack.c.bf16 %v1932_v11, %v1897_v26  ;;  %v4060_v42 = vunpack.i.h.bf16 %v4058_v45  ;;  %v5918_v55 = vld [vmem:[#allocation24_spill] sm:$0xff] }
  0xec   : > { %v4059_v44 = vunpack.i.l.bf16 %v4058_v45  ;;  %v4065_v4 = vunpack.i.h.bf16 %v4063_v29  ;;  %v4064_v54 = vunpack.i.l.bf16 %v4063_v29  ;;  %v1534_v40 = vcombine.high %v1511_v7, %v5916_v22  ;;  %v5921_v45 = vld [vmem:[#allocation15_spill] sm:$0xff] }
  0xed   : > { %v1019_v9 = vsel %vm1003_vm4, %v998_v61, %v4050_v17  ;;  %v1078_v60 = vsel %vm1003_vm4, %v1058_v46, %v4054_v3  ;;  %v1080_v20 = vsel %vm1003_vm4, %v1060_v27, %v4055_v13  ;;  %2381 = vmatmul.mubr.bf16.gmra.mrb[20].mxu1 %v2140_v57  ;;  %v1535_v41 = vcombine.low %v1518_v63, %v5185_v34 }
  0xee   : > { %v1038_v37 = vsel %vm1024_vm5, %v1017_v21, %v4059_v44  ;;  %v1040_v19 = vsel %vm1024_vm5, %v1019_v9, %v4060_v42  ;;  %v1098_v36 = vsel %vm1024_vm5, %v1078_v60, %v4064_v54  ;;  %v1100_v62 = vsel %vm1024_vm5, %v1080_v20, %v4065_v4  ;;  %v4068_v28 = vpop.permute.xlu0 %4067  ;;  %v4073_v52 = vpop.permute.xlu1 %4072 }
  0xef   : > { %v1486_v58 = vcombine.low %v1038_v37, %v1098_v36  ;;  %v1537_v38 = vcombine.low %v1040_v19, %v1100_v62  ;;  %v5325_v25 = vcombine.low %v5208_v59, %v2036_v0  ;;  %v4070_v6 = vunpack.i.h.bf16 %v4068_v28  ;;  %v5922_v36 = vld [vmem:[#allocation26_spill] sm:$0xff] }
  0xf0   : > { %v4069_v10 = vunpack.i.l.bf16 %v4068_v28  ;;  %v4075_v23 = vunpack.i.h.bf16 %v4073_v52  ;;  %v2057_v24 = vrot.slane %v5917_v2, %v4635_v33  ;;  %v4074_v18 = vunpack.i.l.bf16 %v4073_v52 }
  0xf1   : > { %v1493_v50 = vrot.slane %v1486_v58, %v4635_v33  ;;  %v1544_v12 = vrot.slane %v1537_v38, %v4635_v33  ;;  %v1945_v1 = vrot.slane %v1467_v15, %v4635_v33  ;;  %v1063_v47 = vsel %vm404_vm2, %v5918_v55, %v4070_v6  ;;  %v5923_v6 = vld [vmem:[#allocation14_spill] sm:$0xff] }
  0xf2   : > { %v1001_v59 = vsel %vm404_vm2, %v5919_v14, %v4069_v10  ;;  %v1536_v0 = vcombine.high %v1518_v63, %v5185_v34  ;;  %v3636_v31 = vcombine.low %v1534_v40, %v1518_v63  ;;  %v1083_v30 = vsel %vm1003_vm4, %v1063_v47, %v4075_v23  ;;  %v4078_v17 = vpop.permute.xlu0 %4077  ;;  %v4083_v53 = vpop.permute.xlu1 %4082  ;;  %v5924_v14 = vld [vmem:[#allocation20_spill] sm:$0xff] }
  0xf3   : > { %v1552_v35 = vcombine.low %v1544_v12, %v1551_v48  ;;  %v3634_v13 = vcombine.low %v1493_v50, %v1511_v7  ;;  %v3637_v26 = vcombine.high %v5916_v22, %v1535_v41  ;;  %v4080_v3 = vunpack.i.h.bf16 %v4078_v17 }
  0xf4   : > { %v4079_v51 = vunpack.i.l.bf16 %v4078_v17  ;;  %v4085_v11 = vunpack.i.h.bf16 %v4083_v53  ;;  %v4084_v15 = vunpack.i.l.bf16 %v4083_v53  ;;  %v1022_v8 = vsel %vm1003_vm4, %v1001_v59, %v4074_v18 }
  0xf5   : > { %v3639_v56 = vcombine.high %v5185_v34, %v1552_v35  ;;  %v1959_v5 = vrot.slane %v3634_v13, %v4635_v33  ;;  %v3638_v27 = vcombine.low %v1536_v0, %v1544_v12  ;;  %v1062_v48 = vsel %vm404_vm2, %v5920_v32, %v4080_v3 }
  0xf6   : > { %v1043_v16 = vsel %vm1024_vm5, %v1022_v8, %v4084_v15  ;;  %v1103_v7 = vsel %vm1024_vm5, %v1083_v30, %v4085_v11  ;;  %v1980_v46 = vrot.slane %v3636_v31, %v4635_v33  ;;  %v4088_v63 = vpop.permute.xlu0 %4087  ;;  %v4093_v21 = vpop.permute.xlu1 %4092  ;;  %v1000_v29 = vsel %vm404_vm2, %v5921_v45, %v4079_v51 }
  0xf7   : > { %v1604_v49 = vcombine.low %v1043_v16, %v1103_v7  ;;  %v1605_v61 = vcombine.high %v1043_v16, %v1103_v7  ;;  %v1968_v57 = vcombine.high %v1945_v1, %v1959_v5  ;;  %v1994_v34 = vrot.slane %v3638_v27, %v4635_v33  ;;  %v5925_v27 = vld [vmem:[#allocation25_spill] sm:$0xff] }
  0xf8   : > { %v4090_v42 = vunpack.i.h.bf16 %v4088_v63  ;;  %v4089_v44 = vunpack.i.l.bf16 %v4088_v63  ;;  %v4094_v4 = vunpack.i.l.bf16 %v4093_v21  ;;  %v1967_v9 = vcombine.low %v1945_v1, %v1959_v5 }
  0xf9   : > { %v1613_v54 = vrot.slane %v1604_v49, %v4635_v33  ;;  %v5355_v22 = vrot.slane %v1605_v61, %v4635_v33  ;;  %v2003_v40 = vcombine.high %v1980_v46, %v1994_v34  ;;  %v4095_v37 = vunpack.i.h.bf16 %v4093_v21  ;;  %v5927_v61 = vld [vmem:[#allocation18_spill] sm:$0xff] }
  0xfa   : > { %v1021_v60 = vsel %vm1003_vm4, %v1000_v29, %v4089_v44  ;;  %v1082_v20 = vsel %vm1003_vm4, %v1062_v48, %v4090_v42  ;;  %v1987_v19 = vrot.slane %v3637_v26, %v4635_v33  ;;  %v4098_v58 = vpop.permute.xlu0 %4097  ;;  %v4103_v38 = vpop.permute.xlu1 %4102  ;;  %v2002_v52 = vcombine.low %v1980_v46, %v1994_v34  ;;  %v5926_v46 = vld [vmem:[#allocation23_spill] sm:$0xff] }
  0xfb   : > { %v1636_v62 = vcombine.high %v1613_v54, %v5922_v36  ;;  %v1637_v41 = vcombine.low %v5355_v22, %v5278_v39  ;;  %v2144_v28 = vpack.c.bf16 %v2003_v40, %v1968_v57  ;;  %v999_v10 = vsel %vm404_vm2, %v5923_v6, %v4094_v4 }
  0xfc   : > { %v4100_v23 = vunpack.i.h.bf16 %v4098_v58  ;;  %v4099_v50 = vunpack.i.l.bf16 %v4098_v58  ;;  %v4104_v12 = vunpack.i.l.bf16 %v4103_v38  ;;  %v4105_v18 = vunpack.i.h.bf16 %v4103_v38 }
  0xfd   : > { %2388 = vmatprep.mubr.bf16.mxu1 %v2144_v28  ;;  %v2143_v1 = vpack.c.bf16 %v2002_v52, %v1967_v9  ;;  %v2001_v55 = vrot.slane %v3639_v56, %v4635_v33  ;;  %v3643_v47 = vcombine.high %v5922_v36, %v1637_v41  ;;  %v1061_v59 = vsel %vm404_vm2, %v5924_v14, %v4095_v37 }
  0xfe   : > { %v1042_v0 = vsel %vm1024_vm5, %v1021_v60, %v4099_v50  ;;  %v1102_v31 = vsel %vm1024_vm5, %v1082_v20, %v4100_v23  ;;  %v3642_v35 = vcombine.low %v1636_v62, %v5355_v22  ;;  %v1020_v17 = vsel %vm1003_vm4, %v999_v10, %v4104_v12  ;;  %v4108_v13 = vpop.permute.xlu0 %4107  ;;  %v4113_v26 = vpop.permute.xlu1 %4112 }
  0xff   : > { %v1588_v30 = vcombine.low %v1042_v0, %v1102_v31  ;;  %2389 = vmatmul.mubr.bf16.gmra.mrb[24].mxu1 %v2143_v1  ;;  %v2004_v53 = vcombine.low %v1987_v19, %v2001_v55  ;;  %v2071_v3 = vrot.slane %v3643_v47, %v4635_v33  ;;  %v4110_v51 = vunpack.i.h.bf16 %v4108_v13 }
 0x100   : > { %v4109_v11 = vunpack.i.l.bf16 %v4108_v13  ;;  %v4115_v15 = vunpack.i.h.bf16 %v4113_v26  ;;  %v4114_v56 = vunpack.i.l.bf16 %v4113_v26  ;;  %v1081_v5 = vsel %vm1003_vm4, %v1061_v59, %v4105_v18  ;;  %v5928_v26 = vld [vmem:[#allocation21_spill] sm:$0xff] }
 0x101   : > { %v1595_v8 = vrot.slane %v1588_v30, %v4635_v33  ;;  %v2145_v32 = vpack.c.bf16 %v2004_v53, %v5925_v27  ;;  %v2074_v48 = vcombine.low %v2057_v24, %v2071_v3  ;;  %v1101_v7 = vsel %vm1024_vm5, %v1081_v5, %v4110_v51  ;;  %v3609_v30 = vld [vmem:[%s5818_s6] ss:$0 sm:$0xff] }
 0x102   : > { %v1041_v16 = vsel %vm1024_vm5, %v1020_v17, %v4109_v11  ;;  %v1064_v49 = vsel %vm404_vm2, %v5926_v46, %v4115_v15  ;;  %v1002_v63 = vsel %vm404_vm2, %v5927_v61, %v4114_v56  ;;  %v4118_v34 = vpop.permute.xlu0 %4117  ;;  %v4123_v45 = vpop.permute.xlu1 %4122  ;;  %v1638_v10 = vcombine.high %v5355_v22, %v5278_v39  ;;  %v4286_v5 = vld [vmem:[%s5815_s3] sm:$0xff]  }
 0x103   : > { %3795 = vmatmul.mubr.msk.bf16.gmra.mrb[16].mxu0 %vm404_vm2, %v2145_v32  ;;  %v1553_v21 = vcombine.low %v1041_v16, %v1101_v7  ;;  %v1554_v57 = vcombine.high %v1041_v16, %v1101_v7  ;;  %v2148_v29 = vpack.c.bf16 %v2074_v48, %v5325_v25  ;;  %v3640_v2 = vcombine.low %v1595_v8, %v1613_v54  ;;  %v4287_v16 = vld [vmem:[%s5815_s3 + $0x8] sm:$0xff]   ;;  %v5443_v46 = vld [vmem:[%s5814_s2] ss:$0 sm:$0xff] }
 0x104   : > { %v4120_v24 = vunpack.i.h.bf16 %v4118_v34  ;;  %v4119_v42 = vunpack.i.l.bf16 %v4118_v34  ;;  %v4125_v44 = vunpack.i.h.bf16 %v4123_v45  ;;  %v4124_v4 = vunpack.i.l.bf16 %v4123_v45  ;;  %3798 = vmatprep.mubr.msk.bf16.mxu0 %vm4309_vm3, %v5897_v43 }
 0x105   : > { %v1562_v40 = vrot.slane %v1553_v21, %v4635_v33  ;;  %v1569_v9 = vrot.slane %v1554_v57, %v4635_v33  ;;  %v2050_v60 = vrot.slane %v3640_v2, %v4635_v33  ;;  %v2064_v25 = vrot.slane %v3642_v35, %v4635_v33  ;;  %v4288_v57 = vld [vmem:[%s5815_s3 + $0x10] sm:$0xff]   ;;  %v4289_v2 = vld [vmem:[%s5815_s3 + $0x18] sm:$0xff]  }
 0x106   : > { %v1023_v20 = vsel %vm1003_vm4, %v1002_v63, %v4119_v42  ;;  %v1084_v37 = vsel %vm1003_vm4, %v1064_v49, %v4120_v24  ;;  %v5929_v3 = vrot.slane %v5928_v26, 2  ;;  %v4310_v32 = vmov 0  }
 0x107   : > { %v1044_v54 = vsel %vm1024_vm5, %v1023_v20, %v4124_v4  ;;  %v1104_v19 = vsel %vm1024_vm5, %v1084_v37, %v4125_v44  ;;  %v2015_v36 = vrot.slane %v1562_v40, %v4635_v33  ;;  %v2029_v62 = vrot.slane %v1569_v9, %v4635_v33  ;;  %3456 = vmatprep.subr.bf16.mxu0 %v4310_v32 }
 0x108   : > { %v1639_v41 = vcombine.low %v1044_v54, %v1104_v19  ;;  %v2073_v38 = vcombine.high %v2050_v60, %v2064_v25  ;;  %v2072_v52 = vcombine.low %v2050_v60, %v2064_v25  ;;  %v1653_v51 = vrot.slane %v5929_v3, %v4635_v33  ;;  %3457 = vmatpush1.bf16.msra.mxu0 %v4286_v5 }
 0x109   : > { %v2038_v58 = vcombine.high %v2015_v36, %v2029_v62  ;;  %v2037_v28 = vcombine.low %v2015_v36, %v2029_v62  ;;  %3458 = vmatprep.subr.bf16.mxu0 %v4310_v32 }
 0x10a   : > { %v1646_v6 = vrot.slane %v1639_v41, %v4635_v33 }
 0x10b   : > { %3799 = vmatmul.mubr.msk.bf16.gmra.mrb[20].mxu0 %vm404_vm2, %v2148_v29  ;;  %v2147_v23 = vpack.c.bf16 %v2073_v38, %v2038_v58  ;;  %v2146_v50 = vpack.c.bf16 %v2072_v52, %v2037_v28 }
 0x10c   : > { %v3644_v12 = vcombine.low %v1638_v10, %v1646_v6  ;;  %3802 = vmatprep.mubr.msk.bf16.mxu0 %vm4309_vm3, %v5897_v43  ;;  %v1654_v11 = vcombine.low %v1646_v6, %v1653_v51  ;;  %3459 = vmatpush1.bf16.msra.mxu0 %v4287_v16 }
 0x10d   : > { %2396 = vmatprep.mubr.bf16.mxu1 %v2147_v23  ;;  %3460 = vmatprep.subr.bf16.mxu0 %v4310_v32  ;;  %v5930_v23 = vld [vmem:[#allocation10_spill] sm:$0xff] }
 0x10e   : > { %2397 = vmatmul.mubr.bf16.gmra.mrb[28].mxu1 %v2146_v50  ;;  %v2083_v18 = vrot.slane %v3644_v12, %v4635_v33  ;;  %v3645_v15 = vcombine.high %v5278_v39, %v1654_v11  ;;  %v5460_v50 = vadd.s32 8, %v5930_v23  ;;  %vm2741_vm7 = vcmp.ge.s32.totalorder %v5930_v23, 1 }
 0x110   : > { %v2091_v1 = vcombine.high %v2083_v18, %v2083_v18  ;;  %v2149_v47 = vpack.c.bf16 %v2083_v18, %v2083_v18  ;;  %v2090_v56 = vrot.slane %v3645_v15, %v4635_v33  ;;  %3461 = vmatpush1.bf16.msra.mxu0 %v4288_v57  ;;  %vm2748_vm6 = vcmp.le.s32.totalorder %v5460_v50, 8 }
 0x111   : > { %3462 = vmatprep.subr.bf16.mxu0 %v4310_v32 }
 0x112   : > { %v2150_v55 = vpack.c.bf16 %v2091_v1, %v2091_v1  ;;  %v2151_v8 = vpack.c.bf16 %v2090_v56, %v2090_v56 }
 0x114   : > { %2404 = vmatprep.mubr.bf16.mxu1 %v2150_v55  ;;  %3803 = vmatmul.mubr.msk.bf16.gmra.mrb[24].mxu0 %vm404_vm2, %v2151_v8 }
 0x115   : > { %3463 = vmatpush1.bf16.msra.mxu0 %v4289_v2 }
 0x116   : > { %2405 = vmatmul.mubr.bf16.gmra.mrb[32].mxu1 %v2149_v47  ;;  %3464 = vmatprep.subr.bf16.mxu0 %v4310_v32 }
 0x11c   : > { %v5407_v14 = vpop.f32.mrb[0].mxu1 }
 0x11d   : > { %v5409_v22 = vpop.f32.mrb[1].mxu1 }
 0x11e   : > { %v5411_v59 = vpop.f32.mrb[2].mxu1 }
 0x11f   : > { %v5413_v0 = vpop.f32.mrb[3].mxu1 }
 0x126   : > { %v5415_v31 = vpop.f32.mrb[4].mxu1 }
 0x127   : > { %v5417_v35 = vpop.f32.mrb[5].mxu1 }
 0x128   : > { %v3773_v17 = vpop.f32.mrb[6].mxu1 }
 0x129   : > { %v5422_v53 = vadd.f32 %v3773_v17, %v3609_v30  ;;  %v5424_v13 = vpop.f32.mrb[7].mxu1 }
 0x181   : > { %v3711_v27 = vpop.f32.mrb[8].mxu1 }
 0x182   : > { %v3712_v48 = vpop.f32.mrb[9].mxu1 }
 0x183   : > { %v3714_v39 = vpop.f32.mrb[10].mxu1  ;;  %v2446_v7 = vpop.f32.mrb[0].mxu0 }
 0x184   : > { %v3715_v49 = vpop.f32.mrb[11].mxu1  ;;  %v3780_v61 = vpop.f32.mrb[1].mxu0  ;;  %v4290_v7 = vld [vmem:[%s5815_s3 + $0x20] sm:$0xff]  }
 0x185   : > { %v3716_v63 = vadd.f32 %v3715_v49, %v3714_v39  ;;  %v2449_v21 = vpop.f32.mrb[2].mxu0  ;;  %3465 = vmatpush1.bf16.msra.mxu0 %v4290_v7  ;;  %v4293_v7 = vld [vmem:[%s5815_s3 + $0x38] sm:$0xff]  }
 0x186   : > { %v3781_v34 = vpop.f32.mrb[3].mxu0  ;;  %3466 = vmatprep.subr.bf16.mxu0 %v4310_v32 }
 0x187   : > { %v2362_v45 = vadd.f32 %v3716_v63, %v5443_v46 }
 0x189   : > { %v2450_v29 = vadd.f32 %v2449_v21, %v2362_v45 }
 0x18b   : > { %v2501_v44 = vmax.f32 %v2450_v29, 0.0 }
 0x18d   : > { %v2543_v60 = vcombine.high %v2501_v44, %v2501_v44  ;;  %v2550_v20 = vrot.slane %v2501_v44, %v4635_v33 }
 0x18f   : > { %v2557_v41 = vrot.slane %v2543_v60, %v4635_v33  ;;  %v2558_v58 = vcombine.high %v2550_v20, %v2550_v20  ;;  %v4291_v60 = vld [vmem:[%s5815_s3 + $0x28] sm:$0xff]  }
 0x190   : > { %3467 = vmatpush1.bf16.msra.mxu0 %v4291_v60 }
 0x191   : > { %v2785_v10 = vcombine.low %v2558_v58, %v2557_v41  ;;  %v2559_v12 = vcombine.high %v2557_v41, %v2557_v41  ;;  %3468 = vmatprep.subr.bf16.mxu0 %v4310_v32 }
 0x193   : > { %v2454_v24 = vpop.f32.mrb[4].mxu0  ;;  %v2793_v3 = vrot.slane %v2785_v10, %v4635_v33  ;;  %v4292_v10 = vld [vmem:[%s5815_s3 + $0x30] sm:$0xff]  }
 0x194   : > { %v3784_v42 = vpop.f32.mrb[5].mxu0  ;;  %3469 = vmatpush1.bf16.msra.mxu0 %v4292_v10 }
 0x195   : > { %v2457_v4 = vpop.f32.mrb[6].mxu0  ;;  %3470 = vmatprep.subr.bf16.mxu0 %v4310_v32 }
 0x196   : > { %v3785_v40 = vpop.f32.mrb[7].mxu0 }
 0x198   : > { %3471 = vmatpush1.bf16.msra.mxu0 %v4293_v7 }
 0x199   : > { %3472 = vmatprep.subr.bf16.mxu0 %v4310_v32 }
 0x19a   : > { %v3717_v9 = vpop.f32.mrb[12].mxu1 }
 0x19b   : > { %v3718_v37 = vpop.f32.mrb[13].mxu1 }
 0x19c   : > { %v3719_v25 = vadd.f32 %v3718_v37, %v3717_v9  ;;  %v3720_v54 = vpop.f32.mrb[14].mxu1  ;;  %v5489_v9 = vrot.slane %v5897_v43, 1 }
 0x19d   : > { %v3721_v19 = vpop.f32.mrb[15].mxu1 }
 0x19e   : > { %v2367_v36 = vadd.f32 %v3719_v25, %v5443_v46  ;;  %v3722_v62 = vadd.f32 %v3721_v19, %v3720_v54 }
 0x1a0   : > { %v2455_v38 = vadd.f32 %v2454_v24, %v2367_v36  ;;  %v2370_v28 = vadd.f32 %v3722_v62, %v5443_v46  ;;  %v5481_v24 = vrot.slane %v5897_v43, 2 }
 0x1a2   : > { %v2502_v52 = vmax.f32 %v2455_v38, 0.0  ;;  %v2458_v6 = vadd.f32 %v2457_v4, %v2370_v28 }
 0x1a4   : > { %v2560_v18 = vcombine.high %v2502_v52, %v2502_v52  ;;  %v2567_v1 = vrot.slane %v2502_v52, %v4635_v33  ;;  %v2503_v55 = vmax.f32 %v2458_v6, 0.0 }
 0x1a6   : > { %v2574_v47 = vrot.slane %v2560_v18, %v4635_v33  ;;  %v2575_v30 = vcombine.high %v2567_v1, %v2567_v1  ;;  %v2786_v17 = vcombine.low %v2559_v12, %v2567_v1  ;;  %v2577_v26 = vcombine.high %v2503_v55, %v2503_v55 }
 0x1a7   : > { %v2584_v51 = vrot.slane %v2503_v55, %v4635_v33 }
 0x1a8   : > { %v2462_v11 = vpop.f32.mrb[8].mxu0  ;;  %v2576_v15 = vcombine.high %v2574_v47, %v2574_v47  ;;  %v2800_v56 = vrot.slane %v2786_v17, %v4635_v33  ;;  %v2808_v8 = vrot.slane %v2575_v30, %v4635_v33  ;;  %v5470_v5 = vrot.slane %v2577_v26, %v4635_v33 }
 0x1a9   : > { %v3788_v27 = vpop.f32.mrb[9].mxu0  ;;  %v2592_v48 = vcombine.high %v2584_v51, %v2584_v51 }
 0x1aa   : > { %v3723_v16 = vpop.f32.mrb[16].mxu1  ;;  %v2465_v39 = vpop.f32.mrb[10].mxu0  ;;  %v2801_v49 = vcombine.low %v2793_v3, %v2800_v56  ;;  %v2809_v61 = vcombine.low %v2574_v47, %v2576_v15  ;;  %v2832_v63 = vrot.slane %v5470_v5, %v4635_v33  ;;  %v3024_v2 = vsel %vm2748_vm6, %v2808_v8, 0.0 }
 0x1ab   : > { %v3724_v21 = vpop.f32.mrb[17].mxu1  ;;  %v3789_v57 = vpop.f32.mrb[11].mxu0  ;;  %v2810_v34 = vcombine.low %v2584_v51, %v2592_v48  ;;  %v3109_v40 = vrot.slane %v3024_v2, 2  ;;  %v3061_v36 = vrot.slane %v3024_v2, 1  ;;  %v2593_v3 = vcombine.high %v5470_v5, %v5470_v5 }
 0x1ac   : > { %v3725_v45 = vadd.f32 %v3724_v21, %v3723_v16  ;;  %v3726_v29 = vpop.f32.mrb[18].mxu1  ;;  %v2817_v42 = vrot.slane %v2809_v61, %v4635_v33  ;;  %v5486_v4 = vsel %vm2741_vm7, %v2801_v49, 0.0  ;;  %v3026_v62 = vsel %vm2748_vm6, %v2832_v63, 0.0 }
 0x1ad   : > { %v3727_v44 = vpop.f32.mrb[19].mxu1  ;;  %v2824_v20 = vrot.slane %v2810_v34, %v4635_v33  ;;  %v3108_v54 = vrot.slane %v5486_v4, 2  ;;  %v3060_v19 = vrot.slane %v5486_v4, 1  ;;  %v3064_v30 = vrot.slane %v3026_v62, 1 }
 0x1ae   : > { %v2375_v37 = vadd.f32 %v3725_v45, %v5443_v46  ;;  %v3728_v25 = vadd.f32 %v3727_v44, %v3726_v29  ;;  %v3112_v26 = vrot.slane %v3026_v62, 2 }
 0x1af   : > { %v2825_v41 = vcombine.low %v2817_v42, %v2824_v20  ;;  %v3110_v28 = vsel %vm344_vm1, %v3108_v54, %v3109_v40  ;;  %v3062_v6 = vsel %vm526_vm0, %v3060_v19, %v3061_v36  ;;  %v4294_v40 = vld [vmem:[%s5815_s3 + $0x40] sm:$0xff]  }
 0x1b0   : > { %v2463_v58 = vadd.f32 %v2462_v11, %v2375_v37  ;;  %v2378_v38 = vadd.f32 %v3728_v25, %v5443_v46  ;;  %v4131_v52 = vpack.i.bf16 %v3110_v28, %v5481_v24  ;;  %v4126_v55 = vpack.i.bf16 %v3062_v6, %v5489_v9  ;;  %3473 = vmatpush1.bf16.msra.mxu0 %v4294_v40 }
 0x1b1   : > { %v5511_v12 = vsel %vm2741_vm7, %v2825_v41, 0.0 }
 0x1b2   : > { %v2504_v18 = vmax.f32 %v2463_v58, 0.0  ;;  %v2466_v1 = vadd.f32 %v2465_v39, %v2378_v38  ;;  %4132 = vrot.lane.b32.xlu1 %v4131_v52, %s4305_s14  ;;  %v3063_v47 = vrot.slane %v5511_v12, 1  ;;  %v3111_v17 = vrot.slane %v5511_v12, 2  ;;  %4127 = vrot.lane.b32.xlu0 %v4126_v55, %s4311_s10 }
 0x1b3   : > { %v4136_v8 = vpack.i.bf16 %v5511_v12, %v5486_v4 }
 0x1b4   : > { %v2594_v51 = vcombine.high %v2504_v18, %v2504_v18  ;;  %v2601_v11 = vrot.slane %v2504_v18, %v4635_v33  ;;  %v2505_v15 = vmax.f32 %v2466_v1, 0.0  ;;  %v3065_v56 = vsel %vm526_vm0, %v3063_v47, %v3064_v30 }
 0x1b5   : > { %v5525_v27 = vsel %vm344_vm1, %v3111_v17, %v3112_v26  ;;  %v4141_v61 = vpack.i.bf16 %v3065_v56, %v3062_v6 }
 0x1b6   : > { %v2608_v5 = vrot.slane %v2594_v51, %v4635_v33  ;;  %v2609_v48 = vcombine.high %v2601_v11, %v2601_v11  ;;  %v2833_v16 = vcombine.low %v2593_v3, %v2601_v11  ;;  %v2611_v39 = vcombine.high %v2505_v15, %v2505_v15  ;;  %4137 = vrot.lane.b32.xlu0 %v4136_v8, %s4312_s18 }
 0x1b7   : > { %v2618_v49 = vrot.slane %v2505_v15, %v4635_v33  ;;  %v4146_v63 = vpack.i.bf16 %v5525_v27, %v3110_v28  ;;  %4142 = vrot.lane.b32.xlu1 %v4141_v61, %s4304_s13 }
 0x1b8   : > { %v2610_v21 = vcombine.high %v2608_v5, %v2608_v5  ;;  %v2834_v57 = vcombine.low %v2609_v48, %v2608_v5  ;;  %v2625_v34 = vrot.slane %v2611_v39, %v4635_v33  ;;  %v2841_v29 = vrot.slane %v2833_v16, %v4635_v33 }
 0x1b9   : > { %v2626_v45 = vcombine.high %v2618_v49, %v2618_v49 }
 0x1ba   : > { %v2848_v2 = vrot.slane %v2834_v57, %v4635_v33  ;;  %v2856_v42 = vrot.slane %v2610_v21, %v4635_v33  ;;  %v2627_v44 = vcombine.high %v2625_v34, %v2625_v34  ;;  %4147 = vrot.lane.b32.xlu0 %v4146_v63, %s4313_s21 }
 0x1bb   : > { %v2857_v60 = vcombine.low %v2618_v49, %v2626_v45 }
 0x1bc   : > { %v3028_v20 = vsel %vm2748_vm6, %v2856_v42, 0.0  ;;  %v2858_v37 = vcombine.low %v2625_v34, %v2627_v44  ;;  %v2470_v25 = vpop.f32.mrb[12].mxu0  ;;  %v2849_v54 = vcombine.low %v2841_v29, %v2848_v2 }
 0x1bd   : > { %v3792_v19 = vpop.f32.mrb[13].mxu0  ;;  %v2865_v36 = vrot.slane %v2857_v60, %v4635_v33  ;;  %v3115_v58 = vrot.slane %v3028_v20, 2  ;;  %v3067_v10 = vrot.slane %v3028_v20, 1 }
 0x1be   : > { %v2872_v32 = vrot.slane %v2858_v37, %v4635_v33  ;;  %v5551_v62 = vsel %vm2741_vm7, %v2849_v54, 0.0  ;;  %v2473_v41 = vpop.f32.mrb[14].mxu0 }
 0x1bf   : > { %v4151_v38 = vpack.i.bf16 %v5551_v62, %v5511_v12  ;;  %v3793_v28 = vpop.f32.mrb[15].mxu0  ;;  %v3114_v52 = vrot.slane %v5551_v62, 2  ;;  %v3066_v6 = vrot.slane %v5551_v62, 1 }
 0x1c0   : > { %v3729_v18 = vpop.f32.mrb[20].mxu1  ;;  %v2873_v1 = vcombine.low %v2865_v36, %v2872_v32 }
 0x1c1   : > { %4152 = vrot.lane.b32.xlu1 %v4151_v38, %s4306_s15  ;;  %v3730_v55 = vpop.f32.mrb[21].mxu1  ;;  %v3116_v47 = vsel %vm344_vm1, %v3114_v52, %v3115_v58  ;;  %v3068_v30 = vsel %vm526_vm0, %v3066_v6, %v3067_v10 }
 0x1c2   : > { %v3731_v17 = vadd.f32 %v3730_v55, %v3729_v18  ;;  %v3732_v26 = vpop.f32.mrb[22].mxu1  ;;  %v3358_v3 = vpack.c.bf16 %v3116_v47, %v5525_v27  ;;  %v4156_v51 = vpack.i.bf16 %v3068_v30, %v3065_v56  ;;  %v4166_v15 = vpack.i.bf16 %v3116_v47, %v5525_v27 }
 0x1c3   : > { %v3733_v11 = vpop.f32.mrb[23].mxu1  ;;  %v5567_v48 = vsel %vm2741_vm7, %v2873_v1, 0.0 }
 0x1c4   : > { %v2383_v8 = vadd.f32 %v3731_v17, %v5443_v46  ;;  %3682 = vmatprep.mubr.msk.bf16.mxu0 %vm3297_vm8, %v3358_v3  ;;  %4157 = vrot.lane.b32.xlu0 %v4156_v51, %s4314_s22  ;;  %v3734_v5 = vadd.f32 %v3733_v11, %v3732_v26  ;;  %v4171_v27 = vpack.i.bf16 %v5567_v48, %v5551_v62  ;;  %v3117_v44 = vrot.slane %v5567_v48, 2 }
 0x1c5   : > { %4162 = vrot.lane.b32.xlu1 %v4156_v51, %s4311_s10  ;;  %v3069_v20 = vrot.slane %v5567_v48, 1 }
 0x1c6   : > { %v2471_v16 = vadd.f32 %v2470_v25, %v2383_v8  ;;  %v2386_v56 = vadd.f32 %v3734_v5, %v5443_v46 }
 0x1c8   : > { %v2506_v39 = vmax.f32 %v2471_v16, 0.0  ;;  %v2474_v7 = vadd.f32 %v2473_v41, %v2386_v56  ;;  %4167 = vrot.lane.b32.xlu0 %v4166_v15, %s4305_s14 }
 0x1c9   : > { %4172 = vrot.lane.b32.xlu1 %v4171_v27, %s4312_s18 }
 0x1ca   : > { %v2628_v49 = vcombine.high %v2506_v39, %v2506_v39  ;;  %v2635_v61 = vrot.slane %v2506_v39, %v4635_v33  ;;  %v2507_v63 = vmax.f32 %v2474_v7, 0.0 }
 0x1cc   : > { %v2642_v21 = vrot.slane %v2628_v49, %v4635_v33  ;;  %v2643_v57 = vcombine.high %v2635_v61, %v2635_v61  ;;  %v2880_v34 = vrot.slane %v2635_v61, %v4635_v33  ;;  %v2652_v45 = vrot.slane %v2507_v63, %v4635_v33 }
 0x1cd   : > { %v2645_v54 = vcombine.high %v2507_v63, %v2507_v63 }
 0x1ce   : > { %v2881_v29 = vcombine.low %v2643_v57, %v2642_v21  ;;  %v3030_v2 = vsel %vm2748_vm6, %v2880_v34, 0.0  ;;  %v2644_v42 = vcombine.high %v2642_v21, %v2642_v21  ;;  %v2660_v40 = vcombine.high %v2652_v45, %v2652_v45 }
 0x1cf   : > { %v3118_v60 = vrot.slane %v3030_v2, 2  ;;  %v3070_v37 = vrot.slane %v3030_v2, 1  ;;  %v2659_v17 = vrot.slane %v2645_v54, %v4635_v33 }
 0x1d0   : > { %v2882_v25 = vcombine.low %v2644_v42, %v2652_v45  ;;  %v2904_v19 = vrot.slane %v2660_v40, %v4635_v33  ;;  %v2889_v41 = vrot.slane %v2881_v29, %v4635_v33 }
 0x1d1   : > { %v5585_v36 = vsel %vm344_vm1, %v3117_v44, %v3118_v60  ;;  %v3071_v32 = vsel %vm526_vm0, %v3069_v20, %v3070_v37  ;;  %v2661_v49 = vcombine.high %v2659_v17, %v2659_v17 }
 0x1d2   : > { %v2896_v58 = vrot.slane %v2882_v25, %v4635_v33  ;;  %v3735_v38 = vpop.f32.mrb[24].mxu1  ;;  %v4181_v28 = vpack.i.bf16 %v5585_v36, %v3116_v47  ;;  %v4176_v52 = vpack.i.bf16 %v3071_v32, %v3068_v30  ;;  %v3032_v10 = vsel %vm2748_vm6, %v2904_v19, 0.0 }
 0x1d3   : > { %v3736_v6 = vpop.f32.mrb[25].mxu1  ;;  %v3073_v30 = vrot.slane %v3032_v10, 1  ;;  %v3121_v56 = vrot.slane %v3032_v10, 2  ;;  %v2905_v60 = vcombine.low %v2659_v17, %v2661_v49 }
 0x1d4   : > { %v3737_v18 = vadd.f32 %v3736_v6, %v3735_v38  ;;  %v3738_v1 = vpop.f32.mrb[26].mxu1  ;;  %4182 = vrot.lane.b32.xlu1 %v4181_v28, %s4313_s21  ;;  %4177 = vrot.lane.b32.xlu0 %v4176_v52, %s4304_s13  ;;  %v2897_v55 = vcombine.low %v2889_v41, %v2896_v58 }
 0x1d5   : > { %v3739_v26 = vpop.f32.mrb[27].mxu1 }
 0x1d6   : > { %v2391_v3 = vadd.f32 %v3737_v18, %v5443_v46  ;;  %v2478_v51 = vpop.f32.mrb[16].mxu0  ;;  %v3740_v11 = vadd.f32 %v3739_v26, %v3738_v1  ;;  %v5599_v47 = vsel %vm2741_vm7, %v2897_v55, 0.0  ;;  %v2913_v1 = vrot.slane %v2905_v60, %v4635_v33 }
 0x1d7   : > { %v3796_v15 = vpop.f32.mrb[17].mxu0  ;;  %v4186_v8 = vpack.i.bf16 %v5599_v47, %v5567_v48  ;;  %v3072_v5 = vrot.slane %v5599_v47, 1  ;;  %v3120_v16 = vrot.slane %v5599_v47, 2 }
 0x1d8   : > { %v2479_v27 = vadd.f32 %v2478_v51, %v2391_v3  ;;  %v2394_v39 = vadd.f32 %v3740_v11, %v5443_v46  ;;  %v2481_v7 = vpop.f32.mrb[18].mxu0 }
 0x1d9   : > { %v3797_v61 = vpop.f32.mrb[19].mxu0  ;;  %4187 = vrot.lane.b32.xlu0 %v4186_v8, %s4306_s15  ;;  %v5608_v63 = vsel %vm526_vm0, %v3072_v5, %v3073_v30  ;;  %v5611_v21 = vsel %vm344_vm1, %v3120_v16, %v3121_v56 }
 0x1da   : > { %v2508_v57 = vmax.f32 %v2479_v27, 0.0  ;;  %v2482_v34 = vadd.f32 %v2481_v7, %v2394_v39  ;;  %v4191_v45 = vpack.i.bf16 %v5608_v63, %v3071_v32  ;;  %v4201_v29 = vpack.i.bf16 %v5611_v21, %v5585_v36 }
 0x1db   : > { %v3360_v2 = vpack.c.bf16 %v5611_v21, %v5585_v36 }
 0x1dc   : > { %v2662_v42 = vcombine.high %v2508_v57, %v2508_v57  ;;  %v2669_v44 = vrot.slane %v2508_v57, %v4635_v33  ;;  %v2509_v40 = vmax.f32 %v2482_v34, 0.0  ;;  %4192 = vrot.lane.b32.xlu1 %v4191_v45, %s4314_s22 }
 0x1dd   : > { %4197 = vrot.lane.b32.xlu0 %v4191_v45, %s4311_s10 }
 0x1de   : > { %v2676_v20 = vrot.slane %v2662_v42, %v4635_v33  ;;  %v2677_v37 = vcombine.high %v2669_v44, %v2669_v44  ;;  %v2679_v25 = vcombine.high %v2509_v40, %v2509_v40  ;;  %v2686_v54 = vrot.slane %v2509_v40, %v4635_v33  ;;  %v2486_v19 = vpop.f32.mrb[20].mxu0 }
 0x1df   : > { %v3800_v32 = vpop.f32.mrb[21].mxu0 }
 0x1e0   : > { %v2906_v41 = vcombine.low %v2669_v44, %v2677_v37  ;;  %v2678_v58 = vcombine.high %v2676_v20, %v2676_v20  ;;  %v2693_v38 = vrot.slane %v2679_v25, %v4635_v33  ;;  %v2489_v28 = vpop.f32.mrb[22].mxu0  ;;  %4202 = vrot.lane.b32.xlu1 %v4201_v29, %s4305_s14  ;;  %v2928_v52 = vrot.slane %v2676_v20, %v4635_v33 }
 0x1e1   : > { %v2694_v6 = vcombine.high %v2686_v54, %v2686_v54  ;;  %v3801_v10 = vpop.f32.mrb[23].mxu0  ;;  %v3741_v18 = vpop.f32.mrb[28].mxu1 }
 0x1e2   : > { %v2920_v55 = vrot.slane %v2906_v41, %v4635_v33  ;;  %v2695_v17 = vcombine.high %v2693_v38, %v2693_v38  ;;  %v2929_v26 = vcombine.low %v2678_v58, %v2686_v54  ;;  %v3742_v3 = vpop.f32.mrb[29].mxu1  ;;  %v3034_v56 = vsel %vm2748_vm6, %v2928_v52, 0.0 }
 0x1e3   : > { %v2930_v51 = vcombine.low %v2694_v6, %v2693_v38  ;;  %v3743_v11 = vadd.f32 %v3742_v3, %v3741_v18  ;;  %v3744_v30 = vpop.f32.mrb[30].mxu1  ;;  %v3076_v42 = vrot.slane %v3034_v56, 1  ;;  %v3124_v44 = vrot.slane %v3034_v56, 2 }
 0x1e4   : > { %v2921_v15 = vcombine.low %v2913_v1, %v2920_v55  ;;  %v2937_v8 = vrot.slane %v2929_v26, %v4635_v33  ;;  %v2952_v5 = vrot.slane %v2695_v17, %v4635_v33  ;;  %v3745_v16 = vpop.f32.mrb[31].mxu1 }
 0x1e5   : > { %v2944_v27 = vrot.slane %v2930_v51, %v4635_v33  ;;  %v2399_v39 = vadd.f32 %v3743_v11, %v5443_v46  ;;  %v3746_v7 = vadd.f32 %v3745_v16, %v3744_v30 }
 0x1e6   : > { %v3036_v49 = vsel %vm2748_vm6, %v2952_v5, 0.0  ;;  %v5638_v61 = vsel %vm2741_vm7, %v2921_v15, 0.0 }
 0x1e7   : > { %v2945_v57 = vcombine.low %v2937_v8, %v2944_v27  ;;  %v2487_v34 = vadd.f32 %v2486_v19, %v2399_v39  ;;  %v2402_v45 = vadd.f32 %v3746_v7, %v5443_v46  ;;  %v4206_v29 = vpack.i.bf16 %v5638_v61, %v5599_v47 }
 0x1e8   : > { %v3123_v40 = vrot.slane %v5638_v61, 2  ;;  %v3075_v60 = vrot.slane %v5638_v61, 1  ;;  %v3079_v19 = vrot.slane %v3036_v49, 1  ;;  %v3127_v3 = vrot.slane %v3036_v49, 2 }
 0x1e9   : > { %v2510_v20 = vmax.f32 %v2487_v34, 0.0  ;;  %v2490_v37 = vadd.f32 %v2489_v28, %v2402_v45  ;;  %4207 = vrot.lane.b32.xlu0 %v4206_v29, %s4312_s18  ;;  %v5648_v25 = vsel %vm2741_vm7, %v2945_v57, 0.0  ;;  %v3747_v54 = vpop.f32.mrb[32].mxu1 }
 0x1ea   : > { %v4211_v46 = vpack.i.bf16 %v5648_v25, %v5638_v61  ;;  %v3748_v32 = vpop.f32.mrb[33].mxu1  ;;  %v5653_v41 = vsel %vm344_vm1, %v3123_v40, %v3124_v44  ;;  %v3077_v58 = vsel %vm526_vm0, %v3075_v60, %v3076_v42  ;;  %v3078_v38 = vrot.slane %v5648_v25, 1 }
 0x1eb   : > { %v2696_v28 = vcombine.high %v2510_v20, %v2510_v20  ;;  %v2703_v52 = vrot.slane %v2510_v20, %v4635_v33  ;;  %v2511_v6 = vmax.f32 %v2490_v37, 0.0  ;;  %v4221_v10 = vpack.i.bf16 %v5653_v41, %v5611_v21  ;;  %v3750_v18 = vpop.f32.mrb[34].mxu1 }
 0x1ec   : > { %4212 = vrot.lane.b32.xlu1 %v4211_v46, %s4306_s15  ;;  %v3751_v1 = vpop.f32.mrb[35].mxu1  ;;  %v4216_v55 = vpack.i.bf16 %v3077_v58, %v5608_v63  ;;  %v3080_v17 = vsel %vm526_vm0, %v3078_v38, %v3079_v19  ;;  %v3126_v26 = vrot.slane %v5648_v25, 2  ;;  %v2494_v19 = vpop.f32.mrb[24].mxu0 }
 0x1ed   : > { %v2710_v51 = vrot.slane %v2696_v28, %v4635_v33  ;;  %v2711_v11 = vcombine.high %v2703_v52, %v2703_v52  ;;  %v2720_v30 = vrot.slane %v2511_v6, %v4635_v33  ;;  %4222 = vrot.lane.b32.xlu0 %v4221_v10, %s4313_s21  ;;  %v4226_v15 = vpack.i.bf16 %v3080_v17, %v3077_v58  ;;  %v3804_v46 = vpop.f32.mrb[25].mxu0 }
 0x1ee   : > { %v5668_v8 = vsel %vm344_vm1, %v3126_v26, %v3127_v3  ;;  %v2497_v32 = vpop.f32.mrb[26].mxu0 }
 0x1ef   : > { %v2712_v5 = vcombine.high %v2710_v51, %v2710_v51  ;;  %v2953_v16 = vcombine.low %v2703_v52, %v2711_v11  ;;  %v4236_v63 = vpack.i.bf16 %v5668_v8, %v5653_v41  ;;  %v2976_v56 = vrot.slane %v2720_v30, %v4635_v33  ;;  %v3805_v58 = vpop.f32.mrb[27].mxu0 }
 0x1f0   : > { %4217 = vrot.lane.b32.xlu1 %v4216_v55, %s4304_s13  ;;  %v3362_v27 = vpack.c.bf16 %v5668_v8, %v5653_v41 }
 0x1f1   : > { %v2954_v39 = vcombine.low %v2710_v51, %v2712_v5  ;;  %4227 = vrot.lane.b32.xlu0 %v4226_v15, %s4314_s22  ;;  %v2961_v7 = vrot.slane %v2953_v16, %v4635_v33  ;;  %v3038_v57 = vsel %vm2748_vm6, %v2976_v56, 0.0 }
 0x1f2   : > { %v3180_v29 = vrot.slane %v3038_v57, 1  ;;  %v3207_v60 = vrot.slane %v3038_v57, 2 }
 0x1f3   : > { %v2968_v49 = vrot.slane %v2954_v39, %v4635_v33 }
 0x1f4   : > { %4232 = vrot.lane.b32.xlu1 %v4226_v15, %s4311_s10 }
 0x1f5   : > { %4237 = vrot.lane.b32.xlu0 %v4236_v63, %s4305_s14  ;;  %v2969_v34 = vcombine.low %v2961_v7, %v2968_v49 }
 0x1f7   : > { %v3037_v45 = vsel %vm2741_vm7, %v2969_v34, 0.0 }
 0x1f8   : > { %v4241_v42 = vpack.i.bf16 %v3037_v45, %v5648_v25  ;;  %v3179_v44 = vrot.slane %v3037_v45, 1  ;;  %v3206_v40 = vrot.slane %v3037_v45, 2  ;;  %v4256_v23 = vpack.i.bf16 %v5897_v43, %v3037_v45 }
 0x1fa   : > { %4242 = vrot.lane.b32.xlu1 %v4241_v42, %s4312_s18  ;;  %v3181_v33 = vsel %vm526_vm0, %v3179_v44, %v3180_v29  ;;  %v5689_v20 = vsel %vm344_vm1, %v3206_v40, %v3207_v60 }
 0x1fb   : > { %v4246_v50 = vpack.i.bf16 %v3181_v33, %v3080_v17  ;;  %v4251_v37 = vpack.i.bf16 %v5689_v20, %v5668_v8  ;;  %v4261_v54 = vpack.i.bf16 %v5489_v9, %v3181_v33 }
 0x1fd   : > { %4247 = vrot.lane.b32.xlu0 %v4246_v50, %s4304_s13 }
 0x1fe   : > { %4252 = vrot.lane.b32.xlu1 %v4251_v37, %s4313_s21 }
 0x201   : > { %4257 = vrot.lane.b32.xlu0 %v4256_v23, %s4306_s15 }
 0x202   : > { %4262 = vrot.lane.b32.xlu1 %v4261_v54, %s4314_s22 }
 0x224   : > { %v4128_v38 = vpop.permute.xlu0 %4127  ;;  %v4133_v28 = vpop.permute.xlu1 %4132 }
 0x225   : > { %v4130_v6 = vunpack.i.h.bf16 %v4128_v38  ;;  %v4129_v10 = vunpack.i.l.bf16 %v4128_v38  ;;  %v4135_v18 = vunpack.i.h.bf16 %v4133_v28  ;;  %v4134_v1 = vunpack.i.l.bf16 %v4133_v28 }
 0x227   : > { %v3299_v43 = vsel %vm3297_vm8, %v5486_v4, %v4130_v6  ;;  %v3298_v9 = vsel %vm3297_vm8, 0.0, %v4129_v10 }
 0x228   : > { %v4138_v52 = vpop.permute.xlu0 %4137  ;;  %v3306_v51 = vsel %vm404_vm2, %v3298_v9, %v4134_v1  ;;  %v3307_v15 = vsel %vm404_vm2, %v3299_v43, %v4135_v18 }
 0x229   : > { %v4143_v55 = vpop.permute.xlu1 %4142  ;;  %v4140_v17 = vunpack.i.h.bf16 %v4138_v52  ;;  %v4139_v26 = vunpack.i.l.bf16 %v4138_v52 }
 0x22a   : > { %v4145_v11 = vunpack.i.h.bf16 %v4143_v55  ;;  %v4144_v30 = vunpack.i.l.bf16 %v4143_v55 }
 0x22b   : > { %v3315_v5 = vsel %vm3314_vm9, %v3306_v51, %v4139_v26  ;;  %v3316_v16 = vsel %vm3314_vm9, %v3307_v15, %v4140_v17 }
 0x22c   : > { %v4148_v3 = vpop.permute.xlu0 %4147  ;;  %v3323_v49 = vsel %vm1003_vm4, %v3315_v5, %v4144_v30  ;;  %v3324_v57 = vsel %vm1003_vm4, %v3316_v16, %v4145_v11 }
 0x22d   : > { %v4150_v63 = vunpack.i.h.bf16 %v4148_v3  ;;  %v4149_v56 = vunpack.i.l.bf16 %v4148_v3 }
 0x22f   : > { %v3332_v45 = vsel %vm3331_vm10, %v3323_v49, %v4149_v56  ;;  %v3333_v29 = vsel %vm3331_vm10, %v3324_v57, %v4150_v63 }
 0x233   : > { %v4153_v4 = vpop.permute.xlu1 %4152 }
 0x234   : > { %v4155_v39 = vunpack.i.h.bf16 %v4153_v4  ;;  %v4154_v7 = vunpack.i.l.bf16 %v4153_v4 }
 0x236   : > { %v4158_v34 = vpop.permute.xlu0 %4157  ;;  %v3340_v40 = vsel %vm1024_vm5, %v3332_v45, %v4154_v7  ;;  %v3341_v60 = vsel %vm1024_vm5, %v3333_v29, %v4155_v39 }
 0x237   : > { %v4160_v42 = vunpack.i.h.bf16 %v4158_v34  ;;  %v4159_v44 = vunpack.i.l.bf16 %v4158_v34  ;;  %v4163_v23 = vpop.permute.xlu1 %4162 }
 0x238   : > { %v4165_v19 = vunpack.i.h.bf16 %v4163_v23  ;;  %v4164_v46 = vunpack.i.l.bf16 %v4163_v23 }
 0x239   : > { %v3349_v33 = vsel %vm3348_vm11, %v3340_v40, %v4159_v44  ;;  %v3350_v50 = vsel %vm3348_vm11, %v3341_v60, %v4160_v42 }
 0x23a   : > { %v3357_v37 = vpack.c.bf16 %v3350_v50, %v3349_v33  ;;  %v4168_v54 = vpop.permute.xlu0 %4167  ;;  %v3301_v52 = vsel %vm3297_vm8, %v5551_v62, %v4165_v19  ;;  %v3300_v6 = vsel %vm3297_vm8, %v5511_v12, %v4164_v46 }
 0x23b   : > { %v4170_v32 = vunpack.i.h.bf16 %v4168_v54  ;;  %v4169_v58 = vunpack.i.l.bf16 %v4168_v54  ;;  %v4173_v38 = vpop.permute.xlu1 %4172 }
 0x23c   : > { %3489 = vmatmul.mubr.bf16.vlgmr.msra.gmra.mrb[28].mxu0 %v3357_v37  ;;  %v4175_v10 = vunpack.i.h.bf16 %v4173_v38  ;;  %v4174_v18 = vunpack.i.l.bf16 %v4173_v38 }
 0x23d   : > { %3683 = vmatprep.mubr.msk.bf16.mxu0 %vm3297_vm8, %v3360_v2  ;;  %v3309_v36 = vsel %vm404_vm2, %v3301_v52, %v4170_v32  ;;  %v3308_v21 = vsel %vm404_vm2, %v3300_v6, %v4169_v58 }
 0x23e   : > { %v3317_v9 = vsel %vm3314_vm9, %v3308_v21, %v4174_v18  ;;  %v3318_v55 = vsel %vm3314_vm9, %v3309_v36, %v4175_v10 }
 0x246   : > { %v4178_v28 = vpop.permute.xlu0 %4177  ;;  %v4183_v2 = vpop.permute.xlu1 %4182 }
 0x247   : > { %v4180_v1 = vunpack.i.h.bf16 %v4178_v28  ;;  %v4179_v43 = vunpack.i.l.bf16 %v4178_v28  ;;  %v4185_v17 = vunpack.i.h.bf16 %v4183_v2  ;;  %v4184_v26 = vunpack.i.l.bf16 %v4183_v2 }
 0x249   : > { %v3325_v62 = vsel %vm1003_vm4, %v3317_v9, %v4179_v43  ;;  %v3326_v12 = vsel %vm1003_vm4, %v3318_v55, %v4180_v1 }
 0x24a   : > { %v3334_v15 = vsel %vm3331_vm10, %v3325_v62, %v4184_v26  ;;  %v3335_v5 = vsel %vm3331_vm10, %v3326_v12, %v4185_v17 }
 0x24b   : > { %v4188_v3 = vpop.permute.xlu0 %4187 }
 0x24c   : > { %v4190_v51 = vunpack.i.h.bf16 %v4188_v3  ;;  %v4189_v11 = vunpack.i.l.bf16 %v4188_v3 }
 0x24e   : > { %v4193_v30 = vpop.permute.xlu1 %4192  ;;  %v3342_v56 = vsel %vm1024_vm5, %v3334_v15, %v4189_v11  ;;  %v3343_v4 = vsel %vm1024_vm5, %v3335_v5, %v4190_v51  ;;  %v3364_v51 = vpack.c.bf16 %v5481_v24, %v5689_v20 }
 0x24f   : > { %v4195_v16 = vunpack.i.h.bf16 %v4193_v30  ;;  %v4194_v63 = vunpack.i.l.bf16 %v4193_v30  ;;  %v4198_v57 = vpop.permute.xlu0 %4197 }
 0x250   : > { %v4200_v29 = vunpack.i.h.bf16 %v4198_v57  ;;  %v4199_v42 = vunpack.i.l.bf16 %v4198_v57 }
 0x251   : > { %v3351_v39 = vsel %vm3348_vm11, %v3342_v56, %v4194_v63  ;;  %v3352_v7 = vsel %vm3348_vm11, %v3343_v4, %v4195_v16 }
 0x252   : > { %v3359_v49 = vpack.c.bf16 %v3352_v7, %v3351_v39  ;;  %v4203_v34 = vpop.permute.xlu1 %4202  ;;  %v3303_v23 = vsel %vm3297_vm8, %v5599_v47, %v4200_v29  ;;  %v3302_v54 = vsel %vm3297_vm8, %v5567_v48, %v4199_v42 }
 0x253   : > { %v4205_v44 = vunpack.i.h.bf16 %v4203_v34  ;;  %v4204_v40 = vunpack.i.l.bf16 %v4203_v34 }
 0x254   : > { %3497 = vmatmul.mubr.bf16.gmra.mrb[32].mxu0 %v3359_v49 }
 0x255   : > { %3684 = vmatprep.mubr.msk.bf16.mxu0 %vm3297_vm8, %v3362_v27  ;;  %v3310_v41 = vsel %vm404_vm2, %v3302_v54, %v4204_v40  ;;  %v3311_v8 = vsel %vm404_vm2, %v3303_v23, %v4205_v44 }
 0x25b   : > { %v4208_v45 = vpop.permute.xlu0 %4207 }
 0x25c   : > { %v4210_v33 = vunpack.i.h.bf16 %v4208_v45  ;;  %v4209_v50 = vunpack.i.l.bf16 %v4208_v45 }
 0x25e   : > { %v4213_v60 = vpop.permute.xlu1 %4212  ;;  %v3319_v19 = vsel %vm3314_vm9, %v3310_v41, %v4209_v50  ;;  %v3320_v46 = vsel %vm3314_vm9, %v3311_v8, %v4210_v33 }
 0x25f   : > { %v4223_v37 = vpop.permute.xlu0 %4222  ;;  %v4215_v47 = vunpack.i.h.bf16 %v4213_v60  ;;  %v4214_v18 = vunpack.i.l.bf16 %v4213_v60 }
 0x260   : > { %v4225_v28 = vunpack.i.h.bf16 %v4223_v37  ;;  %v4224_v52 = vunpack.i.l.bf16 %v4223_v37 }
 0x262   : > { %v4218_v27 = vpop.permute.xlu1 %4217 }
 0x263   : > { %v4220_v32 = vunpack.i.h.bf16 %v4218_v27  ;;  %v4219_v58 = vunpack.i.l.bf16 %v4218_v27  ;;  %v4228_v38 = vpop.permute.xlu0 %4227 }
 0x264   : > { %v4230_v6 = vunpack.i.h.bf16 %v4228_v38  ;;  %v4229_v10 = vunpack.i.l.bf16 %v4228_v38 }
 0x265   : > { %v3327_v48 = vsel %vm1003_vm4, %v3319_v19, %v4219_v58  ;;  %v3328_v36 = vsel %vm1003_vm4, %v3320_v46, %v4220_v32  ;;  %v3672_v46 = vld [vmem:[%s5816_s4] ss:$0 sm:$0xff] }
 0x266   : > { %v3336_v21 = vsel %vm3331_vm10, %v3327_v48, %v4224_v52  ;;  %v3337_v2 = vsel %vm3331_vm10, %v3328_v36, %v4225_v28  ;;  %v4233_v1 = vpop.permute.xlu1 %4232  ;;  %v4295_v58 = vld [vmem:[%s5818_s6] ss:$0 sm:$0xff] }
 0x267   : > { %v3344_v43 = vsel %vm1024_vm5, %v3336_v21, %v4214_v18  ;;  %v3345_v9 = vsel %vm1024_vm5, %v3337_v2, %v4215_v47  ;;  %v4235_v26 = vunpack.i.h.bf16 %v4233_v1  ;;  %v4234_v3 = vunpack.i.l.bf16 %v4233_v1  ;;  %v4238_v62 = vpop.permute.xlu0 %4237 }
 0x268   : > { %v3353_v55 = vsel %vm3348_vm11, %v3344_v43, %v4229_v10  ;;  %v3354_v17 = vsel %vm3348_vm11, %v3345_v9, %v4230_v6  ;;  %v4240_v11 = vunpack.i.h.bf16 %v4238_v62  ;;  %v4239_v30 = vunpack.i.l.bf16 %v4238_v62 }
 0x269   : > { %v3361_v12 = vpack.c.bf16 %v3354_v17, %v3353_v55  ;;  %v3305_v5 = vsel %vm3297_vm8, %v5648_v25, %v4235_v26  ;;  %v3304_v16 = vsel %vm3297_vm8, %v5638_v61, %v4234_v3  ;;  %v452_v38 = vadd.f32 %v4295_v58, %v5409_v22 }
 0x26a   : > { %v3313_v39 = vsel %vm404_vm2, %v3305_v5, %v4240_v11  ;;  %v3312_v7 = vsel %vm404_vm2, %v3304_v16, %v4239_v30  ;;  %v455_v10 = vadd.f32 %v4295_v58, %v5413_v0  ;;  %v460_v2 = vadd.f32 %v4295_v58, %v5407_v14 }
 0x26b   : > { %3505 = vmatmul.mubr.bf16.gmra.mrb[36].mxu0 %v3361_v12  ;;  %v463_v55 = vadd.f32 %v4295_v58, %v5411_v59  ;;  %v468_v14 = vadd.f32 %v4295_v58, %v5417_v35  ;;  %v471_v59 = vadd.f32 %v4295_v58, %v5424_v13  ;;  %v476_v35 = vadd.f32 %v4295_v58, %v5415_v31 }
 0x26c   : > { %3685 = vmatprep.mubr.msk.bf16.mxu0 %vm3297_vm8, %v3364_v51  ;;  %v4243_v15 = vpop.permute.xlu1 %4242 }
 0x26d   : > { %v4245_v63 = vunpack.i.h.bf16 %v4243_v15  ;;  %v4244_v56 = vunpack.i.l.bf16 %v4243_v15 }
 0x26f   : > { %v4248_v4 = vpop.permute.xlu0 %4247  ;;  %v3321_v57 = vsel %vm3314_vm9, %v3312_v7, %v4244_v56  ;;  %v3322_v34 = vsel %vm3314_vm9, %v3313_v39, %v4245_v63 }
 0x270   : > { %v4250_v24 = vunpack.i.h.bf16 %v4248_v4  ;;  %v4249_v20 = vunpack.i.l.bf16 %v4248_v4  ;;  %v4253_v49 = vpop.permute.xlu1 %4252 }
 0x271   : > { %v4255_v45 = vunpack.i.h.bf16 %v4253_v49  ;;  %v4254_v29 = vunpack.i.l.bf16 %v4253_v49 }
 0x272   : > { %v3329_v25 = vsel %vm1003_vm4, %v3321_v57, %v4249_v20  ;;  %v3330_v61 = vsel %vm1003_vm4, %v3322_v34, %v4250_v24 }
 0x273   : > { %v4258_v42 = vpop.permute.xlu0 %4257  ;;  %v3338_v33 = vsel %vm3331_vm10, %v3329_v25, %v4254_v29  ;;  %v3339_v50 = vsel %vm3331_vm10, %v3330_v61, %v4255_v45 }
 0x274   : > { %v4260_v44 = vunpack.i.h.bf16 %v4258_v42  ;;  %v4259_v40 = vunpack.i.l.bf16 %v4258_v42  ;;  %v4263_v60 = vpop.permute.xlu1 %4262 }
 0x275   : > { %v4265_v37 = vunpack.i.h.bf16 %v4263_v60  ;;  %v4264_v23 = vunpack.i.l.bf16 %v4263_v60 }
 0x276   : > { %v3346_v54 = vsel %vm1024_vm5, %v3338_v33, %v4259_v40  ;;  %v3347_v41 = vsel %vm1024_vm5, %v3339_v50, %v4260_v44 }
 0x277   : > { %v3355_v8 = vsel %vm3348_vm11, %v3346_v54, %v4264_v23  ;;  %v3356_v27 = vsel %vm3348_vm11, %v3347_v41, %v4265_v37 }
 0x278   : > { %v3363_v19 = vpack.c.bf16 %v3356_v27, %v3355_v8 }
 0x27a   : > { %3513 = vmatmul.mubr.bf16.gmra.mrb[40].mxu0 %v3363_v19 }
 0x30f   : > { %v3490_v32 = vpop.f32.mrb[28].mxu0 }
 0x310   : > { %v3491_v28 = vadd.f32 %v3672_v46, %v3490_v32  ;;  %v3492_v52 = vpop.f32.mrb[29].mxu0 }
 0x311   : > { %v3493_v6 = vpop.f32.mrb[30].mxu0 }
 0x312   : > { %v3521_v47 = vadd.f32 %v3491_v28, %v452_v38  ;;  %v3494_v18 = vadd.f32 %v3672_v46, %v3493_v6  ;;  %v3495_v48 = vpop.f32.mrb[31].mxu0 }
 0x314   : > { %v3529_v36 = vpack.c.bf16 %v3521_v47, %v3521_v47  ;;  %v3522_v22 = vadd.f32 %v3494_v18, %v455_v10 }
 0x316   : > { %3538 = vst.msk [vmem:[%s5785_s29] sm:$0xf] %vm3537_vm12, %v3529_v36  ;;  %v3530_v21 = vpack.c.bf16 %v3522_v22, %v3522_v22 }
 0x318   : > { %3539 = vst.msk [vmem:[%s5785_s29 + $0x4] sm:$0xf] %vm3537_vm12, %v3530_v21 }
 0x327   : > { %v3498_v0 = vpop.f32.mrb[32].mxu0 }
 0x328   : > { %v3499_v1 = vadd.f32 %v3672_v46, %v3498_v0  ;;  %v3500_v43 = vpop.f32.mrb[33].mxu0 }
 0x329   : > { %v3501_v9 = vpop.f32.mrb[34].mxu0 }
 0x32a   : > { %v3523_v17 = vadd.f32 %v3499_v1, %v460_v2  ;;  %v3502_v26 = vadd.f32 %v3672_v46, %v3501_v9  ;;  %v3503_v3 = vpop.f32.mrb[35].mxu0 }
 0x32c   : > { %v3531_v62 = vpack.c.bf16 %v3523_v17, %v3523_v17  ;;  %v3524_v12 = vadd.f32 %v3502_v26, %v463_v55 }
 0x32e   : > { %3540 = vst.msk [vmem:[%s5785_s29 + $0x8] sm:$0xf] %vm3537_vm12, %v3531_v62  ;;  %v3532_v51 = vpack.c.bf16 %v3524_v12, %v3524_v12 }
 0x330   : > { %3541 = vst.msk [vmem:[%s5785_s29 + $0xc] sm:$0xf] %vm3537_vm12, %v3532_v51 }
 0x33e   : > { %v3506_v11 = vpop.f32.mrb[36].mxu0 }
 0x33f   : > { %v3507_v30 = vadd.f32 %v3672_v46, %v3506_v11  ;;  %v3508_v15 = vpop.f32.mrb[37].mxu0 }
 0x340   : > { %v3509_v5 = vpop.f32.mrb[38].mxu0 }
 0x341   : > { %v3525_v16 = vadd.f32 %v3507_v30, %v468_v14  ;;  %v3510_v63 = vadd.f32 %v3672_v46, %v3509_v5  ;;  %v3511_v56 = vpop.f32.mrb[39].mxu0 }
 0x343   : > { %v3533_v4 = vpack.c.bf16 %v3525_v16, %v3525_v16  ;;  %v3526_v39 = vadd.f32 %v3510_v63, %v471_v59 }
 0x345   : > { %3542 = vst.msk [vmem:[%s5785_s29 + $0x10] sm:$0xf] %vm3537_vm12, %v3533_v4  ;;  %v3534_v7 = vpack.c.bf16 %v3526_v39, %v3526_v39 }
 0x347   : > { %3543 = vst.msk [vmem:[%s5785_s29 + $0x14] sm:$0xf] %vm3537_vm12, %v3534_v7 }
 0x34d   : > { %v3514_v24 = vpop.f32.mrb[40].mxu0 }
 0x34e   : > { %v3515_v20 = vadd.f32 %v3672_v46, %v3514_v24  ;;  %v3516_v49 = vpop.f32.mrb[41].mxu0 }
 0x34f   : > { %v3517_v57 = vpop.f32.mrb[42].mxu0 }
 0x350   : > { %v3527_v34 = vadd.f32 %v3515_v20, %v476_v35  ;;  %v3518_v13 = vadd.f32 %v3672_v46, %v3517_v57  ;;  %v3519_v45 = vpop.f32.mrb[43].mxu0 }
 0x352   : > { %v3535_v29 = vpack.c.bf16 %v3527_v34, %v3527_v34  ;;  %v3528_v25 = vadd.f32 %v3518_v13, %v5422_v53 }
 0x354   : > { %3544 = vst.msk [vmem:[%s5785_s29 + $0x18] sm:$0xf] %vm3537_vm12, %v3535_v29  ;;  %v3536_v61 = vpack.c.bf16 %v3528_v25, %v3528_v25 }
 0x356   : > { %3545 = vst.msk [vmem:[%s5785_s29 + $0x1c] sm:$0xf] %vm3537_vm12, %v3536_v61 }
 0x357 PF: > { %s17_s24 = sadd.s32 1, %s4302_s24  }
 0x358   : > { %p14_p4 = scmp.ge.s32.totalorder %s17_s24, 4  }
 0x35a   :  { %16 = sbr.rel (!%p14_p4) target bundleno = 1 (0x1), region = 78 }

// kernel: vqgan_decoder_forward.10
= control target key start
LH: loop header
LB: loop body
LE: loop exit
PB: predicated region body
PF: predicated region fallthrough
CT: control target
= control target key end

     0   :  { %s3423_s18 = smov 0   ;;  %s4679_s0 = inlined_call_operand.vmem [shape: bf16[2,12,12,16], index: 0, kind: input, shape index: {}]   ;;  %s4680_s1 = inlined_call_operand.vmem [shape: bf16[144,16], index: 1, kind: input, shape index: {}]   ;;  %s4681_s2 = inlined_call_operand.vmem [shape: f32[1,16], index: 2, kind: input, shape index: {}]   ;;  %s4682_s3 = inlined_call_operand.vmem [shape: bf16[144,16], index: 3, kind: input, shape index: {}]   ;;  %s4683_s4 = inlined_call_operand.vmem [shape: f32[1,16], index: 4, kind: input, shape index: {}]   ;;  %s4684_s5 = inlined_call_operand.vmem [shape: bf16[2,8,8,16], index: 5, kind: output, shape index: {}]  }
   0x1 LB: > { %s2841_s19 = sadd.s32 4294967295, %s3381_s18   ;;  %p2845_p0 = scmp.ge.s32.totalorder %s3381_s18, 1  ;;  %s3381_s18 = sphi %s3423_s18, %s15_s18  }
   0x2   : > { %p187_p1 = scmp.lt.s32.totalorder %s3381_s18, 3 }
   0x4   : > { %p188_p2 = pnand %p2845_p0, %p187_p1 }
   0x6   : > { %191 = sbr.rel (%p188_p2) target bundleno = 877 (0x36d), region = 40 }
   0xd   : > { %p215_p3 = scmp.lt.s32.totalorder %s2841_s19, 1  ;;  %vm367_vm0 = vcmask 1046528   ;;  %vm290_vm1 = vcmask 1045504   ;;  %v3357_v0 = vld [vmem:[%s4680_s1] sm:$0xff]   ;;  %v4701_v1 = vmov 0   ;;  %s3384_s26 = smov 48  }
   0xe   : > { %1656 = vmatprep.subr.bf16.mxu0 %v4701_v1  ;;  %2696 = vmatprep.subr.bf16.mxu1 %v4701_v1  ;;  %v3358_v40 = vld [vmem:[%s4680_s1 + $0x8] sm:$0xff]   ;;  %v3359_v48 = vld [vmem:[%s4680_s1 + $0x10] sm:$0xff]   ;;  %s3385_s6 = smov 16   ;;  %v3360_v56 = vld [vmem:[%s4680_s1 + $0x18] sm:$0xff]   ;;  %s3386_s9 = smov 64   ;;  %vm864_vm2 = vcmask 130048  }
   0xf   : > { %s4783_s19 = smov (!%p215_p3, %s2841_s19), 1  ;;  %1657 = vmatpush1.bf16.msra.mxu0 %v3357_v0  ;;  %s3387_s10 = smov 32   ;;  %v3361_v0 = vld [vmem:[%s4680_s1 + $0x20] sm:$0xff]   ;;  %vm885_vm3 = vcmask 261120   ;;  %vm906_vm4 = vcmask 392192   ;;  %vm927_vm5 = vcmask 523264  }
  0x10   : > { %s2883_s20 = smul.u32 96, %s4783_s19  ;;  %1658 = vmatprep.subr.bf16.mxu0 %v4701_v1  ;;  %s3388_s13 = smov 80   ;;  %vm948_vm6 = vcmask 654336   ;;  %vm969_vm7 = vcmask 785408   ;;  %vm990_vm8 = vcmask 916480   ;;  %vm2777_vm11 = vcmask 125952  }
  0x11   : > { %s3389_s16 = smov 96   ;;  %s3390_s21 = smov 112  }
  0x12   : > { %s3440_s25 = scalar_lea.vmem %s4679_s0, %s2883_s20 }
  0x13   : > { %v229_v2 = vld [vmem:[%s3440_s25 + $0xc] sm:$0x3]  ;;  %v3446_v3 = vld [vmem:[%s3440_s25 + $0x8] ss:$16 sps:$4 sm:$0xff]   ;;  %v3449_v4 = vld [vmem:[%s3440_s25] ss:$16 sps:$4 sm:$0xff]   ;;  %1659 = vmatpush1.bf16.msra.mxu0 %v3358_v40 }
  0x14   : > { %4727 = vst [vmem:[#allocation2_spill] sm:$0xff] %v3446_v3  ;;  %4728 = vst [vmem:[#allocation3_spill] sm:$0xff] %v3449_v4  ;;  %v253_v5 = vunpack.c.l.bf16 %v229_v2  ;;  %v4698_v6 = vunpack.c.h.bf16 %v3446_v3  ;;  %v252_v7 = vunpack.c.l.bf16 %v3446_v3  ;;  %v4700_v8 = vunpack.c.h.bf16 %v3449_v4  ;;  %v227_v9 = vld [vmem:[%s3440_s25 + $0x4] sm:$0x3]  ;;  %v3456_v10 = vld [vmem:[%s3440_s25 + $0x14] sm:$0x3]  ;;  %1660 = vmatprep.subr.bf16.mxu0 %v4701_v1 }
  0x15   : > { %4729 = vst [vmem:[#allocation4_spill] sm:$0xff] %v3456_v10  ;;  %v3459_v11 = vld [vmem:[%s3440_s25 + $0x1c] sm:$0x3]  ;;  %v251_v12 = vunpack.c.l.bf16 %v227_v9  ;;  %v4699_v13 = vunpack.c.l.bf16 %v3456_v10  ;;  %v250_v14 = vunpack.c.l.bf16 %v3449_v4  ;;  %v3525_v44 = vld [vmem:[%s3440_s25 + $0x20] ss:$8 sps:$4 sm:$0xff]  }
  0x16   : > { %4730 = vst [vmem:[#allocation5_spill] sm:$0xff] %v3459_v11  ;;  %v4697_v15 = vunpack.c.l.bf16 %v3459_v11  ;;  %v3465_v16 = vmax.f32 %v253_v5, 0.0  ;;  %v3469_v17 = vmax.f32 %v4698_v6, 0.0  ;;  %v3471_v18 = vmax.f32 %v252_v7, 0.0  ;;  %4731 = vst [vmem:[#allocation6_spill] sm:$0xff] %v3525_v44 }
  0x17   : > { %v3475_v19 = vmax.f32 %v4700_v8, 0.0  ;;  %v3477_v20 = vmax.f32 %v251_v12, 0.0  ;;  %v3481_v21 = vmax.f32 %v4699_v13, 0.0  ;;  %v3483_v22 = vmax.f32 %v250_v14, 0.0  ;;  %v3528_v45 = vld [vmem:[%s3440_s25 + $0x24] sm:$0x3]  ;;  %1661 = vmatpush1.bf16.msra.mxu0 %v3359_v48 }
  0x18   : > { %v3487_v23 = vmax.f32 %v4697_v15, 0.0  ;;  %v2907_v24 = vpack.i.bf16 %v3469_v17, %v3465_v16  ;;  %v371_v27 = vrot.slane %v3471_v18, 1  ;;  %v3501_v31 = vrot.slane %v3465_v16, 1  ;;  %4732 = vst [vmem:[#allocation7_spill] sm:$0xff] %v3528_v45  ;;  %1662 = vmatprep.subr.bf16.mxu0 %v4701_v1  ;;  %v3362_v14 = vld [vmem:[%s4680_s1 + $0x28] sm:$0xff]  }
  0x19   : > { %v2902_v25 = vpack.i.bf16 %v3475_v19, %v3471_v18  ;;  %v374_v26 = vrot.slane %v3475_v19, 1  ;;  %v369_v28 = vrot.slane %v3477_v20, 1  ;;  %v3497_v29 = vrot.slane %v3481_v21, 1  ;;  %v247_v6 = vld [vmem:[%s3440_s25 + $0x54] sm:$0x3] }
  0x1a   : > { %v368_v30 = vrot.slane %v3483_v22, 1  ;;  %2908 = vrot.lane.b32.xlu0 %v2907_v24, %s3384_s26  ;;  %v458_v32 = vrot.slane %v3483_v22, 2  ;;  %v459_v33 = vrot.slane %v3477_v20, 2  ;;  %v461_v34 = vrot.slane %v3471_v18, 2 }
  0x1b   : > { %2903 = vrot.lane.b32.xlu1 %v2902_v25, %s3384_s26  ;;  %v3509_v35 = vrot.slane %v3465_v16, 2  ;;  %v3513_v36 = vsel %vm367_vm0, %v374_v26, %v3497_v29  ;;  %v373_v38 = vsel %vm367_vm0, %v371_v27, %v3501_v31  ;;  %v464_v39 = vrot.slane %v3475_v19, 2  ;;  %1663 = vmatpush1.bf16.msra.mxu0 %v3360_v56  ;;  %v3603_v27 = vld [vmem:[%s3440_s25 + $0x2c] sm:$0x3]  ;;  %v3658_v56 = vld [vmem:[%s3440_s25 + $0x34] sm:$0x3] }
  0x1c   : > { %v370_v37 = vsel %vm367_vm0, %v368_v30, %v369_v28  ;;  %v2922_v41 = vpack.i.bf16 %v3513_v36, %v369_v28  ;;  %v460_v43 = vsel %vm290_vm1, %v458_v32, %v459_v33  ;;  %v3533_v47 = vrot.slane %v3481_v21, 2  ;;  %1664 = vmatprep.subr.bf16.mxu0 %v4701_v1  ;;  %4733 = vst [vmem:[#allocation8_spill] sm:$0xff] %v3603_v27  ;;  %v3363_v28 = vld [vmem:[%s4680_s1 + $0x30] sm:$0xff]  }
  0x1d   : > { %v2912_v42 = vpack.i.bf16 %v373_v38, %v370_v37  ;;  %v463_v46 = vsel %vm290_vm1, %v461_v34, %v3509_v35  ;;  %v2932_v49 = vpack.i.bf16 %v3513_v36, %v373_v38  ;;  %v377_v51 = vrot.slane %v3469_v17, 1  ;;  %v3364_v38 = vld [vmem:[%s4680_s1 + $0x38] sm:$0xff]   ;;  %4735 = vst [vmem:[#allocation10_spill] sm:$0xff] %v3658_v56 }
  0x1e   : > { %v2917_v50 = vpack.i.bf16 %v463_v46, %v460_v43  ;;  %v3544_v52 = vsel %vm290_vm1, %v464_v39, %v3533_v47  ;;  %v3547_v53 = vrot.slane %v3487_v23, 1  ;;  %v4696_v54 = vunpack.c.l.bf16 %v3525_v44 }
  0x1f   : > { %2923 = vrot.lane.b32.xlu1 %v2922_v41, %s3385_s6  ;;  %2913 = vrot.lane.b32.xlu0 %v2912_v42, %s3385_s6  ;;  %v4693_v55 = vunpack.c.l.bf16 %v3528_v45  ;;  %v2937_v57 = vpack.i.bf16 %v3544_v52, %v463_v46  ;;  %v2927_v58 = vpack.i.bf16 %v3544_v52, %v459_v33  ;;  %v467_v59 = vrot.slane %v3469_v17, 2  ;;  %v3365_v46 = vld [vmem:[%s4680_s1 + $0x40] sm:$0xff]  }
  0x20   : > { %v379_v60 = vsel %vm367_vm0, %v377_v51, %v3547_v53  ;;  %v3563_v61 = vrot.slane %v3487_v23, 2  ;;  %v3567_v62 = vmax.f32 %v4696_v54, 0.0  ;;  %v2947_v2 = vpack.i.bf16 %v3469_v17, %v3475_v19  ;;  %1665 = vmatpush1.bf16.msra.mxu0 %v3361_v0  ;;  %v3654_v51 = vld [vmem:[%s3440_s25 + $0x30] ss:$8 sps:$4 sm:$0xff]  }
  0x21   : > { %v3571_v63 = vmax.f32 %v4693_v55, 0.0  ;;  %v2942_v5 = vpack.i.bf16 %v379_v60, %v3501_v31  ;;  %v2957_v24 = vpack.i.bf16 %v379_v60, %v3513_v36  ;;  %1666 = vmatprep.subr.bf16.mxu0 %v4701_v1  ;;  %v4692_v36 = vunpack.c.h.bf16 %v3525_v44  ;;  %4734 = vst [vmem:[#allocation9_spill] sm:$0xff] %v3654_v51 }
  0x22   : > { %v3584_v7 = vsel %vm290_vm1, %v467_v59, %v3563_v61  ;;  %v380_v9 = vrot.slane %v3567_v62, 1  ;;  %v2962_v32 = vpack.i.bf16 %v3567_v62, %v3481_v21  ;;  %v470_v33 = vrot.slane %v3567_v62, 2 }
  0x23   : > { %2933 = vrot.lane.b32.xlu1 %v2932_v49, %s3386_s9  ;;  %2918 = vrot.lane.b32.xlu0 %v2917_v50, %s3387_s10  ;;  %v3588_v12 = vrot.slane %v3571_v63, 1  ;;  %v2952_v25 = vpack.i.bf16 %v3584_v7, %v3509_v35  ;;  %v3615_v34 = vrot.slane %v3571_v63, 2  ;;  %v4691_v37 = vunpack.c.l.bf16 %v3603_v27 }
  0x24   : > { %1667 = vmatpush1.bf16.msra.mxu0 %v3362_v14  ;;  %v2972_v40 = vpack.i.bf16 %v3497_v29, %v3501_v31  ;;  %v3633_v42 = vmax.f32 %v4692_v36, 0.0  ;;  %v2982_v48 = vpack.i.bf16 %v3533_v47, %v3509_v35  ;;  %v2992_v35 = vpack.i.bf16 %v3487_v23, %v3481_v21 }
  0x25   : > { %v382_v26 = vsel %vm367_vm0, %v380_v9, %v3588_v12  ;;  %1668 = vmatprep.subr.bf16.mxu0 %v4701_v1  ;;  %v3629_v41 = vsel %vm290_vm1, %v470_v33, %v3615_v34  ;;  %v3637_v43 = vmax.f32 %v4691_v37, 0.0  ;;  %v3002_v9 = vpack.i.bf16 %v3547_v53, %v3497_v29 }
  0x26   : > { %v2967_v30 = vpack.i.bf16 %v382_v26, %v3497_v29  ;;  %v2977_v39 = vpack.i.bf16 %v382_v26, %v379_v60  ;;  %v2987_v31 = vpack.i.bf16 %v3629_v41, %v3584_v7  ;;  %v383_v49 = vrot.slane %v3633_v42, 1 }
  0x27   : > { %2938 = vrot.lane.b32.xlu1 %v2937_v57, %s3388_s13  ;;  %2928 = vrot.lane.b32.xlu0 %v2927_v58, %s3387_s10  ;;  %v3651_v50 = vrot.slane %v3637_v43, 1  ;;  %v2997_v57 = vpack.i.bf16 %v3633_v42, %v3567_v62  ;;  %v4690_v58 = vunpack.c.l.bf16 %v3654_v51  ;;  %v473_v60 = vrot.slane %v3633_v42, 2 }
  0x28   : > { %1669 = vmatpush1.bf16.msra.mxu0 %v3363_v28  ;;  %v3671_v0 = vrot.slane %v3637_v43, 2  ;;  %v3012_v29 = vpack.i.bf16 %v3563_v61, %v3533_v47  ;;  %v3022_v33 = vpack.i.bf16 %v3571_v63, %v3487_v23  ;;  %v271_v13 = vunpack.c.l.bf16 %v247_v6 }
  0x29   : > { %1670 = vmatprep.subr.bf16.mxu0 %v4701_v1  ;;  %v385_v59 = vsel %vm367_vm0, %v383_v49, %v3651_v50 }
  0x2a   : > { %v3680_v14 = vsel %vm290_vm1, %v473_v60, %v3671_v0 }
  0x2b   : > { %2948 = vrot.lane.b32.xlu1 %v2947_v2, %s3389_s16  ;;  %2943 = vrot.lane.b32.xlu0 %v2942_v5, %s3386_s9  ;;  %v4687_v2 = vunpack.c.l.bf16 %v3658_v56  ;;  %v3007_v5 = vpack.i.bf16 %v385_v59, %v382_v26  ;;  %v3017_v26 = vpack.i.bf16 %v3680_v14, %v3629_v41  ;;  %v3047_v49 = vpack.i.bf16 %v3680_v14, %v3563_v61 }
  0x2c   : > { %1671 = vmatpush1.bf16.msra.mxu0 %v3364_v38 }
  0x2d   : > { %1672 = vmatprep.subr.bf16.mxu0 %v4701_v1  ;;  %v3878_v1 = vmax.f32 %v271_v13, 0.0 }
  0x2f   : > { %2958 = vrot.lane.b32.xlu1 %v2957_v24, %s3390_s21  ;;  %2953 = vrot.lane.b32.xlu0 %v2952_v25, %s3388_s13  ;;  %v3684_v24 = vmax.f32 %v4690_v58, 0.0  ;;  %v3688_v25 = vmax.f32 %v4687_v2, 0.0 }
  0x30   : > { %1673 = vmatpush1.bf16.msra.mxu0 %v3365_v46  ;;  %v3032_v46 = vpack.i.bf16 %v3588_v12, %v3547_v53 }
  0x31   : > { %v386_v28 = vrot.slane %v3684_v24, 1  ;;  %v476_v60 = vrot.slane %v3684_v24, 2 }
  0x33   : > { %2968 = vrot.lane.b32.xlu1 %v2967_v30, %s3390_s21  ;;  %2963 = vrot.lane.b32.xlu0 %v2962_v32, %s3389_s16  ;;  %v3698_v30 = vrot.slane %v3688_v25, 1  ;;  %v3027_v32 = vpack.i.bf16 %v3684_v24, %v3633_v42 }
  0x35   : > { %v388_v38 = vsel %vm367_vm0, %v386_v28, %v3698_v30 }
  0x37   : > { %2978 = vrot.lane.b32.xlu1 %v2977_v39, %s3385_s6  ;;  %2973 = vrot.lane.b32.xlu0 %v2972_v40, %s3385_s6  ;;  %v3709_v39 = vld [vmem:[%s3440_s25 + $0x3c] sm:$0x3]  ;;  %v3037_v40 = vpack.i.bf16 %v388_v38, %v385_v59 }
  0x38   : > { %4736 = vst [vmem:[#allocation11_spill] sm:$0xff] %v3709_v39 }
  0x3b   : > { %2988 = vrot.lane.b32.xlu1 %v2987_v31, %s3387_s10  ;;  %2983 = vrot.lane.b32.xlu0 %v2982_v48, %s3387_s10  ;;  %v4686_v31 = vunpack.c.h.bf16 %v3654_v51  ;;  %v4685_v48 = vunpack.c.l.bf16 %v3709_v39 }
  0x3f   : > { %2998 = vrot.lane.b32.xlu1 %v2997_v57, %s3384_s26  ;;  %2993 = vrot.lane.b32.xlu0 %v2992_v35, %s3384_s26  ;;  %v3042_v57 = vpack.i.bf16 %v385_v59, %v3547_v53  ;;  %v3724_v35 = vmax.f32 %v4686_v31, 0.0  ;;  %v3057_v53 = vpack.i.bf16 %v388_v38, %v3588_v12  ;;  %v3052_v59 = vpack.i.bf16 %v3684_v24, %v3571_v63 }
  0x41   : > { %v3092_v31 = vpack.i.bf16 %v3637_v43, %v3724_v35 }
  0x43   : > { %3008 = vrot.lane.b32.xlu1 %v3007_v5, %s3386_s9  ;;  %3003 = vrot.lane.b32.xlu0 %v3002_v9, %s3386_s9  ;;  %v3728_v5 = vrot.slane %v3688_v25, 2  ;;  %v3732_v9 = vmax.f32 %v4685_v48, 0.0 }
  0x45   : > { %v3745_v28 = vrot.slane %v3732_v9, 1 }
  0x47   : > { %3018 = vrot.lane.b32.xlu1 %v3017_v26, %s3388_s13  ;;  %3013 = vrot.lane.b32.xlu0 %v3012_v29, %s3388_s13  ;;  %v3741_v26 = vsel %vm290_vm1, %v476_v60, %v3728_v5  ;;  %v389_v29 = vrot.slane %v3724_v35, 1  ;;  %v3072_v60 = vpack.i.bf16 %v3588_v12, %v388_v38  ;;  %v3147_v54 = vpack.i.bf16 %v3745_v28, %v3698_v30 }
  0x4b   : > { %3028 = vrot.lane.b32.xlu1 %v3027_v32, %s3389_s16  ;;  %3023 = vrot.lane.b32.xlu0 %v3022_v33, %s3389_s16  ;;  %v3067_v32 = vpack.i.bf16 %v3724_v35, %v3637_v43  ;;  %v3062_v33 = vpack.i.bf16 %v3741_v26, %v3615_v34 }
  0x4f   : > { %3038 = vrot.lane.b32.xlu1 %v3037_v40, %s3390_s21  ;;  %3033 = vrot.lane.b32.xlu0 %v3032_v46, %s3390_s21  ;;  %v391_v40 = vsel %vm367_vm0, %v389_v29, %v3745_v28  ;;  %v3756_v46 = vld [vmem:[%s3440_s25 + $0x40] ss:$8 sps:$4 sm:$0xff]  }
  0x50   : > { %4737 = vst [vmem:[#allocation12_spill] sm:$0xff] %v3756_v46  ;;  %v4688_v29 = vunpack.c.l.bf16 %v3756_v46 }
  0x52   : > { %v3781_v38 = vmax.f32 %v4688_v29, 0.0  ;;  %v3798_v29 = vld [vmem:[%s3440_s25 + $0x4c] sm:$0x3] }
  0x53   : > { %3048 = vrot.lane.b32.xlu1 %v3047_v49, %s3387_s10  ;;  %3043 = vrot.lane.b32.xlu0 %v3042_v57, %s3385_s6  ;;  %v3759_v49 = vld [vmem:[%s3440_s25 + $0x44] sm:$0x3]  ;;  %v3077_v57 = vpack.i.bf16 %v391_v40, %v3651_v50  ;;  %4739 = vst [vmem:[#allocation14_spill] sm:$0xff] %v3798_v29  ;;  %v4695_v55 = vunpack.c.l.bf16 %v3798_v29  ;;  %v249_v29 = vld [vmem:[%s3440_s25 + $0x5c] sm:$0x3] }
  0x54   : > { %4738 = vst [vmem:[#allocation13_spill] sm:$0xff] %v3759_v49  ;;  %v4689_v48 = vunpack.c.l.bf16 %v3759_v49  ;;  %v482_v37 = vrot.slane %v3781_v38, 2  ;;  %v273_v49 = vunpack.c.l.bf16 %v249_v29 }
  0x56   : > { %v3912_v56 = vmax.f32 %v273_v49, 0.0 }
  0x57   : > { %3058 = vrot.lane.b32.xlu1 %v3057_v53, %s3386_s9  ;;  %3053 = vrot.lane.b32.xlu0 %v3052_v59, %s3384_s26  ;;  %v479_v53 = vrot.slane %v3724_v35, 2  ;;  %v3767_v59 = vrot.slane %v3732_v9, 2 }
  0x59   : > { %v3777_v12 = vsel %vm290_vm1, %v479_v53, %v3767_v59  ;;  %v392_v53 = vrot.slane %v3781_v38, 1 }
  0x5b   : > { %3068 = vrot.lane.b32.xlu1 %v3067_v32, %s3389_s16  ;;  %3063 = vrot.lane.b32.xlu0 %v3062_v33, %s3388_s13  ;;  %v3082_v32 = vpack.i.bf16 %v3615_v34, %v3741_v26  ;;  %v3785_v33 = vmax.f32 %v4689_v48, 0.0  ;;  %v4694_v48 = vunpack.c.h.bf16 %v3756_v46 }
  0x5d   : > { %v3795_v2 = vrot.slane %v3785_v33, 1  ;;  %v3810_v36 = vrot.slane %v3785_v33, 2 }
  0x5f   : > { %3078 = vrot.lane.b32.xlu1 %v3077_v57, %s3390_s21  ;;  %3073 = vrot.lane.b32.xlu0 %v3072_v60, %s3385_s6  ;;  %v3097_v60 = vpack.i.bf16 %v3777_v12, %v3671_v0  ;;  %v394_v58 = vsel %vm367_vm0, %v392_v53, %v3795_v2  ;;  %v3828_v53 = vmax.f32 %v4695_v55, 0.0 }
  0x61   : > { %4740 = vst [vmem:[#allocation15_spill] sm:$0xff] %v3828_v53 }
  0x63   : > { %3088 = vrot.lane.b32.xlu1 %v3077_v57, %s3385_s6  ;;  %3083 = vrot.lane.b32.xlu0 %v3082_v32, %s3387_s10  ;;  %v3107_v57 = vpack.i.bf16 %v3781_v38, %v3688_v25  ;;  %v3102_v32 = vpack.i.bf16 %v3651_v50, %v391_v40  ;;  %v3112_v50 = vpack.i.bf16 %v3671_v0, %v3777_v12 }
  0x64   : > { %v3820_v40 = vsel %vm290_vm1, %v482_v37, %v3810_v36 }
  0x67   : > { %3098 = vrot.lane.b32.xlu1 %v3097_v60, %s3387_s10  ;;  %3093 = vrot.lane.b32.xlu0 %v3092_v31, %s3384_s26  ;;  %v3117_v31 = vpack.i.bf16 %v394_v58, %v3698_v30  ;;  %v3824_v60 = vmax.f32 %v4694_v48, 0.0  ;;  %v3838_v48 = vrot.slane %v3828_v53, 1 }
  0x69   : > { %v395_v37 = vrot.slane %v3824_v60, 1  ;;  %4741 = vst [vmem:[#allocation16_spill] sm:$0xff] %v3838_v48 }
  0x6b   : > { %3108 = vrot.lane.b32.xlu1 %v3107_v57, %s3384_s26  ;;  %3103 = vrot.lane.b32.xlu0 %v3102_v32, %s3386_s9  ;;  %v3127_v57 = vpack.i.bf16 %v3820_v40, %v3728_v5  ;;  %v3122_v32 = vpack.i.bf16 %v3688_v25, %v3781_v38  ;;  %v397_v55 = vsel %vm367_vm0, %v395_v37, %v3838_v48  ;;  %v246_v37 = vld [vmem:[%s3440_s25 + $0x50] ss:$8 sps:$4 sm:$0xff]  }
  0x6c   : > { %v3142_v15 = vpack.i.bf16 %v397_v55, %v3745_v28 }
  0x6f   : > { %3118 = vrot.lane.b32.xlu1 %v3117_v31, %s3386_s9  ;;  %3113 = vrot.lane.b32.xlu0 %v3112_v50, %s3388_s13  ;;  %v3137_v31 = vpack.i.bf16 %v3824_v60, %v3732_v9  ;;  %v3132_v50 = vpack.i.bf16 %v3698_v30, %v394_v58  ;;  %v3167_v30 = vpack.i.bf16 %v3810_v36, %v3767_v59 }
  0x73   : > { %3128 = vrot.lane.b32.xlu1 %v3127_v57, %s3388_s13  ;;  %3123 = vrot.lane.b32.xlu0 %v3122_v32, %s3389_s16  ;;  %v3157_v57 = vpack.i.bf16 %v3785_v33, %v3732_v9  ;;  %v3152_v32 = vpack.i.bf16 %v3767_v59, %v3728_v5 }
  0x77   : > { %3138 = vrot.lane.b32.xlu1 %v3137_v31, %s3389_s16  ;;  %3133 = vrot.lane.b32.xlu0 %v3132_v50, %s3390_s21  ;;  %v3868_v31 = vrot.slane %v3828_v53, 2  ;;  %v270_v50 = vunpack.c.l.bf16 %v246_v37 }
  0x7b   : > { %3148 = vrot.lane.b32.xlu1 %v3147_v54, %s3385_s6  ;;  %3143 = vrot.lane.b32.xlu0 %v3142_v15, %s3390_s21  ;;  %v3162_v54 = vpack.i.bf16 %v3795_v2, %v3745_v28  ;;  %v485_v15 = vrot.slane %v3824_v60, 2  ;;  %v343_v28 = vmax.f32 %v270_v50, 0.0 }
  0x7d   : > { %v3876_v8 = vsel %vm290_vm1, %v485_v15, %v3868_v31  ;;  %v3192_v13 = vpack.i.bf16 %v343_v28, %v3824_v60  ;;  %v673_v15 = vrot.slane %v343_v28, 2 }
  0x7e   : > { %v3187_v6 = vpack.i.bf16 %v3876_v8, %v3820_v40 }
  0x7f   : > { %3158 = vrot.lane.b32.xlu1 %v3157_v57, %s3384_s26  ;;  %3153 = vrot.lane.b32.xlu0 %v3152_v32, %s3387_s10  ;;  %v3177_v57 = vpack.i.bf16 %v397_v55, %v394_v58  ;;  %v3172_v32 = vpack.i.bf16 %v3828_v53, %v3785_v33  ;;  %v3182_v58 = vpack.i.bf16 %v3838_v48, %v3795_v2 }
  0x83   : > { %3168 = vrot.lane.b32.xlu1 %v3167_v30, %s3388_s13  ;;  %3163 = vrot.lane.b32.xlu0 %v3162_v54, %s3386_s9  ;;  %v610_v30 = vrot.slane %v343_v28, 1  ;;  %v3887_v54 = vrot.slane %v3878_v1, 1 }
  0x85   : > { %v3895_v50 = vsel %vm367_vm0, %v610_v30, %v3887_v54 }
  0x87   : > { %3178 = vrot.lane.b32.xlu1 %v3177_v57, %s3385_s6  ;;  %3173 = vrot.lane.b32.xlu0 %v3172_v32, %s3389_s16  ;;  %v3898_v57 = vrot.slane %v3878_v1, 2  ;;  %v272_v32 = vunpack.c.h.bf16 %v246_v37 }
  0x89   : > { %4742 = vst [vmem:[#allocation17_spill] sm:$0xff] %v3898_v57  ;;  %v3910_v30 = vmax.f32 %v272_v32, 0.0 }
  0x8b   : > { %3188 = vrot.lane.b32.xlu1 %v3187_v6, %s3387_s10  ;;  %3183 = vrot.lane.b32.xlu0 %v3182_v58, %s3390_s21  ;;  %v3197_v6 = vpack.i.bf16 %v3895_v50, %v397_v55  ;;  %v3908_v58 = vsel %vm290_vm1, %v673_v15, %v3898_v57  ;;  %v3207_v44 = vpack.i.bf16 %v3910_v30, %v343_v28 }
  0x8c   : > { %v3900_v46 = vpop.permute.xlu0 %2908  ;;  %4743 = vst [vmem:[#allocation18_spill] sm:$0xff] %v3908_v58  ;;  %v3202_v55 = vpack.i.bf16 %v3908_v58, %v3876_v8 }
  0x8d   : > { %v2904_v39 = vpop.permute.xlu1 %2903 }
  0x8e   : > { %v2906_v4 = vunpack.i.h.bf16 %v2904_v39 }
  0x8f   : > { %3193 = vrot.lane.b32.xlu1 %v3192_v13, %s3384_s26  ;;  %432 = vrot.lane.b32.xlu0 %v3795_v2, %s3385_s6  ;;  %v798_v2 = vrot.slane %v3910_v30, 1  ;;  %v3391_v13 = vmov 1983009808  }
  0x90   : > { %v1034_v11 = vunpack.c.l.s4 %v3391_v13 }
  0x91   : > { %v3914_v37 = vpop.permute.xlu1 %2923  ;;  %v2914_v29 = vpop.permute.xlu0 %2913 }
  0x92   : > { %v2916_v51 = vunpack.i.h.bf16 %v2914_v29  ;;  %v2915_v27 = vunpack.i.l.bf16 %v2914_v29 }
  0x93   : > { %3198 = vrot.lane.b32.xlu1 %v3197_v6, %s3386_s9  ;;  %522 = vrot.lane.b32.xlu0 %v3810_v36, %s3387_s10 }
  0x94   : > { %v867_v6 = vsel %vm864_vm2, %v3471_v18, %v2916_v51  ;;  %v865_v29 = vsel %vm864_vm2, %v3483_v22, %v2915_v27  ;;  %v1036_v51 = vlaneseq  ;;  %v2905_v22 = vunpack.i.l.bf16 %v2904_v39 }
  0x95   : > { %v2934_v49 = vpop.permute.xlu1 %2933  ;;  %v2919_v15 = vpop.permute.xlu0 %2918  ;;  %v2925_v39 = vunpack.i.l.bf16 %v3914_v37 }
  0x96   : > { %v2921_v32 = vunpack.i.h.bf16 %v2919_v15  ;;  %v2920_v45 = vunpack.i.l.bf16 %v2919_v15  ;;  %v4744_v15 = vrot.slane %v3912_v56, 1  ;;  %v2936_v57 = vunpack.i.h.bf16 %v2934_v49 }
  0x97   : > { %3203 = vrot.lane.b32.xlu1 %v3202_v55, %s3388_s13  ;;  %584 = vrot.lane.b32.xlu0 %v3828_v53, %s3384_s26  ;;  %v2935_v58 = vunpack.i.l.bf16 %v2934_v49  ;;  %v3942_v13 = vshrl.u32 %v1036_v51, 7 }
  0x98   : > { %v886_v3 = vsel %vm885_vm3, %v865_v29, %v2920_v45  ;;  %v888_v10 = vsel %vm885_vm3, %v867_v6, %v2921_v32  ;;  %v800_v18 = vsel %vm367_vm0, %v798_v2, %v4744_v15  ;;  %v1035_v2 = vunpack.c.0.s8 %v1034_v11 }
  0x99   : > { %v2939_v27 = vpop.permute.xlu1 %2938  ;;  %v2929_v55 = vpop.permute.xlu0 %2928  ;;  %v907_v53 = vsel %vm906_vm4, %v886_v3, %v2905_v22  ;;  %v909_v28 = vsel %vm906_vm4, %v888_v10, %v2906_v4  ;;  %v3212_v45 = vpack.i.bf16 %v800_v18, %v3895_v50  ;;  %4745 = vst [vmem:[#allocation19_spill] sm:$0xff] %v3942_v13 }
  0x9a   : > { %v2941_v32 = vunpack.i.h.bf16 %v2939_v27  ;;  %v2940_v6 = vunpack.i.l.bf16 %v2939_v27  ;;  %v928_v3 = vsel %vm927_vm5, %v907_v53, %v2935_v58  ;;  %v930_v4 = vsel %vm927_vm5, %v909_v28, %v2936_v57 }
  0x9b   : > { %3208 = vrot.lane.b32.xlu1 %v3207_v44, %s3389_s16  ;;  %647 = vrot.lane.b32.xlu0 %v3838_v48, %s3386_s9  ;;  %v2930_v10 = vunpack.i.l.bf16 %v2929_v55  ;;  %v2926_v44 = vunpack.i.h.bf16 %v3914_v37  ;;  %v2931_v11 = vunpack.i.h.bf16 %v2929_v55  ;;  %v3952_v50 = vsub.s32 %v1035_v2, %v3942_v13 }
  0x9c   : > { %v2910_v53 = vunpack.i.l.bf16 %v3900_v46  ;;  %v866_v57 = vsel %vm864_vm2, %v3477_v20, %v2925_v39  ;;  %v949_v58 = vsel %vm948_vm6, %v928_v3, %v2940_v6  ;;  %v951_v37 = vsel %vm948_vm6, %v930_v4, %v2941_v32 }
  0x9d   : > { %v2949_v49 = vpop.permute.xlu1 %2948  ;;  %v2944_v29 = vpop.permute.xlu0 %2943  ;;  %v887_v27 = vsel %vm885_vm3, %v866_v57, %v2930_v10  ;;  %v869_v2 = vsel %vm864_vm2, %v3475_v19, %v2926_v44  ;;  %v2911_v20 = vunpack.i.h.bf16 %v3900_v46 }
  0x9e   : > { %v2951_v15 = vunpack.i.h.bf16 %v2949_v49  ;;  %v2950_v22 = vunpack.i.l.bf16 %v2949_v49  ;;  %v2945_v28 = vunpack.i.l.bf16 %v2944_v29  ;;  %v890_v39 = vsel %vm885_vm3, %v869_v2, %v2931_v11 }
  0x9f   : > { %3213 = vrot.lane.b32.xlu1 %v3212_v45, %s3390_s21  ;;  %710 = vrot.lane.b32.xlu0 %v3868_v31, %s3388_s13  ;;  %v908_v19 = vsel %vm906_vm4, %v887_v27, %v2910_v53 }
  0xa0   : > { %v970_v49 = vsel %vm969_vm7, %v949_v58, %v2950_v22  ;;  %v972_v48 = vsel %vm969_vm7, %v951_v37, %v2951_v15  ;;  %v2946_v22 = vunpack.i.h.bf16 %v2944_v29  ;;  %v929_v57 = vsel %vm927_vm5, %v908_v19, %v2945_v28 }
  0xa1   : > { %v2959_v18 = vpop.permute.xlu1 %2958  ;;  %v2954_v51 = vpop.permute.xlu0 %2953  ;;  %v911_v29 = vsel %vm906_vm4, %v890_v39, %v2911_v20 }
  0xa2   : > { %v2961_v55 = vunpack.i.h.bf16 %v2959_v18  ;;  %v2960_v45 = vunpack.i.l.bf16 %v2959_v18  ;;  %v2955_v13 = vunpack.i.l.bf16 %v2954_v51  ;;  %v4746_v18 = vrot.slane %v3912_v56, 1 }
  0xa3   : > { %772 = vrot.lane.b32.xlu0 %v3878_v1, %s3389_s16  ;;  %835 = vrot.lane.b32.xlu1 %v3887_v54, %s3390_s21 }
  0xa4   : > { %v991_v32 = vsel %vm990_vm8, %v970_v49, %v2960_v45  ;;  %v993_v6 = vsel %vm990_vm8, %v972_v48, %v2961_v55  ;;  %v2956_v48 = vunpack.i.h.bf16 %v2954_v51  ;;  %v950_v53 = vsel %vm948_vm6, %v929_v57, %v2955_v13 }
  0xa5   : > { %v1031_v3 = vcombine.low %v991_v32, %v3544_v52  ;;  %v1032_v4 = vcombine.high %v991_v32, %v3544_v52  ;;  %v1057_v10 = vcombine.low %v993_v6, %v3584_v7  ;;  %v2969_v44 = vpop.permute.xlu1 %2968  ;;  %v2964_v15 = vpop.permute.xlu0 %2963  ;;  %v932_v49 = vsel %vm927_vm5, %v911_v29, %v2946_v22 }
  0xa6   : > { %v2970_v46 = vunpack.i.l.bf16 %v2969_v44  ;;  %v2965_v58 = vunpack.i.l.bf16 %v2964_v15  ;;  %v2966_v52 = vunpack.i.h.bf16 %v2964_v15  ;;  %v1058_v51 = vcombine.high %v993_v6, %v3584_v7 }
  0xa7   : > { %v1039_v11 = vrot.slane %v1031_v3, %v3952_v50  ;;  %v1046_v37 = vrot.slane %v1032_v4, %v3952_v50  ;;  %839 = vrot.lane.b32.xlu0 %v4746_v18, %s3390_s21  ;;  %v1065_v28 = vrot.slane %v1057_v10, %v3952_v50  ;;  %v953_v32 = vsel %vm948_vm6, %v932_v49, %v2956_v48 }
  0xa8   : > { %v971_v27 = vsel %vm969_vm7, %v950_v53, %v2965_v58  ;;  %v2971_v19 = vunpack.i.h.bf16 %v2969_v44  ;;  %v974_v15 = vsel %vm969_vm7, %v953_v32, %v2966_v52 }
  0xa9   : > { %v992_v55 = vsel %vm990_vm8, %v971_v27, %v2970_v46  ;;  %v2979_v45 = vpop.permute.xlu1 %2978  ;;  %v2974_v2 = vpop.permute.xlu0 %2973  ;;  %v1047_v3 = vcombine.high %v1039_v11, %v1039_v11  ;;  %v1048_v4 = vcombine.high %v1046_v37, %v1046_v37  ;;  %v1073_v57 = vcombine.high %v1065_v28, %v1065_v28 }
  0xaa   : > { %v1049_v13 = vcombine.low %v992_v55, %v3533_v47  ;;  %v3994_v46 = vrot.slane %v1058_v51, %v3952_v50  ;;  %v995_v22 = vsel %vm990_vm8, %v974_v15, %v2971_v19  ;;  %v2981_v49 = vunpack.i.h.bf16 %v2979_v45 }
  0xab   : > { %v1291_v7 = vcombine.low %v1039_v11, %v1047_v3  ;;  %v1292_v6 = vcombine.low %v1046_v37, %v1048_v4  ;;  %v1083_v52 = vcombine.low %v995_v22, %v3629_v41  ;;  %v1084_v27 = vcombine.high %v995_v22, %v3629_v41 }
  0xac   : > { %v1056_v20 = vrot.slane %v1049_v13, %v3952_v50  ;;  %v1310_v58 = vcombine.low %v1073_v57, %v3994_v46  ;;  %v2980_v11 = vunpack.i.l.bf16 %v2979_v45  ;;  %v2976_v37 = vunpack.i.h.bf16 %v2974_v2 }
  0xad   : > { %v2989_v39 = vpop.permute.xlu1 %2988  ;;  %v2984_v10 = vpop.permute.xlu0 %2983  ;;  %v1299_v53 = vrot.slane %v1291_v7, %v3952_v50  ;;  %v1306_v18 = vrot.slane %v1292_v6, %v3952_v50  ;;  %v4005_v15 = vrot.slane %v1083_v52, %v3952_v50  ;;  %v4008_v6 = vrot.slane %v1084_v27, %v3952_v50 }
  0xae   : > { %v1309_v47 = vcombine.low %v1056_v20, %v1065_v28  ;;  %v1324_v55 = vrot.slane %v1310_v58, %v3952_v50  ;;  %v2975_v28 = vunpack.i.l.bf16 %v2974_v2  ;;  %v2991_v20 = vunpack.i.h.bf16 %v2989_v39 }
  0xaf   : > { %v1308_v32 = vcombine.high %v1299_v53, %v1306_v18  ;;  %v1307_v3 = vcombine.low %v1299_v53, %v1306_v18  ;;  %v2990_v57 = vunpack.i.l.bf16 %v2989_v39  ;;  %v2985_v41 = vunpack.i.l.bf16 %v2984_v10 }
  0xb0   : > { %v1317_v29 = vrot.slane %v1309_v47, %v3952_v50  ;;  %v2986_v45 = vunpack.i.h.bf16 %v2984_v10  ;;  %v873_v2 = vsel %vm864_vm2, %v3567_v62, %v2981_v49  ;;  %v871_v47 = vsel %vm864_vm2, %v3469_v17, %v2980_v11 }
  0xb1   : > { %v2999_v44 = vpop.permute.xlu1 %2998  ;;  %v2994_v48 = vpop.permute.xlu0 %2993  ;;  %v870_v58 = vsel %vm864_vm2, %v3481_v21, %v2976_v37  ;;  %v868_v53 = vsel %vm864_vm2, %v3465_v16, %v2975_v28  ;;  %v1099_v62 = vcombine.high %v4005_v15, %v4005_v15  ;;  %v892_v17 = vsel %vm885_vm3, %v871_v47, %v2990_v57 }
  0xb2   : > { %v1326_v19 = vcombine.high %v1317_v29, %v1324_v55  ;;  %v1325_v4 = vcombine.low %v1317_v29, %v1324_v55  ;;  %v3001_v52 = vunpack.i.h.bf16 %v2999_v44  ;;  %v3000_v27 = vunpack.i.l.bf16 %v2999_v44 }
  0xb3   : > { %v2996_v29 = vunpack.i.h.bf16 %v2994_v48  ;;  %v2995_v10 = vunpack.i.l.bf16 %v2994_v48  ;;  %v894_v55 = vsel %vm885_vm3, %v873_v2, %v2991_v20  ;;  %v889_v21 = vsel %vm885_vm3, %v868_v53, %v2985_v41 }
  0xb4   : > { %v1543_v22 = vpack.c.bf16 %v1326_v19, %v1308_v32  ;;  %v1542_v7 = vpack.c.bf16 %v1325_v4, %v1307_v3  ;;  %v891_v16 = vsel %vm885_vm3, %v870_v58, %v2986_v45  ;;  %v913_v4 = vsel %vm906_vm4, %v892_v17, %v3000_v27 }
  0xb5   : > { %v3009_v51 = vpop.permute.xlu1 %3008  ;;  %v3004_v13 = vpop.permute.xlu0 %3003  ;;  %v910_v57 = vsel %vm906_vm4, %v889_v21, %v2995_v10  ;;  %v912_v20 = vsel %vm906_vm4, %v891_v16, %v2996_v29 }
  0xb6   : > { %2859 = vmatprep.mubr.msk.bf16.mxu0 %vm864_vm2, %v1543_v22  ;;  %v3010_v49 = vunpack.i.l.bf16 %v3009_v51  ;;  %v3006_v11 = vunpack.i.h.bf16 %v3004_v13  ;;  %v3005_v37 = vunpack.i.l.bf16 %v3004_v13  ;;  %v3011_v28 = vunpack.i.h.bf16 %v3009_v51 }
  0xb7   : > { %1689 = vmatmul.mubr.bf16.vlgmr.msra.gmra.mrb[0].mxu0 %v1542_v7  ;;  %v915_v22 = vsel %vm906_vm4, %v894_v55, %v3001_v52 }
  0xb8   : > { %v934_v13 = vsel %vm927_vm5, %v913_v4, %v3010_v49  ;;  %v931_v51 = vsel %vm927_vm5, %v910_v57, %v3005_v37  ;;  %v933_v47 = vsel %vm927_vm5, %v912_v20, %v3006_v11  ;;  %v936_v53 = vsel %vm927_vm5, %v915_v22, %v3011_v28 }
  0xb9   : > { %v3019_v39 = vpop.permute.xlu1 %3018  ;;  %v3014_v18 = vpop.permute.xlu0 %3013 }
  0xba   : > { %v3020_v32 = vunpack.i.l.bf16 %v3019_v39  ;;  %v3016_v44 = vunpack.i.h.bf16 %v3014_v18  ;;  %v3015_v19 = vunpack.i.l.bf16 %v3014_v18  ;;  %v3021_v41 = vunpack.i.h.bf16 %v3019_v39 }
  0xbc   : > { %v955_v18 = vsel %vm948_vm6, %v934_v13, %v3020_v32  ;;  %v952_v52 = vsel %vm948_vm6, %v931_v51, %v3015_v19  ;;  %v954_v27 = vsel %vm948_vm6, %v933_v47, %v3016_v44  ;;  %v957_v16 = vsel %vm948_vm6, %v936_v53, %v3021_v41 }
  0xbd   : > { %v3029_v48 = vpop.permute.xlu1 %3028  ;;  %v3024_v3 = vpop.permute.xlu0 %3023 }
  0xbe   : > { %v3030_v7 = vunpack.i.l.bf16 %v3029_v48  ;;  %v3026_v45 = vunpack.i.h.bf16 %v3024_v3  ;;  %v3025_v2 = vunpack.i.l.bf16 %v3024_v3  ;;  %v3031_v58 = vunpack.i.h.bf16 %v3029_v48 }
  0xbf   : > { %v1100_v48 = vcombine.high %v4008_v6, %v4008_v6 }
  0xc0   : > { %v976_v49 = vsel %vm969_vm7, %v955_v18, %v3030_v7  ;;  %v973_v11 = vsel %vm969_vm7, %v952_v52, %v3025_v2  ;;  %v975_v37 = vsel %vm969_vm7, %v954_v27, %v3026_v45  ;;  %v978_v28 = vsel %vm969_vm7, %v957_v16, %v3031_v58 }
  0xc1   : > { %v3039_v29 = vpop.permute.xlu1 %3038  ;;  %v3034_v39 = vpop.permute.xlu0 %3033  ;;  %v1074_v7 = vcombine.high %v3994_v46, %v3994_v46  ;;  %v1328_v2 = vcombine.low %v4005_v15, %v1099_v62  ;;  %v1345_v52 = vcombine.low %v4008_v6, %v1100_v48 }
  0xc2   : > { %v3041_v10 = vunpack.i.h.bf16 %v3039_v29  ;;  %v3040_v17 = vunpack.i.l.bf16 %v3039_v29  ;;  %v3036_v55 = vunpack.i.h.bf16 %v3034_v39  ;;  %v3035_v21 = vunpack.i.l.bf16 %v3034_v39 }
  0xc3   : > { %v1342_v39 = vrot.slane %v1328_v2, %v3952_v50 }
  0xc4   : > { %v997_v32 = vsel %vm990_vm8, %v976_v49, %v3040_v17  ;;  %v994_v44 = vsel %vm990_vm8, %v973_v11, %v3035_v21  ;;  %v996_v19 = vsel %vm990_vm8, %v975_v37, %v3036_v55  ;;  %v999_v3 = vsel %vm990_vm8, %v978_v28, %v3041_v10 }
  0xc5   : > { %v1109_v4 = vcombine.low %v997_v32, %v3680_v14  ;;  %v3049_v22 = vpop.permute.xlu1 %3048  ;;  %v3044_v57 = vpop.permute.xlu0 %3043  ;;  %v1075_v20 = vcombine.low %v994_v44, %v3563_v61  ;;  %v1101_v41 = vcombine.low %v996_v19, %v3615_v34  ;;  %v1135_v13 = vcombine.low %v999_v3, %v3741_v26 }
  0xc6   : > { %v3045_v58 = vunpack.i.l.bf16 %v3044_v57  ;;  %v1136_v53 = vcombine.high %v999_v3, %v3741_v26  ;;  %v3050_v61 = vunpack.i.l.bf16 %v3049_v22  ;;  %v3046_v29 = vunpack.i.h.bf16 %v3044_v57 }
  0xc7   : > { %v4053_v45 = vrot.slane %v1109_v4, %v3952_v50  ;;  %v1082_v51 = vrot.slane %v1075_v20, %v3952_v50  ;;  %v1108_v47 = vrot.slane %v1101_v41, %v3952_v50  ;;  %v1110_v62 = vcombine.high %v997_v32, %v3680_v14 }
  0xc8   : > { %v872_v15 = vsel %vm864_vm2, %v3487_v23, %v3045_v58  ;;  %v1143_v10 = vrot.slane %v1135_v13, %v3952_v50  ;;  %v3051_v17 = vunpack.i.h.bf16 %v3049_v22  ;;  %v1150_v21 = vrot.slane %v1136_v53, %v3952_v50 }
  0xc9   : > { %v3059_v18 = vpop.permute.xlu1 %3058  ;;  %v3054_v34 = vpop.permute.xlu0 %3053  ;;  %v1327_v46 = vcombine.low %v1074_v7, %v1082_v51  ;;  %v1346_v27 = vcombine.low %v1108_v47, %v4053_v45  ;;  %v893_v6 = vsel %vm885_vm3, %v872_v15, %v3050_v61  ;;  %v875_v23 = vsel %vm864_vm2, %v3633_v42, %v3046_v29 }
  0xca   : > { %v3060_v26 = vunpack.i.l.bf16 %v3059_v18  ;;  %v3055_v55 = vunpack.i.l.bf16 %v3054_v34  ;;  %v3056_v14 = vunpack.i.h.bf16 %v3054_v34  ;;  %v1353_v32 = vrot.slane %v1345_v52, %v3952_v50 }
  0xcb   : > { %v1335_v11 = vrot.slane %v1327_v46, %v3952_v50  ;;  %v1360_v37 = vrot.slane %v1346_v27, %v3952_v50  ;;  %v1124_v44 = vrot.slane %v1110_v62, %v3952_v50  ;;  %v1151_v41 = vcombine.high %v1143_v10, %v1143_v10 }
  0xcc   : > { %v914_v28 = vsel %vm906_vm4, %v893_v6, %v3055_v55  ;;  %v1152_v7 = vcombine.high %v1150_v21, %v1150_v21  ;;  %v896_v2 = vsel %vm885_vm3, %v875_v23, %v3051_v17  ;;  %v1125_v47 = vcombine.high %v4053_v45, %v4053_v45 }
  0xcd   : > { %v3069_v16 = vpop.permute.xlu1 %3068  ;;  %v3064_v49 = vpop.permute.xlu0 %3063  ;;  %v935_v3 = vsel %vm927_vm5, %v914_v28, %v3060_v26  ;;  %v1344_v4 = vcombine.high %v1335_v11, %v1342_v39  ;;  %v1362_v22 = vcombine.high %v1353_v32, %v1360_v37  ;;  %v1343_v57 = vcombine.low %v1335_v11, %v1342_v39 }
  0xce   : > { %v3070_v19 = vunpack.i.l.bf16 %v3069_v16  ;;  %v3065_v48 = vunpack.i.l.bf16 %v3064_v49  ;;  %v1361_v20 = vcombine.low %v1353_v32, %v1360_v37  ;;  %v3061_v58 = vunpack.i.h.bf16 %v3059_v18 }
  0xcf   : > { %v917_v53 = vsel %vm906_vm4, %v896_v2, %v3056_v14  ;;  %v3066_v34 = vunpack.i.h.bf16 %v3064_v49  ;;  %v1545_v46 = vpack.c.bf16 %v1362_v22, %v1344_v4  ;;  %v1381_v15 = vcombine.low %v1143_v10, %v1151_v41 }
  0xd0   : > { %v956_v42 = vsel %vm948_vm6, %v935_v3, %v3065_v48  ;;  %v1544_v27 = vpack.c.bf16 %v1361_v20, %v1343_v57  ;;  %v1382_v62 = vcombine.low %v1150_v21, %v1152_v7  ;;  %v1126_v45 = vcombine.high %v1124_v44, %v1124_v44 }
  0xd1   : > { %v3079_v13 = vpop.permute.xlu1 %3078  ;;  %v3074_v51 = vpop.permute.xlu0 %3073  ;;  %v977_v52 = vsel %vm969_vm7, %v956_v42, %v3070_v19  ;;  %2860 = vmatprep.mubr.msk.bf16.mxu0 %vm864_vm2, %v1545_v46  ;;  %v3071_v18 = vunpack.i.h.bf16 %v3069_v16  ;;  %v938_v55 = vsel %vm927_vm5, %v917_v53, %v3061_v58  ;;  %v1363_v6 = vcombine.low %v1125_v47, %v1124_v44 }
  0xd2   : > { %v3080_v61 = vunpack.i.l.bf16 %v3079_v13  ;;  %1697 = vmatmul.mubr.bf16.gmra.mrb[4].mxu0 %v1544_v27  ;;  %v959_v49 = vsel %vm948_vm6, %v938_v55, %v3066_v34  ;;  %v3081_v11 = vunpack.i.h.bf16 %v3079_v13  ;;  %v1396_v14 = vrot.slane %v1382_v62, %v3952_v50 }
  0xd3   : > { %v980_v28 = vsel %vm969_vm7, %v959_v49, %v3071_v18  ;;  %v1371_v32 = vrot.slane %v1363_v6, %v3952_v50  ;;  %v3076_v41 = vunpack.i.h.bf16 %v3074_v51  ;;  %v3075_v7 = vunpack.i.l.bf16 %v3074_v51 }
  0xd4   : > { %v998_v29 = vsel %vm990_vm8, %v977_v52, %v3080_v61  ;;  %v1001_v16 = vsel %vm990_vm8, %v980_v28, %v3081_v11 }
  0xd5   : > { %v1127_v39 = vcombine.low %v998_v29, %v3671_v0  ;;  %v3089_v17 = vpop.permute.xlu1 %3088  ;;  %v3084_v26 = vpop.permute.xlu0 %3083  ;;  %v1389_v0 = vrot.slane %v1381_v15, %v3952_v50  ;;  %v1161_v20 = vcombine.low %v1001_v16, %v3777_v12  ;;  %v1162_v13 = vcombine.high %v1001_v16, %v3777_v12 }
  0xd6   : > { %v3091_v47 = vunpack.i.h.bf16 %v3089_v17  ;;  %v3090_v58 = vunpack.i.l.bf16 %v3089_v17  ;;  %v3086_v53 = vunpack.i.h.bf16 %v3084_v26  ;;  %v3085_v46 = vunpack.i.l.bf16 %v3084_v26 }
  0xd7   : > { %v1134_v37 = vrot.slane %v1127_v39, %v3952_v50  ;;  %v1398_v4 = vcombine.high %v1389_v0, %v1396_v14  ;;  %v1397_v57 = vcombine.low %v1389_v0, %v1396_v14  ;;  %v4101_v52 = vrot.slane %v1161_v20, %v3952_v50 }
  0xd8   : > { %v874_v51 = vsel %vm864_vm2, %v3571_v63, %v3076_v41  ;;  %v877_v29 = vsel %vm864_vm2, %v3684_v24, %v3075_v7  ;;  %v4108_v62 = vrot.slane %v1162_v13, %v3952_v50  ;;  %v879_v39 = vsel %vm864_vm2, %v3724_v35, %v3091_v47 }
  0xd9   : > { %v1364_v23 = vcombine.low %v1126_v45, %v1134_v37  ;;  %v3099_v10 = vpop.permute.xlu1 %3098  ;;  %v3094_v21 = vpop.permute.xlu0 %3093  ;;  %v876_v26 = vsel %vm864_vm2, %v3637_v43, %v3090_v58  ;;  %v895_v18 = vsel %vm885_vm3, %v874_v51, %v3086_v53  ;;  %v1177_v24 = vcombine.high %v4101_v52, %v4101_v52 }
  0xda   : > { %v3100_v27 = vunpack.i.l.bf16 %v3099_v10  ;;  %v3101_v12 = vunpack.i.h.bf16 %v3099_v10  ;;  %v3096_v15 = vunpack.i.h.bf16 %v3094_v21  ;;  %v3095_v17 = vunpack.i.l.bf16 %v3094_v21 }
  0xdb   : > { %v1378_v44 = vrot.slane %v1364_v23, %v3952_v50  ;;  %v898_v11 = vsel %vm885_vm3, %v877_v29, %v3085_v46 }
  0xdc   : > { %v897_v37 = vsel %vm885_vm3, %v876_v26, %v3100_v27  ;;  %v900_v35 = vsel %vm885_vm3, %v879_v39, %v3101_v12  ;;  %v916_v10 = vsel %vm906_vm4, %v895_v18, %v3096_v15  ;;  %v919_v0 = vsel %vm906_vm4, %v898_v11, %v3095_v17 }
  0xdd   : > { %v4095_v19 = vpop.permute.xlu1 %3108  ;;  %v3104_v48 = vpop.permute.xlu0 %3103  ;;  %v1380_v3 = vcombine.high %v1371_v32, %v1378_v44  ;;  %v1379_v22 = vcombine.low %v1371_v32, %v1378_v44 }
  0xde   : > { %v3106_v45 = vunpack.i.h.bf16 %v3104_v48  ;;  %v3105_v55 = vunpack.i.l.bf16 %v3104_v48  ;;  %v3111_v14 = vunpack.i.h.bf16 %v4095_v19  ;;  %v3110_v28 = vunpack.i.l.bf16 %v4095_v19 }
  0xdf   : > { %v1547_v2 = vpack.c.bf16 %v1398_v4, %v1380_v3  ;;  %v1546_v42 = vpack.c.bf16 %v1397_v57, %v1379_v22 }
  0xe0   : > { %v937_v16 = vsel %vm927_vm5, %v916_v10, %v3106_v45  ;;  %v940_v32 = vsel %vm927_vm5, %v919_v0, %v3105_v55  ;;  %v918_v47 = vsel %vm906_vm4, %v897_v37, %v3110_v28  ;;  %v1178_v0 = vcombine.high %v4108_v62, %v4108_v62 }
  0xe1   : > { %v3119_v61 = vpop.permute.xlu1 %3118  ;;  %v3114_v34 = vpop.permute.xlu0 %3113  ;;  %2861 = vmatprep.mubr.msk.bf16.mxu0 %vm864_vm2, %v1547_v2 }
  0xe2   : > { %1705 = vmatmul.mubr.bf16.gmra.mrb[8].mxu0 %v1546_v42  ;;  %v3116_v63 = vunpack.i.h.bf16 %v3114_v34  ;;  %v3115_v23 = vunpack.i.l.bf16 %v3114_v34  ;;  %v3121_v44 = vunpack.i.h.bf16 %v3119_v61  ;;  %v3120_v48 = vunpack.i.l.bf16 %v3119_v61 }
  0xe3   : > { %v921_v34 = vsel %vm906_vm4, %v900_v35, %v3111_v14  ;;  %v1400_v14 = vcombine.low %v1177_v24, %v4108_v62 }
  0xe4   : > { %v958_v3 = vsel %vm948_vm6, %v937_v16, %v3116_v63  ;;  %v961_v57 = vsel %vm948_vm6, %v940_v32, %v3115_v23  ;;  %v939_v46 = vsel %vm927_vm5, %v918_v47, %v3120_v48  ;;  %v942_v15 = vsel %vm927_vm5, %v921_v34, %v3121_v44 }
  0xe5   : > { %v3129_v6 = vpop.permute.xlu1 %3128  ;;  %v3124_v49 = vpop.permute.xlu0 %3123 }
  0xe6   : > { %v3126_v21 = vunpack.i.h.bf16 %v3124_v49  ;;  %v3125_v43 = vunpack.i.l.bf16 %v3124_v49  ;;  %v3130_v20 = vunpack.i.l.bf16 %v3129_v6  ;;  %v3131_v2 = vunpack.i.h.bf16 %v3129_v6 }
  0xe8   : > { %v979_v42 = vsel %vm969_vm7, %v958_v3, %v3126_v21  ;;  %v982_v19 = vsel %vm969_vm7, %v961_v57, %v3125_v43  ;;  %v960_v39 = vsel %vm948_vm6, %v939_v46, %v3130_v20  ;;  %v963_v26 = vsel %vm948_vm6, %v942_v15, %v3131_v2 }
  0xe9   : > { %v3139_v4 = vpop.permute.xlu1 %3138  ;;  %v3134_v22 = vpop.permute.xlu0 %3133 }
  0xea   : > { %v3136_v41 = vunpack.i.h.bf16 %v3134_v22  ;;  %v3135_v7 = vunpack.i.l.bf16 %v3134_v22  ;;  %v3140_v13 = vunpack.i.l.bf16 %v3139_v4  ;;  %v3141_v58 = vunpack.i.h.bf16 %v3139_v4 }
  0xec   : > { %v1000_v53 = vsel %vm990_vm8, %v979_v42, %v3136_v41  ;;  %v1003_v61 = vsel %vm990_vm8, %v982_v19, %v3135_v7  ;;  %v981_v18 = vsel %vm969_vm7, %v960_v39, %v3140_v13 }
  0xed   : > { %v1153_v27 = vcombine.low %v1000_v53, %v3728_v5  ;;  %v1187_v51 = vcombine.low %v1003_v61, %v3820_v40  ;;  %v3149_v29 = vpop.permute.xlu1 %3148  ;;  %v3144_v12 = vpop.permute.xlu0 %3143  ;;  %v984_v5 = vsel %vm969_vm7, %v963_v26, %v3141_v58  ;;  %v1188_v28 = vcombine.high %v1003_v61, %v3820_v40 }
  0xee   : > { %v3146_v17 = vunpack.i.h.bf16 %v3144_v12  ;;  %v3145_v45 = vunpack.i.l.bf16 %v3144_v12  ;;  %v3151_v11 = vunpack.i.h.bf16 %v3149_v29  ;;  %v3150_v37 = vunpack.i.l.bf16 %v3149_v29 }
  0xef   : > { %v1160_v55 = vrot.slane %v1153_v27, %v3952_v50  ;;  %v1195_v63 = vrot.slane %v1187_v51, %v3952_v50  ;;  %v1202_v7 = vrot.slane %v1188_v28, %v3952_v50 }
  0xf0   : > { %v1002_v6 = vsel %vm990_vm8, %v981_v18, %v3145_v45  ;;  %v1005_v23 = vsel %vm990_vm8, %v984_v5, %v3146_v17  ;;  %v880_v4 = vsel %vm864_vm2, %v3732_v9, %v3151_v11  ;;  %v1414_v9 = vrot.slane %v1400_v14, %v3952_v50 }
  0xf1   : > { %v1203_v49 = vcombine.high %v1195_v63, %v1195_v63  ;;  %v3159_v35 = vpop.permute.xlu1 %3158  ;;  %v3154_v10 = vpop.permute.xlu0 %3153  ;;  %v1399_v21 = vcombine.low %v1160_v55, %v4101_v52  ;;  %v1179_v43 = vcombine.low %v1002_v6, %v3767_v59  ;;  %v1213_v44 = vcombine.low %v1005_v23, %v3876_v8 }
  0xf2   : > { %v3156_v16 = vunpack.i.h.bf16 %v3154_v10  ;;  %v3155_v3 = vunpack.i.l.bf16 %v3154_v10  ;;  %v878_v59 = vsel %vm864_vm2, %v3688_v25, %v3150_v37  ;;  %v3161_v52 = vunpack.i.h.bf16 %v3159_v35 }
  0xf3   : > { %v1418_v32 = vcombine.low %v1195_v63, %v1203_v49  ;;  %v1186_v48 = vrot.slane %v1179_v43, %v3952_v50  ;;  %v3160_v22 = vunpack.i.l.bf16 %v3159_v35  ;;  %v1407_v41 = vrot.slane %v1399_v21, %v3952_v50 }
  0xf4   : > { %v901_v40 = vsel %vm885_vm3, %v880_v4, %v3156_v16  ;;  %v899_v24 = vsel %vm885_vm3, %v878_v59, %v3155_v3  ;;  %v1214_v19 = vcombine.high %v1005_v23, %v3876_v8  ;;  %v1221_v25 = vrot.slane %v1213_v44, %v3952_v50 }
  0xf5   : > { %v3169_v57 = vpop.permute.xlu1 %3168  ;;  %v3164_v20 = vpop.permute.xlu0 %3163  ;;  %v1417_v62 = vcombine.low %v1178_v0, %v1186_v48  ;;  %v1432_v47 = vrot.slane %v1418_v32, %v3952_v50  ;;  %v920_v61 = vsel %vm906_vm4, %v899_v24, %v3160_v22  ;;  %v922_v34 = vsel %vm906_vm4, %v901_v40, %v3161_v52 }
  0xf6   : > { %v3166_v2 = vunpack.i.h.bf16 %v3164_v20  ;;  %v3165_v42 = vunpack.i.l.bf16 %v3164_v20  ;;  %v3171_v58 = vunpack.i.h.bf16 %v3169_v57  ;;  %v3170_v53 = vunpack.i.l.bf16 %v3169_v57 }
  0xf7   : > { %v1425_v13 = vrot.slane %v1417_v62, %v3952_v50  ;;  %v1416_v8 = vcombine.high %v1407_v41, %v1414_v9  ;;  %v1415_v12 = vcombine.low %v1407_v41, %v1414_v9  ;;  %v1204_v26 = vcombine.high %v1202_v7, %v1202_v7 }
  0xf8   : > { %v941_v51 = vsel %vm927_vm5, %v920_v61, %v3165_v42  ;;  %v943_v29 = vsel %vm927_vm5, %v922_v34, %v3166_v2  ;;  %v1228_v23 = vrot.slane %v1214_v19, %v3952_v50  ;;  %v1229_v35 = vcombine.high %v1221_v25, %v1221_v25 }
  0xf9   : > { %v4169_v46 = vpop.permute.xlu1 %3178  ;;  %v3174_v27 = vpop.permute.xlu0 %3173  ;;  %v1434_v17 = vcombine.high %v1425_v13, %v1432_v47  ;;  %v1433_v45 = vcombine.low %v1425_v13, %v1432_v47  ;;  %v962_v6 = vsel %vm948_vm6, %v941_v51, %v3170_v53  ;;  %v964_v49 = vsel %vm948_vm6, %v943_v29, %v3171_v58 }
  0xfa   : > { %v3176_v15 = vunpack.i.h.bf16 %v3174_v27  ;;  %v3175_v39 = vunpack.i.l.bf16 %v3174_v27  ;;  %v1435_v44 = vcombine.low %v1202_v7, %v1204_v26  ;;  %v1230_v48 = vcombine.high %v1228_v23, %v1228_v23 }
  0xfb   : > { %v1549_v63 = vpack.c.bf16 %v1434_v17, %v1416_v8  ;;  %v1548_v5 = vpack.c.bf16 %v1433_v45, %v1415_v12  ;;  %v1453_v3 = vcombine.low %v1229_v35, %v1228_v23  ;;  %v3181_v13 = vunpack.i.h.bf16 %v4169_v46 }
  0xfc   : > { %v983_v10 = vsel %vm969_vm7, %v962_v6, %v3175_v39  ;;  %v985_v21 = vsel %vm969_vm7, %v964_v49, %v3176_v15  ;;  %v1443_v62 = vrot.slane %v1435_v44, %v3952_v50  ;;  %v861_v15 = vrot.slane %v3910_v30, 2 }
  0xfd   : > { %v3189_v18 = vpop.permute.xlu1 %3188  ;;  %v3184_v55 = vpop.permute.xlu0 %3183  ;;  %2862 = vmatprep.mubr.msk.bf16.mxu0 %vm864_vm2, %v1549_v63  ;;  %v862_v39 = vrot.slane %v3912_v56, 2  ;;  %v883_v17 = vsel %vm864_vm2, %v3824_v60, %v3181_v13 }
  0xfe   : > { %v3186_v11 = vunpack.i.h.bf16 %v3184_v55  ;;  %v3185_v37 = vunpack.i.l.bf16 %v3184_v55  ;;  %1713 = vmatmul.mubr.bf16.gmra.mrb[12].mxu0 %v1548_v5  ;;  %v3191_v47 = vunpack.i.h.bf16 %v3189_v18  ;;  %v3190_v58 = vunpack.i.l.bf16 %v3189_v18 }
 0x100   : > { %v1004_v43 = vsel %vm990_vm8, %v983_v10, %v3185_v37  ;;  %v1006_v0 = vsel %vm990_vm8, %v985_v21, %v3186_v11  ;;  %v904_v55 = vsel %vm885_vm3, %v883_v17, %v3191_v47  ;;  %v863_v37 = vsel %vm290_vm1, %v861_v15, %v862_v39 }
 0x101   : > { %v1205_v14 = vcombine.low %v1004_v43, %v3810_v36  ;;  %v1231_v28 = vcombine.low %v1006_v0, %v3868_v31  ;;  %v3194_v16 = vpop.permute.xlu1 %3193  ;;  %v433_v32 = vpop.permute.xlu0 %432  ;;  %v1461_v36 = vrot.slane %v1453_v3, %v3952_v50 }
 0x102   : > { %v3196_v34 = vunpack.i.h.bf16 %v3194_v16  ;;  %v3195_v27 = vunpack.i.l.bf16 %v3194_v16  ;;  %v882_v49 = vsel %vm864_vm2, %v3785_v33, %v433_v32 }
 0x103   : > { %v1212_v4 = vrot.slane %v1205_v14, %v3952_v50  ;;  %v1238_v59 = vrot.slane %v1231_v28, %v3952_v50 }
 0x104   : > { %v925_v30 = vsel %vm906_vm4, %v904_v55, %v3196_v34 }
 0x105   : > { %v1436_v52 = vcombine.low %v1212_v4, %v1221_v25  ;;  %v1454_v22 = vcombine.low %v1230_v48, %v1238_v59  ;;  %v3199_v57 = vpop.permute.xlu1 %3198  ;;  %v523_v20 = vpop.permute.xlu0 %522  ;;  %v3180_v25 = vunpack.i.l.bf16 %v4169_v46  ;;  %v4747_v48 = vld [vmem:[#allocation18_spill] sm:$0xff] }
 0x106   : > { %v3201_v51 = vunpack.i.h.bf16 %v3199_v57  ;;  %v3200_v29 = vunpack.i.l.bf16 %v3199_v57  ;;  %v903_v11 = vsel %vm885_vm3, %v882_v49, %v523_v20  ;;  %v4749_v49 = vmov 0  }
 0x107   : > { %v1450_v40 = vrot.slane %v1436_v52, %v3952_v50  ;;  %v1468_v24 = vrot.slane %v1454_v22, %v3952_v50  ;;  %v881_v46 = vsel %vm864_vm2, %v3781_v38, %v3180_v25 }
 0x108   : > { %v902_v18 = vsel %vm885_vm3, %v881_v46, %v3190_v58  ;;  %v946_v38 = vsel %vm927_vm5, %v925_v30, %v3201_v51  ;;  %v3367_v30 = vld [vmem:[%s4682_s3 + $0x8] sm:$0xff]  }
 0x109   : > { %v3204_v41 = vpop.permute.xlu1 %3203  ;;  %v585_v7 = vpop.permute.xlu0 %584  ;;  %v1452_v2 = vcombine.high %v1443_v62, %v1450_v40  ;;  %v1470_v42 = vcombine.high %v1461_v36, %v1468_v24  ;;  %v1451_v9 = vcombine.low %v1443_v62, %v1450_v40  ;;  %v1469_v19 = vcombine.low %v1461_v36, %v1468_v24 }
 0x10a   : > { %v3206_v45 = vunpack.i.h.bf16 %v3204_v41  ;;  %v3205_v26 = vunpack.i.l.bf16 %v3204_v41  ;;  %v923_v6 = vsel %vm906_vm4, %v902_v18, %v3195_v27  ;;  %v924_v33 = vsel %vm906_vm4, %v903_v11, %v585_v7  ;;  %v4748_v41 = vld [vmem:[#allocation17_spill] sm:$0xff] }
 0x10b   : > { %v1551_v53 = vpack.c.bf16 %v1470_v42, %v1452_v2  ;;  %v1550_v61 = vpack.c.bf16 %v1469_v19, %v1451_v9  ;;  %v944_v60 = vsel %vm927_vm5, %v923_v6, %v3200_v29  ;;  %v4243_v6 = vld [vmem:[%s4681_s2] ss:$0 sm:$0xff] }
 0x10c   : > { %v965_v10 = vsel %vm948_vm6, %v944_v60, %v3205_v26  ;;  %v967_v21 = vsel %vm948_vm6, %v946_v38, %v3206_v45  ;;  %v3368_v38 = vld [vmem:[%s4682_s3 + $0x10] sm:$0xff]  }
 0x10d   : > { %v3209_v8 = vpop.permute.xlu1 %3208  ;;  %v648_v12 = vpop.permute.xlu0 %647  ;;  %2863 = vmatprep.mubr.msk.bf16.mxu0 %vm864_vm2, %v1551_v53 }
 0x10e   : > { %1721 = vmatmul.mubr.bf16.gmra.mrb[16].mxu0 %v1550_v61  ;;  %v3211_v63 = vunpack.i.h.bf16 %v3209_v8  ;;  %v3210_v5 = vunpack.i.l.bf16 %v3209_v8  ;;  %v945_v16 = vsel %vm927_vm5, %v924_v33, %v648_v12 }
 0x110   : > { %v986_v14 = vsel %vm969_vm7, %v965_v10, %v3210_v5  ;;  %v988_v28 = vsel %vm969_vm7, %v967_v21, %v3211_v63  ;;  %v3366_v5 = vld [vmem:[%s4682_s3] sm:$0xff]  }
 0x111   : > { %v3214_v23 = vpop.permute.xlu1 %3213  ;;  %v711_v35 = vpop.permute.xlu0 %710  ;;  %2697 = vmatpush1.bf16.msra.mxu1 %v3366_v5 }
 0x112   : > { %v3216_v43 = vunpack.i.h.bf16 %v3214_v23  ;;  %v3215_v0 = vunpack.i.l.bf16 %v3214_v23  ;;  %v966_v52 = vsel %vm948_vm6, %v945_v16, %v711_v35  ;;  %2698 = vmatprep.subr.bf16.mxu1 %v4749_v49 }
 0x114   : > { %v1007_v32 = vsel %vm990_vm8, %v986_v14, %v3215_v0  ;;  %v1009_v44 = vsel %vm990_vm8, %v988_v28, %v3216_v43 }
 0x115   : > { %v1239_v3 = vcombine.low %v1007_v32, %v4747_v48  ;;  %v1240_v4 = vcombine.high %v1007_v32, %v4747_v48  ;;  %v1265_v59 = vcombine.low %v1009_v44, %v863_v37  ;;  %v773_v22 = vpop.permute.xlu0 %772  ;;  %v836_v57 = vpop.permute.xlu1 %835  ;;  %v1266_v20 = vcombine.high %v1009_v44, %v863_v37  ;;  %2699 = vmatpush1.bf16.msra.mxu1 %v3367_v30  ;;  %v4750_v44 = vld [vmem:[#allocation19_spill] sm:$0xff] }
 0x116   : > { %v987_v62 = vsel %vm969_vm7, %v966_v52, %v773_v22  ;;  %2700 = vmatprep.subr.bf16.mxu1 %v4749_v49  ;;  %v4260_v48 = vadd.s32 8, %v4750_v44  ;;  %vm1985_vm10 = vcmp.ge.s32.totalorder %v4750_v44, 1 }
 0x117   : > { %v1247_v40 = vrot.slane %v1239_v3, %v3952_v50  ;;  %v1254_v36 = vrot.slane %v1240_v4, %v3952_v50  ;;  %v1008_v24 = vsel %vm990_vm8, %v987_v62, %v836_v57  ;;  %v1273_v2 = vrot.slane %v1265_v59, %v3952_v50 }
 0x118   : > { %v1257_v7 = vcombine.low %v1008_v24, %v4748_v41  ;;  %v4228_v19 = vrot.slane %v1266_v20, %v3952_v50  ;;  %vm1992_vm9 = vcmp.le.s32.totalorder %v4260_v48, 8  ;;  %v3369_v24 = vld [vmem:[%s4682_s3 + $0x18] sm:$0xff]  }
 0x119   : > { %v1255_v42 = vcombine.high %v1247_v40, %v1247_v40  ;;  %v1256_v9 = vcombine.high %v1254_v36, %v1254_v36  ;;  %v1281_v25 = vcombine.high %v1273_v2, %v1273_v2  ;;  %2701 = vmatpush1.bf16.msra.mxu1 %v3368_v38 }
 0x11a   : > { %v1264_v13 = vrot.slane %v1257_v7, %v3952_v50  ;;  %2702 = vmatprep.subr.bf16.mxu1 %v4749_v49 }
 0x11b   : > { %v1471_v47 = vcombine.low %v1247_v40, %v1255_v42  ;;  %v1472_v58 = vcombine.low %v1254_v36, %v1256_v9  ;;  %v1490_v61 = vcombine.low %v1281_v25, %v4228_v19 }
 0x11c   : > { %v1489_v53 = vcombine.low %v1264_v13, %v1273_v2 }
 0x11d   : > { %v1479_v34 = vrot.slane %v1471_v47, %v3952_v50  ;;  %v1486_v27 = vrot.slane %v1472_v58, %v3952_v50  ;;  %v1504_v29 = vrot.slane %v1490_v61, %v3952_v50  ;;  %2703 = vmatpush1.bf16.msra.mxu1 %v3369_v24 }
 0x11e   : > { %v1497_v51 = vrot.slane %v1489_v53, %v3952_v50  ;;  %2704 = vmatprep.subr.bf16.mxu1 %v4749_v49 }
 0x11f   : > { %v1488_v8 = vcombine.high %v1479_v34, %v1486_v27  ;;  %v1487_v12 = vcombine.low %v1479_v34, %v1486_v27  ;;  %v3370_v27 = vld [vmem:[%s4682_s3 + $0x20] sm:$0xff]  }
 0x120   : > { %v1506_v15 = vcombine.high %v1497_v51, %v1504_v29  ;;  %v1505_v17 = vcombine.low %v1497_v51, %v1504_v29 }
 0x121   : > { %2705 = vmatpush1.bf16.msra.mxu1 %v3370_v27 }
 0x122   : > { %v1553_v46 = vpack.c.bf16 %v1506_v15, %v1488_v8  ;;  %v1552_v45 = vpack.c.bf16 %v1505_v17, %v1487_v12  ;;  %v3392_v15 = vmov 0.0   ;;  %2706 = vmatprep.subr.bf16.mxu1 %v4749_v49 }
 0x123   : > { %v4288_v17 = vrot.slane %v3392_v15, 2 }
 0x124   : > { %2864 = vmatprep.mubr.msk.bf16.mxu0 %vm864_vm2, %v1553_v46 }
 0x125   : > { %1729 = vmatmul.mubr.bf16.gmra.mrb[20].mxu0 %v1552_v45 }
 0x18a   : > { %v1690_v26 = vpop.f32.mrb[0].mxu0 }
 0x18b   : > { %v1692_v18 = vpop.f32.mrb[1].mxu0 }
 0x18c   : > { %v1693_v55 = vpop.f32.mrb[2].mxu0 }
 0x18d   : > { %v1695_v63 = vpop.f32.mrb[3].mxu0  ;;  %v1694_v60 = vadd.f32 %v4243_v6, %v1693_v55  ;;  %v4293_v55 = vrot.slane %v3392_v15, 1 }
 0x18f   : > { %v1745_v11 = vmax.f32 %v1694_v60, 0.0 }
 0x191   : > { %v1787_v37 = vcombine.high %v1745_v11, %v1745_v11  ;;  %v1794_v23 = vrot.slane %v1745_v11, %v3952_v50 }
 0x193   : > { %v1801_v35 = vrot.slane %v1787_v37, %v3952_v50  ;;  %v1802_v10 = vcombine.high %v1794_v23, %v1794_v23 }
 0x195   : > { %v2029_v32 = vcombine.low %v1802_v10, %v1801_v35  ;;  %v1803_v3 = vcombine.high %v1801_v35, %v1801_v35  ;;  %v3371_v10 = vld [vmem:[%s4682_s3 + $0x28] sm:$0xff]  }
 0x196   : > { %2707 = vmatpush1.bf16.msra.mxu1 %v3371_v10 }
 0x197   : > { %v2037_v40 = vrot.slane %v2029_v32, %v3952_v50  ;;  %2708 = vmatprep.subr.bf16.mxu1 %v4749_v49 }
 0x1a5   : > { %v1698_v21 = vpop.f32.mrb[4].mxu0 }
 0x1a6   : > { %v1699_v43 = vadd.f32 %v4243_v6, %v1698_v21  ;;  %v1700_v0 = vpop.f32.mrb[5].mxu0 }
 0x1a7   : > { %v1701_v33 = vpop.f32.mrb[6].mxu0 }
 0x1a8   : > { %v1746_v14 = vmax.f32 %v1699_v43, 0.0  ;;  %v1702_v28 = vadd.f32 %v4243_v6, %v1701_v33  ;;  %v1703_v16 = vpop.f32.mrb[7].mxu0 }
 0x1aa   : > { %v1804_v4 = vcombine.high %v1746_v14, %v1746_v14  ;;  %v1811_v59 = vrot.slane %v1746_v14, %v3952_v50  ;;  %v1747_v52 = vmax.f32 %v1702_v28, 0.0 }
 0x1ac   : > { %v1818_v22 = vrot.slane %v1804_v4, %v3952_v50  ;;  %v1819_v57 = vcombine.high %v1811_v59, %v1811_v59  ;;  %v2030_v20 = vcombine.low %v1803_v3, %v1811_v59  ;;  %v1821_v62 = vcombine.high %v1747_v52, %v1747_v52  ;;  %v3372_v59 = vld [vmem:[%s4682_s3 + $0x30] sm:$0xff]  }
 0x1ad   : > { %v1828_v36 = vrot.slane %v1747_v52, %v3952_v50  ;;  %2709 = vmatpush1.bf16.msra.mxu1 %v3372_v59 }
 0x1ae   : > { %v1820_v7 = vcombine.high %v1818_v22, %v1818_v22  ;;  %v2044_v2 = vrot.slane %v2030_v20, %v3952_v50  ;;  %v2052_v42 = vrot.slane %v1819_v57, %v3952_v50  ;;  %v1835_v9 = vrot.slane %v1821_v62, %v3952_v50  ;;  %2710 = vmatprep.subr.bf16.mxu1 %v4749_v49 }
 0x1af   : > { %v1836_v13 = vcombine.high %v1828_v36, %v1828_v36 }
 0x1b0   : > { %v2045_v25 = vcombine.low %v2037_v40, %v2044_v2  ;;  %v2053_v47 = vcombine.low %v1818_v22, %v1820_v7  ;;  %v2268_v58 = vsel %vm1992_vm9, %v2052_v42, 0.0  ;;  %v2076_v61 = vrot.slane %v1835_v9, %v3952_v50 }
 0x1b1   : > { %v2054_v53 = vcombine.low %v1828_v36, %v1836_v13  ;;  %v2353_v18 = vrot.slane %v2268_v58, 2  ;;  %v1837_v5 = vcombine.high %v1835_v9, %v1835_v9  ;;  %v2305_v35 = vrot.slane %v2268_v58, 1  ;;  %v3373_v13 = vld [vmem:[%s4682_s3 + $0x38] sm:$0xff]  }
 0x1b2   : > { %v2061_v51 = vrot.slane %v2053_v47, %v3952_v50  ;;  %v4284_v29 = vsel %vm1985_vm10, %v2045_v25, 0.0  ;;  %v2270_v37 = vsel %vm1992_vm9, %v2076_v61, 0.0  ;;  %2711 = vmatpush1.bf16.msra.mxu1 %v3373_v13 }
 0x1b3   : > { %v2068_v46 = vrot.slane %v2054_v53, %v3952_v50  ;;  %v2352_v26 = vrot.slane %v4284_v29, 2  ;;  %v2304_v38 = vrot.slane %v4284_v29, 1  ;;  %v2308_v52 = vrot.slane %v2270_v37, 1  ;;  %2712 = vmatprep.subr.bf16.mxu1 %v4749_v49 }
 0x1b4   : > { %v2356_v62 = vrot.slane %v2270_v37, 2 }
 0x1b5   : > { %v1706_v34 = vpop.f32.mrb[8].mxu0  ;;  %v2069_v11 = vcombine.low %v2061_v51, %v2068_v46  ;;  %v2354_v23 = vsel %vm290_vm1, %v2352_v26, %v2353_v18  ;;  %v2306_v28 = vsel %vm367_vm0, %v2304_v38, %v2305_v35 }
 0x1b6   : > { %v1707_v8 = vadd.f32 %v4243_v6, %v1706_v34  ;;  %v1708_v12 = vpop.f32.mrb[9].mxu0  ;;  %v3222_v33 = vpack.i.bf16 %v2354_v23, %v4288_v17  ;;  %v3217_v57 = vpack.i.bf16 %v2306_v28, %v4293_v55 }
 0x1b7   : > { %v1709_v45 = vpop.f32.mrb[10].mxu0  ;;  %v4308_v14 = vsel %vm1985_vm10, %v2069_v11, 0.0 }
 0x1b8   : > { %v1748_v63 = vmax.f32 %v1707_v8, 0.0  ;;  %v1710_v30 = vadd.f32 %v4243_v6, %v1709_v45  ;;  %v1711_v60 = vpop.f32.mrb[11].mxu0  ;;  %3223 = vrot.lane.b32.xlu1 %v3222_v33, %s3387_s10  ;;  %v2307_v20 = vrot.slane %v4308_v14, 1  ;;  %3218 = vrot.lane.b32.xlu0 %v3217_v57, %s3385_s6  ;;  %v2355_v9 = vrot.slane %v4308_v14, 2 }
 0x1b9   : > { %v3227_v34 = vpack.i.bf16 %v4308_v14, %v4284_v29 }
 0x1ba   : > { %v1838_v21 = vcombine.high %v1748_v63, %v1748_v63  ;;  %v1845_v43 = vrot.slane %v1748_v63, %v3952_v50  ;;  %v1749_v0 = vmax.f32 %v1710_v30, 0.0  ;;  %v2309_v42 = vsel %vm367_vm0, %v2307_v20, %v2308_v52 }
 0x1bb   : > { %v3232_v53 = vpack.i.bf16 %v2309_v42, %v2306_v28  ;;  %v2357_v27 = vsel %vm290_vm1, %v2355_v9, %v2356_v62 }
 0x1bc   : > { %v1852_v16 = vrot.slane %v1838_v21, %v3952_v50  ;;  %v1853_v32 = vcombine.high %v1845_v43, %v1845_v43  ;;  %v2077_v3 = vcombine.low %v1837_v5, %v1845_v43  ;;  %v1855_v4 = vcombine.high %v1749_v0, %v1749_v0  ;;  %3228 = vrot.lane.b32.xlu0 %v3227_v34, %s3384_s26  ;;  %v3374_v5 = vld [vmem:[%s4682_s3 + $0x40] sm:$0xff]  }
 0x1bd   : > { %v1862_v22 = vrot.slane %v1749_v0, %v3952_v50  ;;  %3233 = vrot.lane.b32.xlu1 %v3232_v53, %s3386_s9  ;;  %v3237_v12 = vpack.i.bf16 %v2357_v27, %v2354_v23  ;;  %2713 = vmatpush1.bf16.msra.mxu1 %v3374_v5 }
 0x1be   : > { %v1854_v40 = vcombine.high %v1852_v16, %v1852_v16  ;;  %v2078_v36 = vcombine.low %v1853_v32, %v1852_v16  ;;  %v1869_v24 = vrot.slane %v1855_v4, %v3952_v50  ;;  %v2085_v7 = vrot.slane %v2077_v3, %v3952_v50 }
 0x1bf   : > { %v1870_v2 = vcombine.high %v1862_v22, %v1862_v22 }
 0x1c0   : > { %v2092_v25 = vrot.slane %v2078_v36, %v3952_v50  ;;  %v2100_v47 = vrot.slane %v1854_v40, %v3952_v50  ;;  %v1871_v58 = vcombine.high %v1869_v24, %v1869_v24  ;;  %3238 = vrot.lane.b32.xlu0 %v3237_v12, %s3388_s13 }
 0x1c1   : > { %v2101_v61 = vcombine.low %v1862_v22, %v1870_v2 }
 0x1c2   : > { %v2093_v51 = vcombine.low %v2085_v7, %v2092_v25  ;;  %v2102_v8 = vcombine.low %v1869_v24, %v1871_v58  ;;  %v2272_v46 = vsel %vm1992_vm9, %v2100_v47, 0.0 }
 0x1c3   : > { %v2109_v45 = vrot.slane %v2101_v61, %v3952_v50  ;;  %v2311_v63 = vrot.slane %v2272_v46, 1  ;;  %v2359_v38 = vrot.slane %v2272_v46, 2 }
 0x1c4   : > { %v2116_v26 = vrot.slane %v2102_v8, %v3952_v50  ;;  %v4342_v18 = vsel %vm1985_vm10, %v2093_v51, 0.0 }
 0x1c5   : > { %v3242_v30 = vpack.i.bf16 %v4342_v18, %v4308_v14  ;;  %v2358_v60 = vrot.slane %v4342_v18, 2  ;;  %v2310_v11 = vrot.slane %v4342_v18, 1 }
 0x1c6   : > { %v2117_v37 = vcombine.low %v2109_v45, %v2116_v26 }
 0x1c7   : > { %3243 = vrot.lane.b32.xlu1 %v3242_v30, %s3389_s16  ;;  %v2360_v23 = vsel %vm290_vm1, %v2358_v60, %v2359_v38  ;;  %v2312_v49 = vsel %vm367_vm0, %v2310_v11, %v2311_v63 }
 0x1c8   : > { %v2598_v35 = vpack.c.bf16 %v2360_v23, %v2357_v27  ;;  %v3247_v10 = vpack.i.bf16 %v2312_v49, %v2309_v42  ;;  %v3257_v21 = vpack.i.bf16 %v2360_v23, %v2357_v27  ;;  %v4359_v43 = vsel %vm1985_vm10, %v2117_v37, 0.0 }
 0x1c9   : > { %v3262_v0 = vpack.i.bf16 %v4359_v43, %v4342_v18  ;;  %v2361_v9 = vrot.slane %v4359_v43, 2  ;;  %v2313_v58 = vrot.slane %v4359_v43, 1 }
 0x1ca   : > { %2876 = vmatprep.mubr.msk.bf16.mxu1 %vm864_vm2, %v2598_v35  ;;  %3248 = vrot.lane.b32.xlu0 %v3247_v10, %s3390_s21 }
 0x1cb   : > { %3253 = vrot.lane.b32.xlu1 %v3247_v10, %s3385_s6 }
 0x1ce   : > { %3258 = vrot.lane.b32.xlu0 %v3257_v21, %s3387_s10 }
 0x1cf   : > { %3263 = vrot.lane.b32.xlu1 %v3262_v0, %s3384_s26 }
 0x1d1   : > { %v1714_v33 = vpop.f32.mrb[12].mxu0 }
 0x1d2   : > { %v1715_v28 = vadd.f32 %v4243_v6, %v1714_v33  ;;  %v1716_v16 = vpop.f32.mrb[13].mxu0 }
 0x1d3   : > { %v1717_v32 = vpop.f32.mrb[14].mxu0 }
 0x1d4   : > { %v1750_v3 = vmax.f32 %v1715_v28, 0.0  ;;  %v1718_v4 = vadd.f32 %v4243_v6, %v1717_v32  ;;  %v1719_v59 = vpop.f32.mrb[15].mxu0 }
 0x1d6   : > { %v1872_v52 = vcombine.high %v1750_v3, %v1750_v3  ;;  %v1879_v22 = vrot.slane %v1750_v3, %v3952_v50  ;;  %v1751_v57 = vmax.f32 %v1718_v4, 0.0 }
 0x1d8   : > { %v1886_v20 = vrot.slane %v1872_v52, %v3952_v50  ;;  %v1887_v62 = vcombine.high %v1879_v22, %v1879_v22  ;;  %v2124_v40 = vrot.slane %v1879_v22, %v3952_v50  ;;  %v1889_v36 = vcombine.high %v1751_v57, %v1751_v57 }
 0x1d9   : > { %v1896_v24 = vrot.slane %v1751_v57, %v3952_v50 }
 0x1da   : > { %v2125_v7 = vcombine.low %v1887_v62, %v1886_v20  ;;  %v2274_v2 = vsel %vm1992_vm9, %v2124_v40, 0.0  ;;  %v1888_v42 = vcombine.high %v1886_v20, %v1886_v20  ;;  %v1903_v53 = vrot.slane %v1889_v36, %v3952_v50 }
 0x1db   : > { %v2314_v13 = vrot.slane %v2274_v2, 1  ;;  %v2362_v25 = vrot.slane %v2274_v2, 2  ;;  %v1904_v47 = vcombine.high %v1896_v24, %v1896_v24 }
 0x1dc   : > { %v2126_v61 = vcombine.low %v1888_v42, %v1896_v24  ;;  %v2133_v8 = vrot.slane %v2125_v7, %v3952_v50  ;;  %v1905_v5 = vcombine.high %v1903_v53, %v1903_v53 }
 0x1dd   : > { %v2148_v34 = vrot.slane %v1904_v47, %v3952_v50  ;;  %v4380_v27 = vsel %vm290_vm1, %v2361_v9, %v2362_v25  ;;  %v2315_v51 = vsel %vm367_vm0, %v2313_v58, %v2314_v13 }
 0x1de   : > { %v2140_v12 = vrot.slane %v2126_v61, %v3952_v50  ;;  %v3272_v46 = vpack.i.bf16 %v4380_v27, %v2360_v23  ;;  %v3267_v45 = vpack.i.bf16 %v2315_v51, %v2312_v49  ;;  %v2149_v16 = vcombine.low %v1903_v53, %v1905_v5 }
 0x1df   : > { %v2276_v26 = vsel %vm1992_vm9, %v2148_v34, 0.0 }
 0x1e0   : > { %v2141_v30 = vcombine.low %v2133_v8, %v2140_v12  ;;  %3273 = vrot.lane.b32.xlu1 %v3272_v46, %s3388_s13  ;;  %3268 = vrot.lane.b32.xlu0 %v3267_v45, %s3386_s9  ;;  %v2317_v37 = vrot.slane %v2276_v26, 1  ;;  %v2365_v35 = vrot.slane %v2276_v26, 2  ;;  %v2157_v58 = vrot.slane %v2149_v16, %v3952_v50 }
 0x1e1   : > { %v1722_v63 = vpop.f32.mrb[16].mxu0 }
 0x1e2   : > { %v1724_v60 = vpop.f32.mrb[17].mxu0  ;;  %v1723_v38 = vadd.f32 %v4243_v6, %v1722_v63  ;;  %v4394_v49 = vsel %vm1985_vm10, %v2141_v30, 0.0 }
 0x1e3   : > { %v1725_v11 = vpop.f32.mrb[18].mxu0  ;;  %v3277_v0 = vpack.i.bf16 %v4394_v49, %v4359_v43  ;;  %v2316_v33 = vrot.slane %v4394_v49, 1  ;;  %v2364_v28 = vrot.slane %v4394_v49, 2 }
 0x1e4   : > { %v1726_v10 = vadd.f32 %v4243_v6, %v1725_v11  ;;  %v1727_v23 = vpop.f32.mrb[19].mxu0  ;;  %v1752_v21 = vmax.f32 %v1723_v38, 0.0 }
 0x1e5   : > { %3278 = vrot.lane.b32.xlu0 %v3277_v0, %s3389_s16  ;;  %v2318_v59 = vsel %vm367_vm0, %v2316_v33, %v2317_v37  ;;  %v4404_v52 = vsel %vm290_vm1, %v2364_v28, %v2365_v35 }
 0x1e6   : > { %v1753_v32 = vmax.f32 %v1726_v10, 0.0  ;;  %v1906_v3 = vcombine.high %v1752_v21, %v1752_v21  ;;  %v1913_v4 = vrot.slane %v1752_v21, %v3952_v50  ;;  %v3282_v20 = vpack.i.bf16 %v2318_v59, %v2315_v51 }
 0x1e7   : > { %v3292_v36 = vpack.i.bf16 %v4404_v52, %v4380_v27  ;;  %v2600_v24 = vpack.c.bf16 %v4404_v52, %v4380_v27 }
 0x1e8   : > { %v1923_v22 = vcombine.high %v1753_v32, %v1753_v32  ;;  %v1930_v57 = vrot.slane %v1753_v32, %v3952_v50  ;;  %v1920_v62 = vrot.slane %v1906_v3, %v3952_v50  ;;  %v1921_v40 = vcombine.high %v1913_v4, %v1913_v4  ;;  %3283 = vrot.lane.b32.xlu1 %v3282_v20, %s3390_s21 }
 0x1e9   : > { %3288 = vrot.lane.b32.xlu0 %v3282_v20, %s3385_s6 }
 0x1ea   : > { %v1937_v7 = vrot.slane %v1923_v22, %v3952_v50  ;;  %v1938_v2 = vcombine.high %v1930_v57, %v1930_v57  ;;  %v2150_v42 = vcombine.low %v1913_v4, %v1921_v40  ;;  %v2172_v9 = vrot.slane %v1920_v62, %v3952_v50  ;;  %v4751_v4 = vld [vmem:[#allocation16_spill] sm:$0xff] }
 0x1eb   : > { %v1922_v13 = vcombine.high %v1920_v62, %v1920_v62 }
 0x1ec   : > { %v1939_v25 = vcombine.high %v1937_v7, %v1937_v7  ;;  %v2174_v47 = vcombine.low %v1938_v2, %v1937_v7  ;;  %v2164_v53 = vrot.slane %v2150_v42, %v3952_v50  ;;  %v2278_v34 = vsel %vm1992_vm9, %v2172_v9, 0.0  ;;  %3293 = vrot.lane.b32.xlu1 %v3292_v36, %s3387_s10 }
 0x1ed   : > { %v2173_v61 = vcombine.low %v1922_v13, %v1930_v57  ;;  %v2320_v45 = vrot.slane %v2278_v34, 1  ;;  %v2368_v26 = vrot.slane %v2278_v34, 2 }
 0x1ee   : > { %v2188_v51 = vrot.slane %v2174_v47, %v3952_v50  ;;  %v2196_v8 = vrot.slane %v1939_v25, %v3952_v50  ;;  %v2165_v12 = vcombine.low %v2157_v58, %v2164_v53 }
 0x1ef   : > { %v2181_v46 = vrot.slane %v2173_v61, %v3952_v50 }
 0x1f0   : > { %v4426_v5 = vsel %vm1985_vm10, %v2165_v12, 0.0  ;;  %v2280_v30 = vsel %vm1992_vm9, %v2196_v8, 0.0 }
 0x1f1   : > { %v2189_v63 = vcombine.low %v2181_v46, %v2188_v51  ;;  %v3297_v60 = vpack.i.bf16 %v4426_v5, %v4394_v49  ;;  %v2319_v38 = vrot.slane %v4426_v5, 1  ;;  %v2367_v11 = vrot.slane %v4426_v5, 2 }
 0x1f2   : > { %v2323_v33 = vrot.slane %v2280_v30, 1 }
 0x1f3   : > { %v4436_v37 = vsel %vm1985_vm10, %v2189_v63, 0.0  ;;  %3298 = vrot.lane.b32.xlu0 %v3297_v60, %s3384_s26  ;;  %v2321_v10 = vsel %vm367_vm0, %v2319_v38, %v2320_v45  ;;  %v4443_v23 = vsel %vm290_vm1, %v2367_v11, %v2368_v26 }
 0x1f4   : > { %v3302_v35 = vpack.i.bf16 %v4436_v37, %v3878_v1  ;;  %v3317_v21 = vpack.i.bf16 %v2321_v10, %v2318_v59  ;;  %v3327_v0 = vpack.i.bf16 %v4443_v23, %v4404_v52  ;;  %v3307_v28 = vpack.i.bf16 %v4436_v37, %v4426_v5 }
 0x1f5   : > { %v2322_v16 = vrot.slane %v4436_v37, 1  ;;  %v2370_v32 = vrot.slane %v4436_v37, 2  ;;  %v2371_v1 = vrot.slane %v2280_v30, 2  ;;  %v3312_v22 = vpack.i.bf16 %v2321_v10, %v4751_v4 }
 0x1f6   : > { %3303 = vrot.lane.b32.xlu1 %v3302_v35, %s3384_s26  ;;  %v3322_v13 = vpack.i.bf16 %v4443_v23, %v3868_v31 }
 0x1f7   : > { %3308 = vrot.lane.b32.xlu0 %v3307_v28, %s3389_s16  ;;  %v2324_v59 = vsel %vm367_vm0, %v2322_v16, %v2323_v33  ;;  %v4456_v57 = vsel %vm290_vm1, %v2370_v32, %v2371_v1 }
 0x1f8   : > { %v1730_v3 = vpop.f32.mrb[20].mxu0  ;;  %v3337_v40 = vpack.i.bf16 %v2324_v59, %v2321_v10  ;;  %v2602_v7 = vpack.c.bf16 %v4456_v57, %v4443_v23  ;;  %v3342_v46 = vpack.i.bf16 %v4456_v57, %v4748_v41 }
 0x1f9   : > { %v1731_v20 = vadd.f32 %v4243_v6, %v1730_v3  ;;  %v1732_v62 = vpop.f32.mrb[21].mxu0 }
 0x1fa   : > { %3313 = vrot.lane.b32.xlu1 %v3312_v22, %s3385_s6  ;;  %v1733_v36 = vpop.f32.mrb[22].mxu0 }
 0x1fb   : > { %v1754_v2 = vmax.f32 %v1731_v20, 0.0  ;;  %v1734_v42 = vadd.f32 %v4243_v6, %v1733_v36  ;;  %v1735_v9 = vpop.f32.mrb[23].mxu0  ;;  %3318 = vrot.lane.b32.xlu0 %v3317_v21, %s3386_s9  ;;  %v3332_v6 = vpack.i.bf16 %v2324_v59, %v3887_v54  ;;  %v4501_v21 = vpop.permute.xlu0 %839 }
 0x1fd   : > { %v1940_v25 = vcombine.high %v1754_v2, %v1754_v2  ;;  %v1947_v47 = vrot.slane %v1754_v2, %v3952_v50  ;;  %v1755_v58 = vmax.f32 %v1734_v42, 0.0 }
 0x1fe   : > { %3323 = vrot.lane.b32.xlu1 %v3322_v13, %s3387_s10 }
 0x1ff   : > { %v1954_v53 = vrot.slane %v1940_v25, %v3952_v50  ;;  %v1955_v61 = vcombine.high %v1947_v47, %v1947_v47  ;;  %v1964_v34 = vrot.slane %v1755_v58, %v3952_v50  ;;  %3328 = vrot.lane.b32.xlu0 %v3327_v0, %s3388_s13 }
 0x201   : > { %v1956_v51 = vcombine.high %v1954_v53, %v1954_v53  ;;  %v2197_v8 = vcombine.low %v1947_v47, %v1955_v61  ;;  %v2220_v12 = vrot.slane %v1964_v34, %v3952_v50 }
 0x202   : > { %3333 = vrot.lane.b32.xlu1 %v3332_v6, %s3386_s9 }
 0x203   : > { %v2198_v31 = vcombine.low %v1954_v53, %v1956_v51  ;;  %3338 = vrot.lane.b32.xlu0 %v3337_v40, %s3390_s21  ;;  %v2205_v45 = vrot.slane %v2197_v8, %v3952_v50  ;;  %v2282_v63 = vsel %vm1992_vm9, %v2220_v12, 0.0 }
 0x204   : > { %v2424_v60 = vrot.slane %v2282_v63, 1  ;;  %v2451_v35 = vrot.slane %v2282_v63, 2 }
 0x205   : > { %v2212_v26 = vrot.slane %v2198_v31, %v3952_v50 }
 0x206   : > { %3343 = vrot.lane.b32.xlu1 %v3342_v46, %s3388_s13 }
 0x207   : > { %v2213_v54 = vcombine.low %v2205_v45, %v2212_v26 }
 0x209   : > { %v2281_v30 = vsel %vm1985_vm10, %v2213_v54, 0.0 }
 0x20a   : > { %2339 = vrot.lane.b32.xlu1 %v2324_v59, %s3385_s6  ;;  %v3347_v38 = vpack.i.bf16 %v2281_v30, %v3912_v56  ;;  %v2423_v11 = vrot.slane %v2281_v30, 1  ;;  %v2450_v41 = vrot.slane %v2281_v30, 2 }
 0x20c   : > { %3348 = vrot.lane.b32.xlu0 %v3347_v38, %s3389_s16  ;;  %v2425_v10 = vsel %vm367_vm0, %v2423_v11, %v2424_v60  ;;  %v4489_v48 = vsel %vm290_vm1, %v2450_v41, %v2451_v35 }
 0x20d   : > { %v3352_v44 = vpack.i.bf16 %v4293_v55, %v2425_v10 }
 0x20e   : > { %2387 = vrot.lane.b32.xlu1 %v4456_v57, %s3387_s10 }
 0x210   : > { %2412 = vrot.lane.b32.xlu0 %v2281_v30, %s3384_s26 }
 0x212   : > { %2440 = vrot.lane.b32.xlu1 %v2425_v10, %s3386_s9  ;;  %s2882_s9 = sshll.u32 %s4783_s19, 5 }
 0x214   : > { %2467 = vrot.lane.b32.xlu0 %v4489_v48, %s3388_s13 }
 0x216   : > { %2492 = vrot.lane.b32.xlu1 %v3392_v15, %s3389_s16  ;;  %s4622_s16 = scalar_lea.vmem %s4684_s5, %s2882_s9 }
 0x218   : > { %3353 = vrot.lane.b32.xlu0 %v3352_v44, %s3390_s21 }
 0x22a   : > { %v3224_v0 = vpop.permute.xlu1 %3223  ;;  %v3219_v33 = vpop.permute.xlu0 %3218 }
 0x22b   : > { %v3221_v28 = vunpack.i.h.bf16 %v3219_v33  ;;  %v3220_v16 = vunpack.i.l.bf16 %v3219_v33  ;;  %v3226_v32 = vunpack.i.h.bf16 %v3224_v0  ;;  %v3225_v1 = vunpack.i.l.bf16 %v3224_v0 }
 0x22d   : > { %v2542_v22 = vsel %vm864_vm2, %v4284_v29, %v3221_v28  ;;  %v2541_v55 = vsel %vm864_vm2, 0.0, %v3220_v16 }
 0x22e   : > { %v3229_v4 = vpop.permute.xlu0 %3228  ;;  %v2549_v15 = vsel %vm885_vm3, %v2541_v55, %v3225_v1  ;;  %v2550_v36 = vsel %vm885_vm3, %v2542_v22, %v3226_v32 }
 0x22f   : > { %v3234_v3 = vpop.permute.xlu1 %3233  ;;  %v3231_v59 = vunpack.i.h.bf16 %v3229_v4  ;;  %v3230_v20 = vunpack.i.l.bf16 %v3229_v4 }
 0x230   : > { %v3236_v62 = vunpack.i.h.bf16 %v3234_v3  ;;  %v3235_v40 = vunpack.i.l.bf16 %v3234_v3 }
 0x231   : > { %v2557_v9 = vsel %vm906_vm4, %v2549_v15, %v3230_v20  ;;  %v2558_v13 = vsel %vm906_vm4, %v2550_v36, %v3231_v59 }
 0x232   : > { %v3239_v2 = vpop.permute.xlu0 %3238  ;;  %v2565_v53 = vsel %vm927_vm5, %v2557_v9, %v3235_v40  ;;  %v2566_v61 = vsel %vm927_vm5, %v2558_v13, %v3236_v62 }
 0x233   : > { %v3241_v25 = vunpack.i.h.bf16 %v3239_v2  ;;  %v3240_v47 = vunpack.i.l.bf16 %v3239_v2 }
 0x235   : > { %v2573_v6 = vsel %vm948_vm6, %v2565_v53, %v3240_v47  ;;  %v2574_v51 = vsel %vm948_vm6, %v2566_v61, %v3241_v25 }
 0x239   : > { %v3244_v42 = vpop.permute.xlu1 %3243 }
 0x23a   : > { %v3246_v58 = vunpack.i.h.bf16 %v3244_v42  ;;  %v3245_v29 = vunpack.i.l.bf16 %v3244_v42 }
 0x23c   : > { %v3249_v34 = vpop.permute.xlu0 %3248  ;;  %v2581_v31 = vsel %vm969_vm7, %v2573_v6, %v3245_v29  ;;  %v2582_v46 = vsel %vm969_vm7, %v2574_v51, %v3246_v58 }
 0x23d   : > { %v3251_v8 = vunpack.i.h.bf16 %v3249_v34  ;;  %v3250_v12 = vunpack.i.l.bf16 %v3249_v34  ;;  %v3254_v54 = vpop.permute.xlu1 %3253 }
 0x23e   : > { %v3256_v60 = vunpack.i.h.bf16 %v3254_v54  ;;  %v3255_v38 = vunpack.i.l.bf16 %v3254_v54 }
 0x23f   : > { %v2589_v45 = vsel %vm990_vm8, %v2581_v31, %v3250_v12  ;;  %v2590_v26 = vsel %vm990_vm8, %v2582_v46, %v3251_v8 }
 0x240   : > { %v2597_v63 = vpack.c.bf16 %v2590_v26, %v2589_v45  ;;  %v3259_v30 = vpop.permute.xlu0 %3258  ;;  %v2544_v44 = vsel %vm864_vm2, %v4342_v18, %v3256_v60  ;;  %v2543_v0 = vsel %vm864_vm2, %v4308_v14, %v3255_v38 }
 0x241   : > { %v3261_v11 = vunpack.i.h.bf16 %v3259_v30  ;;  %v3260_v41 = vunpack.i.l.bf16 %v3259_v30  ;;  %v3264_v35 = vpop.permute.xlu1 %3263 }
 0x242   : > { %2729 = vmatmul.mubr.bf16.vlgmr.msra.gmra.mrb[0].mxu1 %v2597_v63  ;;  %v3266_v33 = vunpack.i.h.bf16 %v3264_v35  ;;  %v3265_v28 = vunpack.i.l.bf16 %v3264_v35 }
 0x243   : > { %2877 = vmatprep.mubr.msk.bf16.mxu1 %vm864_vm2, %v2600_v24  ;;  %v2552_v27 = vsel %vm885_vm3, %v2544_v44, %v3261_v11  ;;  %v2551_v52 = vsel %vm885_vm3, %v2543_v0, %v3260_v41 }
 0x244   : > { %v2559_v1 = vsel %vm906_vm4, %v2551_v52, %v3265_v28  ;;  %v2560_v3 = vsel %vm906_vm4, %v2552_v27, %v3266_v33 }
 0x252   : > { %v3269_v10 = vpop.permute.xlu0 %3268  ;;  %v3274_v24 = vpop.permute.xlu1 %3273 }
 0x253   : > { %v3271_v16 = vunpack.i.h.bf16 %v3269_v10  ;;  %v3270_v32 = vunpack.i.l.bf16 %v3269_v10  ;;  %v3276_v4 = vunpack.i.h.bf16 %v3274_v24  ;;  %v3275_v22 = vunpack.i.l.bf16 %v3274_v24 }
 0x255   : > { %v2567_v18 = vsel %vm927_vm5, %v2559_v1, %v3270_v32  ;;  %v2568_v14 = vsel %vm927_vm5, %v2560_v3, %v3271_v16 }
 0x256   : > { %v2575_v62 = vsel %vm948_vm6, %v2567_v18, %v3275_v22  ;;  %v2576_v40 = vsel %vm948_vm6, %v2568_v14, %v3276_v4  ;;  %v4752_v14 = vld [vmem:[#allocation15_spill] sm:$0xff] }
 0x257   : > { %v3279_v55 = vpop.permute.xlu0 %3278 }
 0x258   : > { %v3281_v59 = vunpack.i.h.bf16 %v3279_v55  ;;  %v3280_v20 = vunpack.i.l.bf16 %v3279_v55 }
 0x25a   : > { %v3284_v15 = vpop.permute.xlu1 %3283  ;;  %v2583_v42 = vsel %vm969_vm7, %v2575_v62, %v3280_v20  ;;  %v2584_v9 = vsel %vm969_vm7, %v2576_v40, %v3281_v59 }
 0x25b   : > { %v3286_v36 = vunpack.i.h.bf16 %v3284_v15  ;;  %v3285_v2 = vunpack.i.l.bf16 %v3284_v15  ;;  %v3289_v58 = vpop.permute.xlu0 %3288  ;;  %v2604_v15 = vpack.c.bf16 %v4288_v17, %v4489_v48 }
 0x25c   : > { %v3291_v51 = vunpack.i.h.bf16 %v3289_v58  ;;  %v3290_v8 = vunpack.i.l.bf16 %v3289_v58 }
 0x25d   : > { %v2591_v13 = vsel %vm990_vm8, %v2583_v42, %v3285_v2  ;;  %v2592_v25 = vsel %vm990_vm8, %v2584_v9, %v3286_v36 }
 0x25e   : > { %v2599_v47 = vpack.c.bf16 %v2592_v25, %v2591_v13  ;;  %v3294_v29 = vpop.permute.xlu1 %3293  ;;  %v2546_v23 = vsel %vm864_vm2, %v4394_v49, %v3291_v51  ;;  %v2545_v57 = vsel %vm864_vm2, %v4359_v43, %v3290_v8 }
 0x25f   : > { %v3296_v12 = vunpack.i.h.bf16 %v3294_v29  ;;  %v3295_v31 = vunpack.i.l.bf16 %v3294_v29 }
 0x260   : > { %2737 = vmatmul.mubr.bf16.gmra.mrb[4].mxu1 %v2599_v47 }
 0x261   : > { %2878 = vmatprep.mubr.msk.bf16.mxu1 %vm864_vm2, %v2602_v7  ;;  %v2553_v7 = vsel %vm885_vm3, %v2545_v57, %v3295_v31  ;;  %v2554_v60 = vsel %vm885_vm3, %v2546_v23, %v3296_v12 }
 0x265   : > { %v3299_v53 = vpop.permute.xlu0 %3298 }
 0x266   : > { %v3301_v45 = vunpack.i.h.bf16 %v3299_v53  ;;  %v3300_v26 = vunpack.i.l.bf16 %v3299_v53 }
 0x268   : > { %v4542_v61 = vpop.permute.xlu1 %3303  ;;  %v2561_v11 = vsel %vm906_vm4, %v2553_v7, %v3300_v26  ;;  %v2562_v41 = vsel %vm906_vm4, %v2554_v60, %v3301_v45  ;;  %v1282_v45 = vcombine.high %v4228_v19, %v4228_v19 }
 0x269   : > { %v3309_v34 = vpop.permute.xlu0 %3308  ;;  %v3305_v36 = vunpack.i.l.bf16 %v4542_v61  ;;  %v3306_v56 = vunpack.i.h.bf16 %v4542_v61 }
 0x26a   : > { %v3311_v28 = vunpack.i.h.bf16 %v3309_v34  ;;  %v3310_v27 = vunpack.i.l.bf16 %v3309_v34 }
 0x26c   : > { %v4544_v6 = vpop.permute.xlu1 %3313 }
 0x26d   : > { %v3319_v46 = vpop.permute.xlu0 %3318  ;;  %v3315_v52 = vunpack.i.l.bf16 %v4544_v6  ;;  %v3316_v17 = vunpack.i.h.bf16 %v4544_v6 }
 0x26e   : > { %v3321_v63 = vunpack.i.h.bf16 %v3319_v46  ;;  %v3320_v54 = vunpack.i.l.bf16 %v3319_v46 }
 0x26f   : > { %v884_v59 = vsel %vm864_vm2, %v4752_v14, %v3315_v52  ;;  %v2547_v6 = vsel %vm864_vm2, %v4426_v5, %v3316_v17 }
 0x270   : > { %v3324_v30 = vpop.permute.xlu1 %3323  ;;  %v2569_v44 = vsel %vm927_vm5, %v2561_v11, %v3320_v54  ;;  %v2570_v0 = vsel %vm927_vm5, %v2562_v41, %v3321_v63 }
 0x271   : > { %v3329_v38 = vpop.permute.xlu0 %3328  ;;  %v3325_v16 = vunpack.i.l.bf16 %v3324_v30  ;;  %v3326_v53 = vunpack.i.h.bf16 %v3324_v30 }
 0x272   : > { %v3331_v35 = vunpack.i.h.bf16 %v3329_v38  ;;  %v3330_v10 = vunpack.i.l.bf16 %v3329_v38 }
 0x273   : > { %v905_v62 = vsel %vm885_vm3, %v884_v59, %v3325_v16  ;;  %v2555_v63 = vsel %vm885_vm3, %v2547_v6, %v3326_v53  ;;  %v4755_v16 = vld [vmem:[#allocation4_spill] sm:$0xff]  ;;  %v4763_v53 = vld [vmem:[#allocation7_spill] sm:$0xff] }
 0x274   : > { %v3334_v33 = vpop.permute.xlu1 %3333  ;;  %v2577_v49 = vsel %vm948_vm6, %v2569_v44, %v3330_v10  ;;  %v2578_v43 = vsel %vm948_vm6, %v2570_v0, %v3331_v35  ;;  %v926_v9 = vsel %vm906_vm4, %v905_v62, %v3305_v36  ;;  %v2563_v19 = vsel %vm906_vm4, %v2555_v63, %v3306_v56 }
 0x275   : > { %v3339_v24 = vpop.permute.xlu0 %3338  ;;  %v2585_v4 = vsel %vm969_vm7, %v2577_v49, %v3310_v27  ;;  %v2586_v22 = vsel %vm969_vm7, %v2578_v43, %v3311_v28  ;;  %v3335_v40 = vunpack.i.l.bf16 %v3334_v33  ;;  %v3336_v54 = vunpack.i.h.bf16 %v3334_v33  ;;  %v4753_v27 = vld [vmem:[#allocation3_spill] sm:$0xff] }
 0x276   : > { %v3341_v32 = vunpack.i.h.bf16 %v3339_v24  ;;  %v3340_v1 = vunpack.i.l.bf16 %v3339_v24  ;;  %v4754_v52 = vunpack.c.h.bf16 %v4753_v27 }
 0x277   : > { %v947_v25 = vsel %vm927_vm5, %v926_v9, %v3335_v40  ;;  %v2571_v38 = vsel %vm927_vm5, %v2563_v19, %v3336_v54 }
 0x278   : > { %v3344_v3 = vpop.permute.xlu1 %3343  ;;  %v2593_v55 = vsel %vm990_vm8, %v2585_v4, %v3340_v1  ;;  %v2594_v18 = vsel %vm990_vm8, %v2586_v22, %v3341_v32  ;;  %v291_v24 = vrot.slane %v4754_v52, 2  ;;  %v4756_v32 = vunpack.c.l.bf16 %v4755_v16  ;;  %v4757_v4 = vld [vmem:[#allocation2_spill] sm:$0xff] }
 0x279   : > { %v2601_v20 = vpack.c.bf16 %v2594_v18, %v2593_v55  ;;  %v3345_v2 = vunpack.i.l.bf16 %v3344_v3  ;;  %v4758_v22 = vunpack.c.h.bf16 %v4757_v4  ;;  %v4759_v18 = vld [vmem:[#allocation5_spill] sm:$0xff] }
 0x27a   : > { %v292_v1 = vrot.slane %v4756_v32, 2  ;;  %v4760_v14 = vunpack.c.l.bf16 %v4759_v18 }
 0x27b   : > { %2745 = vmatmul.mubr.bf16.gmra.mrb[8].mxu1 %v2601_v20  ;;  %v968_v58 = vsel %vm948_vm6, %v947_v25, %v3345_v2  ;;  %v294_v55 = vrot.slane %v4758_v22, 2  ;;  %v4775_v22 = vld [vmem:[#allocation12_spill] sm:$0xff] }
 0x27c   : > { %v2340_v42 = vpop.permute.xlu1 %2339  ;;  %2879 = vmatprep.mubr.msk.bf16.mxu1 %vm864_vm2, %v2604_v15  ;;  %v295_v59 = vrot.slane %v4760_v14, 2  ;;  %v293_v20 = vsel %vm290_vm1, %v291_v24, %v292_v1  ;;  %v4777_v14 = vld [vmem:[#allocation13_spill] sm:$0xff] }
 0x27d   : > { %v2548_v8 = vsel %vm864_vm2, %v4436_v37, %v2340_v42 }
 0x27e   : > { %v3349_v13 = vpop.permute.xlu0 %3348  ;;  %v296_v36 = vsel %vm290_vm1, %v294_v55, %v295_v59  ;;  %v4776_v55 = vunpack.c.l.bf16 %v4775_v22  ;;  %v4778_v59 = vunpack.c.l.bf16 %v4777_v14 }
 0x27f   : > { %v3350_v47 = vunpack.i.l.bf16 %v3349_v13  ;;  %v3351_v23 = vunpack.i.h.bf16 %v3349_v13 }
 0x280   : > { %v2388_v29 = vpop.permute.xlu1 %2387  ;;  %v309_v18 = vrot.slane %v4776_v55, 2 }
 0x281   : > { %v989_v48 = vsel %vm969_vm7, %v968_v58, %v3350_v47  ;;  %v2556_v31 = vsel %vm885_vm3, %v2548_v8, %v2388_v29  ;;  %v4761_v29 = vld [vmem:[#allocation6_spill] sm:$0xff] }
 0x282   : > { %v1010_v34 = vsel %vm990_vm8, %v989_v48, %v4501_v21  ;;  %v2413_v51 = vpop.permute.xlu0 %2412  ;;  %v4762_v17 = vunpack.c.l.bf16 %v4761_v29  ;;  %v4765_v8 = vunpack.c.h.bf16 %v4761_v29 }
 0x283   : > { %v1283_v12 = vcombine.low %v1010_v34, %v862_v39  ;;  %v2564_v21 = vsel %vm906_vm4, %v2556_v31, %v2413_v51  ;;  %v3346_v39 = vunpack.i.h.bf16 %v3344_v3  ;;  %v4608_v3 = vld [vmem:[%s4683_s4] ss:$0 sm:$0xff]  ;;  %v4764_v34 = vunpack.c.l.bf16 %v4763_v53  ;;  %v4766_v31 = vld [vmem:[#allocation8_spill] sm:$0xff] }
 0x284   : > { %v2441_v46 = vpop.permute.xlu1 %2440  ;;  %v297_v48 = vrot.slane %v4762_v17, 2 }
 0x285   : > { %v1290_v26 = vrot.slane %v1283_v12, %v3952_v50  ;;  %v2572_v57 = vsel %vm927_vm5, %v2564_v21, %v2441_v46  ;;  %v2579_v41 = vsel %vm948_vm6, %v2571_v38, %v3346_v39  ;;  %v298_v51 = vrot.slane %v4764_v34, 2  ;;  %v4770_v38 = vld [vmem:[#allocation10_spill] sm:$0xff] }
 0x286   : > { %v2468_v37 = vpop.permute.xlu0 %2467  ;;  %v2587_v44 = vsel %vm969_vm7, %v2579_v41, %v3351_v23  ;;  %v300_v12 = vrot.slane %v4765_v8, 2  ;;  %v4767_v46 = vunpack.c.l.bf16 %v4766_v31 }
 0x287   : > { %v1507_v30 = vcombine.low %v1282_v45, %v1290_v26  ;;  %v2580_v7 = vsel %vm948_vm6, %v2572_v57, %v2468_v37  ;;  %v299_v6 = vsel %vm290_vm1, %v297_v48, %v298_v51 }
 0x288   : > { %v2493_v5 = vpop.permute.xlu1 %2492  ;;  %v301_v45 = vrot.slane %v4767_v46, 2 }
 0x289   : > { %v1514_v60 = vrot.slane %v1507_v30, %v3952_v50  ;;  %v2588_v0 = vsel %vm969_vm7, %v2580_v7, %v2493_v5  ;;  %v4768_v7 = vld [vmem:[#allocation9_spill] sm:$0xff] }
 0x28a   : > { %v3354_v11 = vpop.permute.xlu0 %3353  ;;  %v302_v54 = vsel %vm290_vm1, %v300_v12, %v301_v45  ;;  %v4769_v5 = vunpack.c.l.bf16 %v4768_v7 }
 0x28b   : > { %v3356_v35 = vunpack.i.h.bf16 %v3354_v11  ;;  %v3355_v10 = vunpack.i.l.bf16 %v3354_v11  ;;  %v1515_v61 = vcombine.high %v1514_v60, %v1514_v60  ;;  %v1554_v28 = vpack.c.bf16 %v1514_v60, %v1514_v60 }
 0x28c   : > { %v303_v60 = vrot.slane %v4769_v5, 2  ;;  %v4771_v11 = vunpack.c.l.bf16 %v4770_v38 }
 0x28d   : > { %v1555_v33 = vpack.c.bf16 %v1515_v61, %v1515_v61  ;;  %v2595_v49 = vsel %vm990_vm8, %v2587_v44, %v3355_v10  ;;  %v2596_v43 = vsel %vm990_vm8, %v2588_v0, %v3356_v35  ;;  %v4772_v35 = vunpack.c.h.bf16 %v4768_v7  ;;  %v4773_v61 = vld [vmem:[#allocation11_spill] sm:$0xff] }
 0x28e   : > { %v2603_v50 = vpack.c.bf16 %v2596_v43, %v2595_v49  ;;  %v304_v41 = vrot.slane %v4771_v11, 2  ;;  %v4774_v44 = vunpack.c.l.bf16 %v4773_v61 }
 0x28f   : > { %2865 = vmatprep.mubr.msk.bf16.mxu0 %vm864_vm2, %v1555_v33  ;;  %v306_v10 = vrot.slane %v4772_v35, 2 }
 0x290   : > { %1737 = vmatmul.mubr.bf16.gmra.mrb[24].mxu0 %v1554_v28  ;;  %2753 = vmatmul.mubr.bf16.gmra.mrb[12].mxu1 %v2603_v50  ;;  %v307_v0 = vrot.slane %v4774_v44, 2  ;;  %v305_v33 = vsel %vm290_vm1, %v303_v60, %v304_v41 }
 0x292   : > { %v308_v50 = vsel %vm290_vm1, %v306_v10, %v307_v0 }
 0x315   : > { %v2730_v15 = vpop.f32.mrb[0].mxu1 }
 0x316   : > { %v2731_v62 = vadd.f32 %v4608_v3, %v2730_v15  ;;  %v2732_v40 = vpop.f32.mrb[1].mxu1  ;;  %v4779_v15 = vunpack.c.h.bf16 %v4775_v22 }
 0x317   : > { %v2733_v2 = vpop.f32.mrb[2].mxu1  ;;  %v4780_v40 = vld [vmem:[#allocation14_spill] sm:$0xff] }
 0x318   : > { %v2761_v42 = vadd.f32 %v2731_v62, %v293_v20  ;;  %v2734_v9 = vadd.f32 %v4608_v3, %v2733_v2  ;;  %v2735_v13 = vpop.f32.mrb[3].mxu1  ;;  %v310_v20 = vrot.slane %v4778_v59, 2  ;;  %v312_v62 = vrot.slane %v4779_v15, 2 }
 0x31a   : > { %v2769_v25 = vpack.c.bf16 %v2761_v42, %v2761_v42  ;;  %v2762_v47 = vadd.f32 %v2734_v9, %v296_v36  ;;  %v4781_v36 = vunpack.c.l.bf16 %v4780_v40  ;;  %v311_v9 = vsel %vm290_vm1, %v309_v18, %v310_v20 }
 0x31c   : > { %2778 = vst.msk [vmem:[%s4622_s16] sm:$0xf] %vm2777_vm11, %v2769_v25  ;;  %v2770_v58 = vpack.c.bf16 %v2762_v47, %v2762_v47  ;;  %v313_v2 = vrot.slane %v4781_v36, 2 }
 0x31e   : > { %2779 = vst.msk [vmem:[%s4622_s16 + $0x4] sm:$0xf] %vm2777_vm11, %v2770_v58  ;;  %v314_v17 = vsel %vm290_vm1, %v312_v62, %v313_v2 }
 0x333   : > { %v2738_v26 = vpop.f32.mrb[4].mxu1 }
 0x334   : > { %v2739_v21 = vadd.f32 %v4608_v3, %v2738_v26  ;;  %v2740_v63 = vpop.f32.mrb[5].mxu1 }
 0x335   : > { %v2741_v37 = vpop.f32.mrb[6].mxu1 }
 0x336   : > { %v2763_v56 = vadd.f32 %v2739_v21, %v299_v6  ;;  %v2742_v39 = vadd.f32 %v4608_v3, %v2741_v37  ;;  %v2743_v30 = vpop.f32.mrb[7].mxu1 }
 0x338   : > { %v2771_v23 = vpack.c.bf16 %v2763_v56, %v2763_v56  ;;  %v2764_v57 = vadd.f32 %v2742_v39, %v302_v54 }
 0x33a   : > { %2780 = vst.msk [vmem:[%s4622_s16 + $0x8] sm:$0xf] %vm2777_vm11, %v2771_v23  ;;  %v2772_v19 = vpack.c.bf16 %v2764_v57, %v2764_v57 }
 0x33c   : > { %2781 = vst.msk [vmem:[%s4622_s16 + $0xc] sm:$0xf] %vm2777_vm11, %v2772_v19 }
 0x34e   : > { %v2746_v49 = vpop.f32.mrb[8].mxu1 }
 0x34f   : > { %v2747_v43 = vadd.f32 %v4608_v3, %v2746_v49  ;;  %v2748_v28 = vpop.f32.mrb[9].mxu1 }
 0x350   : > { %v2749_v27 = vpop.f32.mrb[10].mxu1 }
 0x351   : > { %v2765_v52 = vadd.f32 %v2747_v43, %v305_v33  ;;  %v2750_v24 = vadd.f32 %v4608_v3, %v2749_v27  ;;  %v2751_v16 = vpop.f32.mrb[11].mxu1 }
 0x353   : > { %v2773_v32 = vpack.c.bf16 %v2765_v52, %v2765_v52  ;;  %v2766_v1 = vadd.f32 %v2750_v24, %v308_v50 }
 0x355   : > { %2782 = vst.msk [vmem:[%s4622_s16 + $0x10] sm:$0xf] %vm2777_vm11, %v2773_v32  ;;  %v2774_v4 = vpack.c.bf16 %v2766_v1, %v2766_v1 }
 0x357   : > { %2783 = vst.msk [vmem:[%s4622_s16 + $0x14] sm:$0xf] %vm2777_vm11, %v2774_v4 }
 0x363   : > { %v1738_v42 = vpop.f32.mrb[24].mxu0  ;;  %v2754_v13 = vpop.f32.mrb[12].mxu1 }
 0x364   : > { %v2755_v25 = vadd.f32 %v4608_v3, %v2754_v13  ;;  %v1740_v47 = vpop.f32.mrb[25].mxu0  ;;  %v2756_v58 = vpop.f32.mrb[13].mxu1 }
 0x365   : > { %v1741_v29 = vpop.f32.mrb[26].mxu0  ;;  %v2757_v48 = vpop.f32.mrb[14].mxu1 }
 0x366   : > { %v2767_v53 = vadd.f32 %v2755_v25, %v311_v9  ;;  %v2758_v34 = vadd.f32 %v4608_v3, %v2757_v48  ;;  %v1742_v51 = vpop.f32.mrb[27].mxu0  ;;  %v2759_v8 = vpop.f32.mrb[15].mxu1 }
 0x368   : > { %v2775_v12 = vpack.c.bf16 %v2767_v53, %v2767_v53  ;;  %v2768_v31 = vadd.f32 %v2758_v34, %v314_v17 }
 0x36a   : > { %2784 = vst.msk [vmem:[%s4622_s16 + $0x18] sm:$0xf] %vm2777_vm11, %v2775_v12  ;;  %v2776_v46 = vpack.c.bf16 %v2768_v31, %v2768_v31 }
 0x36c   : > { %2785 = vst.msk [vmem:[%s4622_s16 + $0x1c] sm:$0xf] %vm2777_vm11, %v2776_v46 }
 0x36d PF: > { %s15_s18 = sadd.s32 1, %s3381_s18  }
 0x36e   : > { %p12_p4 = scmp.ge.s32.totalorder %s15_s18, 4  }
 0x370   :  { %14 = sbr.rel (!%p12_p4) target bundleno = 1 (0x1), region = 70 }

</bundles_post_ra>
